<compile_context>
chip_gen: v6e
topology: v6e:2x2x1
jax: 0.10.0
libtpu: 0.0.40
codegen_flags: <defaults>
</compile_context>

<pallas_src>
import numpy as np
import jax
import jax.numpy as jnp
from jax.experimental import pallas as pl
from jax.experimental.pallas import tpu as pltpu

IN_CH = 63          # input_ch (positional-embedded light_pts)
W_HID = 256
HALF = 128          # W // 2
LAT_DIM = 128       # nn.Embedding dim
IN_PAD = 128        # 63 padded to a lane multiple
OUT_PAD = 128       # rgb (3) padded to a lane multiple
N_PTS_LAYERS = 8    # D = 8 -> pts_linears has 8 layers (skip feeds layer 5)


def _dot(x_f32, w_ref):
    # bf16 MXU matmul with f32 accumulation.
    return jnp.dot(x_f32.astype(jnp.bfloat16), w_ref[...],
                   preferred_element_type=jnp.float32)


def color_mlp_kernel(x_ref, latb_ref,
                     w0, b0, w1, b1, w2, b2, w3, b3, w4, b4,
                     w5a, w5b, b5, w6, b6, w7, b7,
                     wfe, bfe, wfc, wv, bv, wr, br,
                     out_ref):
    xin = x_ref[...]                                    # (tn, 128) f32; cols 63.. are zero

    def lin(a, w, b):
        return _dot(a, w) + b[...]

    relu = lambda v: jnp.maximum(v, 0.0)

    x = relu(lin(xin, w0, b0))                          # pts_linears[0]: 63 -> 256
    x = relu(lin(x, w1, b1))                            # pts_linears[1]
    x = relu(lin(x, w2, b2))                            # pts_linears[2]
    x = relu(lin(x, w3, b3))                            # pts_linears[3]
    x = relu(lin(x, w4, b4))                            # pts_linears[4]
    # skip: cat([input, h], -1) @ W5  ==  input @ W5[:63] + h @ W5[63:]
    x = relu(_dot(xin, w5a) + lin(x, w5b, b5))          # pts_linears[5]: 319 -> 256
    x = relu(lin(x, w6, b6))                            # pts_linears[6]
    x = relu(lin(x, w7, b7))                            # pts_linears[7]

    feat = lin(x, wfe, bfe)                             # feature_linear (no ReLU)
    # latent_fc: features half + per-frame (latent @ W_fc[256:] + b_fc) bias; no ReLU
    g = _dot(feat, wfc) + latb_ref[0]                   # (tn, 256)
    h = relu(lin(g, wv, bv))                            # views_linears[0]: 256 -> 128
    out_ref[...] = lin(h, wr, br)                       # rgb_linear (padded to 128 lanes)


def _init_linear(key, fan_in, fan_out):
    # PyTorch-default-style nn.Linear init; weight stored (in, out), bias (1, out).
    kw, kb = jax.random.split(key)
    bound = 1.0 / np.sqrt(fan_in)
    w = jax.random.uniform(kw, (fan_in, fan_out), jnp.float32, -bound, bound)
    b = jax.random.uniform(kb, (1, fan_out), jnp.float32, -bound, bound)
    return w, b


def init_params(key, num_train_frame):
    keys = jax.random.split(key, 13)
    pts_in = [IN_CH] + [W_HID] * 4 + [W_HID + IN_CH] + [W_HID] * 2
    pts = [_init_linear(keys[i], pts_in[i], W_HID) for i in range(N_PTS_LAYERS)]
    return {
        "pts": pts,
        "feature": _init_linear(keys[8], W_HID, W_HID),
        "latent_fc": _init_linear(keys[9], W_HID + LAT_DIM, W_HID),
        "views": _init_linear(keys[10], W_HID, HALF),
        "rgb": _init_linear(keys[11], HALF, 3),
        "embedding": jax.random.normal(keys[12], (num_train_frame, LAT_DIM), jnp.float32),
    }


def color_network_forward(light_pts, viewdir, latent_index, params, *, tn=256):
    """light_pts: (B, N, 63) f32; latent_index: (B,) int32. Returns (B, N, 3).

    `viewdir` is accepted for API parity with the PyTorch module but is unused
    (the original forward never touches it).
    """
    del viewdir
    B, N, cin = light_pts.shape
    assert cin == IN_CH
    assert N % tn == 0, f"N ({N}) must be a multiple of tn ({tn})"
    tiles = N // tn

    # ---- trace-time weight prep: pad ragged dims, cast matmul operands to bf16 ----
    def bf16(a):
        return a.astype(jnp.bfloat16)

    pts = params["pts"]
    w0 = bf16(jnp.pad(pts[0][0], ((0, IN_PAD - IN_CH), (0, 0))))
    w5 = pts[5][0]                                  # (319, 256): rows 0..62 input, 63.. hidden
    w5a = bf16(jnp.pad(w5[:IN_CH], ((0, IN_PAD - IN_CH), (0, 0))))
    w5b = bf16(w5[IN_CH:])
    wfe, bfe = params["feature"]
    wfc_full, bfc = params["latent_fc"]
    wfc = bf16(wfc_full[:W_HID])                    # features half of latent_fc
    wv, bv = params["views"]
    wr_raw, br_raw = params["rgb"]
    wr = bf16(jnp.pad(wr_raw, ((0, 0), (0, OUT_PAD - 3))))
    br = jnp.pad(br_raw, ((0, 0), (0, OUT_PAD - 3)))

    # Per-frame latent bias (tiny, plain JAX): latent @ W_fc[256:] + b_fc
    lat = params["embedding"][latent_index]                          # (B, 128)
    lat_bias = (lat @ wfc_full[W_HID:] + bfc).reshape(B, 1, W_HID)   # (B, 1, 256) f32

    # Input: flatten batch, zero-pad features 63 -> 128 lanes.
    x = jnp.pad(light_pts.reshape(B * N, IN_CH), ((0, 0), (0, IN_PAD - IN_CH)))

    flat_args = [x, lat_bias]
    flat_specs = [
        pl.BlockSpec((tn, IN_PAD), lambda b, j: (b * tiles + j, 0)),
        pl.BlockSpec((1, 1, W_HID), lambda b, j: (b, 0, 0)),
    ]

    def add(arr):
        flat_args.append(arr)
        flat_specs.append(pl.BlockSpec(arr.shape, lambda b, j: (0,) * arr.ndim))

    add(w0); add(pts[0][1])
    for l in range(1, 5):
        add(bf16(pts[l][0])); add(pts[l][1])
    add(w5a); add(w5b); add(pts[5][1])
    for l in range(6, 8):
        add(bf16(pts[l][0])); add(pts[l][1])
    add(bf16(wfe)); add(bfe)
    add(wfc)
    add(bf16(wv)); add(bv)
    add(wr); add(br)

    # Advisory cost estimate so XLA schedules around the custom call sensibly.
    macs_per_pt = (IN_PAD * W_HID                       # pts 0
                   + 4 * W_HID * W_HID                  # pts 1-4
                   + IN_PAD * W_HID + W_HID * W_HID     # pts 5 (skip)
                   + 2 * W_HID * W_HID                  # pts 6-7
                   + W_HID * W_HID                      # feature_linear
                   + W_HID * W_HID                      # latent_fc (features half)
                   + W_HID * HALF                       # views_linears[0]
                   + HALF * OUT_PAD)                    # rgb_linear (padded)
    bytes_accessed = sum(int(np.prod(a.shape)) * a.dtype.itemsize for a in flat_args)
    bytes_accessed += B * N * OUT_PAD * 4
    cost = pl.CostEstimate(flops=2 * macs_per_pt * B * N, transcendentals=0,
                           bytes_accessed=int(bytes_accessed))

    out = pl.pallas_call(
        color_mlp_kernel,
        out_shape=jax.ShapeDtypeStruct((B * N, OUT_PAD), jnp.float32),
        grid_spec=pltpu.PrefetchScalarGridSpec(
            num_scalar_prefetch=0,
            grid=(B, tiles),
            in_specs=flat_specs,
            out_specs=pl.BlockSpec((tn, OUT_PAD), lambda b, j: (b * tiles + j, 0)),
        ),
        compiler_params=pltpu.CompilerParams(
            dimension_semantics=("parallel", "parallel")),
        cost_estimate=cost,
    )(*flat_args)

    return out[:, :3].reshape(B, N, 3)


def color_network_reference(light_pts, latent_index, params):
    """Pure-JAX f32 mirror of the PyTorch ColorNetwork.forward (for verification)."""
    B, N, _ = light_pts.shape
    inp = light_pts
    h = inp
    for i in range(N_PTS_LAYERS):
        w, b = params["pts"][i]
        h = jnp.maximum(h @ w + b, 0.0)
        if i == 4:
            h = jnp.concatenate([inp, h], axis=-1)
    wfe, bfe = params["feature"]
    features = h @ wfe + bfe
    latent = params["embedding"][latent_index]                  # (B, 128)
    latent = jnp.broadcast_to(latent[:, None, :], (B, N, LAT_DIM))
    features = jnp.concatenate([features, latent], axis=-1)     # (B, N, 384)
    wfc, bfc = params["latent_fc"]
    h = features @ wfc + bfc                                    # no ReLU (matches torch code)
    wv, bv = params["views"]
    h = jnp.maximum(h @ wv + bv, 0.0)
    wr, br = params["rgb"]
    return h @ wr + br


if __name__ == "__main__":
    key = jax.random.PRNGKey(0)
    k_pts, k_par = jax.random.split(key)

    B, N = 2, 512                          # small batch of frames x sampled points
    NUM_TRAIN_FRAME = 4                    # stand-in for cfg.num_train_frame
    light_pts = jax.random.uniform(k_pts, (B, N, IN_CH), jnp.float32, -1.0, 1.0)
    viewdir = jnp.zeros((B, N, 27), jnp.float32)        # unused by the forward
    latent_index = jnp.array([0, 3], dtype=jnp.int32)

    params = init_params(k_par, NUM_TRAIN_FRAME)

    rgb = color_network_forward(light_pts, viewdir, latent_index, params, tn=256)
    rgb = jax.block_until_ready(rgb)

    ref = color_network_reference(light_pts, latent_index, params)
    assert rgb.shape == (B, N, 3), rgb.shape
    # bf16 matmul operands with f32 accumulation -> loosened tolerance vs f32 reference.
    np.testing.assert_allclose(np.asarray(rgb), np.asarray(ref), rtol=2e-2, atol=2e-2)

    print("KERNEL_OK")
</pallas_src>

<mosaic_0001>
module attributes {stable_mosaic.version = 11 : i64} {
  func.func @color_mlp_kernel(%arg0: i32, %arg1: i32, %arg2: memref<256x128xf32, #tpu.memory_space<vmem>>, %arg3: memref<1x1x256xf32, #tpu.memory_space<vmem>>, %arg4: memref<128x256xbf16, #tpu.memory_space<vmem>>, %arg5: memref<1x256xf32, #tpu.memory_space<vmem>>, %arg6: memref<256x256xbf16, #tpu.memory_space<vmem>>, %arg7: memref<1x256xf32, #tpu.memory_space<vmem>>, %arg8: memref<256x256xbf16, #tpu.memory_space<vmem>>, %arg9: memref<1x256xf32, #tpu.memory_space<vmem>>, %arg10: memref<256x256xbf16, #tpu.memory_space<vmem>>, %arg11: memref<1x256xf32, #tpu.memory_space<vmem>>, %arg12: memref<256x256xbf16, #tpu.memory_space<vmem>>, %arg13: memref<1x256xf32, #tpu.memory_space<vmem>>, %arg14: memref<128x256xbf16, #tpu.memory_space<vmem>>, %arg15: memref<256x256xbf16, #tpu.memory_space<vmem>>, %arg16: memref<1x256xf32, #tpu.memory_space<vmem>>, %arg17: memref<256x256xbf16, #tpu.memory_space<vmem>>, %arg18: memref<1x256xf32, #tpu.memory_space<vmem>>, %arg19: memref<256x256xbf16, #tpu.memory_space<vmem>>, %arg20: memref<1x256xf32, #tpu.memory_space<vmem>>, %arg21: memref<256x256xbf16, #tpu.memory_space<vmem>>, %arg22: memref<1x256xf32, #tpu.memory_space<vmem>>, %arg23: memref<256x256xbf16, #tpu.memory_space<vmem>>, %arg24: memref<256x128xbf16, #tpu.memory_space<vmem>>, %arg25: memref<1x128xf32, #tpu.memory_space<vmem>>, %arg26: memref<128x128xbf16, #tpu.memory_space<vmem>>, %arg27: memref<1x128xf32, #tpu.memory_space<vmem>>, %arg28: memref<256x128xf32, #tpu.memory_space<vmem>>) attributes {dimension_semantics = [#tpu.dimension_semantics<parallel>, #tpu.dimension_semantics<parallel>], iteration_bounds = array<i64: 2, 2>, scalar_prefetch = 0 : i64, scratch_operands = 0 : i64, tpu.core_type = #tpu.core_type<tc>, window_params = [{transform_indices = @transform_0, window_bounds = array<i64: 256, 128>}, {transform_indices = @transform_1, window_bounds = array<i64: 1, 1, 256>}, {pipeline_mode = #tpu.pipeline_mode<synchronous>, transform_indices = @transform_2, window_bounds = array<i64: 128, 256>}, {pipeline_mode = #tpu.pipeline_mode<synchronous>, transform_indices = @transform_3, window_bounds = array<i64: 1, 256>}, {pipeline_mode = #tpu.pipeline_mode<synchronous>, transform_indices = @transform_4, window_bounds = array<i64: 256, 256>}, {pipeline_mode = #tpu.pipeline_mode<synchronous>, transform_indices = @transform_5, window_bounds = array<i64: 1, 256>}, {pipeline_mode = #tpu.pipeline_mode<synchronous>, transform_indices = @transform_6, window_bounds = array<i64: 256, 256>}, {pipeline_mode = #tpu.pipeline_mode<synchronous>, transform_indices = @transform_7, window_bounds = array<i64: 1, 256>}, {pipeline_mode = #tpu.pipeline_mode<synchronous>, transform_indices = @transform_8, window_bounds = array<i64: 256, 256>}, {pipeline_mode = #tpu.pipeline_mode<synchronous>, transform_indices = @transform_9, window_bounds = array<i64: 1, 256>}, {pipeline_mode = #tpu.pipeline_mode<synchronous>, transform_indices = @transform_10, window_bounds = array<i64: 256, 256>}, {pipeline_mode = #tpu.pipeline_mode<synchronous>, transform_indices = @transform_11, window_bounds = array<i64: 1, 256>}, {pipeline_mode = #tpu.pipeline_mode<synchronous>, transform_indices = @transform_12, window_bounds = array<i64: 128, 256>}, {pipeline_mode = #tpu.pipeline_mode<synchronous>, transform_indices = @transform_13, window_bounds = array<i64: 256, 256>}, {pipeline_mode = #tpu.pipeline_mode<synchronous>, transform_indices = @transform_14, window_bounds = array<i64: 1, 256>}, {pipeline_mode = #tpu.pipeline_mode<synchronous>, transform_indices = @transform_15, window_bounds = array<i64: 256, 256>}, {pipeline_mode = #tpu.pipeline_mode<synchronous>, transform_indices = @transform_16, window_bounds = array<i64: 1, 256>}, {pipeline_mode = #tpu.pipeline_mode<synchronous>, transform_indices = @transform_17, window_bounds = array<i64: 256, 256>}, {pipeline_mode = #tpu.pipeline_mode<synchronous>, transform_indices = @transform_18, window_bounds = array<i64: 1, 256>}, {pipeline_mode = #tpu.pipeline_mode<synchronous>, transform_indices = @transform_19, window_bounds = array<i64: 256, 256>}, {pipeline_mode = #tpu.pipeline_mode<synchronous>, transform_indices = @transform_20, window_bounds = array<i64: 1, 256>}, {pipeline_mode = #tpu.pipeline_mode<synchronous>, transform_indices = @transform_21, window_bounds = array<i64: 256, 256>}, {pipeline_mode = #tpu.pipeline_mode<synchronous>, transform_indices = @transform_22, window_bounds = array<i64: 256, 128>}, {pipeline_mode = #tpu.pipeline_mode<synchronous>, transform_indices = @transform_23, window_bounds = array<i64: 1, 128>}, {pipeline_mode = #tpu.pipeline_mode<synchronous>, transform_indices = @transform_24, window_bounds = array<i64: 128, 128>}, {pipeline_mode = #tpu.pipeline_mode<synchronous>, transform_indices = @transform_25, window_bounds = array<i64: 1, 128>}, {transform_indices = @transform_26, window_bounds = array<i64: 256, 128>}]} {
    %c0 = arith.constant 0 : index
    %c0_0 = arith.constant 0 : index
    %0 = vector.load %arg2[%c0, %c0_0] : memref<256x128xf32, #tpu.memory_space<vmem>>, vector<256x128xf32>
    %1 = arith.truncf %0 : vector<256x128xf32> to vector<256x128xbf16>
    %c0_1 = arith.constant 0 : index
    %c0_2 = arith.constant 0 : index
    %2 = vector.load %arg4[%c0_1, %c0_2] : memref<128x256xbf16, #tpu.memory_space<vmem>>, vector<128x256xbf16>
    %cst = arith.constant dense<0.000000e+00> : vector<256x256xf32>
    %3 = tpu.matmul %1, %2, %cst {dimension_numbers = #tpu.dot_dimension_numbers<[1], [0], [0], [1], [0, 0, 1, 1], [], []>} : vector<256x128xbf16>, vector<128x256xbf16>, vector<256x256xf32> -> vector<256x256xf32>
    %c0_3 = arith.constant 0 : index
    %c0_4 = arith.constant 0 : index
    %4 = vector.load %arg5[%c0_3, %c0_4] : memref<1x256xf32, #tpu.memory_space<vmem>>, vector<1x256xf32>
    %5 = vector.broadcast %4 : vector<1x256xf32> to vector<256x256xf32>
    %6 = arith.addf %3, %5 : vector<256x256xf32>
    %cst_5 = arith.constant 0.000000e+00 : f32
    %7 = vector.broadcast %cst_5 : f32 to vector<256x256xf32>
    %8 = arith.maximumf %6, %7 : vector<256x256xf32>
    %9 = arith.truncf %8 : vector<256x256xf32> to vector<256x256xbf16>
    %c0_6 = arith.constant 0 : index
    %c0_7 = arith.constant 0 : index
    %10 = vector.load %arg6[%c0_6, %c0_7] : memref<256x256xbf16, #tpu.memory_space<vmem>>, vector<256x256xbf16>
    %cst_8 = arith.constant dense<0.000000e+00> : vector<256x256xf32>
    %11 = tpu.matmul %9, %10, %cst_8 {dimension_numbers = #tpu.dot_dimension_numbers<[1], [0], [0], [1], [0, 0, 1, 1], [], []>} : vector<256x256xbf16>, vector<256x256xbf16>, vector<256x256xf32> -> vector<256x256xf32>
    %c0_9 = arith.constant 0 : index
    %c0_10 = arith.constant 0 : index
    %12 = vector.load %arg7[%c0_9, %c0_10] : memref<1x256xf32, #tpu.memory_space<vmem>>, vector<1x256xf32>
    %13 = vector.broadcast %12 : vector<1x256xf32> to vector<256x256xf32>
    %14 = arith.addf %11, %13 : vector<256x256xf32>
    %cst_11 = arith.constant 0.000000e+00 : f32
    %15 = vector.broadcast %cst_11 : f32 to vector<256x256xf32>
    %16 = arith.maximumf %14, %15 : vector<256x256xf32>
    %17 = arith.truncf %16 : vector<256x256xf32> to vector<256x256xbf16>
    %c0_12 = arith.constant 0 : index
    %c0_13 = arith.constant 0 : index
    %18 = vector.load %arg8[%c0_12, %c0_13] : memref<256x256xbf16, #tpu.memory_space<vmem>>, vector<256x256xbf16>
    %cst_14 = arith.constant dense<0.000000e+00> : vector<256x256xf32>
    %19 = tpu.matmul %17, %18, %cst_14 {dimension_numbers = #tpu.dot_dimension_numbers<[1], [0], [0], [1], [0, 0, 1, 1], [], []>} : vector<256x256xbf16>, vector<256x256xbf16>, vector<256x256xf32> -> vector<256x256xf32>
    %c0_15 = arith.constant 0 : index
    %c0_16 = arith.constant 0 : index
    %20 = vector.load %arg9[%c0_15, %c0_16] : memref<1x256xf32, #tpu.memory_space<vmem>>, vector<1x256xf32>
    %21 = vector.broadcast %20 : vector<1x256xf32> to vector<256x256xf32>
    %22 = arith.addf %19, %21 : vector<256x256xf32>
    %cst_17 = arith.constant 0.000000e+00 : f32
    %23 = vector.broadcast %cst_17 : f32 to vector<256x256xf32>
    %24 = arith.maximumf %22, %23 : vector<256x256xf32>
    %25 = arith.truncf %24 : vector<256x256xf32> to vector<256x256xbf16>
    %c0_18 = arith.constant 0 : index
    %c0_19 = arith.constant 0 : index
    %26 = vector.load %arg10[%c0_18, %c0_19] : memref<256x256xbf16, #tpu.memory_space<vmem>>, vector<256x256xbf16>
    %cst_20 = arith.constant dense<0.000000e+00> : vector<256x256xf32>
    %27 = tpu.matmul %25, %26, %cst_20 {dimension_numbers = #tpu.dot_dimension_numbers<[1], [0], [0], [1], [0, 0, 1, 1], [], []>} : vector<256x256xbf16>, vector<256x256xbf16>, vector<256x256xf32> -> vector<256x256xf32>
    %c0_21 = arith.constant 0 : index
    %c0_22 = arith.constant 0 : index
    %28 = vector.load %arg11[%c0_21, %c0_22] : memref<1x256xf32, #tpu.memory_space<vmem>>, vector<1x256xf32>
    %29 = vector.broadcast %28 : vector<1x256xf32> to vector<256x256xf32>
    %30 = arith.addf %27, %29 : vector<256x256xf32>
    %cst_23 = arith.constant 0.000000e+00 : f32
    %31 = vector.broadcast %cst_23 : f32 to vector<256x256xf32>
    %32 = arith.maximumf %30, %31 : vector<256x256xf32>
    %33 = arith.truncf %32 : vector<256x256xf32> to vector<256x256xbf16>
    %c0_24 = arith.constant 0 : index
    %c0_25 = arith.constant 0 : index
    %34 = vector.load %arg12[%c0_24, %c0_25] : memref<256x256xbf16, #tpu.memory_space<vmem>>, vector<256x256xbf16>
    %cst_26 = arith.constant dense<0.000000e+00> : vector<256x256xf32>
    %35 = tpu.matmul %33, %34, %cst_26 {dimension_numbers = #tpu.dot_dimension_numbers<[1], [0], [0], [1], [0, 0, 1, 1], [], []>} : vector<256x256xbf16>, vector<256x256xbf16>, vector<256x256xf32> -> vector<256x256xf32>
    %c0_27 = arith.constant 0 : index
    %c0_28 = arith.constant 0 : index
    %36 = vector.load %arg13[%c0_27, %c0_28] : memref<1x256xf32, #tpu.memory_space<vmem>>, vector<1x256xf32>
    %37 = vector.broadcast %36 : vector<1x256xf32> to vector<256x256xf32>
    %38 = arith.addf %35, %37 : vector<256x256xf32>
    %cst_29 = arith.constant 0.000000e+00 : f32
    %39 = vector.broadcast %cst_29 : f32 to vector<256x256xf32>
    %40 = arith.maximumf %38, %39 : vector<256x256xf32>
    %41 = arith.truncf %0 : vector<256x128xf32> to vector<256x128xbf16>
    %c0_30 = arith.constant 0 : index
    %c0_31 = arith.constant 0 : index
    %42 = vector.load %arg14[%c0_30, %c0_31] : memref<128x256xbf16, #tpu.memory_space<vmem>>, vector<128x256xbf16>
    %cst_32 = arith.constant dense<0.000000e+00> : vector<256x256xf32>
    %43 = tpu.matmul %41, %42, %cst_32 {dimension_numbers = #tpu.dot_dimension_numbers<[1], [0], [0], [1], [0, 0, 1, 1], [], []>} : vector<256x128xbf16>, vector<128x256xbf16>, vector<256x256xf32> -> vector<256x256xf32>
    %44 = arith.truncf %40 : vector<256x256xf32> to vector<256x256xbf16>
    %c0_33 = arith.constant 0 : index
    %c0_34 = arith.constant 0 : index
    %45 = vector.load %arg15[%c0_33, %c0_34] : memref<256x256xbf16, #tpu.memory_space<vmem>>, vector<256x256xbf16>
    %cst_35 = arith.constant dense<0.000000e+00> : vector<256x256xf32>
    %46 = tpu.matmul %44, %45, %cst_35 {dimension_numbers = #tpu.dot_dimension_numbers<[1], [0], [0], [1], [0, 0, 1, 1], [], []>} : vector<256x256xbf16>, vector<256x256xbf16>, vector<256x256xf32> -> vector<256x256xf32>
    %c0_36 = arith.constant 0 : index
    %c0_37 = arith.constant 0 : index
    %47 = vector.load %arg16[%c0_36, %c0_37] : memref<1x256xf32, #tpu.memory_space<vmem>>, vector<1x256xf32>
    %48 = vector.broadcast %47 : vector<1x256xf32> to vector<256x256xf32>
    %49 = arith.addf %46, %48 : vector<256x256xf32>
    %50 = arith.addf %43, %49 : vector<256x256xf32>
    %cst_38 = arith.constant 0.000000e+00 : f32
    %51 = vector.broadcast %cst_38 : f32 to vector<256x256xf32>
    %52 = arith.maximumf %50, %51 : vector<256x256xf32>
    %53 = arith.truncf %52 : vector<256x256xf32> to vector<256x256xbf16>
    %c0_39 = arith.constant 0 : index
    %c0_40 = arith.constant 0 : index
    %54 = vector.load %arg17[%c0_39, %c0_40] : memref<256x256xbf16, #tpu.memory_space<vmem>>, vector<256x256xbf16>
    %cst_41 = arith.constant dense<0.000000e+00> : vector<256x256xf32>
    %55 = tpu.matmul %53, %54, %cst_41 {dimension_numbers = #tpu.dot_dimension_numbers<[1], [0], [0], [1], [0, 0, 1, 1], [], []>} : vector<256x256xbf16>, vector<256x256xbf16>, vector<256x256xf32> -> vector<256x256xf32>
    %c0_42 = arith.constant 0 : index
    %c0_43 = arith.constant 0 : index
    %56 = vector.load %arg18[%c0_42, %c0_43] : memref<1x256xf32, #tpu.memory_space<vmem>>, vector<1x256xf32>
    %57 = vector.broadcast %56 : vector<1x256xf32> to vector<256x256xf32>
    %58 = arith.addf %55, %57 : vector<256x256xf32>
    %cst_44 = arith.constant 0.000000e+00 : f32
    %59 = vector.broadcast %cst_44 : f32 to vector<256x256xf32>
    %60 = arith.maximumf %58, %59 : vector<256x256xf32>
    %61 = arith.truncf %60 : vector<256x256xf32> to vector<256x256xbf16>
    %c0_45 = arith.constant 0 : index
    %c0_46 = arith.constant 0 : index
    %62 = vector.load %arg19[%c0_45, %c0_46] : memref<256x256xbf16, #tpu.memory_space<vmem>>, vector<256x256xbf16>
    %cst_47 = arith.constant dense<0.000000e+00> : vector<256x256xf32>
    %63 = tpu.matmul %61, %62, %cst_47 {dimension_numbers = #tpu.dot_dimension_numbers<[1], [0], [0], [1], [0, 0, 1, 1], [], []>} : vector<256x256xbf16>, vector<256x256xbf16>, vector<256x256xf32> -> vector<256x256xf32>
    %c0_48 = arith.constant 0 : index
    %c0_49 = arith.constant 0 : index
    %64 = vector.load %arg20[%c0_48, %c0_49] : memref<1x256xf32, #tpu.memory_space<vmem>>, vector<1x256xf32>
    %65 = vector.broadcast %64 : vector<1x256xf32> to vector<256x256xf32>
    %66 = arith.addf %63, %65 : vector<256x256xf32>
    %cst_50 = arith.constant 0.000000e+00 : f32
    %67 = vector.broadcast %cst_50 : f32 to vector<256x256xf32>
    %68 = arith.maximumf %66, %67 : vector<256x256xf32>
    %69 = arith.truncf %68 : vector<256x256xf32> to vector<256x256xbf16>
    %c0_51 = arith.constant 0 : index
    %c0_52 = arith.constant 0 : index
    %70 = vector.load %arg21[%c0_51, %c0_52] : memref<256x256xbf16, #tpu.memory_space<vmem>>, vector<256x256xbf16>
    %cst_53 = arith.constant dense<0.000000e+00> : vector<256x256xf32>
    %71 = tpu.matmul %69, %70, %cst_53 {dimension_numbers = #tpu.dot_dimension_numbers<[1], [0], [0], [1], [0, 0, 1, 1], [], []>} : vector<256x256xbf16>, vector<256x256xbf16>, vector<256x256xf32> -> vector<256x256xf32>
    %c0_54 = arith.constant 0 : index
    %c0_55 = arith.constant 0 : index
    %72 = vector.load %arg22[%c0_54, %c0_55] : memref<1x256xf32, #tpu.memory_space<vmem>>, vector<1x256xf32>
    %73 = vector.broadcast %72 : vector<1x256xf32> to vector<256x256xf32>
    %74 = arith.addf %71, %73 : vector<256x256xf32>
    %75 = arith.truncf %74 : vector<256x256xf32> to vector<256x256xbf16>
    %c0_56 = arith.constant 0 : index
    %c0_57 = arith.constant 0 : index
    %76 = vector.load %arg23[%c0_56, %c0_57] : memref<256x256xbf16, #tpu.memory_space<vmem>>, vector<256x256xbf16>
    %cst_58 = arith.constant dense<0.000000e+00> : vector<256x256xf32>
    %77 = tpu.matmul %75, %76, %cst_58 {dimension_numbers = #tpu.dot_dimension_numbers<[1], [0], [0], [1], [0, 0, 1, 1], [], []>} : vector<256x256xbf16>, vector<256x256xbf16>, vector<256x256xf32> -> vector<256x256xf32>
    %c0_59 = arith.constant 0 : index
    %c0_60 = arith.constant 0 : index
    %c0_61 = arith.constant 0 : index
    %78 = vector.load %arg3[%c0_59, %c0_60, %c0_61] : memref<1x1x256xf32, #tpu.memory_space<vmem>>, vector<1x1x256xf32>
    %79 = vector.shape_cast %78 : vector<1x1x256xf32> to vector<1x256xf32>
    %80 = vector.broadcast %79 : vector<1x256xf32> to vector<256x256xf32>
    %81 = arith.addf %77, %80 : vector<256x256xf32>
    %82 = arith.truncf %81 : vector<256x256xf32> to vector<256x256xbf16>
    %c0_62 = arith.constant 0 : index
    %c0_63 = arith.constant 0 : index
    %83 = vector.load %arg24[%c0_62, %c0_63] : memref<256x128xbf16, #tpu.memory_space<vmem>>, vector<256x128xbf16>
    %cst_64 = arith.constant dense<0.000000e+00> : vector<256x128xf32>
    %84 = tpu.matmul %82, %83, %cst_64 {dimension_numbers = #tpu.dot_dimension_numbers<[1], [0], [0], [1], [0, 0, 1, 1], [], []>} : vector<256x256xbf16>, vector<256x128xbf16>, vector<256x128xf32> -> vector<256x128xf32>
    %c0_65 = arith.constant 0 : index
    %c0_66 = arith.constant 0 : index
    %85 = vector.load %arg25[%c0_65, %c0_66] : memref<1x128xf32, #tpu.memory_space<vmem>>, vector<1x128xf32>
    %86 = vector.broadcast %85 : vector<1x128xf32> to vector<256x128xf32>
    %87 = arith.addf %84, %86 : vector<256x128xf32>
    %cst_67 = arith.constant 0.000000e+00 : f32
    %88 = vector.broadcast %cst_67 : f32 to vector<256x128xf32>
    %89 = arith.maximumf %87, %88 : vector<256x128xf32>
    %90 = arith.truncf %89 : vector<256x128xf32> to vector<256x128xbf16>
    %c0_68 = arith.constant 0 : index
    %c0_69 = arith.constant 0 : index
    %91 = vector.load %arg26[%c0_68, %c0_69] : memref<128x128xbf16, #tpu.memory_space<vmem>>, vector<128x128xbf16>
    %cst_70 = arith.constant dense<0.000000e+00> : vector<256x128xf32>
    %92 = tpu.matmul %90, %91, %cst_70 {dimension_numbers = #tpu.dot_dimension_numbers<[1], [0], [0], [1], [0, 0, 1, 1], [], []>} : vector<256x128xbf16>, vector<128x128xbf16>, vector<256x128xf32> -> vector<256x128xf32>
    %c0_71 = arith.constant 0 : index
    %c0_72 = arith.constant 0 : index
    %93 = vector.load %arg27[%c0_71, %c0_72] : memref<1x128xf32, #tpu.memory_space<vmem>>, vector<1x128xf32>
    %94 = vector.broadcast %93 : vector<1x128xf32> to vector<256x128xf32>
    %95 = arith.addf %92, %94 : vector<256x128xf32>
    %c0_73 = arith.constant 0 : index
    %c0_74 = arith.constant 0 : index
    %96 = vector.load %arg28[%c0_73, %c0_74] : memref<256x128xf32, #tpu.memory_space<vmem>>, vector<256x128xf32>
    tpu.vector_store %arg28[%c0_73, %c0_74], %95 {strides = array<i32>} : memref<256x128xf32, #tpu.memory_space<vmem>>, vector<256x128xf32>,
    return
  }
  func.func @transform_0(%arg0: i32, %arg1: i32) -> (i32, i32) {
    %c2_i32 = arith.constant 2 : i32
    %0 = arith.muli %arg0, %c2_i32 : i32
    %1 = arith.addi %0, %arg1 : i32
    %c0_i32 = arith.constant 0 : i32
    %c0_i32_0 = arith.constant 0 : i32
    return %1, %c0_i32 : i32, i32
  }
  func.func @transform_1(%arg0: i32, %arg1: i32) -> (i32, i32, i32) {
    %c0_i32 = arith.constant 0 : i32
    %c0_i32_0 = arith.constant 0 : i32
    %c0_i32_1 = arith.constant 0 : i32
    return %arg0, %c0_i32, %c0_i32_0 : i32, i32, i32
  }
  func.func @transform_2(%arg0: i32, %arg1: i32) -> (i32, i32) {
    %c0_i32 = arith.constant 0 : i32
    %c0_i32_0 = arith.constant 0 : i32
    %c0_i32_1 = arith.constant 0 : i32
    return %c0_i32, %c0_i32_0 : i32, i32
  }
  func.func @transform_3(%arg0: i32, %arg1: i32) -> (i32, i32) {
    %c0_i32 = arith.constant 0 : i32
    %c0_i32_0 = arith.constant 0 : i32
    %c0_i32_1 = arith.constant 0 : i32
    return %c0_i32, %c0_i32_0 : i32, i32
  }
  func.func @transform_4(%arg0: i32, %arg1: i32) -> (i32, i32) {
    %c0_i32 = arith.constant 0 : i32
    %c0_i32_0 = arith.constant 0 : i32
    %c0_i32_1 = arith.constant 0 : i32
    return %c0_i32, %c0_i32_0 : i32, i32
  }
  func.func @transform_5(%arg0: i32, %arg1: i32) -> (i32, i32) {
    %c0_i32 = arith.constant 0 : i32
    %c0_i32_0 = arith.constant 0 : i32
    %c0_i32_1 = arith.constant 0 : i32
    return %c0_i32, %c0_i32_0 : i32, i32
  }
  func.func @transform_6(%arg0: i32, %arg1: i32) -> (i32, i32) {
    %c0_i32 = arith.constant 0 : i32
    %c0_i32_0 = arith.constant 0 : i32
    %c0_i32_1 = arith.constant 0 : i32
    return %c0_i32, %c0_i32_0 : i32, i32
  }
  func.func @transform_7(%arg0: i32, %arg1: i32) -> (i32, i32) {
    %c0_i32 = arith.constant 0 : i32
    %c0_i32_0 = arith.constant 0 : i32
    %c0_i32_1 = arith.constant 0 : i32
    return %c0_i32, %c0_i32_0 : i32, i32
  }
  func.func @transform_8(%arg0: i32, %arg1: i32) -> (i32, i32) {
    %c0_i32 = arith.constant 0 : i32
    %c0_i32_0 = arith.constant 0 : i32
    %c0_i32_1 = arith.constant 0 : i32
    return %c0_i32, %c0_i32_0 : i32, i32
  }
  func.func @transform_9(%arg0: i32, %arg1: i32) -> (i32, i32) {
    %c0_i32 = arith.constant 0 : i32
    %c0_i32_0 = arith.constant 0 : i32
    %c0_i32_1 = arith.constant 0 : i32
    return %c0_i32, %c0_i32_0 : i32, i32
  }
  func.func @transform_10(%arg0: i32, %arg1: i32) -> (i32, i32) {
    %c0_i32 = arith.constant 0 : i32
    %c0_i32_0 = arith.constant 0 : i32
    %c0_i32_1 = arith.constant 0 : i32
    return %c0_i32, %c0_i32_0 : i32, i32
  }
  func.func @transform_11(%arg0: i32, %arg1: i32) -> (i32, i32) {
    %c0_i32 = arith.constant 0 : i32
    %c0_i32_0 = arith.constant 0 : i32
    %c0_i32_1 = arith.constant 0 : i32
    return %c0_i32, %c0_i32_0 : i32, i32
  }
  func.func @transform_12(%arg0: i32, %arg1: i32) -> (i32, i32) {
    %c0_i32 = arith.constant 0 : i32
    %c0_i32_0 = arith.constant 0 : i32
    %c0_i32_1 = arith.constant 0 : i32
    return %c0_i32, %c0_i32_0 : i32, i32
  }
  func.func @transform_13(%arg0: i32, %arg1: i32) -> (i32, i32) {
    %c0_i32 = arith.constant 0 : i32
    %c0_i32_0 = arith.constant 0 : i32
    %c0_i32_1 = arith.constant 0 : i32
    return %c0_i32, %c0_i32_0 : i32, i32
  }
  func.func @transform_14(%arg0: i32, %arg1: i32) -> (i32, i32) {
    %c0_i32 = arith.constant 0 : i32
    %c0_i32_0 = arith.constant 0 : i32
    %c0_i32_1 = arith.constant 0 : i32
    return %c0_i32, %c0_i32_0 : i32, i32
  }
  func.func @transform_15(%arg0: i32, %arg1: i32) -> (i32, i32) {
    %c0_i32 = arith.constant 0 : i32
    %c0_i32_0 = arith.constant 0 : i32
    %c0_i32_1 = arith.constant 0 : i32
    return %c0_i32, %c0_i32_0 : i32, i32
  }
  func.func @transform_16(%arg0: i32, %arg1: i32) -> (i32, i32) {
    %c0_i32 = arith.constant 0 : i32
    %c0_i32_0 = arith.constant 0 : i32
    %c0_i32_1 = arith.constant 0 : i32
    return %c0_i32, %c0_i32_0 : i32, i32
  }
  func.func @transform_17(%arg0: i32, %arg1: i32) -> (i32, i32) {
    %c0_i32 = arith.constant 0 : i32
    %c0_i32_0 = arith.constant 0 : i32
    %c0_i32_1 = arith.constant 0 : i32
    return %c0_i32, %c0_i32_0 : i32, i32
  }
  func.func @transform_18(%arg0: i32, %arg1: i32) -> (i32, i32) {
    %c0_i32 = arith.constant 0 : i32
    %c0_i32_0 = arith.constant 0 : i32
    %c0_i32_1 = arith.constant 0 : i32
    return %c0_i32, %c0_i32_0 : i32, i32
  }
  func.func @transform_19(%arg0: i32, %arg1: i32) -> (i32, i32) {
    %c0_i32 = arith.constant 0 : i32
    %c0_i32_0 = arith.constant 0 : i32
    %c0_i32_1 = arith.constant 0 : i32
    return %c0_i32, %c0_i32_0 : i32, i32
  }
  func.func @transform_20(%arg0: i32, %arg1: i32) -> (i32, i32) {
    %c0_i32 = arith.constant 0 : i32
    %c0_i32_0 = arith.constant 0 : i32
    %c0_i32_1 = arith.constant 0 : i32
    return %c0_i32, %c0_i32_0 : i32, i32
  }
  func.func @transform_21(%arg0: i32, %arg1: i32) -> (i32, i32) {
    %c0_i32 = arith.constant 0 : i32
    %c0_i32_0 = arith.constant 0 : i32
    %c0_i32_1 = arith.constant 0 : i32
    return %c0_i32, %c0_i32_0 : i32, i32
  }
  func.func @transform_22(%arg0: i32, %arg1: i32) -> (i32, i32) {
    %c0_i32 = arith.constant 0 : i32
    %c0_i32_0 = arith.constant 0 : i32
    %c0_i32_1 = arith.constant 0 : i32
    return %c0_i32, %c0_i32_0 : i32, i32
  }
  func.func @transform_23(%arg0: i32, %arg1: i32) -> (i32, i32) {
    %c0_i32 = arith.constant 0 : i32
    %c0_i32_0 = arith.constant 0 : i32
    %c0_i32_1 = arith.constant 0 : i32
    return %c0_i32, %c0_i32_0 : i32, i32
  }
  func.func @transform_24(%arg0: i32, %arg1: i32) -> (i32, i32) {
    %c0_i32 = arith.constant 0 : i32
    %c0_i32_0 = arith.constant 0 : i32
    %c0_i32_1 = arith.constant 0 : i32
    return %c0_i32, %c0_i32_0 : i32, i32
  }
  func.func @transform_25(%arg0: i32, %arg1: i32) -> (i32, i32) {
    %c0_i32 = arith.constant 0 : i32
    %c0_i32_0 = arith.constant 0 : i32
    %c0_i32_1 = arith.constant 0 : i32
    return %c0_i32, %c0_i32_0 : i32, i32
  }
  func.func @transform_26(%arg0: i32, %arg1: i32) -> (i32, i32) {
    %c2_i32 = arith.constant 2 : i32
    %0 = arith.muli %arg0, %c2_i32 : i32
    %1 = arith.addi %0, %arg1 : i32
    %c0_i32 = arith.constant 0 : i32
    %c0_i32_0 = arith.constant 0 : i32
    return %1, %c0_i32 : i32, i32
  }
}

</mosaic_0001>

<bundles_post_ra>
// kernel: tpu_custom_call.1
= control target key start
LH: loop header
LB: loop body
LE: loop exit
PB: predicated region body
PF: predicated region fallthrough
CT: control target
= control target key end

     0   :  { %s10593_s0 = inlined_call_operand.hbm [shape: f32[1024,128], index: 0, kind: input, shape index: {}]   ;;  %s10594_s1 = inlined_call_operand.hbm [shape: f32[2,1,256], index: 1, kind: input, shape index: {}]   ;;  %s10595_s2 = inlined_call_operand.hbm [shape: bf16[128,256], index: 2, kind: input, shape index: {}]   ;;  %s10596_s3 = inlined_call_operand.vmem [shape: f32[1,256], index: 3, kind: input, shape index: {}]   ;;  %s10597_s4 = inlined_call_operand.hbm [shape: bf16[256,256], index: 4, kind: input, shape index: {}]   ;;  %s10598_s5 = inlined_call_operand.vmem [shape: f32[1,256], index: 5, kind: input, shape index: {}]   ;;  %s10599_s6 = inlined_call_operand.hbm [shape: bf16[256,256], index: 6, kind: input, shape index: {}]   ;;  %s10600_s7 = inlined_call_operand.vmem [shape: f32[1,256], index: 7, kind: input, shape index: {}]   ;;  %s10601_s8 = inlined_call_operand.hbm [shape: bf16[256,256], index: 8, kind: input, shape index: {}]   ;;  %s10602_s9 = inlined_call_operand.vmem [shape: f32[1,256], index: 9, kind: input, shape index: {}]   ;;  %s10603_s10 = inlined_call_operand.hbm [shape: bf16[256,256], index: 10, kind: input, shape index: {}]   ;;  %s10604_s11 = inlined_call_operand.vmem [shape: f32[1,256], index: 11, kind: input, shape index: {}]   ;;  %s10605_s12 = inlined_call_operand.hbm [shape: bf16[128,256], index: 12, kind: input, shape index: {}]   ;;  %s10606_s13 = inlined_call_operand.hbm [shape: bf16[256,256], index: 13, kind: input, shape index: {}]   ;;  %s10607_s14 = inlined_call_operand.vmem [shape: f32[1,256], index: 14, kind: input, shape index: {}]   ;;  %s10608_s15 = inlined_call_operand.hbm [shape: bf16[256,256], index: 15, kind: input, shape index: {}]   ;;  %s10609_s16 = inlined_call_operand.vmem [shape: f32[1,256], index: 16, kind: input, shape index: {}]   ;;  %s10610_s17 = inlined_call_operand.hbm [shape: bf16[256,256], index: 17, kind: input, shape index: {}]   ;;  %s10611_s18 = inlined_call_operand.vmem [shape: f32[1,256], index: 18, kind: input, shape index: {}]   ;;  %s10612_s19 = inlined_call_operand.hbm [shape: bf16[256,256], index: 19, kind: input, shape index: {}]   ;;  %s10613_s20 = inlined_call_operand.vmem [shape: f32[1,256], index: 20, kind: input, shape index: {}]   ;;  %s10614_s21 = inlined_call_operand.hbm [shape: bf16[256,256], index: 21, kind: input, shape index: {}]   ;;  %s10615_s22 = inlined_call_operand.hbm [shape: bf16[256,128], index: 22, kind: input, shape index: {}]   ;;  %s10616_s23 = inlined_call_operand.vmem [shape: f32[1,128], index: 23, kind: input, shape index: {}]   ;;  %s10617_s24 = inlined_call_operand.hbm [shape: bf16[128,128], index: 24, kind: input, shape index: {}]   ;;  %s10618_s25 = inlined_call_operand.vmem [shape: f32[1,128], index: 25, kind: input, shape index: {}]   ;;  %s10619_s26 = inlined_call_operand.hbm [shape: f32[1024,128], index: 26, kind: output, shape index: {}]  }
   0x1   :  { %10629 = sst [smem:[#allocation41_spill]] %s10593_s0 }
   0x2   :  { %10630 = sst [smem:[#allocation42_spill]] %s10594_s1 }
   0x3   :  { %10631 = sst [smem:[#allocation43_spill]] %s10595_s2 }
   0x4   :  { %10632 = sst [smem:[#allocation44_spill]] %s10596_s3 }
   0x5   :  { %10633 = sst [smem:[#allocation45_spill]] %s10597_s4 }
   0x6   :  { %10634 = sst [smem:[#allocation46_spill]] %s10598_s5 }
   0x7   :  { %10635 = sst [smem:[#allocation47_spill]] %s10599_s6 }
   0x8   :  { %10636 = sst [smem:[#allocation48_spill]] %s10600_s7 }
   0x9   :  { %10637 = sst [smem:[#allocation49_spill]] %s10601_s8 }
   0xa   :  { %10638 = sst [smem:[#allocation50_spill]] %s10602_s9 }
   0xb   :  { %10639 = sst [smem:[#allocation51_spill]] %s10603_s10 }
   0xc   :  { %10640 = sst [smem:[#allocation52_spill]] %s10604_s11 }
   0xd   :  { %10641 = sst [smem:[#allocation53_spill]] %s10605_s12 }
   0xe   :  { %10642 = sst [smem:[#allocation54_spill]] %s10606_s13 }
   0xf   :  { %10643 = sst [smem:[#allocation55_spill]] %s10607_s14 }
  0x10   :  { %10644 = sst [smem:[#allocation56_spill]] %s10608_s15 }
  0x11   :  { %10645 = sst [smem:[#allocation57_spill]] %s10609_s16 }
  0x12   :  { %10646 = sst [smem:[#allocation58_spill]] %s10610_s17 }
  0x13   :  { %10647 = sst [smem:[#allocation59_spill]] %s10611_s18 }
  0x14   :  { %10648 = sst [smem:[#allocation60_spill]] %s10612_s19 }
  0x15   :  { %10649 = sst [smem:[#allocation61_spill]] %s10613_s20 }
  0x16   :  { %10650 = sst [smem:[#allocation62_spill]] %s10614_s21 }
  0x17   :  { %10651 = sst [smem:[#allocation63_spill]] %s10615_s22 }
  0x18   :  { %10652 = sst [smem:[#allocation64_spill]] %s10616_s23 }
  0x19   :  { %10653 = sst [smem:[#allocation65_spill]] %s10617_s24 }
  0x1a   :  { %10654 = sst [smem:[#allocation66_spill]] %s10618_s25 }
  0x1b   :  { %10655 = sst [smem:[#allocation67_spill]] %s10619_s26 }
  0x1c   :  { %31 = vsyncpa [#allocation3], 0 }
  0x1d   :  { %33 = vsyncpa [#allocation3 + $0x1], 0 }
  0x1e   :  { %34 = vsyncpa [#allocation6], 0 }
  0x1f   :  { %36 = vsyncpa [#allocation6 + $0x1], 0 }
  0x20   :  { %37 = vsyncpa [#allocation9], 0 }
  0x21   :  { %38 = vsyncpa [#allocation12], 0 }
  0x22   :  { %39 = vsyncpa [#allocation15], 0 }
  0x23   :  { %40 = vsyncpa [#allocation18], 0 }
  0x24   :  { %41 = vsyncpa [#allocation21], 0 }
  0x25   :  { %42 = vsyncpa [#allocation24], 0 }
  0x26   :  { %43 = vsyncpa [#allocation4], 0 }
  0x27   :  { %45 = vsyncpa [#allocation4 + $0x1], 0  ;;  %s9021_s27 = smov 0   ;;  %s9023_s3 = smov 0  }
  0x28   :  { %s9025_s7 = smov 0   ;;  %s9027_s28 = smov 0  }
  0x29   :  { %s9029_s8 = smov 0   ;;  %s9031_s4 = smov 0  }
  0x2a   :  { %s9033_s29 = smov 0   ;;  %s9035_s0 = smov 0  }
  0x2b   :  { %s9037_s9 = smov 0   ;;  %s9039_s30 = smov 0  }
  0x2c   :  { %s9041_s2 = smov 0  }
  0x2d LB: > { %10656 = sst [smem:[#allocation37_spill]] %s8821_s27  ;;  %s9077_s5 = sadd.s32 4294967295, %s8861_s2   ;;  %s8861_s2 = sphi %s9041_s2, %s51_s2   ;;  %s8857_s30 = sphi %s9039_s30, %s10734_s30   ;;  %s8853_s9 = sphi %s9037_s9, %s10733_s9   ;;  %s8849_s0 = sphi %s9035_s0, %s10732_s0   ;;  %s8845_s29 = sphi %s9033_s29, %s10731_s29   ;;  %s8841_s4 = sphi %s9031_s4, %s10730_s4   ;;  %s8837_s8 = sphi %s9029_s8, %s10729_s8   ;;  %s8833_s28 = sphi %s9027_s28, %s10728_s28   ;;  %s8829_s7 = sphi %s9025_s7, %s10727_s7   ;;  %s8825_s3 = sphi %s9023_s3, %s10726_s3   ;;  %s8821_s27 = sphi %s9021_s27, %s10725_s27  }
  0x2e   : > { %10657 = sst [smem:[#allocation38_spill]] %s8845_s29  ;;  %p6972_p0 = scmp.ge.s32.totalorder %s8861_s2, 1 }
  0x2f   : > { %10658 = sst [smem:[#allocation39_spill]] %s8849_s0  ;;  %p10626_p1 = scmp.eq.s32.totalorder %s9077_s5, 0 }
  0x30   : > { %p658_p2 = scmp.lt.s32.totalorder %s8861_s2, 5  ;;  %s8863_s6 = smov [#allocation7]  }
  0x31   : > { %s670_s1 = sshll.u32 %s8863_s6, 4  ;;  %s8864_s29 = smov [#allocation8]   ;;  %s671_s1 = int_to_ptr.vmem [resolvable:$true] %s670_s1 }
  0x32   : > { %p9082_p3 = pnand %p6972_p0, %p658_p2  ;;  %s686_s0 = sshll.u32 %s8864_s29, 4  ;;  %s687_s0 = int_to_ptr.vmem [resolvable:$true] %s686_s0 }
  0x33   : > { %s8865_s25 = smov [#allocation11]   ;;  %s8326_s6 = scalar_lea.vmem %s671_s1, 2048 }
  0x34   : > { %s10659_s10 = scalar_select %p9082_p3, 1, 0 }
  0x35   : > { %p7624_p4 = pneg %p9082_p3  ;;  %s718_s23 = sshll.u32 %s8865_s25, 4  ;;  %s719_s23 = int_to_ptr.vmem [resolvable:$true] %s718_s23 }
  0x36   : > { %10660 = sst [smem:[#allocation40_spill]] %s10659_s10  ;;  %p8327_p7 = scmp.ne.s32.totalorder %s671_s1, %s8326_s6 }
  0x37   : > { %p9090_p5 = pnand %p7624_p4, %p10626_p1  ;;  %p8334_p10 = scmp.lt.s32.totalorder %s671_s1, %s671_s1 }
  0x38   : > { %p8335_p11 = scmp.lt.s32.totalorder %s8326_s6, %s8326_s6 }
  0x39   : > { %p9096_p6 = pneg %p9090_p5 }
  0x3a   : > { %p8336_p12 = por %p8335_p11, %p8334_p10 }
  0x3b   : > { %p8329_p8 = pnand %p8327_p7, %p9096_p6 }
  0x3d   : > { %p8330_p9 = pneg %p8329_p8 }
  0x3f   : > { %p8337_p13 = pnand %p8336_p12, %p8330_p9 }
  0x41   : > { %8340 = shalt.err (!%p8337_p13)
}
  0x42   : > { %s10624_s29 = smov 128   ;;  %s10625_s25 = smov 8  }
  0x43   : > { %s10663_s14 = sld [smem:[#allocation43_spill]]  ;;  %s8352_s11 = scalar_lea.vmem %s687_s0, 4096 }
  0x44   : > { %p8353_p0 = scmp.ne.s32.totalorder %s687_s0, %s8352_s11  ;;  %p8360_p7 = scmp.lt.s32.totalorder %s687_s0, %s687_s0 }
  0x45   : > { %p8361_p8 = scmp.lt.s32.totalorder %s8352_s11, %s8352_s11 }
  0x46   : > { %p8355_p2 = pnand %p8353_p0, %p9096_p6 }
  0x47   : > { %p8362_p9 = por %p8361_p8, %p8360_p7 }
  0x48   : > { %p8356_p4 = pneg %p8355_p2 }
  0x49   : > { %7627 = dma.hbm_to_vmem [thread:$0]  (!%p9090_p5), %s10663_s14, 2048, %s671_s1, [#allocation6], %s10624_s29, %s10624_s29, %s10625_s25  }
  0x4a   : > { %p8363_p10 = pnand %p8362_p9, %p8356_p4 }
  0x4c   : > { %8366 = shalt.err (!%p8363_p10)
}
  0x4d   : > { %s10664_s27 = sld [smem:[#allocation45_spill]]  ;;  %s8378_s14 = scalar_lea.vmem %s719_s23, 4096 }
  0x4e   : > { %p8379_p11 = scmp.ne.s32.totalorder %s719_s23, %s8378_s14  ;;  %p8386_p0 = scmp.lt.s32.totalorder %s719_s23, %s719_s23 }
  0x4f   : > { %p8387_p2 = scmp.lt.s32.totalorder %s8378_s14, %s8378_s14 }
  0x50   : > { %p8381_p12 = pnand %p8379_p11, %p9096_p6 }
  0x51   : > { %p8388_p4 = por %p8387_p2, %p8386_p0 }
  0x52   : > { %p8382_p13 = pneg %p8381_p12 }
  0x53   : > { %7630 = dma.hbm_to_vmem [thread:$0]  (!%p9090_p5), %s10664_s27, 4096, %s687_s0, [#allocation9], %s10624_s29, %s10624_s29, %s10625_s25  }
  0x54   : > { %p8389_p7 = pnand %p8388_p4, %p8382_p13 }
  0x56   : > { %8392 = shalt.err (!%p8389_p7)
}
  0x57   : > { %s10665_s18 = sld [smem:[#allocation49_spill]]  ;;  %s8868_s27 = smov [#allocation14]  }
  0x58   : > { %s750_s0 = sshll.u32 %s8868_s27, 4  ;;  %s8869_s10 = smov [#allocation17]   ;;  %s751_s0 = int_to_ptr.vmem [resolvable:$true] %s750_s0 }
  0x59   : > { %s779_s1 = sshll.u32 %s8869_s10, 4  ;;  %s8404_s6 = scalar_lea.vmem %s751_s0, 2048  ;;  %s780_s1 = int_to_ptr.vmem [resolvable:$true] %s779_s1 }
  0x5a   : > { %p8405_p8 = scmp.ne.s32.totalorder %s751_s0, %s8404_s6  ;;  %p8412_p11 = scmp.lt.s32.totalorder %s751_s0, %s751_s0 }
  0x5b   : > { %p8413_p12 = scmp.lt.s32.totalorder %s8404_s6, %s8404_s6 }
  0x5c   : > { %p8407_p9 = pnand %p8405_p8, %p9096_p6 }
  0x5d   : > { %7636 = dma.hbm_to_vmem [thread:$0]  (!%p9090_p5), %s10665_s18, 4096, %s719_s23, [#allocation12], %s10624_s29, %s10624_s29, %s10625_s25  }
  0x5e   : > { %p8408_p10 = pneg %p8407_p9  ;;  %p8414_p13 = por %p8413_p12, %p8412_p11 }
  0x60   : > { %p8415_p0 = pnand %p8414_p13, %p8408_p10 }
  0x62   : > { %8418 = shalt.err (!%p8415_p0)
}
  0x63   : > { %s10666_s12 = sld [smem:[#allocation53_spill]]  ;;  %s8430_s11 = scalar_lea.vmem %s780_s1, 4096 }
  0x64   : > { %p8431_p2 = scmp.ne.s32.totalorder %s780_s1, %s8430_s11  ;;  %p8438_p8 = scmp.lt.s32.totalorder %s780_s1, %s780_s1 }
  0x65   : > { %p8439_p9 = scmp.lt.s32.totalorder %s8430_s11, %s8430_s11 }
  0x66   : > { %p8433_p4 = pnand %p8431_p2, %p9096_p6 }
  0x67   : > { %p8440_p10 = por %p8439_p9, %p8438_p8 }
  0x68   : > { %p8434_p7 = pneg %p8433_p4 }
  0x69   : > { %7642 = dma.hbm_to_vmem [thread:$0]  (!%p9090_p5), %s10666_s12, 2048, %s751_s0, [#allocation15], %s10624_s29, %s10624_s29, %s10625_s25  }
  0x6a   : > { %p8441_p11 = pnand %p8440_p10, %p8434_p7 }
  0x6c   : > { %8444 = shalt.err (!%p8441_p11)
}
  0x6d   : > { %s10667_s15 = sld [smem:[#allocation56_spill]]  ;;  %s8870_s27 = smov [#allocation20]  }
  0x6e   : > { %s811_s0 = sshll.u32 %s8870_s27, 4  ;;  %s8871_s10 = smov [#allocation23]   ;;  %s812_s0 = int_to_ptr.vmem [resolvable:$true] %s811_s0 }
  0x6f   : > { %s840_s6 = sshll.u32 %s8871_s10, 4  ;;  %s8456_s23 = scalar_lea.vmem %s812_s0, 4096  ;;  %s841_s6 = int_to_ptr.vmem [resolvable:$true] %s840_s6 }
  0x70   : > { %p8457_p12 = scmp.ne.s32.totalorder %s812_s0, %s8456_s23  ;;  %p8464_p2 = scmp.lt.s32.totalorder %s812_s0, %s812_s0 }
  0x71   : > { %p8465_p4 = scmp.lt.s32.totalorder %s8456_s23, %s8456_s23 }
  0x72   : > { %p8459_p13 = pnand %p8457_p12, %p9096_p6 }
  0x73   : > { %7648 = dma.hbm_to_vmem [thread:$0]  (!%p9090_p5), %s10667_s15, 4096, %s780_s1, [#allocation18], %s10624_s29, %s10624_s29, %s10625_s25  }
  0x74   : > { %p8460_p0 = pneg %p8459_p13  ;;  %p8466_p7 = por %p8465_p4, %p8464_p2 }
  0x76   : > { %p8467_p8 = pnand %p8466_p7, %p8460_p0 }
  0x78   : > { %8470 = shalt.err (!%p8467_p8)
}
  0x79   : > { %s10668_s19 = sld [smem:[#allocation60_spill]]  ;;  %s8482_s11 = scalar_lea.vmem %s841_s6, 2048 }
  0x7a   : > { %p8483_p9 = scmp.ne.s32.totalorder %s841_s6, %s8482_s11  ;;  %p8490_p12 = scmp.lt.s32.totalorder %s841_s6, %s841_s6 }
  0x7b   : > { %p8491_p13 = scmp.lt.s32.totalorder %s8482_s11, %s8482_s11 }
  0x7c   : > { %p8485_p10 = pnand %p8483_p9, %p9096_p6 }
  0x7d   : > { %p8492_p0 = por %p8491_p13, %p8490_p12 }
  0x7e   : > { %p8486_p11 = pneg %p8485_p10 }
  0x7f   : > { %7654 = dma.hbm_to_vmem [thread:$0]  (!%p9090_p5), %s10668_s19, 4096, %s812_s0, [#allocation21], %s10624_s29, %s10624_s29, %s10625_s25  }
  0x80   : > { %p8493_p2 = pnand %p8492_p0, %p8486_p11 }
  0x82   : > { %8496 = shalt.err (!%p8493_p2)
}
  0x83   : > { %s10622_s16 = smov 64   ;;  %s10623_s18 = smov 4  }
  0x84   : > { %s10669_s22 = sld [smem:[#allocation63_spill]]  ;;  %s8874_s10 = smov [#allocation10]  }
  0x85   : > { %s702_s23 = sshll.u32 %s8874_s10, 4  ;;  %s8875_s1 = smov [#allocation13]   ;;  %s703_s23 = int_to_ptr.vmem [resolvable:$true] %s702_s23 }
  0x86   : > { %s734_s14 = sshll.u32 %s8875_s1, 4  ;;  %s8508_s11 = scalar_lea.vmem %s703_s23, 4096  ;;  %s735_s14 = int_to_ptr.vmem [resolvable:$true] %s734_s14 }
  0x87   : > { %p8509_p4 = scmp.ne.s32.totalorder %s703_s23, %s8508_s11  ;;  %p8516_p9 = scmp.lt.s32.totalorder %s703_s23, %s703_s23 }
  0x88   : > { %p8517_p10 = scmp.lt.s32.totalorder %s8508_s11, %s8508_s11 }
  0x89   : > { %p8511_p7 = pnand %p8509_p4, %p9096_p6 }
  0x8a   : > { %7660 = dma.hbm_to_vmem [thread:$0]  (!%p9090_p5), %s10669_s22, 2048, %s841_s6, [#allocation24], %s10622_s16, %s10622_s16, %s10623_s18  }
  0x8b   : > { %p8512_p8 = pneg %p8511_p7  ;;  %p8518_p11 = por %p8517_p10, %p8516_p9 }
  0x8d   : > { %p8519_p12 = pnand %p8518_p11, %p8512_p8 }
  0x8f   : > { %8522 = shalt.err (!%p8519_p12)
}
  0x90   : > { %s10670_s0 = sld [smem:[#allocation47_spill]]  ;;  %s8534_s10 = scalar_lea.vmem %s735_s14, 4096 }
  0x91   : > { %p8535_p13 = scmp.ne.s32.totalorder %s735_s14, %s8534_s10  ;;  %p8542_p4 = scmp.lt.s32.totalorder %s735_s14, %s735_s14 }
  0x92   : > { %p8543_p7 = scmp.lt.s32.totalorder %s8534_s10, %s8534_s10 }
  0x93   : > { %p8537_p0 = pnand %p8535_p13, %p9096_p6 }
  0x94   : > { %p8544_p8 = por %p8543_p7, %p8542_p4 }
  0x95   : > { %p8538_p2 = pneg %p8537_p0 }
  0x96   : > { %7633 = dma.hbm_to_vmem [thread:$0]  (!%p9090_p5), %s10670_s0, 4096, %s703_s23, [#allocation9], %s10624_s29, %s10624_s29, %s10625_s25  }
  0x97   : > { %p8545_p9 = pnand %p8544_p8, %p8538_p2 }
  0x99   : > { %8548 = shalt.err (!%p8545_p9)
}
  0x9a   : > { %s10671_s6 = sld [smem:[#allocation51_spill]]  ;;  %s8876_s23 = smov [#allocation16]  }
  0x9b   : > { %s763_s27 = sshll.u32 %s8876_s23, 4  ;;  %s8877_s0 = smov [#allocation19]   ;;  %s764_s27 = int_to_ptr.vmem [resolvable:$true] %s763_s27 }
  0x9c   : > { %s795_s16 = sshll.u32 %s8877_s0, 4  ;;  %s8560_s18 = scalar_lea.vmem %s764_s27, 4096  ;;  %s796_s16 = int_to_ptr.vmem [resolvable:$true] %s795_s16 }
  0x9d   : > { %p8561_p10 = scmp.ne.s32.totalorder %s764_s27, %s8560_s18  ;;  %p8568_p13 = scmp.lt.s32.totalorder %s764_s27, %s764_s27 }
  0x9e   : > { %p8569_p0 = scmp.lt.s32.totalorder %s8560_s18, %s8560_s18 }
  0x9f   : > { %p8563_p11 = pnand %p8561_p10, %p9096_p6 }
  0xa0   : > { %7639 = dma.hbm_to_vmem [thread:$0]  (!%p9090_p5), %s10671_s6, 4096, %s735_s14, [#allocation12], %s10624_s29, %s10624_s29, %s10625_s25  }
  0xa1   : > { %p8564_p12 = pneg %p8563_p11  ;;  %p8570_p2 = por %p8569_p0, %p8568_p13 }
  0xa3   : > { %p8571_p4 = pnand %p8570_p2, %p8564_p12 }
  0xa5   : > { %8574 = shalt.err (!%p8571_p4)
}
  0xa6   : > { %s10672_s13 = sld [smem:[#allocation54_spill]]  ;;  %s8586_s1 = scalar_lea.vmem %s796_s16, 4096 }
  0xa7   : > { %p8587_p7 = scmp.ne.s32.totalorder %s796_s16, %s8586_s1  ;;  %p8594_p10 = scmp.lt.s32.totalorder %s796_s16, %s796_s16 }
  0xa8   : > { %p8595_p11 = scmp.lt.s32.totalorder %s8586_s1, %s8586_s1 }
  0xa9   : > { %p8589_p8 = pnand %p8587_p7, %p9096_p6 }
  0xaa   : > { %p8596_p12 = por %p8595_p11, %p8594_p10 }
  0xab   : > { %p8590_p9 = pneg %p8589_p8 }
  0xac   : > { %7645 = dma.hbm_to_vmem [thread:$0]  (!%p9090_p5), %s10672_s13, 4096, %s764_s27, [#allocation15], %s10624_s29, %s10624_s29, %s10625_s25  }
  0xad   : > { %p8597_p13 = pnand %p8596_p12, %p8590_p9 }
  0xaf   : > { %8600 = shalt.err (!%p8597_p13)
}
  0xb0   : > { %s10673_s17 = sld [smem:[#allocation58_spill]]  ;;  %s8878_s6 = smov [#allocation22]  }
  0xb1   : > { %s827_s23 = sshll.u32 %s8878_s6, 4  ;;  %s8879_s27 = smov [#allocation25]   ;;  %s828_s23 = int_to_ptr.vmem [resolvable:$true] %s827_s23 }
  0xb2   : > { %s856_s0 = sshll.u32 %s8879_s27, 4  ;;  %s8612_s14 = scalar_lea.vmem %s828_s23, 4096  ;;  %s857_s0 = int_to_ptr.vmem [resolvable:$true] %s856_s0 }
  0xb3   : > { %p8613_p0 = scmp.ne.s32.totalorder %s828_s23, %s8612_s14  ;;  %p8620_p7 = scmp.lt.s32.totalorder %s828_s23, %s828_s23 }
  0xb4   : > { %p8621_p8 = scmp.lt.s32.totalorder %s8612_s14, %s8612_s14 }
  0xb5   : > { %p8615_p2 = pnand %p8613_p0, %p9096_p6 }
  0xb6   : > { %7651 = dma.hbm_to_vmem [thread:$0]  (!%p9090_p5), %s10673_s17, 4096, %s796_s16, [#allocation18], %s10624_s29, %s10624_s29, %s10625_s25  }
  0xb7   : > { %p8616_p4 = pneg %p8615_p2  ;;  %p8622_p9 = por %p8621_p8, %p8620_p7 }
  0xb9   : > { %p8623_p10 = pnand %p8622_p9, %p8616_p4 }
  0xbb   : > { %8626 = shalt.err (!%p8623_p10)
}
  0xbc   : > { %s10674_s21 = sld [smem:[#allocation62_spill]]  ;;  %s8638_s1 = scalar_lea.vmem %s857_s0, 1024 }
  0xbd   : > { %p8639_p11 = scmp.ne.s32.totalorder %s857_s0, %s8638_s1  ;;  %p8646_p0 = scmp.lt.s32.totalorder %s857_s0, %s857_s0 }
  0xbe   : > { %p8647_p2 = scmp.lt.s32.totalorder %s8638_s1, %s8638_s1 }
  0xbf   : > { %p8641_p12 = pnand %p8639_p11, %p9096_p6 }
  0xc0   : > { %p8648_p4 = por %p8647_p2, %p8646_p0 }
  0xc1   : > { %p8642_p13 = pneg %p8641_p12 }
  0xc2   : > { %7657 = dma.hbm_to_vmem [thread:$0]  (!%p9090_p5), %s10674_s21, 4096, %s828_s23, [#allocation21], %s10624_s29, %s10624_s29, %s10625_s25  }
  0xc3   : > { %p8649_p7 = pnand %p8648_p4, %p8642_p13 }
  0xc5   : > { %8652 = shalt.err (!%p8649_p7)
}
  0xc6   : > { %s10675_s18 = smov 4   ;;  %s10676_s11 = smov 64  }
  0xc7   : > { %s10677_s24 = sld [smem:[#allocation65_spill]]  ;;  %s6967_s20 = sadd.s32 4294967294, %s8861_s2  }
  0xc8   : > { %s60_s26 = sadd.s32 1, %s8853_s9  ;;  %s63_s23 = sadd.s32 1, %s8857_s30 }
  0xc9   : > { %p61_p6 = scmp.ge.s32.totalorder %s60_s26, 2  ;;  %s6968_s14 = sshll.u32 %s8857_s30, 1 }
  0xca   : > { %s68_s16 = sadd.s32 %s8853_s9, %s6968_s14  ;;  %s74_s10 = sadd.s32 1, %s8841_s4 }
  0xcb   : > { %s10736_s26 = smov (%p61_p6, %s60_s26), 0  ;;  %s10738_s23 = smov (!%p61_p6, %s63_s23), %s8857_s30 }
  0xcc   : > { %p81_p8 = scmp.ne.s32.totalorder %s8841_s4, %s8837_s8  ;;  %p10627_p9 = scmp.eq.s32.totalorder %s8861_s2, 0 }
  0xcd   : > { %7663 = dma.hbm_to_vmem [thread:$0]  (!%p9090_p5), %s10677_s24, 1024, %s857_s0, [#allocation24], %s10676_s11, %s10676_s11, %s10675_s18  }
  0xce   : > { %p65_p5 = scmp.ge.s32.totalorder %s10738_s23, 2  ;;  %p87_p10 = scmp.ne.s32.totalorder %s8837_s8, %s8833_s28 }
  0xcf   : > { %p9246_p11 = por %p10627_p9, %p81_p8  ;;  %p645_p12 = scmp.eq.s32.totalorder %s9077_s5, 3 }
  0xd0   : > { %s10740_s23 = smov (%p65_p5, %s10738_s23), 0  ;;  %p9258_p13 = por %p10626_p1, %p87_p10 }
  0xd1   : > { %p9262_p0 = por %p645_p12, %p81_p8  ;;  %s6969_s11 = sshll.u32 %s10740_s23, 1 }
  0xd2   : > { %s97_s6 = ssub.s32 %s8857_s30, %s10740_s23  ;;  %s70_s27 = sadd.s32 %s6969_s11, %s10736_s26 }
  0xd3   : > { %s10680_s18 = scalar_select %p9262_p0, 1, 0 }
  0xd4   : > { %p9270_p2 = scmp.eq.s32.totalorder %s97_s6, 0  ;;  %s71_s29 = ssub.s32 %s68_s16, %s70_s27 }
  0xd5   : > { %p651_p4 = scmp.eq.s32.totalorder %s6967_s20, 3  ;;  %p72_p7 = scmp.eq.s32.totalorder %s71_s29, 0 }
  0xd6   : > { %p7688_p6 = scmp.lt.s32.totalorder %s8861_s2, 4  ;;  %s873_s12 = sand.u32 1, %s8841_s4  }
  0xd7   : > { %p9278_p5 = por %p651_p4, %p87_p10  ;;  %s6987_s15 = sshll.u32 %s873_s12, 8 }
  0xd8   : > { %s9284_s13 = scalar_select %p72_p7, %s8841_s4, %s74_s10  }
  0xd9   : > { %s10682_s25 = scalar_select %p9278_p5, 1, 0 }
  0xda   : > { %s7363_s17 = sshll.u32 %s68_s16, 12  ;;  %s10683_s6 = sld [smem:[#allocation41_spill]] }
  0xdb   : > { %s877_s22 = scalar_lea.vmem [#allocation2], %s6987_s15  ;;  %p9293_p8 = pnand %p7688_p6, %p9246_p11 }
  0xdc   : > { %s886_s24 = sshll.u32 %s877_s22, 4  ;;  %s874_s20 = scalar_lea.sflag [#allocation3], %s873_s12  ;;  %s887_s24 = int_to_ptr.vmem [resolvable:$true] %s886_s24 }
  0xdd   : > { %p8655_p10 = pneg %p9293_p8  ;;  %s8666_s10 = scalar_lea.vmem %s887_s24, 4096 }
  0xde   : > { %p8667_p12 = scmp.ne.s32.totalorder %s887_s24, %s8666_s10  ;;  %s8880_s16 = smov [#allocation2]  }
  0xdf   : > { %s8671_s19 = sshll.u32 %s8880_s16, 4  ;;  %s8672_s19 = int_to_ptr.vmem [resolvable:$false] %s8671_s19 }
  0xe0   : > { %s885_s21 = scalar_lea.hbm %s10683_s6, %s7363_s17  ;;  %p8669_p4 = pnand %p8667_p12, %p8655_p10 }
  0xe1   : > { %s8673_s15 = scalar_lea.vmem %s8672_s19, 8192  ;;  %p8674_p1 = scmp.lt.s32.totalorder %s887_s24, %s8672_s19 }
  0xe2   : > { %p8670_p7 = pneg %p8669_p4  ;;  %p8675_p9 = scmp.lt.s32.totalorder %s8673_s15, %s8666_s10 }
  0xe4   : > { %p8676_p5 = por %p8675_p9, %p8674_p1 }
  0xe6   : > { %p8677_p0 = pnand %p8676_p5, %p8670_p7 }
  0xe8   : > { %8680 = shalt.err (!%p8677_p0)
}
  0xe9   : > { %s10685_s17 = smov 8   ;;  %s10686_s22 = smov 128  }
  0xea   : > { %s10687_s12 = sld [smem:[#allocation37_spill]]  ;;  %s100_s0 = sadd.s32 1, %s8829_s7 }
  0xeb   : > { %7667 = dma.hbm_to_vmem [thread:$0]  (!%p9293_p8), %s885_s21, 4096, %s887_s24, %s874_s20, %s10686_s22, %s10686_s22, %s10685_s17  }
  0xec   : > { %s9308_s27 = scalar_select %p9270_p2, %s8829_s7, %s100_s0  }
  0xed   : > { %p107_p1 = scmp.ne.s32.totalorder %s8829_s7, %s8825_s3  ;;  %s896_s11 = sand.u32 1, %s8861_s2  }
  0xee   : > { %s898_s6 = sand.u32 1, %s8829_s7   ;;  %p10688_p11 = scmp.eq.s32.totalorder %s8861_s2, 0 }
  0xef   : > { %p10689_p5 = scmp.eq.s32.totalorder %s9077_s5, 0  ;;  %s6991_s10 = sshll.u32 %s898_s6, 1 }
  0xf0   : > { %p113_p9 = scmp.ne.s32.totalorder %s8825_s3, %s10687_s12  ;;  %p109_p0 = por %p107_p1, %p10688_p11 }
  0xf1   : > { %s7364_s16 = sshll.u32 %s8857_s30, 5  ;;  %s10691_s21 = sld [smem:[#allocation42_spill]] }
  0xf2   : > { %p9320_p10 = por %p113_p9, %p10689_p5  ;;  %s900_s14 = scalar_lea.vmem [#allocation5], %s6991_s10 }
  0xf3   : > { %s908_s20 = sshll.u32 %s900_s14, 4  ;;  %p9330_p2 = pnand %p7688_p6, %p109_p0  ;;  %s909_s20 = int_to_ptr.vmem [resolvable:$true] %s908_s20 }
  0xf4   : > { %s897_s22 = scalar_lea.sflag [#allocation6], %s896_s11  ;;  %s8694_s12 = scalar_lea.vmem %s909_s20, 32 }
  0xf5   : > { %p8683_p8 = pneg %p9330_p2  ;;  %p8695_p12 = scmp.ne.s32.totalorder %s909_s20, %s8694_s12 }
  0xf6   : > { %s8881_s0 = smov [#allocation5]  }
  0xf7   : > { %s906_s24 = scalar_lea.hbm %s10691_s21, %s7364_s16  ;;  %p8697_p4 = pnand %p8695_p12, %p8683_p8 }
  0xf8   : > { %s8699_s6 = sshll.u32 %s8881_s0, 4  ;;  %s8700_s6 = int_to_ptr.vmem [resolvable:$false] %s8699_s6 }
  0xf9   : > { %p8698_p7 = pneg %p8697_p4  ;;  %s8701_s16 = scalar_lea.vmem %s8700_s6, 64 }
  0xfa   : > { %p8702_p1 = scmp.lt.s32.totalorder %s909_s20, %s8700_s6  ;;  %p8703_p9 = scmp.lt.s32.totalorder %s8701_s16, %s8694_s12 }
  0xfc   : > { %p8704_p11 = por %p8703_p9, %p8702_p1 }
  0xfe   : > { %p8705_p5 = pnand %p8704_p11, %p8698_p7 }
 0x100   : > { %8708 = shalt.err (!%p8705_p5)
}
 0x101   : > { %7670 = dma.hbm_to_vmem [thread:$0]  (!%p9330_p2), %s906_s24, 32, %s909_s20, %s897_s22  }
 0x102   : > { %917 = sbr.rel (%p9082_p3) target bundleno = 2923 (0xb6b), region = 124  ;;  %s9341_s11 = sand.u32 (!%p9082_p3), 1, %s8837_s8  }
 0x103   : > { %s6995_s19 = sshll.u32 (!%p9082_p3), %s9341_s11, 8  ;;  %s920_s15 = scalar_lea.sflag (!%p9082_p3), [#allocation3], %s9341_s11 }
 0x104   : > { %s9347_s21 = scalar_lea.vmem (!%p9082_p3), [#allocation2], %s6995_s19 }
 0x107   : > { %8780 = dma.done.wait (%p9258_p13), %s920_s15, 4096  }
 0x108   : > { %8782 = vsyncadd (%p9258_p13), %s920_s15, 4294963200  ;;  %s928_s24 = sand.u32 1, %s9077_s5   ;;  %s930_s14 = sand.u32 1, %s8825_s3  }
 0x109   : > { %s9355_s20 = sshll.u32 %s930_s14, 1  ;;  %s929_s17 = scalar_lea.sflag [#allocation6], %s928_s24 }
 0x10a   : > { %s932_s22 = scalar_lea.vmem [#allocation5], %s9355_s20 }
 0x10b   : > { %8784 = dma.done.wait (%p9320_p10), %s929_s17, 32  }
 0x10c   : > { %8786 = vsyncadd (%p9320_p10), %s929_s17, 4294967264  ;;  %p10694_p3 = scmp.eq.s32.totalorder %s9077_s5, 0 }
 0x10e   : > { %8788 = dma.done.wait (%p10694_p3), [#allocation6], 2048   ;;  %p10695_p13 = pmov %p10694_p3 }
 0x10f   : > { %p10696_p6 = pmov %p10694_p3 }
 0x110   : > { %8790 = vsyncadd (%p10695_p13), [#allocation6], 4294965248 }
 0x111   : > { %8792 = dma.done.wait (%p10696_p6), [#allocation9], 8192   ;;  %p10697_p0 = pmov %p10694_p3 }
 0x113   : > { %8794 = vsyncadd (%p10697_p0), [#allocation9], 4294959104  ;;  %p10698_p2 = pmov %p10697_p0 }
 0x114   : > { %p10699_p8 = pmov %p10697_p0 }
 0x115   : > { %8796 = dma.done.wait (%p10698_p2), [#allocation12], 8192  }
 0x116   : > { %8798 = vsyncadd (%p10699_p8), [#allocation12], 4294959104  ;;  %p10700_p10 = pmov %p10697_p0 }
 0x117   : > { %p10701_p12 = pmov %p10697_p0 }
 0x118   : > { %8800 = dma.done.wait (%p10700_p10), [#allocation15], 6144  }
 0x119   : > { %8802 = vsyncadd (%p10701_p12), [#allocation15], 4294961152  ;;  %p10702_p4 = pmov %p10697_p0 }
 0x11a   : > { %p10703_p7 = pmov %p10697_p0 }
 0x11b   : > { %8804 = dma.done.wait (%p10702_p4), [#allocation18], 8192  }
 0x11c   : > { %8806 = vsyncadd (%p10703_p7), [#allocation18], 4294959104  ;;  %p10704_p1 = pmov %p10697_p0 }
 0x11d   : > { %p10705_p9 = pmov %p10697_p0 }
 0x11e   : > { %8808 = dma.done.wait (%p10704_p1), [#allocation21], 8192  }
 0x11f   : > { %8810 = vsyncadd (%p10705_p9), [#allocation21], 4294959104  ;;  %p10706_p11 = pmov %p10697_p0 }
 0x120   : > { %p10707_p5 = pmov %p10697_p0 }
 0x121   : > { %8812 = dma.done.wait (%p10706_p11), [#allocation24], 3072  }
 0x122   : > { %8814 = vsyncadd (%p10707_p5), [#allocation24], 4294964224  ;;  %v8882_v0 = vmov 0   ;;  %v7811_v1 = vld [vmem:[#allocation7 + $0x74] ss:$8 sps:$4 sm:$0xff]   ;;  %v1066_v21 = vld [vmem:[%s9347_s21 + $0x8] sm:$0xff] }
 0x123   : > { %1253 = vmatprep.mubr.bf16.mxu0 %v8882_v0  ;;  %v7813_v2 = vld [vmem:[#allocation7 + $0x70] ss:$8 sps:$4 sm:$0xff]   ;;  %1221 = vmatprep.subr.bf16.mxu0 %v7811_v1  ;;  %v7814_v3 = vld [vmem:[#allocation7 + $0x64] ss:$8 sps:$4 sm:$0xff]   ;;  %v7816_v4 = vld [vmem:[#allocation7 + $0x60] ss:$8 sps:$4 sm:$0xff]  }
 0x124   : > { %1222 = vmatpush1.bf16.msra.mxu0 %v7813_v2  ;;  %v7817_v5 = vld [vmem:[#allocation7 + $0x54] ss:$8 sps:$4 sm:$0xff]   ;;  %v7819_v6 = vld [vmem:[#allocation7 + $0x50] ss:$8 sps:$4 sm:$0xff]   ;;  %v7820_v7 = vld [vmem:[#allocation7 + $0x44] ss:$8 sps:$4 sm:$0xff]  }
 0x125   : > { %1223 = vmatprep.subr.bf16.mxu0 %v7814_v3  ;;  %v7822_v8 = vld [vmem:[#allocation7 + $0x40] ss:$8 sps:$4 sm:$0xff]   ;;  %v7823_v9 = vld [vmem:[#allocation7 + $0x34] ss:$8 sps:$4 sm:$0xff]   ;;  %v7825_v10 = vld [vmem:[#allocation7 + $0x30] ss:$8 sps:$4 sm:$0xff]  }
 0x126   : > { %v7826_v11 = vld [vmem:[#allocation7 + $0x24] ss:$8 sps:$4 sm:$0xff]   ;;  %v7828_v12 = vld [vmem:[#allocation7 + $0x20] ss:$8 sps:$4 sm:$0xff]   ;;  %v7829_v13 = vld [vmem:[#allocation7 + $0x14] ss:$8 sps:$4 sm:$0xff]  }
 0x127   : > { %v7831_v14 = vld [vmem:[#allocation7 + $0x10] ss:$8 sps:$4 sm:$0xff]   ;;  %v7832_v15 = vld [vmem:[#allocation7 + $0x4] ss:$8 sps:$4 sm:$0xff]   ;;  %v7835_v16 = vld [vmem:[#allocation8 + $0x74] ss:$8 sps:$4 sm:$0xff]  }
 0x128   : > { %1224 = vmatpush1.bf16.msra.mxu0 %v7816_v4  ;;  %v7837_v17 = vld [vmem:[#allocation8 + $0x70] ss:$8 sps:$4 sm:$0xff]   ;;  %v7838_v18 = vld [vmem:[#allocation8 + $0x64] ss:$8 sps:$4 sm:$0xff]   ;;  %v7834_v19 = vld [vmem:[#allocation7] ss:$8 sps:$4 sm:$0xff]   ;;  %1714 = vmatprep.subr.bf16.mxu1 %v7835_v16 }
 0x129   : > { %1225 = vmatprep.subr.bf16.mxu0 %v7817_v5  ;;  %v1065_v20 = vld [vmem:[%s9347_s21] sm:$0xff]  ;;  %1715 = vmatpush1.bf16.msra.mxu1 %v7837_v17  ;;  %v7843_v25 = vld [vmem:[#allocation8 + $0x50] ss:$8 sps:$4 sm:$0xff]   ;;  %v7844_v26 = vld [vmem:[#allocation8 + $0x44] ss:$8 sps:$4 sm:$0xff]   ;;  %s10708_s29 = sld [smem:[#allocation44_spill]] }
 0x12a   : > { %v7840_v22 = vld [vmem:[#allocation8 + $0x60] ss:$8 sps:$4 sm:$0xff]   ;;  %v9393_v23 = vpack.c.bf16 %v1066_v21, %v1065_v20  ;;  %1716 = vmatprep.subr.bf16.mxu1 %v7838_v18  ;;  %v7841_v24 = vld [vmem:[#allocation8 + $0x54] ss:$8 sps:$4 sm:$0xff]   ;;  %v1067_v27 = vld [vmem:[%s9347_s21 + $0x10] sm:$0xff]  ;;  %s10709_s6 = sld [smem:[#allocation46_spill]] }
 0x12b   : > { %v1068_v28 = vld [vmem:[%s9347_s21 + $0x18] sm:$0xff]  ;;  %v7846_v29 = vld [vmem:[#allocation8 + $0x40] ss:$8 sps:$4 sm:$0xff]   ;;  %v7850_v33 = vld [vmem:[#allocation8 + $0x24] ss:$8 sps:$4 sm:$0xff]   ;;  %s10710_s15 = sld [smem:[#allocation48_spill]] }
 0x12c   : > { %1226 = vmatpush1.bf16.msra.mxu0 %v7819_v6  ;;  %v9399_v30 = vpack.c.bf16 %v1068_v28, %v1067_v27  ;;  %v7847_v31 = vld [vmem:[#allocation8 + $0x34] ss:$8 sps:$4 sm:$0xff]   ;;  %v7849_v32 = vld [vmem:[#allocation8 + $0x30] ss:$8 sps:$4 sm:$0xff]   ;;  %v1070_v35 = vld [vmem:[%s9347_s21 + $0x28] sm:$0xff]  ;;  %s10711_s14 = sld [smem:[#allocation50_spill]] }
 0x12d   : > { %1227 = vmatprep.subr.bf16.mxu0 %v7820_v7  ;;  %1717 = vmatpush1.bf16.msra.mxu1 %v7840_v22  ;;  %v1069_v34 = vld [vmem:[%s9347_s21 + $0x20] sm:$0xff]  ;;  %v7855_v39 = vld [vmem:[#allocation8 + $0x10] ss:$8 sps:$4 sm:$0xff]   ;;  %v7856_v40 = vld [vmem:[#allocation8 + $0x4] ss:$8 sps:$4 sm:$0xff]   ;;  %s10712_s1 = sld [smem:[#allocation52_spill]] }
 0x12e   : > { %1718 = vmatprep.subr.bf16.mxu1 %v7841_v24  ;;  %v7852_v36 = vld [vmem:[#allocation8 + $0x20] ss:$8 sps:$4 sm:$0xff]   ;;  %v7853_v37 = vld [vmem:[#allocation8 + $0x14] ss:$8 sps:$4 sm:$0xff]   ;;  %v9405_v38 = vpack.c.bf16 %v1070_v35, %v1069_v34  ;;  %v1071_v41 = vld [vmem:[%s9347_s21 + $0x30] sm:$0xff]  ;;  %s10713_s0 = sld [smem:[#allocation55_spill]] }
 0x12f   : > { %v1072_v42 = vld [vmem:[%s9347_s21 + $0x38] sm:$0xff]  ;;  %v7858_v43 = vld [vmem:[#allocation8] ss:$8 sps:$4 sm:$0xff]   ;;  %v7862_v47 = vld [vmem:[#allocation8 + $0xe4] ss:$8 sps:$4 sm:$0xff]   ;;  %s10714_s10 = sld [smem:[#allocation57_spill]] }
 0x130   : > { %1228 = vmatpush1.bf16.msra.mxu0 %v7822_v8  ;;  %v7859_v44 = vld [vmem:[#allocation8 + $0xf4] ss:$8 sps:$4 sm:$0xff]   ;;  %v9411_v45 = vpack.c.bf16 %v1072_v42, %v1071_v41  ;;  %v7861_v46 = vld [vmem:[#allocation8 + $0xf0] ss:$8 sps:$4 sm:$0xff]   ;;  %v1074_v49 = vld [vmem:[%s9347_s21 + $0x48] sm:$0xff]  ;;  %s10715_s24 = sld [smem:[#allocation59_spill]] }
 0x131   : > { %1229 = vmatprep.subr.bf16.mxu0 %v7823_v9  ;;  %1719 = vmatpush1.bf16.msra.mxu1 %v7843_v25  ;;  %v1073_v48 = vld [vmem:[%s9347_s21 + $0x40] sm:$0xff]  ;;  %v7867_v53 = vld [vmem:[#allocation8 + $0xd0] ss:$8 sps:$4 sm:$0xff]   ;;  %v7868_v54 = vld [vmem:[#allocation8 + $0xc4] ss:$8 sps:$4 sm:$0xff]   ;;  %s10716_s5 = sld [smem:[#allocation61_spill]] }
 0x132   : > { %1720 = vmatprep.subr.bf16.mxu1 %v7844_v26  ;;  %v7864_v50 = vld [vmem:[#allocation8 + $0xe0] ss:$8 sps:$4 sm:$0xff]   ;;  %v7865_v51 = vld [vmem:[#allocation8 + $0xd4] ss:$8 sps:$4 sm:$0xff]   ;;  %v9417_v52 = vpack.c.bf16 %v1074_v49, %v1073_v48  ;;  %v1075_v55 = vld [vmem:[%s9347_s21 + $0x50] sm:$0xff]  ;;  %s10720_s16 = sld [smem:[#allocation38_spill]] }
 0x133   : > { %v1076_v56 = vld [vmem:[%s9347_s21 + $0x58] sm:$0xff]  ;;  %v7870_v57 = vld [vmem:[#allocation8 + $0xc0] ss:$8 sps:$4 sm:$0xff]   ;;  %v1079_v1 = vld [vmem:[%s9347_s21 + $0x70] sm:$0xff]  ;;  %p10722_p13 = scmp.ne.s32.totalorder %s10680_s18, 0 }
 0x134   : > { %1230 = vmatpush1.bf16.msra.mxu0 %v7825_v10  ;;  %v7871_v58 = vld [vmem:[#allocation8 + $0xb4] ss:$8 sps:$4 sm:$0xff]   ;;  %v9423_v59 = vpack.c.bf16 %v1076_v56, %v1075_v55  ;;  %v7873_v60 = vld [vmem:[#allocation8 + $0xb0] ss:$8 sps:$4 sm:$0xff]   ;;  %v1078_v62 = vld [vmem:[%s9347_s21 + $0x68] sm:$0xff] }
 0x135   : > { %1231 = vmatprep.subr.bf16.mxu0 %v7826_v11  ;;  %1721 = vmatpush1.bf16.msra.mxu1 %v7846_v29  ;;  %v1077_v61 = vld [vmem:[%s9347_s21 + $0x60] sm:$0xff]  ;;  %v1080_v2 = vld [vmem:[%s9347_s21 + $0x78] sm:$0xff]  ;;  %v1082_v5 = vld [vmem:[%s9347_s21 + $0x88] sm:$0xff] }
 0x136   : > { %1722 = vmatprep.subr.bf16.mxu1 %v7847_v31  ;;  %v9429_v63 = vpack.c.bf16 %v1078_v62, %v1077_v61  ;;  %v9435_v3 = vpack.c.bf16 %v1080_v2, %v1079_v1  ;;  %v1081_v4 = vld [vmem:[%s9347_s21 + $0x80] sm:$0xff]  ;;  %v1083_v7 = vld [vmem:[%s9347_s21 + $0x90] sm:$0xff]  ;;  %v1084_v8 = vld [vmem:[%s9347_s21 + $0x98] sm:$0xff] }
 0x137   : > { %v9441_v6 = vpack.c.bf16 %v1082_v5, %v1081_v4  ;;  %v7874_v9 = vld [vmem:[#allocation8 + $0xa4] ss:$8 sps:$4 sm:$0xff]   ;;  %v7876_v10 = vld [vmem:[#allocation8 + $0xa0] ss:$8 sps:$4 sm:$0xff]   ;;  %v9447_v11 = vpack.c.bf16 %v1084_v8, %v1083_v7  ;;  %v1088_v20 = vld [vmem:[%s9347_s21 + $0xb8] sm:$0xff] }
 0x138   : > { %1232 = vmatpush1.bf16.msra.mxu0 %v7828_v12  ;;  %v7877_v12 = vld [vmem:[#allocation8 + $0x94] ss:$8 sps:$4 sm:$0xff]   ;;  %v7880_v16 = vld [vmem:[#allocation8 + $0x84] ss:$8 sps:$4 sm:$0xff]   ;;  %v7882_v17 = vld [vmem:[#allocation8 + $0x80] ss:$8 sps:$4 sm:$0xff]  }
 0x139   : > { %1233 = vmatprep.subr.bf16.mxu0 %v7829_v13  ;;  %1723 = vmatpush1.bf16.msra.mxu1 %v7849_v32  ;;  %v7879_v13 = vld [vmem:[#allocation8 + $0x90] ss:$8 sps:$4 sm:$0xff]   ;;  %v1089_v22 = vld [vmem:[%s9347_s21 + $0xc0] sm:$0xff]  ;;  %v1090_v24 = vld [vmem:[%s9347_s21 + $0xc8] sm:$0xff] }
 0x13a   : > { %1724 = vmatprep.subr.bf16.mxu1 %v7850_v33  ;;  %v9465_v25 = vpack.c.bf16 %v1090_v24, %v1089_v22  ;;  %v1091_v26 = vld [vmem:[%s9347_s21 + $0xd0] sm:$0xff]  ;;  %v1092_v27 = vld [vmem:[%s9347_s21 + $0xd8] sm:$0xff]  ;;  %v1093_v29 = vld [vmem:[%s9347_s21 + $0xe0] sm:$0xff] }
 0x13b   : > { %v9471_v28 = vpack.c.bf16 %v1092_v27, %v1091_v26  ;;  %v1094_v31 = vld [vmem:[%s9347_s21 + $0xe8] sm:$0xff]  ;;  %v1095_v33 = vld [vmem:[%s9347_s21 + $0xf0] sm:$0xff]  ;;  %v1096_v34 = vld [vmem:[%s9347_s21 + $0xf8] sm:$0xff] }
 0x13c   : > { %1234 = vmatpush1.bf16.msra.mxu0 %v7831_v14  ;;  %v1085_v14 = vld [vmem:[%s9347_s21 + $0xa0] sm:$0xff]  ;;  %v9477_v32 = vpack.c.bf16 %v1094_v31, %v1093_v29  ;;  %v9483_v35 = vpack.c.bf16 %v1096_v34, %v1095_v33  ;;  %v7889_v41 = vld [vmem:[#allocation10 + $0x50] ss:$8 sps:$4 sm:$0xff]   ;;  %v7912_v34 = vld [vmem:[#allocation10 + $0xe4] ss:$8 sps:$4 sm:$0xff]  }
 0x13d   : > { %1235 = vmatprep.subr.bf16.mxu0 %v7832_v15  ;;  %1725 = vmatpush1.bf16.msra.mxu1 %v7852_v36  ;;  %v1086_v15 = vld [vmem:[%s9347_s21 + $0xa8] sm:$0xff]  ;;  %v7883_v36 = vld [vmem:[#allocation10 + $0x70] ss:$8 sps:$4 sm:$0xff]   ;;  %v7891_v42 = vld [vmem:[#allocation10 + $0x54] ss:$8 sps:$4 sm:$0xff]  }
 0x13e   : > { %1726 = vmatprep.subr.bf16.mxu1 %v7853_v37  ;;  %v9453_v18 = vpack.c.bf16 %v1086_v15, %v1085_v14  ;;  %v7885_v37 = vld [vmem:[#allocation10 + $0x74] ss:$8 sps:$4 sm:$0xff]   ;;  %v7895_v49 = vld [vmem:[#allocation10 + $0x30] ss:$8 sps:$4 sm:$0xff]   ;;  %v7898_v56 = vld [vmem:[#allocation10 + $0x20] ss:$8 sps:$4 sm:$0xff]  }
 0x13f   : > { %v7901_v5 = vld [vmem:[#allocation10 + $0x10] ss:$8 sps:$4 sm:$0xff]   ;;  %v7903_v7 = vld [vmem:[#allocation10 + $0x14] ss:$8 sps:$4 sm:$0xff]   ;;  %v7904_v15 = vld [vmem:[#allocation10] ss:$8 sps:$4 sm:$0xff]  }
 0x140   : > { %1236 = vmatpush1.bf16.msra.mxu0 %v7834_v19  ;;  %v1087_v19 = vld [vmem:[%s9347_s21 + $0xb0] sm:$0xff] }
 0x141   : > { %1727 = vmatpush1.bf16.msra.mxu1 %v7855_v39  ;;  %v9459_v21 = vpack.c.bf16 %v1088_v20, %v1087_v19  ;;  %2207 = vmatprep.subr.bf16.mxu0 %v7885_v37  ;;  %v7886_v39 = vld [vmem:[#allocation10 + $0x60] ss:$8 sps:$4 sm:$0xff]   ;;  %v7909_v19 = vld [vmem:[#allocation10 + $0xf4] ss:$8 sps:$4 sm:$0xff]   ;;  %v7907_v29 = vld [vmem:[#allocation10 + $0xf0] ss:$8 sps:$4 sm:$0xff]  }
 0x142   : > { %1728 = vmatprep.subr.bf16.mxu1 %v7856_v40  ;;  %v7888_v40 = vld [vmem:[#allocation10 + $0x64] ss:$8 sps:$4 sm:$0xff]  }
 0x143   : > { %1254 = vmatmul.mubr.bf16.vlgmr.msra.gmra.mxu0 %v9393_v23 }
 0x144   : > { %1263 = vmatprep.mubr.bf16.mxu0 %v8882_v0  ;;  %2208 = vmatpush1.bf16.msra.mxu0 %v7883_v36 }
 0x145   : > { %1729 = vmatpush1.bf16.msra.mxu1 %v7858_v43  ;;  %2209 = vmatprep.subr.bf16.mxu0 %v7888_v40  ;;  %v7892_v43 = vld [vmem:[#allocation10 + $0x40] ss:$8 sps:$4 sm:$0xff]  }
 0x146   : > { %1730 = vmatprep.subr.bf16.mxu1 %v7859_v44  ;;  %v7894_v44 = vld [vmem:[#allocation10 + $0x44] ss:$8 sps:$4 sm:$0xff]  }
 0x148   : > { %2210 = vmatpush1.bf16.msra.mxu0 %v7886_v39 }
 0x149   : > { %1731 = vmatpush2.bf16.msra.mxu1 %v7861_v46  ;;  %2211 = vmatprep.subr.bf16.mxu0 %v7891_v42  ;;  %v1131_v46 = vlaneseq  ;;  %v7910_v42 = vld [vmem:[#allocation10 + $0xe0] ss:$8 sps:$4 sm:$0xff]  }
 0x14a   : > { %1732 = vmatprep.subr.bf16.mxu1 %v7862_v47 }
 0x14b   : > { %1264 = vmatmul.mubr.bf16.gmra.mxu0 %v9399_v30  ;;  %v1132_v47 = vshrl.u32 %v1131_v46, 7  ;;  %v7915_v46 = vld [vmem:[#allocation10 + $0xd4] ss:$8 sps:$4 sm:$0xff]  }
 0x14c   : > { %1273 = vmatprep.mubr.bf16.mxu0 %v8882_v0  ;;  %2212 = vmatpush1.bf16.msra.mxu0 %v7889_v41 }
 0x14d   : > { %1733 = vmatpush2.bf16.msra.mxu1 %v7864_v50  ;;  %2213 = vmatprep.subr.bf16.mxu0 %v7894_v44  ;;  %v9486_v48 = vsub.s32 1, %v1132_v47  ;;  %v7897_v50 = vld [vmem:[#allocation10 + $0x34] ss:$8 sps:$4 sm:$0xff]  }
 0x14e   : > { %1734 = vmatprep.subr.bf16.mxu1 %v7865_v51  ;;  %v9488_v51 = vsub.s32 0, %v1132_v47 }
 0x150   : > { %2214 = vmatpush1.bf16.msra.mxu0 %v7892_v43 }
 0x151   : > { %1735 = vmatpush2.bf16.msra.mxu1 %v7867_v53  ;;  %v1129_v53 = vld [vmem:[%s10708_s29] sm:$0x3]  ;;  %2215 = vmatprep.subr.bf16.mxu0 %v7897_v50  ;;  %s8883_s29 = smov [#allocation26]  }
 0x152   : > { %1736 = vmatprep.subr.bf16.mxu1 %v7868_v54  ;;  %v9494_v55 = vrot.slane %v1129_v53, %v9486_v48  ;;  %s8713_s12 = sshll.u32 %s8883_s29, 4  ;;  %s8714_s12 = int_to_ptr.vmem [resolvable:$false] %s8713_s12 }
 0x153   : > { %1274 = vmatmul.mubr.bf16.gmra.mxu0 %v9405_v38 }
 0x154   : > { %1283 = vmatprep.mubr.bf16.mxu0 %v8882_v0  ;;  %2216 = vmatpush1.bf16.msra.mxu0 %v7895_v49 }
 0x155   : > { %1737 = vmatpush2.bf16.msra.mxu1 %v7870_v57  ;;  %v7900_v57 = vld [vmem:[#allocation10 + $0x24] ss:$8 sps:$4 sm:$0xff]  }
 0x156   : > { %1738 = vmatprep.subr.bf16.mxu1 %v7871_v58  ;;  %v9497_v58 = vrot.slane %v1129_v53, %v9488_v51  ;;  %2217 = vmatprep.subr.bf16.mxu0 %v7900_v57 }
 0x158   : > { %2218 = vmatpush1.bf16.msra.mxu0 %v7898_v56  ;;  %v7913_v56 = vld [vmem:[#allocation10 + $0xd0] ss:$8 sps:$4 sm:$0xff]  }
 0x159   : > { %1739 = vmatpush2.bf16.msra.mxu1 %v7873_v60  ;;  %2219 = vmatprep.subr.bf16.mxu0 %v7903_v7  ;;  %v7916_v7 = vld [vmem:[#allocation10 + $0xc0] ss:$8 sps:$4 sm:$0xff]  }
 0x15a   : > { %1740 = vmatprep.subr.bf16.mxu1 %v7874_v9  ;;  %v7906_v9 = vld [vmem:[#allocation10 + $0x4] ss:$8 sps:$4 sm:$0xff]  }
 0x15b   : > { %1284 = vmatmul.mubr.bf16.gmra.mxu0 %v9411_v45 }
 0x15c   : > { %1293 = vmatprep.mubr.bf16.mxu0 %v8882_v0  ;;  %2220 = vmatpush1.bf16.msra.mxu0 %v7901_v5 }
 0x15d   : > { %1741 = vmatpush2.bf16.msra.mxu1 %v7876_v10  ;;  %2221 = vmatprep.subr.bf16.mxu0 %v7906_v9 }
 0x15e   : > { %1742 = vmatprep.subr.bf16.mxu1 %v7877_v12 }
 0x160   : > { %2222 = vmatpush1.bf16.msra.mxu0 %v7904_v15 }
 0x161   : > { %1743 = vmatpush2.bf16.msra.mxu1 %v7879_v13  ;;  %2223 = vmatprep.subr.bf16.mxu0 %v7909_v19 }
 0x162   : > { %1744 = vmatprep.subr.bf16.mxu1 %v7880_v16 }
 0x163   : > { %1294 = vmatmul.mubr.bf16.gmra.mxu0 %v9417_v52 }
 0x164   : > { %1303 = vmatprep.mubr.bf16.mxu0 %v8882_v0  ;;  %2224 = vmatpush2.bf16.msra.mxu0 %v7907_v29 }
 0x165   : > { %1745 = vmatpush2.bf16.msra.mxu1 %v7882_v17  ;;  %2225 = vmatprep.subr.bf16.mxu0 %v7912_v34 }
 0x168   : > { %2226 = vmatpush2.bf16.msra.mxu0 %v7910_v42 }
 0x169   : > { %2227 = vmatprep.subr.bf16.mxu0 %v7915_v46 }
 0x16b   : > { %1304 = vmatmul.mubr.bf16.gmra.mxu0 %v9423_v59 }
 0x16c   : > { %1313 = vmatprep.mubr.bf16.mxu0 %v8882_v0  ;;  %2228 = vmatpush2.bf16.msra.mxu0 %v7913_v56 }
 0x173   : > { %1314 = vmatmul.mubr.bf16.gmra.mxu0 %v9429_v63 }
 0x174   : > { %1323 = vmatprep.mubr.bf16.mxu0 %v8882_v0 }
 0x17b   : > { %1324 = vmatmul.mubr.bf16.gmra.mxu0 %v9435_v3 }
 0x17c   : > { %1333 = vmatprep.mubr.bf16.mxu0 %v8882_v0 }
 0x183   : > { %1334 = vmatmul.mubr.bf16.gmra.mxu0 %v9441_v6 }
 0x184   : > { %1343 = vmatprep.mubr.bf16.mxu0 %v8882_v0 }
 0x18b   : > { %1344 = vmatmul.mubr.bf16.gmra.mxu0 %v9447_v11 }
 0x18c   : > { %1353 = vmatprep.mubr.bf16.mxu0 %v8882_v0 }
 0x193   : > { %1354 = vmatmul.mubr.bf16.gmra.mxu0 %v9453_v18 }
 0x194   : > { %1363 = vmatprep.mubr.bf16.mxu0 %v8882_v0 }
 0x19b   : > { %1364 = vmatmul.mubr.bf16.gmra.mxu0 %v9459_v21 }
 0x19c   : > { %1373 = vmatprep.mubr.bf16.mxu0 %v8882_v0 }
 0x1a3   : > { %1374 = vmatmul.mubr.bf16.gmra.mxu0 %v9465_v25 }
 0x1a4   : > { %1383 = vmatprep.mubr.bf16.mxu0 %v8882_v0 }
 0x1ab   : > { %1384 = vmatmul.mubr.bf16.gmra.mxu0 %v9471_v28 }
 0x1ac   : > { %1393 = vmatprep.mubr.bf16.mxu0 %v8882_v0 }
 0x1b3   : > { %1394 = vmatmul.mubr.bf16.gmra.mxu0 %v9477_v32 }
 0x1b4   : > { %1403 = vmatprep.mubr.bf16.mxu0 %v8882_v0 }
 0x1bb   : > { %1404 = vmatmul.mubr.bf16.gmra.mxu0 %v9483_v35 }
 0x203   : > { %v1255_v54 = vpop.f32.mrf.mxu0 }
 0x204   : > { %v1256_v2 = vadd.f32 %v1255_v54, %v9497_v58 }
 0x205   : > { %v1257_v60 = vpop.f32.mrf.mxu0 }
 0x206   : > { %v1258_v62 = vadd.f32 %v1257_v60, %v9494_v55  ;;  %v1414_v16 = vmax.f32 %v1256_v2, 0.0 }
 0x207   : > { %v1259_v61 = vpop.f32.mrf.mxu0 }
 0x208   : > { %v1260_v1 = vadd.f32 %v1259_v61, %v9497_v58  ;;  %v1415_v13 = vmax.f32 %v1258_v62, 0.0  ;;  %v7918_v61 = vld [vmem:[#allocation10 + $0xc4] ss:$8 sps:$4 sm:$0xff]  }
 0x209   : > { %v1261_v4 = vpop.f32.mrf.mxu0  ;;  %2229 = vmatprep.subr.bf16.mxu0 %v7918_v61 }
 0x20a   : > { %v1262_v8 = vadd.f32 %v1261_v4, %v9494_v55  ;;  %v1416_v10 = vmax.f32 %v1260_v1, 0.0  ;;  %2230 = vmatpush2.bf16.msra.mxu0 %v7916_v7 }
 0x20b   : > { %v1265_v12 = vpop.f32.mrf.mxu0 }
 0x20c   : > { %v1417_v14 = vmax.f32 %v1262_v8, 0.0  ;;  %v1478_v22 = vpack.c.bf16 %v1416_v10, %v1414_v16  ;;  %v1266_v31 = vadd.f32 %v1265_v12, %v9497_v58  ;;  %v7921_v10 = vld [vmem:[#allocation10 + $0xb4] ss:$8 sps:$4 sm:$0xff]  }
 0x20d   : > { %v1267_v17 = vpop.f32.mrf.mxu0  ;;  %2231 = vmatprep.subr.bf16.mxu0 %v7921_v10 }
 0x20e   : > { %v1479_v20 = vpack.c.bf16 %v1417_v14, %v1415_v13  ;;  %v1268_v26 = vadd.f32 %v1267_v17, %v9494_v55  ;;  %v1418_v43 = vmax.f32 %v1266_v31, 0.0  ;;  %v7919_v17 = vld [vmem:[#allocation10 + $0xb0] ss:$8 sps:$4 sm:$0xff]  }
 0x20f   : > { %v1269_v24 = vpop.f32.mrf.mxu0  ;;  %2232 = vmatpush2.bf16.msra.mxu0 %v7919_v17 }
 0x210   : > { %v1270_v27 = vadd.f32 %v1269_v24, %v9497_v58  ;;  %1746 = vmatprep.mubr.bf16.mxu1 %v1479_v20  ;;  %v1419_v40 = vmax.f32 %v1268_v26, 0.0 }
 0x211   : > { %v1271_v33 = vpop.f32.mrf.mxu0  ;;  %1747 = vmatmul.mubr.bf16.vlgmr.msra.gmra.mxu1 %v1478_v22  ;;  %v7924_v22 = vld [vmem:[#allocation10 + $0xa4] ss:$8 sps:$4 sm:$0xff]  }
 0x212   : > { %v1272_v36 = vadd.f32 %v1271_v33, %v9494_v55  ;;  %v1420_v37 = vmax.f32 %v1270_v27, 0.0  ;;  %v7922_v33 = vld [vmem:[#allocation10 + $0xa0] ss:$8 sps:$4 sm:$0xff]   ;;  %2233 = vmatprep.subr.bf16.mxu0 %v7924_v22 }
 0x213   : > { %v1275_v39 = vpop.f32.mrf.mxu0  ;;  %2234 = vmatpush2.bf16.msra.mxu0 %v7922_v33 }
 0x214   : > { %v1421_v41 = vmax.f32 %v1272_v36, 0.0  ;;  %v1480_v49 = vpack.c.bf16 %v1420_v37, %v1418_v43  ;;  %v1276_v57 = vadd.f32 %v1275_v39, %v9497_v58  ;;  %v7927_v37 = vld [vmem:[#allocation10 + $0x94] ss:$8 sps:$4 sm:$0xff]  }
 0x215   : > { %v1277_v44 = vpop.f32.mrf.mxu0  ;;  %2235 = vmatprep.subr.bf16.mxu0 %v7927_v37 }
 0x216   : > { %v1481_v47 = vpack.c.bf16 %v1421_v41, %v1419_v40  ;;  %v1278_v53 = vadd.f32 %v1277_v44, %v9494_v55  ;;  %v1422_v8 = vmax.f32 %v1276_v57, 0.0  ;;  %v7925_v44 = vld [vmem:[#allocation10 + $0x90] ss:$8 sps:$4 sm:$0xff]  }
 0x217   : > { %v1279_v50 = vpop.f32.mrf.mxu0  ;;  %2236 = vmatpush2.bf16.msra.mxu0 %v7925_v44 }
 0x218   : > { %v1280_v54 = vadd.f32 %v1279_v50, %v9497_v58  ;;  %1756 = vmatprep.mubr.bf16.mxu1 %v1481_v47  ;;  %v1423_v4 = vmax.f32 %v1278_v53, 0.0 }
 0x219   : > { %v1281_v60 = vpop.f32.mrf.mxu0  ;;  %1757 = vmatmul.mubr.bf16.gmra.mxu1 %v1480_v49 }
 0x21a   : > { %v1282_v62 = vadd.f32 %v1281_v60, %v9494_v55  ;;  %v1424_v1 = vmax.f32 %v1280_v54, 0.0 }
 0x21b   : > { %v1285_v2 = vpop.f32.mrf.mxu0 }
 0x21c   : > { %v1425_v5 = vmax.f32 %v1282_v62, 0.0  ;;  %v1482_v13 = vpack.c.bf16 %v1424_v1, %v1422_v8  ;;  %v1286_v19 = vadd.f32 %v1285_v2, %v9497_v58 }
 0x21d   : > { %v1287_v9 = vpop.f32.mrf.mxu0 }
 0x21e   : > { %v1483_v12 = vpack.c.bf16 %v1425_v5, %v1423_v4  ;;  %v1288_v15 = vadd.f32 %v1287_v9, %v9494_v55  ;;  %v1426_v34 = vmax.f32 %v1286_v19, 0.0 }
 0x21f   : > { %v1289_v14 = vpop.f32.mrf.mxu0 }
 0x220   : > { %v1290_v16 = vadd.f32 %v1289_v14, %v9497_v58  ;;  %1766 = vmatprep.mubr.bf16.mxu1 %v1483_v12  ;;  %v1427_v29 = vmax.f32 %v1288_v15, 0.0 }
 0x221   : > { %v1291_v20 = vpop.f32.mrf.mxu0  ;;  %1767 = vmatmul.mubr.bf16.gmra.mxu1 %v1482_v13 }
 0x222   : > { %v1292_v24 = vadd.f32 %v1291_v20, %v9494_v55  ;;  %v1428_v26 = vmax.f32 %v1290_v16, 0.0 }
 0x223   : > { %v1295_v27 = vpop.f32.mrf.mxu0 }
 0x224   : > { %v1429_v31 = vmax.f32 %v1292_v24, 0.0  ;;  %v1484_v40 = vpack.c.bf16 %v1428_v26, %v1426_v34  ;;  %v1296_v46 = vadd.f32 %v1295_v27, %v9497_v58 }
 0x225   : > { %v1297_v36 = vpop.f32.mrf.mxu0 }
 0x226   : > { %v1485_v39 = vpack.c.bf16 %v1429_v31, %v1427_v29  ;;  %v1298_v42 = vadd.f32 %v1297_v36, %v9494_v55  ;;  %v1430_v57 = vmax.f32 %v1296_v46, 0.0 }
 0x227   : > { %v1299_v41 = vpop.f32.mrf.mxu0 }
 0x228   : > { %v1300_v43 = vadd.f32 %v1299_v41, %v9497_v58  ;;  %1776 = vmatprep.mubr.bf16.mxu1 %v1485_v39  ;;  %v1431_v54 = vmax.f32 %v1298_v42, 0.0 }
 0x229   : > { %v1301_v47 = vpop.f32.mrf.mxu0  ;;  %1777 = vmatmul.mubr.bf16.gmra.mxu1 %v1484_v40 }
 0x22a   : > { %v1302_v49 = vadd.f32 %v1301_v47, %v9494_v55  ;;  %v1432_v50 = vmax.f32 %v1300_v43, 0.0 }
 0x22b   : > { %v1305_v53 = vpop.f32.mrf.mxu0 }
 0x22c   : > { %v1433_v56 = vmax.f32 %v1302_v49, 0.0  ;;  %v1486_v62 = vpack.c.bf16 %v1432_v50, %v1430_v57  ;;  %v1306_v5 = vadd.f32 %v1305_v53, %v9497_v58 }
 0x22d   : > { %v1307_v60 = vpop.f32.mrf.mxu0 }
 0x22e   : > { %v1487_v61 = vpack.c.bf16 %v1433_v56, %v1431_v54  ;;  %v1308_v2 = vadd.f32 %v1307_v60, %v9494_v55  ;;  %v1434_v14 = vmax.f32 %v1306_v5, 0.0 }
 0x22f   : > { %v1309_v1 = vpop.f32.mrf.mxu0 }
 0x230   : > { %v1310_v4 = vadd.f32 %v1309_v1, %v9497_v58  ;;  %1786 = vmatprep.mubr.bf16.mxu1 %v1487_v61  ;;  %v1435_v12 = vmax.f32 %v1308_v2, 0.0 }
 0x231   : > { %v1311_v7 = vpop.f32.mrf.mxu0  ;;  %1787 = vmatmul.mubr.bf16.gmra.mxu1 %v1486_v62 }
 0x232   : > { %v1312_v8 = vadd.f32 %v1311_v7, %v9494_v55  ;;  %v1436_v9 = vmax.f32 %v1310_v4, 0.0 }
 0x233   : > { %v1315_v10 = vpop.f32.mrf.mxu0 }
 0x234   : > { %v1437_v13 = vmax.f32 %v1312_v8, 0.0  ;;  %v1488_v17 = vpack.c.bf16 %v1436_v9, %v1434_v14  ;;  %v1316_v24 = vadd.f32 %v1315_v10, %v9497_v58 }
 0x235   : > { %v1317_v15 = vpop.f32.mrf.mxu0 }
 0x236   : > { %v1489_v16 = vpack.c.bf16 %v1437_v13, %v1435_v12  ;;  %v1318_v20 = vadd.f32 %v1317_v15, %v9494_v55  ;;  %v1438_v36 = vmax.f32 %v1316_v24, 0.0 }
 0x237   : > { %v1319_v19 = vpop.f32.mrf.mxu0 }
 0x238   : > { %v1320_v22 = vadd.f32 %v1319_v19, %v9497_v58  ;;  %1796 = vmatprep.mubr.bf16.mxu1 %v1489_v16  ;;  %v1439_v33 = vmax.f32 %v1318_v20, 0.0 }
 0x239   : > { %v1321_v26 = vpop.f32.mrf.mxu0  ;;  %1797 = vmatmul.mubr.bf16.gmra.mxu1 %v1488_v17 }
 0x23a   : > { %v1322_v27 = vadd.f32 %v1321_v26, %v9494_v55  ;;  %v1440_v29 = vmax.f32 %v1320_v22, 0.0 }
 0x23b   : > { %v1325_v31 = vpop.f32.mrf.mxu0 }
 0x23c   : > { %v1441_v34 = vmax.f32 %v1322_v27, 0.0  ;;  %v1490_v40 = vpack.c.bf16 %v1440_v29, %v1438_v36  ;;  %v1326_v44 = vadd.f32 %v1325_v31, %v9497_v58 }
 0x23d   : > { %v1327_v37 = vpop.f32.mrf.mxu0 }
 0x23e   : > { %v1491_v39 = vpack.c.bf16 %v1441_v34, %v1439_v33  ;;  %v1328_v42 = vadd.f32 %v1327_v37, %v9494_v55  ;;  %v1442_v56 = vmax.f32 %v1326_v44, 0.0 }
 0x23f   : > { %v1329_v41 = vpop.f32.mrf.mxu0 }
 0x240   : > { %v1330_v43 = vadd.f32 %v1329_v41, %v9497_v58  ;;  %1806 = vmatprep.mubr.bf16.mxu1 %v1491_v39  ;;  %v1443_v53 = vmax.f32 %v1328_v42, 0.0 }
 0x241   : > { %v1331_v46 = vpop.f32.mrf.mxu0  ;;  %1807 = vmatmul.mubr.bf16.gmra.mxu1 %v1490_v40 }
 0x242   : > { %v1332_v47 = vadd.f32 %v1331_v46, %v9494_v55  ;;  %v1444_v49 = vmax.f32 %v1330_v43, 0.0  ;;  %v7930_v46 = vld [vmem:[#allocation10 + $0x84] ss:$8 sps:$4 sm:$0xff]  }
 0x243   : > { %v1335_v50 = vpop.f32.mrf.mxu0  ;;  %2237 = vmatprep.subr.bf16.mxu0 %v7930_v46 }
 0x244   : > { %v1445_v54 = vmax.f32 %v1332_v47, 0.0  ;;  %v1492_v61 = vpack.c.bf16 %v1444_v49, %v1442_v56  ;;  %v1336_v4 = vadd.f32 %v1335_v50, %v9497_v58  ;;  %v7928_v49 = vld [vmem:[#allocation10 + $0x80] ss:$8 sps:$4 sm:$0xff]  }
 0x245   : > { %v1337_v57 = vpop.f32.mrf.mxu0  ;;  %2238 = vmatpush2.bf16.msra.mxu0 %v7928_v49 }
 0x246   : > { %v1493_v60 = vpack.c.bf16 %v1445_v54, %v1443_v53  ;;  %v1338_v1 = vadd.f32 %v1337_v57, %v9494_v55  ;;  %v1446_v13 = vmax.f32 %v1336_v4, 0.0 }
 0x247   : > { %v1339_v62 = vpop.f32.mrf.mxu0 }
 0x248   : > { %v1340_v2 = vadd.f32 %v1339_v62, %v9497_v58  ;;  %1816 = vmatprep.mubr.bf16.mxu1 %v1493_v60  ;;  %v1447_v10 = vmax.f32 %v1338_v1, 0.0 }
 0x249   : > { %v1341_v5 = vpop.f32.mrf.mxu0  ;;  %1817 = vmatmul.mubr.bf16.gmra.mxu1 %v1492_v61 }
 0x24a   : > { %v1342_v7 = vadd.f32 %v1341_v5, %v9494_v55  ;;  %v1448_v8 = vmax.f32 %v1340_v2, 0.0 }
 0x24b   : > { %v1345_v9 = vpop.f32.mrf.mxu0 }
 0x24c   : > { %v1449_v12 = vmax.f32 %v1342_v7, 0.0  ;;  %v1494_v16 = vpack.c.bf16 %v1448_v8, %v1446_v13  ;;  %v1346_v22 = vadd.f32 %v1345_v9, %v9497_v58 }
 0x24d   : > { %v1347_v14 = vpop.f32.mrf.mxu0 }
 0x24e   : > { %v1495_v15 = vpack.c.bf16 %v1449_v12, %v1447_v10  ;;  %v1348_v19 = vadd.f32 %v1347_v14, %v9494_v55  ;;  %v1450_v34 = vmax.f32 %v1346_v22, 0.0 }
 0x24f   : > { %v1349_v17 = vpop.f32.mrf.mxu0 }
 0x250   : > { %v1350_v20 = vadd.f32 %v1349_v17, %v9497_v58  ;;  %1826 = vmatprep.mubr.bf16.mxu1 %v1495_v15  ;;  %v1451_v31 = vmax.f32 %v1348_v19, 0.0 }
 0x251   : > { %v1351_v24 = vpop.f32.mrf.mxu0  ;;  %1827 = vmatmul.mubr.bf16.gmra.mxu1 %v1494_v16 }
 0x252   : > { %v1352_v26 = vadd.f32 %v1351_v24, %v9494_v55  ;;  %v1452_v27 = vmax.f32 %v1350_v20, 0.0 }
 0x253   : > { %v1355_v29 = vpop.f32.mrf.mxu0 }
 0x254   : > { %v1453_v33 = vmax.f32 %v1352_v26, 0.0  ;;  %v1496_v39 = vpack.c.bf16 %v1452_v27, %v1450_v34  ;;  %v1356_v43 = vadd.f32 %v1355_v29, %v9497_v58 }
 0x255   : > { %v1357_v36 = vpop.f32.mrf.mxu0 }
 0x256   : > { %v1497_v37 = vpack.c.bf16 %v1453_v33, %v1451_v31  ;;  %v1358_v41 = vadd.f32 %v1357_v36, %v9494_v55  ;;  %v1454_v57 = vmax.f32 %v1356_v43, 0.0 }
 0x257   : > { %v1359_v40 = vpop.f32.mrf.mxu0 }
 0x258   : > { %v1360_v42 = vadd.f32 %v1359_v40, %v9497_v58  ;;  %1836 = vmatprep.mubr.bf16.mxu1 %v1497_v37  ;;  %v1455_v54 = vmax.f32 %v1358_v41, 0.0 }
 0x259   : > { %v1361_v44 = vpop.f32.mrf.mxu0  ;;  %1837 = vmatmul.mubr.bf16.gmra.mxu1 %v1496_v39 }
 0x25a   : > { %v1362_v47 = vadd.f32 %v1361_v44, %v9494_v55  ;;  %v1456_v50 = vmax.f32 %v1360_v42, 0.0 }
 0x25b   : > { %v1365_v53 = vpop.f32.mrf.mxu0 }
 0x25c   : > { %v1457_v56 = vmax.f32 %v1362_v47, 0.0  ;;  %v1498_v62 = vpack.c.bf16 %v1456_v50, %v1454_v57  ;;  %v1366_v5 = vadd.f32 %v1365_v53, %v9497_v58 }
 0x25d   : > { %v1367_v60 = vpop.f32.mrf.mxu0 }
 0x25e   : > { %v1499_v61 = vpack.c.bf16 %v1457_v56, %v1455_v54  ;;  %v1368_v2 = vadd.f32 %v1367_v60, %v9494_v55  ;;  %v1458_v14 = vmax.f32 %v1366_v5, 0.0 }
 0x25f   : > { %v1369_v1 = vpop.f32.mrf.mxu0 }
 0x260   : > { %v1370_v4 = vadd.f32 %v1369_v1, %v9497_v58  ;;  %1846 = vmatprep.mubr.bf16.mxu1 %v1499_v61  ;;  %v1459_v12 = vmax.f32 %v1368_v2, 0.0 }
 0x261   : > { %v1371_v7 = vpop.f32.mrf.mxu0  ;;  %1847 = vmatmul.mubr.bf16.gmra.mxu1 %v1498_v62 }
 0x262   : > { %v1372_v8 = vadd.f32 %v1371_v7, %v9494_v55  ;;  %v1460_v9 = vmax.f32 %v1370_v4, 0.0 }
 0x263   : > { %v1375_v10 = vpop.f32.mrf.mxu0 }
 0x264   : > { %v1461_v13 = vmax.f32 %v1372_v8, 0.0  ;;  %v1500_v17 = vpack.c.bf16 %v1460_v9, %v1458_v14  ;;  %v1376_v24 = vadd.f32 %v1375_v10, %v9497_v58 }
 0x265   : > { %v1377_v15 = vpop.f32.mrf.mxu0 }
 0x266   : > { %v1501_v16 = vpack.c.bf16 %v1461_v13, %v1459_v12  ;;  %v1378_v20 = vadd.f32 %v1377_v15, %v9494_v55  ;;  %v1462_v36 = vmax.f32 %v1376_v24, 0.0 }
 0x267   : > { %v1379_v19 = vpop.f32.mrf.mxu0 }
 0x268   : > { %v1380_v22 = vadd.f32 %v1379_v19, %v9497_v58  ;;  %1856 = vmatprep.mubr.bf16.mxu1 %v1501_v16  ;;  %v1463_v33 = vmax.f32 %v1378_v20, 0.0 }
 0x269   : > { %v1381_v26 = vpop.f32.mrf.mxu0  ;;  %1857 = vmatmul.mubr.bf16.gmra.mxu1 %v1500_v17 }
 0x26a   : > { %v1382_v27 = vadd.f32 %v1381_v26, %v9494_v55  ;;  %v1464_v29 = vmax.f32 %v1380_v22, 0.0 }
 0x26b   : > { %v1385_v31 = vpop.f32.mrf.mxu0 }
 0x26c   : > { %v1465_v34 = vmax.f32 %v1382_v27, 0.0  ;;  %v1502_v40 = vpack.c.bf16 %v1464_v29, %v1462_v36  ;;  %v1386_v44 = vadd.f32 %v1385_v31, %v9497_v58 }
 0x26d   : > { %v1387_v37 = vpop.f32.mrf.mxu0 }
 0x26e   : > { %v1503_v39 = vpack.c.bf16 %v1465_v34, %v1463_v33  ;;  %v1388_v42 = vadd.f32 %v1387_v37, %v9494_v55  ;;  %v1466_v56 = vmax.f32 %v1386_v44, 0.0  ;;  %v7931_v37 = vld [vmem:[#allocation11 + $0x70] ss:$8 sps:$4 sm:$0xff]  }
 0x26f   : > { %v1389_v41 = vpop.f32.mrf.mxu0  ;;  %v7943_v44 = vld [vmem:[#allocation11 + $0x30] ss:$8 sps:$4 sm:$0xff]  }
 0x270   : > { %v1390_v43 = vadd.f32 %v1389_v41, %v9497_v58  ;;  %1866 = vmatprep.mubr.bf16.mxu1 %v1503_v39  ;;  %v1467_v53 = vmax.f32 %v1388_v42, 0.0  ;;  %v7933_v39 = vld [vmem:[#allocation11 + $0x74] ss:$8 sps:$4 sm:$0xff]   ;;  %v7936_v41 = vld [vmem:[#allocation11 + $0x64] ss:$8 sps:$4 sm:$0xff]  }
 0x271   : > { %v1391_v46 = vpop.f32.mrf.mxu0  ;;  %1867 = vmatmul.mubr.bf16.gmra.mxu1 %v1502_v40  ;;  %2700 = vmatprep.subr.bf16.mxu1 %v7933_v39  ;;  %v7934_v40 = vld [vmem:[#allocation11 + $0x60] ss:$8 sps:$4 sm:$0xff]   ;;  %v7939_v42 = vld [vmem:[#allocation11 + $0x54] ss:$8 sps:$4 sm:$0xff]  }
 0x272   : > { %v1392_v47 = vadd.f32 %v1391_v46, %v9494_v55  ;;  %v1468_v49 = vmax.f32 %v1390_v43, 0.0  ;;  %2701 = vmatpush1.bf16.msra.mxu1 %v7931_v37  ;;  %v7942_v43 = vld [vmem:[#allocation11 + $0x44] ss:$8 sps:$4 sm:$0xff]   ;;  %v7945_v46 = vld [vmem:[#allocation11 + $0x34] ss:$8 sps:$4 sm:$0xff]  }
 0x273   : > { %v1395_v50 = vpop.f32.mrf.mxu0  ;;  %2702 = vmatprep.subr.bf16.mxu1 %v7936_v41  ;;  %v7958_v41 = vld [vmem:[#allocation11 + $0xe0] ss:$8 sps:$4 sm:$0xff]  }
 0x274   : > { %v1469_v54 = vmax.f32 %v1392_v47, 0.0  ;;  %v1504_v61 = vpack.c.bf16 %v1468_v49, %v1466_v56  ;;  %v1396_v4 = vadd.f32 %v1395_v50, %v9497_v58  ;;  %v1542_v47 = vld [vmem:[%s10709_s6] sm:$0x3]  ;;  %s10458_s6 = scalar_lea.vmem [#allocation26], %s6995_s19  ;;  %s10719_s19 = sld [smem:[#allocation39_spill]] }
 0x275   : > { %v1397_v57 = vpop.f32.mrf.mxu0  ;;  %v9567_v50 = vrot.slane %v1542_v47, %v9486_v48  ;;  %v9570_v56 = vrot.slane %v1542_v47, %v9488_v51 }
 0x276   : > { %v1505_v60 = vpack.c.bf16 %v1469_v54, %v1467_v53  ;;  %v1398_v1 = vadd.f32 %v1397_v57, %v9494_v55  ;;  %v1470_v13 = vmax.f32 %v1396_v4, 0.0  ;;  %2703 = vmatpush1.bf16.msra.mxu1 %v7934_v40  ;;  %v7946_v53 = vld [vmem:[#allocation11 + $0x20] ss:$8 sps:$4 sm:$0xff]   ;;  %v7948_v54 = vld [vmem:[#allocation11 + $0x24] ss:$8 sps:$4 sm:$0xff]  }
 0x277   : > { %v1399_v62 = vpop.f32.mrf.mxu0  ;;  %2704 = vmatprep.subr.bf16.mxu1 %v7939_v42  ;;  %v7949_v4 = vld [vmem:[#allocation11 + $0x10] ss:$8 sps:$4 sm:$0xff]  }
 0x278   : > { %v1400_v2 = vadd.f32 %v1399_v62, %v9497_v58  ;;  %1876 = vmatprep.mubr.bf16.mxu1 %v1505_v60  ;;  %v1471_v10 = vmax.f32 %v1398_v1, 0.0 }
 0x279   : > { %v1401_v5 = vpop.f32.mrf.mxu0  ;;  %1877 = vmatmul.mubr.bf16.gmra.mxu1 %v1504_v61 }
 0x27a   : > { %v1402_v7 = vadd.f32 %v1401_v5, %v9494_v55  ;;  %v1472_v8 = vmax.f32 %v1400_v2, 0.0  ;;  %v7951_v5 = vld [vmem:[#allocation11 + $0x14] ss:$8 sps:$4 sm:$0xff]  }
 0x27b   : > { %v1405_v9 = vpop.f32.mrf.mxu0 }
 0x27c   : > { %v1473_v12 = vmax.f32 %v1402_v7, 0.0  ;;  %v1506_v16 = vpack.c.bf16 %v1472_v8, %v1470_v13  ;;  %v1406_v22 = vadd.f32 %v1405_v9, %v9497_v58  ;;  %v7954_v8 = vld [vmem:[#allocation11 + $0x4] ss:$8 sps:$4 sm:$0xff]  }
 0x27d   : > { %v1407_v14 = vpop.f32.mrf.mxu0 }
 0x27e   : > { %v1507_v15 = vpack.c.bf16 %v1473_v12, %v1471_v10  ;;  %v1408_v19 = vadd.f32 %v1407_v14, %v9494_v55  ;;  %v1474_v33 = vmax.f32 %v1406_v22, 0.0  ;;  %v7952_v14 = vld [vmem:[#allocation11] ss:$8 sps:$4 sm:$0xff]  }
 0x27f   : > { %v1409_v17 = vpop.f32.mrf.mxu0 }
 0x280   : > { %v1410_v20 = vadd.f32 %v1409_v17, %v9497_v58  ;;  %1886 = vmatprep.mubr.bf16.mxu1 %v1507_v15  ;;  %v1475_v29 = vmax.f32 %v1408_v19, 0.0  ;;  %v7937_v58 = vld [vmem:[#allocation11 + $0x50] ss:$8 sps:$4 sm:$0xff]   ;;  %v7957_v17 = vld [vmem:[#allocation11 + $0xf4] ss:$8 sps:$4 sm:$0xff]  }
 0x281   : > { %v1411_v24 = vpop.f32.mrf.mxu0  ;;  %1887 = vmatmul.mubr.bf16.gmra.mxu1 %v1506_v16 }
 0x282   : > { %v1412_v26 = vadd.f32 %v1411_v24, %v9494_v55  ;;  %v1476_v27 = vmax.f32 %v1410_v20, 0.0  ;;  %2705 = vmatpush1.bf16.msra.mxu1 %v7937_v58  ;;  %v7940_v55 = vld [vmem:[#allocation11 + $0x40] ss:$8 sps:$4 sm:$0xff]  }
 0x283   : > { %2706 = vmatprep.subr.bf16.mxu1 %v7942_v43 }
 0x284   : > { %v1477_v31 = vmax.f32 %v1412_v26, 0.0  ;;  %v1508_v36 = vpack.c.bf16 %v1476_v27, %v1474_v33  ;;  %v7955_v27 = vld [vmem:[#allocation11 + $0xf0] ss:$8 sps:$4 sm:$0xff]   ;;  %v7960_v33 = vld [vmem:[#allocation11 + $0xe4] ss:$8 sps:$4 sm:$0xff]  }
 0x286   : > { %v1509_v34 = vpack.c.bf16 %v1477_v31, %v1475_v29  ;;  %2707 = vmatpush1.bf16.msra.mxu1 %v7940_v55  ;;  %v7963_v55 = vld [vmem:[#allocation11 + $0xd4] ss:$8 sps:$4 sm:$0xff]  }
 0x287   : > { %2708 = vmatprep.subr.bf16.mxu1 %v7945_v46 }
 0x288   : > { %1896 = vmatprep.mubr.bf16.mxu1 %v1509_v34 }
 0x289   : > { %1897 = vmatmul.mubr.bf16.gmra.mxu1 %v1508_v36 }
 0x28a   : > { %2709 = vmatpush1.bf16.msra.mxu1 %v7943_v44 }
 0x28b   : > { %2710 = vmatprep.subr.bf16.mxu1 %v7948_v54 }
 0x28e   : > { %2711 = vmatpush1.bf16.msra.mxu1 %v7946_v53  ;;  %v7961_v53 = vld [vmem:[#allocation11 + $0xd0] ss:$8 sps:$4 sm:$0xff]  }
 0x28f   : > { %2712 = vmatprep.subr.bf16.mxu1 %v7951_v5  ;;  %v7964_v5 = vld [vmem:[#allocation11 + $0xc0] ss:$8 sps:$4 sm:$0xff]  }
 0x292   : > { %2713 = vmatpush1.bf16.msra.mxu1 %v7949_v4 }
 0x293   : > { %2714 = vmatprep.subr.bf16.mxu1 %v7954_v8 }
 0x296   : > { %2715 = vmatpush1.bf16.msra.mxu1 %v7952_v14 }
 0x297   : > { %2716 = vmatprep.subr.bf16.mxu1 %v7957_v17 }
 0x29a   : > { %2717 = vmatpush2.bf16.msra.mxu1 %v7955_v27 }
 0x29b   : > { %2718 = vmatprep.subr.bf16.mxu1 %v7960_v33 }
 0x29e   : > { %2719 = vmatpush2.bf16.msra.mxu1 %v7958_v41 }
 0x29f   : > { %2720 = vmatprep.subr.bf16.mxu1 %v7963_v55 }
 0x2a2   : > { %2721 = vmatpush2.bf16.msra.mxu1 %v7961_v53 }
 0x2d1   : > { %v1748_v49 = vpop.f32.mrf.mxu1 }
 0x2d2   : > { %v1749_v1 = vadd.f32 %v1748_v49, %v9570_v56 }
 0x2d3   : > { %v1750_v57 = vpop.f32.mrf.mxu1 }
 0x2d4   : > { %v1751_v61 = vadd.f32 %v1750_v57, %v9567_v50  ;;  %v1907_v15 = vmax.f32 %v1749_v1, 0.0 }
 0x2d5   : > { %v1752_v60 = vpop.f32.mrf.mxu1 }
 0x2d6   : > { %v1753_v62 = vadd.f32 %v1752_v60, %v9570_v56  ;;  %v1908_v12 = vmax.f32 %v1751_v61, 0.0  ;;  %v7966_v60 = vld [vmem:[#allocation11 + $0xc4] ss:$8 sps:$4 sm:$0xff]  }
 0x2d7   : > { %v1754_v2 = vpop.f32.mrf.mxu1  ;;  %2722 = vmatprep.subr.bf16.mxu1 %v7966_v60 }
 0x2d8   : > { %v1755_v7 = vadd.f32 %v1754_v2, %v9567_v50  ;;  %v1909_v9 = vmax.f32 %v1753_v62, 0.0  ;;  %2723 = vmatpush2.bf16.msra.mxu1 %v7964_v5 }
 0x2d9   : > { %v1758_v10 = vpop.f32.mrf.mxu1 }
 0x2da   : > { %v1910_v13 = vmax.f32 %v1755_v7, 0.0  ;;  %v1971_v20 = vpack.c.bf16 %v1909_v9, %v1907_v15  ;;  %v1759_v29 = vadd.f32 %v1758_v10, %v9570_v56  ;;  %v7969_v9 = vld [vmem:[#allocation11 + $0xb4] ss:$8 sps:$4 sm:$0xff]  }
 0x2db   : > { %v1760_v16 = vpop.f32.mrf.mxu1  ;;  %2724 = vmatprep.subr.bf16.mxu1 %v7969_v9 }
 0x2dc   : > { %v1972_v19 = vpack.c.bf16 %v1910_v13, %v1908_v12  ;;  %v1761_v24 = vadd.f32 %v1760_v16, %v9567_v50  ;;  %v1911_v58 = vmax.f32 %v1759_v29, 0.0  ;;  %v7967_v16 = vld [vmem:[#allocation11 + $0xb0] ss:$8 sps:$4 sm:$0xff]  }
 0x2dd   : > { %v1762_v22 = vpop.f32.mrf.mxu1  ;;  %2725 = vmatpush2.bf16.msra.mxu1 %v7967_v16 }
 0x2de   : > { %v1763_v26 = vadd.f32 %v1762_v22, %v9570_v56  ;;  %2239 = vmatprep.mubr.bf16.mxu0 %v1972_v19  ;;  %v1912_v39 = vmax.f32 %v1761_v24, 0.0 }
 0x2df   : > { %v1764_v31 = vpop.f32.mrf.mxu1  ;;  %2240 = vmatmul.mubr.bf16.vlgmr.msra.gmra.mxu0 %v1971_v20  ;;  %v7972_v20 = vld [vmem:[#allocation11 + $0xa4] ss:$8 sps:$4 sm:$0xff]  }
 0x2e0   : > { %v1765_v34 = vadd.f32 %v1764_v31, %v9567_v50  ;;  %v1913_v36 = vmax.f32 %v1763_v26, 0.0  ;;  %v7970_v31 = vld [vmem:[#allocation11 + $0xa0] ss:$8 sps:$4 sm:$0xff]   ;;  %2726 = vmatprep.subr.bf16.mxu1 %v7972_v20 }
 0x2e1   : > { %v1768_v37 = vpop.f32.mrf.mxu1  ;;  %2727 = vmatpush2.bf16.msra.mxu1 %v7970_v31 }
 0x2e2   : > { %v1914_v40 = vmax.f32 %v1765_v34, 0.0  ;;  %v1973_v44 = vpack.c.bf16 %v1913_v36, %v1911_v58  ;;  %v1769_v54 = vadd.f32 %v1768_v37, %v9570_v56  ;;  %v7975_v36 = vld [vmem:[#allocation11 + $0x94] ss:$8 sps:$4 sm:$0xff]  }
 0x2e3   : > { %v1770_v42 = vpop.f32.mrf.mxu1  ;;  %2728 = vmatprep.subr.bf16.mxu1 %v7975_v36 }
 0x2e4   : > { %v1974_v43 = vpack.c.bf16 %v1914_v40, %v1912_v39  ;;  %v1771_v47 = vadd.f32 %v1770_v42, %v9567_v50  ;;  %v1915_v7 = vmax.f32 %v1769_v54, 0.0  ;;  %v7973_v42 = vld [vmem:[#allocation11 + $0x90] ss:$8 sps:$4 sm:$0xff]  }
 0x2e5   : > { %v1772_v46 = vpop.f32.mrf.mxu1  ;;  %2729 = vmatpush2.bf16.msra.mxu1 %v7973_v42 }
 0x2e6   : > { %v1773_v49 = vadd.f32 %v1772_v46, %v9570_v56  ;;  %2249 = vmatprep.mubr.bf16.mxu0 %v1974_v43  ;;  %v1916_v2 = vmax.f32 %v1771_v47, 0.0 }
 0x2e7   : > { %v1774_v57 = vpop.f32.mrf.mxu1  ;;  %2250 = vmatmul.mubr.bf16.gmra.mxu0 %v1973_v44 }
 0x2e8   : > { %v1775_v61 = vadd.f32 %v1774_v57, %v9567_v50  ;;  %v1917_v62 = vmax.f32 %v1773_v49, 0.0 }
 0x2e9   : > { %v1778_v1 = vpop.f32.mrf.mxu1 }
 0x2ea   : > { %v1918_v4 = vmax.f32 %v1775_v61, 0.0  ;;  %v1975_v12 = vpack.c.bf16 %v1917_v62, %v1915_v7  ;;  %v1779_v17 = vadd.f32 %v1778_v1, %v9570_v56 }
 0x2eb   : > { %v1780_v8 = vpop.f32.mrf.mxu1 }
 0x2ec   : > { %v1976_v10 = vpack.c.bf16 %v1918_v4, %v1916_v2  ;;  %v1781_v14 = vadd.f32 %v1780_v8, %v9567_v50  ;;  %v1919_v33 = vmax.f32 %v1779_v17, 0.0 }
 0x2ed   : > { %v1782_v13 = vpop.f32.mrf.mxu1 }
 0x2ee   : > { %v1783_v15 = vadd.f32 %v1782_v13, %v9570_v56  ;;  %2259 = vmatprep.mubr.bf16.mxu0 %v1976_v10  ;;  %v1920_v27 = vmax.f32 %v1781_v14, 0.0 }
 0x2ef   : > { %v1784_v19 = vpop.f32.mrf.mxu1  ;;  %2260 = vmatmul.mubr.bf16.gmra.mxu0 %v1975_v12 }
 0x2f0   : > { %v1785_v22 = vadd.f32 %v1784_v19, %v9567_v50  ;;  %v1921_v24 = vmax.f32 %v1783_v15, 0.0 }
 0x2f1   : > { %v1788_v26 = vpop.f32.mrf.mxu1 }
 0x2f2   : > { %v1922_v29 = vmax.f32 %v1785_v22, 0.0  ;;  %v1977_v39 = vpack.c.bf16 %v1921_v24, %v1919_v33  ;;  %v1789_v55 = vadd.f32 %v1788_v26, %v9570_v56 }
 0x2f3   : > { %v1790_v34 = vpop.f32.mrf.mxu1 }
 0x2f4   : > { %v1978_v37 = vpack.c.bf16 %v1922_v29, %v1920_v27  ;;  %v1791_v41 = vadd.f32 %v1790_v34, %v9567_v50  ;;  %v1923_v54 = vmax.f32 %v1789_v55, 0.0 }
 0x2f5   : > { %v1792_v40 = vpop.f32.mrf.mxu1 }
 0x2f6   : > { %v1793_v58 = vadd.f32 %v1792_v40, %v9570_v56  ;;  %2269 = vmatprep.mubr.bf16.mxu0 %v1978_v37  ;;  %v1924_v49 = vmax.f32 %v1791_v41, 0.0 }
 0x2f7   : > { %v1794_v43 = vpop.f32.mrf.mxu1  ;;  %2270 = vmatmul.mubr.bf16.gmra.mxu0 %v1977_v39 }
 0x2f8   : > { %v1795_v44 = vadd.f32 %v1794_v43, %v9567_v50  ;;  %v1925_v46 = vmax.f32 %v1793_v58, 0.0 }
 0x2f9   : > { %v1798_v47 = vpop.f32.mrf.mxu1 }
 0x2fa   : > { %v1926_v53 = vmax.f32 %v1795_v44, 0.0  ;;  %v1979_v61 = vpack.c.bf16 %v1925_v46, %v1923_v54  ;;  %v1799_v4 = vadd.f32 %v1798_v47, %v9570_v56 }
 0x2fb   : > { %v1800_v57 = vpop.f32.mrf.mxu1 }
 0x2fc   : > { %v1980_v60 = vpack.c.bf16 %v1926_v53, %v1924_v49  ;;  %v1801_v1 = vadd.f32 %v1800_v57, %v9567_v50  ;;  %v1927_v13 = vmax.f32 %v1799_v4, 0.0 }
 0x2fd   : > { %v1802_v62 = vpop.f32.mrf.mxu1 }
 0x2fe   : > { %v1803_v2 = vadd.f32 %v1802_v62, %v9570_v56  ;;  %2279 = vmatprep.mubr.bf16.mxu0 %v1980_v60  ;;  %v1928_v10 = vmax.f32 %v1801_v1, 0.0 }
 0x2ff   : > { %v1804_v5 = vpop.f32.mrf.mxu1  ;;  %2280 = vmatmul.mubr.bf16.gmra.mxu0 %v1979_v61 }
 0x300   : > { %v1805_v7 = vadd.f32 %v1804_v5, %v9567_v50  ;;  %v1929_v8 = vmax.f32 %v1803_v2, 0.0 }
 0x301   : > { %v1808_v9 = vpop.f32.mrf.mxu1 }
 0x302   : > { %v1930_v12 = vmax.f32 %v1805_v7, 0.0  ;;  %v1981_v16 = vpack.c.bf16 %v1929_v8, %v1927_v13  ;;  %v1809_v22 = vadd.f32 %v1808_v9, %v9570_v56 }
 0x303   : > { %v1810_v14 = vpop.f32.mrf.mxu1 }
 0x304   : > { %v1982_v15 = vpack.c.bf16 %v1930_v12, %v1928_v10  ;;  %v1811_v19 = vadd.f32 %v1810_v14, %v9567_v50  ;;  %v1931_v34 = vmax.f32 %v1809_v22, 0.0 }
 0x305   : > { %v1812_v17 = vpop.f32.mrf.mxu1 }
 0x306   : > { %v1813_v20 = vadd.f32 %v1812_v17, %v9570_v56  ;;  %2289 = vmatprep.mubr.bf16.mxu0 %v1982_v15  ;;  %v1932_v31 = vmax.f32 %v1811_v19, 0.0 }
 0x307   : > { %v1814_v24 = vpop.f32.mrf.mxu1  ;;  %2290 = vmatmul.mubr.bf16.gmra.mxu0 %v1981_v16 }
 0x308   : > { %v1815_v26 = vadd.f32 %v1814_v24, %v9567_v50  ;;  %v1933_v27 = vmax.f32 %v1813_v20, 0.0 }
 0x309   : > { %v1818_v29 = vpop.f32.mrf.mxu1 }
 0x30a   : > { %v1934_v33 = vmax.f32 %v1815_v26, 0.0  ;;  %v1983_v39 = vpack.c.bf16 %v1933_v27, %v1931_v34  ;;  %v1819_v42 = vadd.f32 %v1818_v29, %v9570_v56 }
 0x30b   : > { %v1820_v36 = vpop.f32.mrf.mxu1 }
 0x30c   : > { %v1984_v37 = vpack.c.bf16 %v1934_v33, %v1932_v31  ;;  %v1821_v41 = vadd.f32 %v1820_v36, %v9567_v50  ;;  %v1935_v53 = vmax.f32 %v1819_v42, 0.0 }
 0x30d   : > { %v1822_v40 = vpop.f32.mrf.mxu1 }
 0x30e   : > { %v1823_v58 = vadd.f32 %v1822_v40, %v9570_v56  ;;  %2299 = vmatprep.mubr.bf16.mxu0 %v1984_v37  ;;  %v1936_v47 = vmax.f32 %v1821_v41, 0.0 }
 0x30f   : > { %v1824_v55 = vpop.f32.mrf.mxu1  ;;  %2300 = vmatmul.mubr.bf16.gmra.mxu0 %v1983_v39 }
 0x310   : > { %v1825_v43 = vadd.f32 %v1824_v55, %v9567_v50  ;;  %v1937_v44 = vmax.f32 %v1823_v58, 0.0  ;;  %v7978_v55 = vld [vmem:[#allocation11 + $0x84] ss:$8 sps:$4 sm:$0xff]  }
 0x311   : > { %v1828_v46 = vpop.f32.mrf.mxu1  ;;  %2730 = vmatprep.subr.bf16.mxu1 %v7978_v55 }
 0x312   : > { %v1938_v49 = vmax.f32 %v1825_v43, 0.0  ;;  %v1985_v60 = vpack.c.bf16 %v1937_v44, %v1935_v53  ;;  %v1829_v2 = vadd.f32 %v1828_v46, %v9570_v56  ;;  %v7976_v44 = vld [vmem:[#allocation11 + $0x80] ss:$8 sps:$4 sm:$0xff]  }
 0x313   : > { %v1830_v54 = vpop.f32.mrf.mxu1  ;;  %2731 = vmatpush2.bf16.msra.mxu1 %v7976_v44 }
 0x314   : > { %v1986_v57 = vpack.c.bf16 %v1938_v49, %v1936_v47  ;;  %v1831_v62 = vadd.f32 %v1830_v54, %v9567_v50  ;;  %v1939_v12 = vmax.f32 %v1829_v2, 0.0 }
 0x315   : > { %v1832_v61 = vpop.f32.mrf.mxu1 }
 0x316   : > { %v1833_v1 = vadd.f32 %v1832_v61, %v9570_v56  ;;  %2309 = vmatprep.mubr.bf16.mxu0 %v1986_v57  ;;  %v1940_v9 = vmax.f32 %v1831_v62, 0.0 }
 0x317   : > { %v1834_v4 = vpop.f32.mrf.mxu1  ;;  %2310 = vmatmul.mubr.bf16.gmra.mxu0 %v1985_v60 }
 0x318   : > { %v1835_v5 = vadd.f32 %v1834_v4, %v9567_v50  ;;  %v1941_v7 = vmax.f32 %v1833_v1, 0.0 }
 0x319   : > { %v1838_v8 = vpop.f32.mrf.mxu1 }
 0x31a   : > { %v1942_v10 = vmax.f32 %v1835_v5, 0.0  ;;  %v1987_v15 = vpack.c.bf16 %v1941_v7, %v1939_v12  ;;  %v1839_v20 = vadd.f32 %v1838_v8, %v9570_v56 }
 0x31b   : > { %v1840_v13 = vpop.f32.mrf.mxu1 }
 0x31c   : > { %v1988_v14 = vpack.c.bf16 %v1942_v10, %v1940_v9  ;;  %v1841_v17 = vadd.f32 %v1840_v13, %v9567_v50  ;;  %v1943_v33 = vmax.f32 %v1839_v20, 0.0 }
 0x31d   : > { %v1842_v16 = vpop.f32.mrf.mxu1 }
 0x31e   : > { %v1843_v19 = vadd.f32 %v1842_v16, %v9570_v56  ;;  %2319 = vmatprep.mubr.bf16.mxu0 %v1988_v14  ;;  %v1944_v29 = vmax.f32 %v1841_v17, 0.0 }
 0x31f   : > { %v1844_v22 = vpop.f32.mrf.mxu1  ;;  %2320 = vmatmul.mubr.bf16.gmra.mxu0 %v1987_v15 }
 0x320   : > { %v1845_v24 = vadd.f32 %v1844_v22, %v9567_v50  ;;  %v1945_v26 = vmax.f32 %v1843_v19, 0.0 }
 0x321   : > { %v1848_v27 = vpop.f32.mrf.mxu1 }
 0x322   : > { %v1946_v31 = vmax.f32 %v1845_v24, 0.0  ;;  %v1989_v37 = vpack.c.bf16 %v1945_v26, %v1943_v33  ;;  %v1849_v58 = vadd.f32 %v1848_v27, %v9570_v56 }
 0x323   : > { %v1850_v34 = vpop.f32.mrf.mxu1 }
 0x324   : > { %v1990_v36 = vpack.c.bf16 %v1946_v31, %v1944_v29  ;;  %v1851_v40 = vadd.f32 %v1850_v34, %v9567_v50  ;;  %v1947_v54 = vmax.f32 %v1849_v58, 0.0 }
 0x325   : > { %v1852_v39 = vpop.f32.mrf.mxu1 }
 0x326   : > { %v1853_v41 = vadd.f32 %v1852_v39, %v9570_v56  ;;  %2329 = vmatprep.mubr.bf16.mxu0 %v1990_v36  ;;  %v1948_v49 = vmax.f32 %v1851_v40, 0.0 }
 0x327   : > { %v1854_v42 = vpop.f32.mrf.mxu1  ;;  %2330 = vmatmul.mubr.bf16.gmra.mxu0 %v1989_v37 }
 0x328   : > { %v1855_v43 = vadd.f32 %v1854_v42, %v9567_v50  ;;  %v1949_v46 = vmax.f32 %v1853_v41, 0.0 }
 0x329   : > { %v1858_v47 = vpop.f32.mrf.mxu1 }
 0x32a   : > { %v1950_v53 = vmax.f32 %v1855_v43, 0.0  ;;  %v1991_v61 = vpack.c.bf16 %v1949_v46, %v1947_v54  ;;  %v1859_v4 = vadd.f32 %v1858_v47, %v9570_v56 }
 0x32b   : > { %v1860_v57 = vpop.f32.mrf.mxu1 }
 0x32c   : > { %v1992_v60 = vpack.c.bf16 %v1950_v53, %v1948_v49  ;;  %v1861_v1 = vadd.f32 %v1860_v57, %v9567_v50  ;;  %v1951_v13 = vmax.f32 %v1859_v4, 0.0 }
 0x32d   : > { %v1862_v62 = vpop.f32.mrf.mxu1 }
 0x32e   : > { %v1863_v2 = vadd.f32 %v1862_v62, %v9570_v56  ;;  %2339 = vmatprep.mubr.bf16.mxu0 %v1992_v60  ;;  %v1952_v10 = vmax.f32 %v1861_v1, 0.0 }
 0x32f   : > { %v1864_v5 = vpop.f32.mrf.mxu1  ;;  %2340 = vmatmul.mubr.bf16.gmra.mxu0 %v1991_v61 }
 0x330   : > { %v1865_v7 = vadd.f32 %v1864_v5, %v9567_v50  ;;  %v1953_v8 = vmax.f32 %v1863_v2, 0.0 }
 0x331   : > { %v1868_v9 = vpop.f32.mrf.mxu1 }
 0x332   : > { %v1954_v12 = vmax.f32 %v1865_v7, 0.0  ;;  %v1993_v16 = vpack.c.bf16 %v1953_v8, %v1951_v13  ;;  %v1869_v22 = vadd.f32 %v1868_v9, %v9570_v56 }
 0x333   : > { %v1870_v14 = vpop.f32.mrf.mxu1 }
 0x334   : > { %v1994_v15 = vpack.c.bf16 %v1954_v12, %v1952_v10  ;;  %v1871_v19 = vadd.f32 %v1870_v14, %v9567_v50  ;;  %v1955_v34 = vmax.f32 %v1869_v22, 0.0 }
 0x335   : > { %v1872_v17 = vpop.f32.mrf.mxu1 }
 0x336   : > { %v1873_v20 = vadd.f32 %v1872_v17, %v9570_v56  ;;  %2349 = vmatprep.mubr.bf16.mxu0 %v1994_v15  ;;  %v1956_v31 = vmax.f32 %v1871_v19, 0.0 }
 0x337   : > { %v1874_v24 = vpop.f32.mrf.mxu1  ;;  %2350 = vmatmul.mubr.bf16.gmra.mxu0 %v1993_v16 }
 0x338   : > { %v1875_v26 = vadd.f32 %v1874_v24, %v9567_v50  ;;  %v1957_v27 = vmax.f32 %v1873_v20, 0.0 }
 0x339   : > { %v1878_v29 = vpop.f32.mrf.mxu1 }
 0x33a   : > { %v1958_v33 = vmax.f32 %v1875_v26, 0.0  ;;  %v1995_v39 = vpack.c.bf16 %v1957_v27, %v1955_v34  ;;  %v1879_v42 = vadd.f32 %v1878_v29, %v9570_v56 }
 0x33b   : > { %v1880_v36 = vpop.f32.mrf.mxu1 }
 0x33c   : > { %v1996_v37 = vpack.c.bf16 %v1958_v33, %v1956_v31  ;;  %v1881_v41 = vadd.f32 %v1880_v36, %v9567_v50  ;;  %v1959_v53 = vmax.f32 %v1879_v42, 0.0  ;;  %v7979_v36 = vld [vmem:[#allocation13 + $0x70] ss:$8 sps:$4 sm:$0xff]  }
 0x33d   : > { %v1882_v40 = vpop.f32.mrf.mxu1  ;;  %v7991_v42 = vld [vmem:[#allocation13 + $0x30] ss:$8 sps:$4 sm:$0xff]  }
 0x33e   : > { %v1883_v58 = vadd.f32 %v1882_v40, %v9570_v56  ;;  %2359 = vmatprep.mubr.bf16.mxu0 %v1996_v37  ;;  %v1960_v47 = vmax.f32 %v1881_v41, 0.0  ;;  %v7981_v37 = vld [vmem:[#allocation13 + $0x74] ss:$8 sps:$4 sm:$0xff]   ;;  %v7984_v40 = vld [vmem:[#allocation13 + $0x64] ss:$8 sps:$4 sm:$0xff]  }
 0x33f   : > { %v1884_v55 = vpop.f32.mrf.mxu1  ;;  %2360 = vmatmul.mubr.bf16.gmra.mxu0 %v1995_v39  ;;  %3193 = vmatprep.subr.bf16.mxu0 %v7981_v37  ;;  %v7982_v39 = vld [vmem:[#allocation13 + $0x60] ss:$8 sps:$4 sm:$0xff]   ;;  %v7987_v41 = vld [vmem:[#allocation13 + $0x54] ss:$8 sps:$4 sm:$0xff]  }
 0x340   : > { %v1885_v43 = vadd.f32 %v1884_v55, %v9567_v50  ;;  %v1961_v44 = vmax.f32 %v1883_v58, 0.0  ;;  %3194 = vmatpush1.bf16.msra.mxu0 %v7979_v36  ;;  %v7990_v58 = vld [vmem:[#allocation13 + $0x44] ss:$8 sps:$4 sm:$0xff]   ;;  %v7993_v55 = vld [vmem:[#allocation13 + $0x34] ss:$8 sps:$4 sm:$0xff]  }
 0x341   : > { %v1888_v46 = vpop.f32.mrf.mxu1  ;;  %3195 = vmatprep.subr.bf16.mxu0 %v7984_v40  ;;  %v8006_v40 = vld [vmem:[#allocation13 + $0xe0] ss:$8 sps:$4 sm:$0xff]  }
 0x342   : > { %v1962_v49 = vmax.f32 %v1885_v43, 0.0  ;;  %v1997_v60 = vpack.c.bf16 %v1961_v44, %v1959_v53  ;;  %v1889_v2 = vadd.f32 %v1888_v46, %v9570_v56  ;;  %v2035_v43 = vld [vmem:[%s10710_s15] sm:$0x3] }
 0x343   : > { %v1890_v54 = vpop.f32.mrf.mxu1  ;;  %v9640_v46 = vrot.slane %v2035_v43, %v9486_v48  ;;  %v9643_v53 = vrot.slane %v2035_v43, %v9488_v51 }
 0x344   : > { %v1998_v57 = vpack.c.bf16 %v1962_v49, %v1960_v47  ;;  %v1891_v62 = vadd.f32 %v1890_v54, %v9567_v50  ;;  %v1963_v12 = vmax.f32 %v1889_v2, 0.0  ;;  %3196 = vmatpush1.bf16.msra.mxu0 %v7982_v39  ;;  %v7994_v47 = vld [vmem:[#allocation13 + $0x20] ss:$8 sps:$4 sm:$0xff]   ;;  %v7996_v49 = vld [vmem:[#allocation13 + $0x24] ss:$8 sps:$4 sm:$0xff]  }
 0x345   : > { %v1892_v61 = vpop.f32.mrf.mxu1  ;;  %3197 = vmatprep.subr.bf16.mxu0 %v7987_v41  ;;  %v7997_v2 = vld [vmem:[#allocation13 + $0x10] ss:$8 sps:$4 sm:$0xff]  }
 0x346   : > { %v1893_v1 = vadd.f32 %v1892_v61, %v9570_v56  ;;  %2369 = vmatprep.mubr.bf16.mxu0 %v1998_v57  ;;  %v1964_v9 = vmax.f32 %v1891_v62, 0.0 }
 0x347   : > { %v1894_v4 = vpop.f32.mrf.mxu1  ;;  %2370 = vmatmul.mubr.bf16.gmra.mxu0 %v1997_v60 }
 0x348   : > { %v1895_v5 = vadd.f32 %v1894_v4, %v9567_v50  ;;  %v1965_v7 = vmax.f32 %v1893_v1, 0.0  ;;  %v7999_v4 = vld [vmem:[#allocation13 + $0x14] ss:$8 sps:$4 sm:$0xff]  }
 0x349   : > { %v1898_v8 = vpop.f32.mrf.mxu1 }
 0x34a   : > { %v1966_v10 = vmax.f32 %v1895_v5, 0.0  ;;  %v1999_v15 = vpack.c.bf16 %v1965_v7, %v1963_v12  ;;  %v1899_v20 = vadd.f32 %v1898_v8, %v9570_v56  ;;  %v8002_v7 = vld [vmem:[#allocation13 + $0x4] ss:$8 sps:$4 sm:$0xff]  }
 0x34b   : > { %v1900_v13 = vpop.f32.mrf.mxu1 }
 0x34c   : > { %v2000_v14 = vpack.c.bf16 %v1966_v10, %v1964_v9  ;;  %v1901_v17 = vadd.f32 %v1900_v13, %v9567_v50  ;;  %v1967_v31 = vmax.f32 %v1899_v20, 0.0  ;;  %v8000_v13 = vld [vmem:[#allocation13] ss:$8 sps:$4 sm:$0xff]  }
 0x34d   : > { %v1902_v16 = vpop.f32.mrf.mxu1 }
 0x34e   : > { %v1903_v19 = vadd.f32 %v1902_v16, %v9570_v56  ;;  %2379 = vmatprep.mubr.bf16.mxu0 %v2000_v14  ;;  %v1968_v27 = vmax.f32 %v1901_v17, 0.0  ;;  %v7985_v56 = vld [vmem:[#allocation13 + $0x50] ss:$8 sps:$4 sm:$0xff]   ;;  %v8005_v16 = vld [vmem:[#allocation13 + $0xf4] ss:$8 sps:$4 sm:$0xff]  }
 0x34f   : > { %v1904_v22 = vpop.f32.mrf.mxu1  ;;  %2380 = vmatmul.mubr.bf16.gmra.mxu0 %v1999_v15 }
 0x350   : > { %v1905_v24 = vadd.f32 %v1904_v22, %v9567_v50  ;;  %v1969_v26 = vmax.f32 %v1903_v19, 0.0  ;;  %3198 = vmatpush1.bf16.msra.mxu0 %v7985_v56  ;;  %v7988_v50 = vld [vmem:[#allocation13 + $0x40] ss:$8 sps:$4 sm:$0xff]  }
 0x351   : > { %3199 = vmatprep.subr.bf16.mxu0 %v7990_v58 }
 0x352   : > { %v1970_v29 = vmax.f32 %v1905_v24, 0.0  ;;  %v2001_v34 = vpack.c.bf16 %v1969_v26, %v1967_v31  ;;  %v8003_v26 = vld [vmem:[#allocation13 + $0xf0] ss:$8 sps:$4 sm:$0xff]   ;;  %v8008_v31 = vld [vmem:[#allocation13 + $0xe4] ss:$8 sps:$4 sm:$0xff]  }
 0x354   : > { %v2002_v33 = vpack.c.bf16 %v1970_v29, %v1968_v27  ;;  %3200 = vmatpush1.bf16.msra.mxu0 %v7988_v50  ;;  %v8011_v50 = vld [vmem:[#allocation13 + $0xd4] ss:$8 sps:$4 sm:$0xff]  }
 0x355   : > { %3201 = vmatprep.subr.bf16.mxu0 %v7993_v55 }
 0x356   : > { %2389 = vmatprep.mubr.bf16.mxu0 %v2002_v33 }
 0x357   : > { %2390 = vmatmul.mubr.bf16.gmra.mxu0 %v2001_v34 }
 0x358   : > { %3202 = vmatpush1.bf16.msra.mxu0 %v7991_v42 }
 0x359   : > { %3203 = vmatprep.subr.bf16.mxu0 %v7996_v49 }
 0x35c   : > { %3204 = vmatpush1.bf16.msra.mxu0 %v7994_v47  ;;  %v8009_v47 = vld [vmem:[#allocation13 + $0xd0] ss:$8 sps:$4 sm:$0xff]  }
 0x35d   : > { %3205 = vmatprep.subr.bf16.mxu0 %v7999_v4  ;;  %v8012_v4 = vld [vmem:[#allocation13 + $0xc0] ss:$8 sps:$4 sm:$0xff]  }
 0x360   : > { %3206 = vmatpush1.bf16.msra.mxu0 %v7997_v2 }
 0x361   : > { %3207 = vmatprep.subr.bf16.mxu0 %v8002_v7 }
 0x364   : > { %3208 = vmatpush1.bf16.msra.mxu0 %v8000_v13 }
 0x365   : > { %3209 = vmatprep.subr.bf16.mxu0 %v8005_v16 }
 0x368   : > { %3210 = vmatpush2.bf16.msra.mxu0 %v8003_v26 }
 0x369   : > { %3211 = vmatprep.subr.bf16.mxu0 %v8008_v31 }
 0x36c   : > { %3212 = vmatpush2.bf16.msra.mxu0 %v8006_v40 }
 0x36d   : > { %3213 = vmatprep.subr.bf16.mxu0 %v8011_v50 }
 0x370   : > { %3214 = vmatpush2.bf16.msra.mxu0 %v8009_v47 }
 0x39f   : > { %v2241_v44 = vpop.f32.mrf.mxu0 }
 0x3a0   : > { %v2242_v62 = vadd.f32 %v2241_v44, %v9643_v53 }
 0x3a1   : > { %v2243_v54 = vpop.f32.mrf.mxu0 }
 0x3a2   : > { %v2244_v60 = vadd.f32 %v2243_v54, %v9640_v46  ;;  %v2400_v14 = vmax.f32 %v2242_v62, 0.0 }
 0x3a3   : > { %v2245_v57 = vpop.f32.mrf.mxu0 }
 0x3a4   : > { %v2246_v61 = vadd.f32 %v2245_v57, %v9643_v53  ;;  %v2401_v10 = vmax.f32 %v2244_v60, 0.0  ;;  %v8014_v57 = vld [vmem:[#allocation13 + $0xc4] ss:$8 sps:$4 sm:$0xff]  }
 0x3a5   : > { %v2247_v1 = vpop.f32.mrf.mxu0  ;;  %3215 = vmatprep.subr.bf16.mxu0 %v8014_v57 }
 0x3a6   : > { %v2248_v5 = vadd.f32 %v2247_v1, %v9640_v46  ;;  %v2402_v8 = vmax.f32 %v2246_v61, 0.0  ;;  %3216 = vmatpush2.bf16.msra.mxu0 %v8012_v4 }
 0x3a7   : > { %v2251_v9 = vpop.f32.mrf.mxu0 }
 0x3a8   : > { %v2403_v12 = vmax.f32 %v2248_v5, 0.0  ;;  %v2464_v19 = vpack.c.bf16 %v2402_v8, %v2400_v14  ;;  %v2252_v27 = vadd.f32 %v2251_v9, %v9643_v53  ;;  %v8017_v8 = vld [vmem:[#allocation13 + $0xb4] ss:$8 sps:$4 sm:$0xff]  }
 0x3a9   : > { %v2253_v15 = vpop.f32.mrf.mxu0  ;;  %3217 = vmatprep.subr.bf16.mxu0 %v8017_v8 }
 0x3aa   : > { %v2465_v17 = vpack.c.bf16 %v2403_v12, %v2401_v10  ;;  %v2254_v22 = vadd.f32 %v2253_v15, %v9640_v46  ;;  %v2404_v56 = vmax.f32 %v2252_v27, 0.0  ;;  %v8015_v15 = vld [vmem:[#allocation13 + $0xb0] ss:$8 sps:$4 sm:$0xff]  }
 0x3ab   : > { %v2255_v20 = vpop.f32.mrf.mxu0  ;;  %3218 = vmatpush2.bf16.msra.mxu0 %v8015_v15 }
 0x3ac   : > { %v2256_v24 = vadd.f32 %v2255_v20, %v9643_v53  ;;  %2732 = vmatprep.mubr.bf16.mxu1 %v2465_v17  ;;  %v2405_v37 = vmax.f32 %v2254_v22, 0.0 }
 0x3ad   : > { %v2257_v29 = vpop.f32.mrf.mxu0  ;;  %2733 = vmatmul.mubr.bf16.vlgmr.msra.gmra.mxu1 %v2464_v19  ;;  %v8020_v19 = vld [vmem:[#allocation13 + $0xa4] ss:$8 sps:$4 sm:$0xff]  }
 0x3ae   : > { %v2258_v33 = vadd.f32 %v2257_v29, %v9640_v46  ;;  %v2406_v34 = vmax.f32 %v2256_v24, 0.0  ;;  %v8018_v29 = vld [vmem:[#allocation13 + $0xa0] ss:$8 sps:$4 sm:$0xff]   ;;  %3219 = vmatprep.subr.bf16.mxu0 %v8020_v19 }
 0x3af   : > { %v2261_v36 = vpop.f32.mrf.mxu0  ;;  %3220 = vmatpush2.bf16.msra.mxu0 %v8018_v29 }
 0x3b0   : > { %v2407_v39 = vmax.f32 %v2258_v33, 0.0  ;;  %v2466_v42 = vpack.c.bf16 %v2406_v34, %v2404_v56  ;;  %v2262_v49 = vadd.f32 %v2261_v36, %v9643_v53  ;;  %v8023_v34 = vld [vmem:[#allocation13 + $0x94] ss:$8 sps:$4 sm:$0xff]  }
 0x3b1   : > { %v2263_v41 = vpop.f32.mrf.mxu0  ;;  %3221 = vmatprep.subr.bf16.mxu0 %v8023_v34 }
 0x3b2   : > { %v2467_v58 = vpack.c.bf16 %v2407_v39, %v2405_v37  ;;  %v2264_v43 = vadd.f32 %v2263_v41, %v9640_v46  ;;  %v2408_v5 = vmax.f32 %v2262_v49, 0.0  ;;  %v8021_v41 = vld [vmem:[#allocation13 + $0x90] ss:$8 sps:$4 sm:$0xff]  }
 0x3b3   : > { %v2265_v55 = vpop.f32.mrf.mxu0  ;;  %3222 = vmatpush2.bf16.msra.mxu0 %v8021_v41 }
 0x3b4   : > { %v2266_v44 = vadd.f32 %v2265_v55, %v9643_v53  ;;  %2742 = vmatprep.mubr.bf16.mxu1 %v2467_v58  ;;  %v2409_v1 = vmax.f32 %v2264_v43, 0.0 }
 0x3b5   : > { %v2267_v54 = vpop.f32.mrf.mxu0  ;;  %2743 = vmatmul.mubr.bf16.gmra.mxu1 %v2466_v42 }
 0x3b6   : > { %v2268_v60 = vadd.f32 %v2267_v54, %v9640_v46  ;;  %v2410_v61 = vmax.f32 %v2266_v44, 0.0 }
 0x3b7   : > { %v2271_v62 = vpop.f32.mrf.mxu0 }
 0x3b8   : > { %v2411_v2 = vmax.f32 %v2268_v60, 0.0  ;;  %v2468_v10 = vpack.c.bf16 %v2410_v61, %v2408_v5  ;;  %v2272_v16 = vadd.f32 %v2271_v62, %v9643_v53 }
 0x3b9   : > { %v2273_v7 = vpop.f32.mrf.mxu0 }
 0x3ba   : > { %v2469_v9 = vpack.c.bf16 %v2411_v2, %v2409_v1  ;;  %v2274_v13 = vadd.f32 %v2273_v7, %v9640_v46  ;;  %v2412_v31 = vmax.f32 %v2272_v16, 0.0 }
 0x3bb   : > { %v2275_v12 = vpop.f32.mrf.mxu0 }
 0x3bc   : > { %v2276_v14 = vadd.f32 %v2275_v12, %v9643_v53  ;;  %2752 = vmatprep.mubr.bf16.mxu1 %v2469_v9  ;;  %v2413_v26 = vmax.f32 %v2274_v13, 0.0 }
 0x3bd   : > { %v2277_v17 = vpop.f32.mrf.mxu0  ;;  %2753 = vmatmul.mubr.bf16.gmra.mxu1 %v2468_v10 }
 0x3be   : > { %v2278_v20 = vadd.f32 %v2277_v17, %v9640_v46  ;;  %v2414_v22 = vmax.f32 %v2276_v14, 0.0 }
 0x3bf   : > { %v2281_v24 = vpop.f32.mrf.mxu0 }
 0x3c0   : > { %v2415_v27 = vmax.f32 %v2278_v20, 0.0  ;;  %v2470_v37 = vpack.c.bf16 %v2414_v22, %v2412_v31  ;;  %v2282_v50 = vadd.f32 %v2281_v24, %v9643_v53 }
 0x3c1   : > { %v2283_v33 = vpop.f32.mrf.mxu0 }
 0x3c2   : > { %v2471_v36 = vpack.c.bf16 %v2415_v27, %v2413_v26  ;;  %v2284_v40 = vadd.f32 %v2283_v33, %v9640_v46  ;;  %v2416_v49 = vmax.f32 %v2282_v50, 0.0 }
 0x3c3   : > { %v2285_v39 = vpop.f32.mrf.mxu0 }
 0x3c4   : > { %v2286_v56 = vadd.f32 %v2285_v39, %v9643_v53  ;;  %2762 = vmatprep.mubr.bf16.mxu1 %v2471_v36  ;;  %v2417_v44 = vmax.f32 %v2284_v40, 0.0 }
 0x3c5   : > { %v2287_v58 = vpop.f32.mrf.mxu0  ;;  %2763 = vmatmul.mubr.bf16.gmra.mxu1 %v2470_v37 }
 0x3c6   : > { %v2288_v42 = vadd.f32 %v2287_v58, %v9640_v46  ;;  %v2418_v55 = vmax.f32 %v2286_v56, 0.0 }
 0x3c7   : > { %v2291_v43 = vpop.f32.mrf.mxu0 }
 0x3c8   : > { %v2419_v47 = vmax.f32 %v2288_v42, 0.0  ;;  %v2472_v60 = vpack.c.bf16 %v2418_v55, %v2416_v49  ;;  %v2292_v2 = vadd.f32 %v2291_v43, %v9643_v53 }
 0x3c9   : > { %v2293_v54 = vpop.f32.mrf.mxu0 }
 0x3ca   : > { %v2473_v57 = vpack.c.bf16 %v2419_v47, %v2417_v44  ;;  %v2294_v62 = vadd.f32 %v2293_v54, %v9640_v46  ;;  %v2420_v12 = vmax.f32 %v2292_v2, 0.0 }
 0x3cb   : > { %v2295_v61 = vpop.f32.mrf.mxu0 }
 0x3cc   : > { %v2296_v1 = vadd.f32 %v2295_v61, %v9643_v53  ;;  %2772 = vmatprep.mubr.bf16.mxu1 %v2473_v57  ;;  %v2421_v9 = vmax.f32 %v2294_v62, 0.0 }
 0x3cd   : > { %v2297_v4 = vpop.f32.mrf.mxu0  ;;  %2773 = vmatmul.mubr.bf16.gmra.mxu1 %v2472_v60 }
 0x3ce   : > { %v2298_v5 = vadd.f32 %v2297_v4, %v9640_v46  ;;  %v2422_v7 = vmax.f32 %v2296_v1, 0.0 }
 0x3cf   : > { %v2301_v8 = vpop.f32.mrf.mxu0 }
 0x3d0   : > { %v2423_v10 = vmax.f32 %v2298_v5, 0.0  ;;  %v2474_v15 = vpack.c.bf16 %v2422_v7, %v2420_v12  ;;  %v2302_v20 = vadd.f32 %v2301_v8, %v9643_v53 }
 0x3d1   : > { %v2303_v13 = vpop.f32.mrf.mxu0 }
 0x3d2   : > { %v2475_v14 = vpack.c.bf16 %v2423_v10, %v2421_v9  ;;  %v2304_v17 = vadd.f32 %v2303_v13, %v9640_v46  ;;  %v2424_v33 = vmax.f32 %v2302_v20, 0.0 }
 0x3d3   : > { %v2305_v16 = vpop.f32.mrf.mxu0 }
 0x3d4   : > { %v2306_v19 = vadd.f32 %v2305_v16, %v9643_v53  ;;  %2782 = vmatprep.mubr.bf16.mxu1 %v2475_v14  ;;  %v2425_v29 = vmax.f32 %v2304_v17, 0.0 }
 0x3d5   : > { %v2307_v22 = vpop.f32.mrf.mxu0  ;;  %2783 = vmatmul.mubr.bf16.gmra.mxu1 %v2474_v15 }
 0x3d6   : > { %v2308_v24 = vadd.f32 %v2307_v22, %v9640_v46  ;;  %v2426_v26 = vmax.f32 %v2306_v19, 0.0 }
 0x3d7   : > { %v2311_v27 = vpop.f32.mrf.mxu0 }
 0x3d8   : > { %v2427_v31 = vmax.f32 %v2308_v24, 0.0  ;;  %v2476_v37 = vpack.c.bf16 %v2426_v26, %v2424_v33  ;;  %v2312_v41 = vadd.f32 %v2311_v27, %v9643_v53 }
 0x3d9   : > { %v2313_v34 = vpop.f32.mrf.mxu0 }
 0x3da   : > { %v2477_v36 = vpack.c.bf16 %v2427_v31, %v2425_v29  ;;  %v2314_v40 = vadd.f32 %v2313_v34, %v9640_v46  ;;  %v2428_v47 = vmax.f32 %v2312_v41, 0.0 }
 0x3db   : > { %v2315_v39 = vpop.f32.mrf.mxu0 }
 0x3dc   : > { %v2316_v56 = vadd.f32 %v2315_v39, %v9643_v53  ;;  %2792 = vmatprep.mubr.bf16.mxu1 %v2477_v36  ;;  %v2429_v43 = vmax.f32 %v2314_v40, 0.0 }
 0x3dd   : > { %v2317_v50 = vpop.f32.mrf.mxu0  ;;  %2793 = vmatmul.mubr.bf16.gmra.mxu1 %v2476_v37 }
 0x3de   : > { %v2318_v58 = vadd.f32 %v2317_v50, %v9640_v46  ;;  %v2430_v42 = vmax.f32 %v2316_v56, 0.0  ;;  %v8026_v50 = vld [vmem:[#allocation13 + $0x84] ss:$8 sps:$4 sm:$0xff]  }
 0x3df   : > { %v2321_v55 = vpop.f32.mrf.mxu0  ;;  %3223 = vmatprep.subr.bf16.mxu0 %v8026_v50 }
 0x3e0   : > { %v2431_v44 = vmax.f32 %v2318_v58, 0.0  ;;  %v2478_v57 = vpack.c.bf16 %v2430_v42, %v2428_v47  ;;  %v2322_v1 = vadd.f32 %v2321_v55, %v9643_v53  ;;  %v8024_v42 = vld [vmem:[#allocation13 + $0x80] ss:$8 sps:$4 sm:$0xff]  }
 0x3e1   : > { %v2323_v49 = vpop.f32.mrf.mxu0  ;;  %3224 = vmatpush2.bf16.msra.mxu0 %v8024_v42 }
 0x3e2   : > { %v2479_v54 = vpack.c.bf16 %v2431_v44, %v2429_v43  ;;  %v2324_v61 = vadd.f32 %v2323_v49, %v9640_v46  ;;  %v2432_v10 = vmax.f32 %v2322_v1, 0.0 }
 0x3e3   : > { %v2325_v60 = vpop.f32.mrf.mxu0 }
 0x3e4   : > { %v2326_v62 = vadd.f32 %v2325_v60, %v9643_v53  ;;  %2802 = vmatprep.mubr.bf16.mxu1 %v2479_v54  ;;  %v2433_v8 = vmax.f32 %v2324_v61, 0.0 }
 0x3e5   : > { %v2327_v2 = vpop.f32.mrf.mxu0  ;;  %2803 = vmatmul.mubr.bf16.gmra.mxu1 %v2478_v57 }
 0x3e6   : > { %v2328_v4 = vadd.f32 %v2327_v2, %v9640_v46  ;;  %v2434_v5 = vmax.f32 %v2326_v62, 0.0 }
 0x3e7   : > { %v2331_v7 = vpop.f32.mrf.mxu0 }
 0x3e8   : > { %v2435_v9 = vmax.f32 %v2328_v4, 0.0  ;;  %v2480_v14 = vpack.c.bf16 %v2434_v5, %v2432_v10  ;;  %v2332_v19 = vadd.f32 %v2331_v7, %v9643_v53 }
 0x3e9   : > { %v2333_v12 = vpop.f32.mrf.mxu0 }
 0x3ea   : > { %v2481_v13 = vpack.c.bf16 %v2435_v9, %v2433_v8  ;;  %v2334_v16 = vadd.f32 %v2333_v12, %v9640_v46  ;;  %v2436_v31 = vmax.f32 %v2332_v19, 0.0 }
 0x3eb   : > { %v2335_v15 = vpop.f32.mrf.mxu0 }
 0x3ec   : > { %v2336_v17 = vadd.f32 %v2335_v15, %v9643_v53  ;;  %2812 = vmatprep.mubr.bf16.mxu1 %v2481_v13  ;;  %v2437_v27 = vmax.f32 %v2334_v16, 0.0 }
 0x3ed   : > { %v2337_v20 = vpop.f32.mrf.mxu0  ;;  %2813 = vmatmul.mubr.bf16.gmra.mxu1 %v2480_v14 }
 0x3ee   : > { %v2338_v22 = vadd.f32 %v2337_v20, %v9640_v46  ;;  %v2438_v24 = vmax.f32 %v2336_v17, 0.0 }
 0x3ef   : > { %v2341_v26 = vpop.f32.mrf.mxu0 }
 0x3f0   : > { %v2439_v29 = vmax.f32 %v2338_v22, 0.0  ;;  %v2482_v36 = vpack.c.bf16 %v2438_v24, %v2436_v31  ;;  %v2342_v56 = vadd.f32 %v2341_v26, %v9643_v53 }
 0x3f1   : > { %v2343_v33 = vpop.f32.mrf.mxu0 }
 0x3f2   : > { %v2483_v34 = vpack.c.bf16 %v2439_v29, %v2437_v27  ;;  %v2344_v39 = vadd.f32 %v2343_v33, %v9640_v46  ;;  %v2440_v49 = vmax.f32 %v2342_v56, 0.0 }
 0x3f3   : > { %v2345_v37 = vpop.f32.mrf.mxu0 }
 0x3f4   : > { %v2346_v40 = vadd.f32 %v2345_v37, %v9643_v53  ;;  %2822 = vmatprep.mubr.bf16.mxu1 %v2483_v34  ;;  %v2441_v44 = vmax.f32 %v2344_v39, 0.0 }
 0x3f5   : > { %v2347_v41 = vpop.f32.mrf.mxu0  ;;  %2823 = vmatmul.mubr.bf16.gmra.mxu1 %v2482_v36 }
 0x3f6   : > { %v2348_v58 = vadd.f32 %v2347_v41, %v9640_v46  ;;  %v2442_v55 = vmax.f32 %v2346_v40, 0.0 }
 0x3f7   : > { %v2351_v43 = vpop.f32.mrf.mxu0 }
 0x3f8   : > { %v2443_v47 = vmax.f32 %v2348_v58, 0.0  ;;  %v2484_v60 = vpack.c.bf16 %v2442_v55, %v2440_v49  ;;  %v2352_v2 = vadd.f32 %v2351_v43, %v9643_v53 }
 0x3f9   : > { %v2353_v54 = vpop.f32.mrf.mxu0 }
 0x3fa   : > { %v2485_v57 = vpack.c.bf16 %v2443_v47, %v2441_v44  ;;  %v2354_v62 = vadd.f32 %v2353_v54, %v9640_v46  ;;  %v2444_v12 = vmax.f32 %v2352_v2, 0.0 }
 0x3fb   : > { %v2355_v61 = vpop.f32.mrf.mxu0 }
 0x3fc   : > { %v2356_v1 = vadd.f32 %v2355_v61, %v9643_v53  ;;  %2832 = vmatprep.mubr.bf16.mxu1 %v2485_v57  ;;  %v2445_v9 = vmax.f32 %v2354_v62, 0.0 }
 0x3fd   : > { %v2357_v4 = vpop.f32.mrf.mxu0  ;;  %2833 = vmatmul.mubr.bf16.gmra.mxu1 %v2484_v60 }
 0x3fe   : > { %v2358_v5 = vadd.f32 %v2357_v4, %v9640_v46  ;;  %v2446_v7 = vmax.f32 %v2356_v1, 0.0 }
 0x3ff   : > { %v2361_v8 = vpop.f32.mrf.mxu0 }
 0x400   : > { %v2447_v10 = vmax.f32 %v2358_v5, 0.0  ;;  %v2486_v15 = vpack.c.bf16 %v2446_v7, %v2444_v12  ;;  %v2362_v20 = vadd.f32 %v2361_v8, %v9643_v53 }
 0x401   : > { %v2363_v13 = vpop.f32.mrf.mxu0 }
 0x402   : > { %v2487_v14 = vpack.c.bf16 %v2447_v10, %v2445_v9  ;;  %v2364_v17 = vadd.f32 %v2363_v13, %v9640_v46  ;;  %v2448_v33 = vmax.f32 %v2362_v20, 0.0 }
 0x403   : > { %v2365_v16 = vpop.f32.mrf.mxu0 }
 0x404   : > { %v2366_v19 = vadd.f32 %v2365_v16, %v9643_v53  ;;  %2842 = vmatprep.mubr.bf16.mxu1 %v2487_v14  ;;  %v2449_v29 = vmax.f32 %v2364_v17, 0.0 }
 0x405   : > { %v2367_v22 = vpop.f32.mrf.mxu0  ;;  %2843 = vmatmul.mubr.bf16.gmra.mxu1 %v2486_v15 }
 0x406   : > { %v2368_v24 = vadd.f32 %v2367_v22, %v9640_v46  ;;  %v2450_v26 = vmax.f32 %v2366_v19, 0.0 }
 0x407   : > { %v2371_v27 = vpop.f32.mrf.mxu0 }
 0x408   : > { %v2451_v31 = vmax.f32 %v2368_v24, 0.0  ;;  %v2488_v37 = vpack.c.bf16 %v2450_v26, %v2448_v33  ;;  %v2372_v41 = vadd.f32 %v2371_v27, %v9643_v53 }
 0x409   : > { %v2373_v34 = vpop.f32.mrf.mxu0 }
 0x40a   : > { %v2489_v36 = vpack.c.bf16 %v2451_v31, %v2449_v29  ;;  %v2374_v40 = vadd.f32 %v2373_v34, %v9640_v46  ;;  %v2452_v47 = vmax.f32 %v2372_v41, 0.0  ;;  %v8027_v34 = vld [vmem:[#allocation16 + $0x70] ss:$8 sps:$4 sm:$0xff]   ;;  %v8044_v41 = vld [vmem:[#allocation16 + $0x44] ss:$8 sps:$4 sm:$0xff]  }
 0x40b   : > { %v2375_v39 = vpop.f32.mrf.mxu0 }
 0x40c   : > { %v2376_v56 = vadd.f32 %v2375_v39, %v9643_v53  ;;  %2852 = vmatprep.mubr.bf16.mxu1 %v2489_v36  ;;  %v2453_v43 = vmax.f32 %v2374_v40, 0.0  ;;  %v8029_v36 = vld [vmem:[#allocation16 + $0x74] ss:$8 sps:$4 sm:$0xff]   ;;  %v8033_v39 = vld [vmem:[#allocation16 + $0x60] ss:$8 sps:$4 sm:$0xff]  }
 0x40d   : > { %v2377_v50 = vpop.f32.mrf.mxu0  ;;  %2853 = vmatmul.mubr.bf16.gmra.mxu1 %v2488_v37  ;;  %3702 = vmatprep.subr.bf16.mxu1 %v8029_v36  ;;  %v8032_v37 = vld [vmem:[#allocation14 + $0x74] ss:$8 sps:$4 sm:$0xff]   ;;  %v8036_v40 = vld [vmem:[#allocation16 + $0x50] ss:$8 sps:$4 sm:$0xff]  }
 0x40e   : > { %v2378_v58 = vadd.f32 %v2377_v50, %v9640_v46  ;;  %v2454_v42 = vmax.f32 %v2376_v56, 0.0  ;;  %3703 = vmatpush1.bf16.msra.mxu1 %v8027_v34  ;;  %3975 = vmatprep.subr.bf16.mxu0 %v8032_v37  ;;  %v8042_v56 = vld [vmem:[#allocation16 + $0x40] ss:$8 sps:$4 sm:$0xff]   ;;  %v8045_v50 = vld [vmem:[#allocation16 + $0x30] ss:$8 sps:$4 sm:$0xff]  }
 0x40f   : > { %v2381_v55 = vpop.f32.mrf.mxu0  ;;  %v8071_v34 = vld [vmem:[#allocation16 + $0xe4] ss:$8 sps:$4 sm:$0xff]   ;;  %v8039_v37 = vld [vmem:[#allocation14 + $0x60] ss:$8 sps:$4 sm:$0xff]  }
 0x410   : > { %v2455_v44 = vmax.f32 %v2378_v58, 0.0  ;;  %v2490_v57 = vpack.c.bf16 %v2454_v42, %v2452_v47  ;;  %v2382_v1 = vadd.f32 %v2381_v55, %v9643_v53  ;;  %v8047_v58 = vld [vmem:[#allocation16 + $0x34] ss:$8 sps:$4 sm:$0xff]  }
 0x411   : > { %v2383_v49 = vpop.f32.mrf.mxu0  ;;  %v2528_v42 = vld [vmem:[%s10711_s14] sm:$0x3] }
 0x412   : > { %v2491_v54 = vpack.c.bf16 %v2455_v44, %v2453_v43  ;;  %v2384_v61 = vadd.f32 %v2383_v49, %v9640_v46  ;;  %v2456_v10 = vmax.f32 %v2382_v1, 0.0  ;;  %v9713_v43 = vrot.slane %v2528_v42, %v9486_v48  ;;  %v8051_v44 = vld [vmem:[#allocation16 + $0x20] ss:$8 sps:$4 sm:$0xff]  }
 0x413   : > { %v2385_v60 = vpop.f32.mrf.mxu0  ;;  %v9716_v47 = vrot.slane %v2528_v42, %v9488_v51  ;;  %v8074_v42 = vld [vmem:[#allocation16 + $0xd4] ss:$8 sps:$4 sm:$0xff]  }
 0x414   : > { %v2386_v62 = vadd.f32 %v2385_v60, %v9643_v53  ;;  %2862 = vmatprep.mubr.bf16.mxu1 %v2491_v54  ;;  %v2457_v8 = vmax.f32 %v2384_v61, 0.0  ;;  %v8053_v54 = vld [vmem:[#allocation16 + $0x24] ss:$8 sps:$4 sm:$0xff]  }
 0x415   : > { %v2387_v2 = vpop.f32.mrf.mxu0  ;;  %2863 = vmatmul.mubr.bf16.gmra.mxu1 %v2490_v57 }
 0x416   : > { %v2388_v4 = vadd.f32 %v2387_v2, %v9640_v46  ;;  %v2458_v5 = vmax.f32 %v2386_v62, 0.0  ;;  %v8054_v2 = vld [vmem:[#allocation16 + $0x10] ss:$8 sps:$4 sm:$0xff]  }
 0x417   : > { %v2391_v7 = vpop.f32.mrf.mxu0 }
 0x418   : > { %v2459_v9 = vmax.f32 %v2388_v4, 0.0  ;;  %v2492_v14 = vpack.c.bf16 %v2458_v5, %v2456_v10  ;;  %v2392_v19 = vadd.f32 %v2391_v7, %v9643_v53  ;;  %v8056_v4 = vld [vmem:[#allocation16 + $0x14] ss:$8 sps:$4 sm:$0xff]  }
 0x419   : > { %v2393_v12 = vpop.f32.mrf.mxu0 }
 0x41a   : > { %v2493_v13 = vpack.c.bf16 %v2459_v9, %v2457_v8  ;;  %v2394_v16 = vadd.f32 %v2393_v12, %v9640_v46  ;;  %v2460_v29 = vmax.f32 %v2392_v19, 0.0  ;;  %v8062_v9 = vld [vmem:[#allocation16 + $0x4] ss:$8 sps:$4 sm:$0xff]   ;;  %v8030_v19 = vld [vmem:[#allocation14 + $0x70] ss:$8 sps:$4 sm:$0xff]  }
 0x41b   : > { %v2395_v15 = vpop.f32.mrf.mxu0 }
 0x41c   : > { %v2396_v17 = vadd.f32 %v2395_v15, %v9643_v53  ;;  %2872 = vmatprep.mubr.bf16.mxu1 %v2493_v13  ;;  %v2461_v26 = vmax.f32 %v2394_v16, 0.0  ;;  %v8035_v53 = vld [vmem:[#allocation16 + $0x64] ss:$8 sps:$4 sm:$0xff]   ;;  %v8060_v13 = vld [vmem:[#allocation16] ss:$8 sps:$4 sm:$0xff]  }
 0x41d   : > { %v2397_v20 = vpop.f32.mrf.mxu0  ;;  %2873 = vmatmul.mubr.bf16.gmra.mxu1 %v2492_v14  ;;  %3704 = vmatprep.subr.bf16.mxu1 %v8035_v53  ;;  %v8065_v16 = vld [vmem:[#allocation16 + $0xf4] ss:$8 sps:$4 sm:$0xff]  }
 0x41e   : > { %v2398_v22 = vadd.f32 %v2397_v20, %v9640_v46  ;;  %v2462_v24 = vmax.f32 %v2396_v17, 0.0  ;;  %3705 = vmatpush1.bf16.msra.mxu1 %v8033_v39  ;;  %v8038_v46 = vld [vmem:[#allocation16 + $0x54] ss:$8 sps:$4 sm:$0xff]  }
 0x41f   : > { %3706 = vmatprep.subr.bf16.mxu1 %v8038_v46 }
 0x420   : > { %v2463_v27 = vmax.f32 %v2398_v22, 0.0  ;;  %v2494_v33 = vpack.c.bf16 %v2462_v24, %v2460_v29  ;;  %v8041_v24 = vld [vmem:[#allocation14 + $0x64] ss:$8 sps:$4 sm:$0xff]   ;;  %v8063_v29 = vld [vmem:[#allocation16 + $0xf0] ss:$8 sps:$4 sm:$0xff]  }
 0x422   : > { %v2495_v31 = vpack.c.bf16 %v2463_v27, %v2461_v26  ;;  %3707 = vmatpush1.bf16.msra.mxu1 %v8036_v40  ;;  %v8050_v40 = vld [vmem:[#allocation14 + $0x54] ss:$8 sps:$4 sm:$0xff]  }
 0x423   : > { %3708 = vmatprep.subr.bf16.mxu1 %v8044_v41  ;;  %v8069_v41 = vld [vmem:[#allocation16 + $0xe0] ss:$8 sps:$4 sm:$0xff]  }
 0x424   : > { %2882 = vmatprep.mubr.bf16.mxu1 %v2495_v31 }
 0x425   : > { %2883 = vmatmul.mubr.bf16.gmra.mxu1 %v2494_v33 }
 0x426   : > { %3709 = vmatpush1.bf16.msra.mxu1 %v8042_v56 }
 0x427   : > { %3710 = vmatprep.subr.bf16.mxu1 %v8047_v58 }
 0x42a   : > { %3711 = vmatpush1.bf16.msra.mxu1 %v8045_v50 }
 0x42b   : > { %3712 = vmatprep.subr.bf16.mxu1 %v8053_v54 }
 0x42e   : > { %3713 = vmatpush1.bf16.msra.mxu1 %v8051_v44  ;;  %v8048_v44 = vld [vmem:[#allocation14 + $0x50] ss:$8 sps:$4 sm:$0xff]  }
 0x42f   : > { %3714 = vmatprep.subr.bf16.mxu1 %v8056_v4  ;;  %v8080_v4 = vld [vmem:[#allocation16 + $0xc4] ss:$8 sps:$4 sm:$0xff]  }
 0x432   : > { %3715 = vmatpush1.bf16.msra.mxu1 %v8054_v2 }
 0x433   : > { %3716 = vmatprep.subr.bf16.mxu1 %v8062_v9 }
 0x436   : > { %3717 = vmatpush1.bf16.msra.mxu1 %v8060_v13 }
 0x437   : > { %3718 = vmatprep.subr.bf16.mxu1 %v8065_v16 }
 0x43a   : > { %3719 = vmatpush2.bf16.msra.mxu1 %v8063_v29 }
 0x43b   : > { %3720 = vmatprep.subr.bf16.mxu1 %v8071_v34 }
 0x43e   : > { %3721 = vmatpush2.bf16.msra.mxu1 %v8069_v41 }
 0x43f   : > { %3722 = vmatprep.subr.bf16.mxu1 %v8074_v42 }
 0x46d   : > { %v2734_v55 = vpop.f32.mrf.mxu1 }
 0x46e   : > { %v2735_v62 = vadd.f32 %v2734_v55, %v9716_v47 }
 0x46f   : > { %v2736_v49 = vpop.f32.mrf.mxu1 }
 0x470   : > { %v2737_v60 = vadd.f32 %v2736_v49, %v9713_v43  ;;  %v2893_v14 = vmax.f32 %v2735_v62, 0.0  ;;  %v8072_v62 = vld [vmem:[#allocation16 + $0xd0] ss:$8 sps:$4 sm:$0xff]  }
 0x471   : > { %v2738_v57 = vpop.f32.mrf.mxu1  ;;  %3723 = vmatpush2.bf16.msra.mxu1 %v8072_v62 }
 0x472   : > { %v2739_v61 = vadd.f32 %v2738_v57, %v9716_v47  ;;  %v2894_v10 = vmax.f32 %v2737_v60, 0.0  ;;  %v8059_v57 = vld [vmem:[#allocation14 + $0x44] ss:$8 sps:$4 sm:$0xff]   ;;  %3724 = vmatprep.subr.bf16.mxu1 %v8080_v4 }
 0x473   : > { %v2740_v1 = vpop.f32.mrf.mxu1 }
 0x474   : > { %v2741_v5 = vadd.f32 %v2740_v1, %v9713_v43  ;;  %v2895_v7 = vmax.f32 %v2739_v61, 0.0 }
 0x475   : > { %v2744_v8 = vpop.f32.mrf.mxu1 }
 0x476   : > { %v2896_v12 = vmax.f32 %v2741_v5, 0.0  ;;  %v2957_v20 = vpack.c.bf16 %v2895_v7, %v2893_v14  ;;  %v2745_v31 = vadd.f32 %v2744_v8, %v9716_v47  ;;  %v8057_v7 = vld [vmem:[#allocation14 + $0x40] ss:$8 sps:$4 sm:$0xff]  }
 0x477   : > { %v2746_v15 = vpop.f32.mrf.mxu1  ;;  %v8078_v14 = vld [vmem:[#allocation16 + $0xc0] ss:$8 sps:$4 sm:$0xff]  }
 0x478   : > { %v2958_v17 = vpack.c.bf16 %v2896_v12, %v2894_v10  ;;  %v2747_v26 = vadd.f32 %v2746_v15, %v9713_v43  ;;  %v2897_v50 = vmax.f32 %v2745_v31, 0.0  ;;  %v8068_v10 = vld [vmem:[#allocation14 + $0x34] ss:$8 sps:$4 sm:$0xff]   ;;  %3725 = vmatpush2.bf16.msra.mxu1 %v8078_v14  ;;  %v8081_v31 = vld [vmem:[#allocation16 + $0xb0] ss:$8 sps:$4 sm:$0xff]  }
 0x479   : > { %v2748_v22 = vpop.f32.mrf.mxu1 }
 0x47a   : > { %v2749_v27 = vadd.f32 %v2748_v22, %v9716_v47  ;;  %3225 = vmatprep.mubr.bf16.mxu0 %v2958_v17  ;;  %v2898_v46 = vmax.f32 %v2747_v26, 0.0  ;;  %v8083_v17 = vld [vmem:[#allocation16 + $0xb4] ss:$8 sps:$4 sm:$0xff]   ;;  %v8077_v26 = vld [vmem:[#allocation14 + $0x24] ss:$8 sps:$4 sm:$0xff]  }
 0x47b   : > { %v2750_v33 = vpop.f32.mrf.mxu1  ;;  %3226 = vmatmul.mubr.bf16.vlgmr.msra.gmra.mxu0 %v2957_v20  ;;  %v8066_v20 = vld [vmem:[#allocation14 + $0x30] ss:$8 sps:$4 sm:$0xff]   ;;  %3726 = vmatprep.subr.bf16.mxu1 %v8083_v17 }
 0x47c   : > { %v2751_v36 = vadd.f32 %v2750_v33, %v9713_v43  ;;  %3976 = vmatpush1.bf16.msra.mxu0 %v8030_v19  ;;  %v2899_v39 = vmax.f32 %v2749_v27, 0.0  ;;  %3727 = vmatpush2.bf16.msra.mxu1 %v8081_v31 }
 0x47d   : > { %v2754_v53 = vpop.f32.mrf.mxu1  ;;  %3977 = vmatprep.subr.bf16.mxu0 %v8041_v24 }
 0x47e   : > { %v2900_v56 = vmax.f32 %v2751_v36, 0.0  ;;  %v2959_v49 = vpack.c.bf16 %v2899_v39, %v2897_v50  ;;  %v2755_v1 = vadd.f32 %v2754_v53, %v9716_v47  ;;  %v8089_v36 = vld [vmem:[#allocation16 + $0xa4] ss:$8 sps:$4 sm:$0xff]   ;;  %v8075_v39 = vld [vmem:[#allocation14 + $0x20] ss:$8 sps:$4 sm:$0xff]  }
 0x47f   : > { %v2756_v58 = vpop.f32.mrf.mxu1  ;;  %v8087_v50 = vld [vmem:[#allocation16 + $0xa0] ss:$8 sps:$4 sm:$0xff]   ;;  %3728 = vmatprep.subr.bf16.mxu1 %v8089_v36 }
 0x480   : > { %v2960_v55 = vpack.c.bf16 %v2900_v56, %v2898_v46  ;;  %3978 = vmatpush1.bf16.msra.mxu0 %v8039_v37  ;;  %v2757_v60 = vadd.f32 %v2756_v58, %v9713_v43  ;;  %v2901_v15 = vmax.f32 %v2755_v1, 0.0  ;;  %v8086_v46 = vld [vmem:[#allocation14 + $0x14] ss:$8 sps:$4 sm:$0xff]   ;;  %3729 = vmatpush2.bf16.msra.mxu1 %v8087_v50  ;;  %v8090_v1 = vld [vmem:[#allocation16 + $0x90] ss:$8 sps:$4 sm:$0xff]  }
 0x481   : > { %v2758_v54 = vpop.f32.mrf.mxu1  ;;  %3979 = vmatprep.subr.bf16.mxu0 %v8050_v40 }
 0x482   : > { %v2759_v61 = vadd.f32 %v2758_v54, %v9716_v47  ;;  %3235 = vmatprep.mubr.bf16.mxu0 %v2960_v55  ;;  %v2902_v12 = vmax.f32 %v2757_v60, 0.0  ;;  %v8092_v55 = vld [vmem:[#allocation16 + $0x94] ss:$8 sps:$4 sm:$0xff]   ;;  %v8095_v60 = vld [vmem:[#allocation14 + $0x4] ss:$8 sps:$4 sm:$0xff]  }
 0x483   : > { %v2760_v2 = vpop.f32.mrf.mxu1  ;;  %3236 = vmatmul.mubr.bf16.gmra.mxu0 %v2959_v49  ;;  %v8084_v49 = vld [vmem:[#allocation14 + $0x10] ss:$8 sps:$4 sm:$0xff]   ;;  %3730 = vmatprep.subr.bf16.mxu1 %v8092_v55 }
 0x484   : > { %v2761_v5 = vadd.f32 %v2760_v2, %v9713_v43  ;;  %3980 = vmatpush1.bf16.msra.mxu0 %v8048_v44  ;;  %v2903_v8 = vmax.f32 %v2759_v61, 0.0  ;;  %3731 = vmatpush2.bf16.msra.mxu1 %v8090_v1 }
 0x485   : > { %v2764_v9 = vpop.f32.mrf.mxu1  ;;  %3981 = vmatprep.subr.bf16.mxu0 %v8059_v57 }
 0x486   : > { %v2904_v13 = vmax.f32 %v2761_v5, 0.0  ;;  %v2961_v22 = vpack.c.bf16 %v2903_v8, %v2901_v15  ;;  %v2765_v33 = vadd.f32 %v2764_v9, %v9716_v47 }
 0x487   : > { %v2766_v16 = vpop.f32.mrf.mxu1 }
 0x488   : > { %v2962_v19 = vpack.c.bf16 %v2904_v13, %v2902_v12  ;;  %3982 = vmatpush1.bf16.msra.mxu0 %v8057_v7  ;;  %v2767_v27 = vadd.f32 %v2766_v16, %v9713_v43  ;;  %v2905_v58 = vmax.f32 %v2765_v33, 0.0  ;;  %v8093_v7 = vld [vmem:[#allocation14] ss:$8 sps:$4 sm:$0xff]  }
 0x489   : > { %v2768_v24 = vpop.f32.mrf.mxu1  ;;  %3983 = vmatprep.subr.bf16.mxu0 %v8068_v10 }
 0x48a   : > { %v2769_v29 = vadd.f32 %v2768_v24, %v9716_v47  ;;  %3245 = vmatprep.mubr.bf16.mxu0 %v2962_v19  ;;  %v2906_v56 = vmax.f32 %v2767_v27, 0.0 }
 0x48b   : > { %v2770_v34 = vpop.f32.mrf.mxu1  ;;  %3246 = vmatmul.mubr.bf16.gmra.mxu0 %v2961_v22 }
 0x48c   : > { %v2771_v37 = vadd.f32 %v2770_v34, %v9713_v43  ;;  %3984 = vmatpush1.bf16.msra.mxu0 %v8066_v20  ;;  %v2907_v53 = vmax.f32 %v2769_v29, 0.0 }
 0x48d   : > { %v2774_v40 = vpop.f32.mrf.mxu1  ;;  %3985 = vmatprep.subr.bf16.mxu0 %v8077_v26 }
 0x48e   : > { %v2908_v41 = vmax.f32 %v2771_v37, 0.0  ;;  %v2963_v54 = vpack.c.bf16 %v2907_v53, %v2905_v58  ;;  %v2775_v2 = vadd.f32 %v2774_v40, %v9716_v47 }
 0x48f   : > { %v2776_v42 = vpop.f32.mrf.mxu1 }
 0x490   : > { %v2964_v44 = vpack.c.bf16 %v2908_v41, %v2906_v56  ;;  %3986 = vmatpush1.bf16.msra.mxu0 %v8075_v39  ;;  %v2777_v61 = vadd.f32 %v2776_v42, %v9713_v43  ;;  %v2909_v13 = vmax.f32 %v2775_v2, 0.0 }
 0x491   : > { %v2778_v57 = vpop.f32.mrf.mxu1  ;;  %3987 = vmatprep.subr.bf16.mxu0 %v8086_v46 }
 0x492   : > { %v2779_v62 = vadd.f32 %v2778_v57, %v9716_v47  ;;  %3255 = vmatprep.mubr.bf16.mxu0 %v2964_v44  ;;  %v2910_v10 = vmax.f32 %v2777_v61, 0.0 }
 0x493   : > { %v2780_v4 = vpop.f32.mrf.mxu1  ;;  %3256 = vmatmul.mubr.bf16.gmra.mxu0 %v2963_v54 }
 0x494   : > { %v2781_v5 = vadd.f32 %v2780_v4, %v9713_v43  ;;  %3988 = vmatpush1.bf16.msra.mxu0 %v8084_v49  ;;  %v2911_v8 = vmax.f32 %v2779_v62, 0.0 }
 0x495   : > { %v2784_v9 = vpop.f32.mrf.mxu1  ;;  %3989 = vmatprep.subr.bf16.mxu0 %v8095_v60 }
 0x496   : > { %v2912_v12 = vmax.f32 %v2781_v5, 0.0  ;;  %v2965_v16 = vpack.c.bf16 %v2911_v8, %v2909_v13  ;;  %v2785_v22 = vadd.f32 %v2784_v9, %v9716_v47 }
 0x497   : > { %v2786_v14 = vpop.f32.mrf.mxu1 }
 0x498   : > { %v2966_v15 = vpack.c.bf16 %v2912_v12, %v2910_v10  ;;  %3990 = vmatpush1.bf16.msra.mxu0 %v8093_v7  ;;  %v2787_v19 = vadd.f32 %v2786_v14, %v9713_v43  ;;  %v2913_v34 = vmax.f32 %v2785_v22, 0.0 }
 0x499   : > { %v2788_v17 = vpop.f32.mrf.mxu1 }
 0x49a   : > { %v2789_v20 = vadd.f32 %v2788_v17, %v9716_v47  ;;  %3265 = vmatprep.mubr.bf16.mxu0 %v2966_v15  ;;  %v2914_v31 = vmax.f32 %v2787_v19, 0.0 }
 0x49b   : > { %v2790_v24 = vpop.f32.mrf.mxu1  ;;  %3266 = vmatmul.mubr.bf16.gmra.mxu0 %v2965_v16 }
 0x49c   : > { %v2791_v26 = vadd.f32 %v2790_v24, %v9713_v43  ;;  %v2915_v27 = vmax.f32 %v2789_v20, 0.0 }
 0x49d   : > { %v2794_v29 = vpop.f32.mrf.mxu1 }
 0x49e   : > { %v2916_v33 = vmax.f32 %v2791_v26, 0.0  ;;  %v2967_v39 = vpack.c.bf16 %v2915_v27, %v2913_v34  ;;  %v2795_v56 = vadd.f32 %v2794_v29, %v9716_v47 }
 0x49f   : > { %v2796_v36 = vpop.f32.mrf.mxu1 }
 0x4a0   : > { %v2968_v37 = vpack.c.bf16 %v2916_v33, %v2914_v31  ;;  %v2797_v40 = vadd.f32 %v2796_v36, %v9713_v43  ;;  %v2917_v49 = vmax.f32 %v2795_v56, 0.0 }
 0x4a1   : > { %v2798_v53 = vpop.f32.mrf.mxu1 }
 0x4a2   : > { %v2799_v46 = vadd.f32 %v2798_v53, %v9716_v47  ;;  %3275 = vmatprep.mubr.bf16.mxu0 %v2968_v37  ;;  %v2918_v55 = vmax.f32 %v2797_v40, 0.0 }
 0x4a3   : > { %v2800_v41 = vpop.f32.mrf.mxu1  ;;  %3276 = vmatmul.mubr.bf16.gmra.mxu0 %v2967_v39 }
 0x4a4   : > { %v2801_v50 = vadd.f32 %v2800_v41, %v9713_v43  ;;  %v2919_v58 = vmax.f32 %v2799_v46, 0.0 }
 0x4a5   : > { %v2804_v42 = vpop.f32.mrf.mxu1 }
 0x4a6   : > { %v2920_v44 = vmax.f32 %v2801_v50, 0.0  ;;  %v2969_v60 = vpack.c.bf16 %v2919_v58, %v2917_v49  ;;  %v2805_v2 = vadd.f32 %v2804_v42, %v9716_v47 }
 0x4a7   : > { %v2806_v54 = vpop.f32.mrf.mxu1 }
 0x4a8   : > { %v2970_v57 = vpack.c.bf16 %v2920_v44, %v2918_v55  ;;  %v2807_v62 = vadd.f32 %v2806_v54, %v9713_v43  ;;  %v2921_v12 = vmax.f32 %v2805_v2, 0.0 }
 0x4a9   : > { %v2808_v61 = vpop.f32.mrf.mxu1 }
 0x4aa   : > { %v2809_v1 = vadd.f32 %v2808_v61, %v9716_v47  ;;  %3285 = vmatprep.mubr.bf16.mxu0 %v2970_v57  ;;  %v2922_v9 = vmax.f32 %v2807_v62, 0.0 }
 0x4ab   : > { %v2810_v4 = vpop.f32.mrf.mxu1  ;;  %3286 = vmatmul.mubr.bf16.gmra.mxu0 %v2969_v60 }
 0x4ac   : > { %v2811_v5 = vadd.f32 %v2810_v4, %v9713_v43  ;;  %v2923_v7 = vmax.f32 %v2809_v1, 0.0  ;;  %v8098_v4 = vld [vmem:[#allocation16 + $0x84] ss:$8 sps:$4 sm:$0xff]  }
 0x4ad   : > { %v2814_v8 = vpop.f32.mrf.mxu1  ;;  %3732 = vmatprep.subr.bf16.mxu1 %v8098_v4 }
 0x4ae   : > { %v2924_v10 = vmax.f32 %v2811_v5, 0.0  ;;  %v2971_v15 = vpack.c.bf16 %v2923_v7, %v2921_v12  ;;  %v2815_v20 = vadd.f32 %v2814_v8, %v9716_v47  ;;  %v8096_v7 = vld [vmem:[#allocation16 + $0x80] ss:$8 sps:$4 sm:$0xff]  }
 0x4af   : > { %v2816_v13 = vpop.f32.mrf.mxu1  ;;  %3733 = vmatpush2.bf16.msra.mxu1 %v8096_v7 }
 0x4b0   : > { %v2972_v14 = vpack.c.bf16 %v2924_v10, %v2922_v9  ;;  %v2817_v17 = vadd.f32 %v2816_v13, %v9713_v43  ;;  %v2925_v33 = vmax.f32 %v2815_v20, 0.0 }
 0x4b1   : > { %v2818_v16 = vpop.f32.mrf.mxu1 }
 0x4b2   : > { %v2819_v19 = vadd.f32 %v2818_v16, %v9716_v47  ;;  %3295 = vmatprep.mubr.bf16.mxu0 %v2972_v14  ;;  %v2926_v29 = vmax.f32 %v2817_v17, 0.0 }
 0x4b3   : > { %v2820_v22 = vpop.f32.mrf.mxu1  ;;  %3296 = vmatmul.mubr.bf16.gmra.mxu0 %v2971_v15 }
 0x4b4   : > { %v2821_v24 = vadd.f32 %v2820_v22, %v9713_v43  ;;  %v2927_v26 = vmax.f32 %v2819_v19, 0.0 }
 0x4b5   : > { %v2824_v27 = vpop.f32.mrf.mxu1 }
 0x4b6   : > { %v2928_v31 = vmax.f32 %v2821_v24, 0.0  ;;  %v2973_v37 = vpack.c.bf16 %v2927_v26, %v2925_v33  ;;  %v2825_v46 = vadd.f32 %v2824_v27, %v9716_v47 }
 0x4b7   : > { %v2826_v34 = vpop.f32.mrf.mxu1 }
 0x4b8   : > { %v2974_v36 = vpack.c.bf16 %v2928_v31, %v2926_v29  ;;  %v2827_v53 = vadd.f32 %v2826_v34, %v9713_v43  ;;  %v2929_v44 = vmax.f32 %v2825_v46, 0.0 }
 0x4b9   : > { %v2828_v39 = vpop.f32.mrf.mxu1 }
 0x4ba   : > { %v2829_v40 = vadd.f32 %v2828_v39, %v9716_v47  ;;  %3305 = vmatprep.mubr.bf16.mxu0 %v2974_v36  ;;  %v2930_v42 = vmax.f32 %v2827_v53, 0.0 }
 0x4bb   : > { %v2830_v56 = vpop.f32.mrf.mxu1  ;;  %3306 = vmatmul.mubr.bf16.gmra.mxu0 %v2973_v37 }
 0x4bc   : > { %v2831_v41 = vadd.f32 %v2830_v56, %v9713_v43  ;;  %v2931_v50 = vmax.f32 %v2829_v40, 0.0 }
 0x4bd   : > { %v2834_v58 = vpop.f32.mrf.mxu1 }
 0x4be   : > { %v2932_v55 = vmax.f32 %v2831_v41, 0.0  ;;  %v2975_v57 = vpack.c.bf16 %v2931_v50, %v2929_v44  ;;  %v2835_v1 = vadd.f32 %v2834_v58, %v9716_v47 }
 0x4bf   : > { %v2836_v49 = vpop.f32.mrf.mxu1 }
 0x4c0   : > { %v2976_v54 = vpack.c.bf16 %v2932_v55, %v2930_v42  ;;  %v2837_v61 = vadd.f32 %v2836_v49, %v9713_v43  ;;  %v2933_v13 = vmax.f32 %v2835_v1, 0.0 }
 0x4c1   : > { %v2838_v60 = vpop.f32.mrf.mxu1 }
 0x4c2   : > { %v2839_v62 = vadd.f32 %v2838_v60, %v9716_v47  ;;  %3315 = vmatprep.mubr.bf16.mxu0 %v2976_v54  ;;  %v2934_v10 = vmax.f32 %v2837_v61, 0.0 }
 0x4c3   : > { %v2840_v2 = vpop.f32.mrf.mxu1  ;;  %3316 = vmatmul.mubr.bf16.gmra.mxu0 %v2975_v57 }
 0x4c4   : > { %v2841_v5 = vadd.f32 %v2840_v2, %v9713_v43  ;;  %v2935_v8 = vmax.f32 %v2839_v62, 0.0 }
 0x4c5   : > { %v2844_v9 = vpop.f32.mrf.mxu1 }
 0x4c6   : > { %v2936_v12 = vmax.f32 %v2841_v5, 0.0  ;;  %v2977_v16 = vpack.c.bf16 %v2935_v8, %v2933_v13  ;;  %v2845_v22 = vadd.f32 %v2844_v9, %v9716_v47 }
 0x4c7   : > { %v2846_v14 = vpop.f32.mrf.mxu1 }
 0x4c8   : > { %v2978_v15 = vpack.c.bf16 %v2936_v12, %v2934_v10  ;;  %v2847_v19 = vadd.f32 %v2846_v14, %v9713_v43  ;;  %v2937_v34 = vmax.f32 %v2845_v22, 0.0 }
 0x4c9   : > { %v2848_v17 = vpop.f32.mrf.mxu1 }
 0x4ca   : > { %v2849_v20 = vadd.f32 %v2848_v17, %v9716_v47  ;;  %3325 = vmatprep.mubr.bf16.mxu0 %v2978_v15  ;;  %v2938_v31 = vmax.f32 %v2847_v19, 0.0 }
 0x4cb   : > { %v2850_v24 = vpop.f32.mrf.mxu1  ;;  %3326 = vmatmul.mubr.bf16.gmra.mxu0 %v2977_v16 }
 0x4cc   : > { %v2851_v26 = vadd.f32 %v2850_v24, %v9713_v43  ;;  %v2939_v27 = vmax.f32 %v2849_v20, 0.0 }
 0x4cd   : > { %v2854_v29 = vpop.f32.mrf.mxu1 }
 0x4ce   : > { %v2940_v33 = vmax.f32 %v2851_v26, 0.0  ;;  %v2979_v39 = vpack.c.bf16 %v2939_v27, %v2937_v34  ;;  %v2855_v56 = vadd.f32 %v2854_v29, %v9716_v47 }
 0x4cf   : > { %v2856_v36 = vpop.f32.mrf.mxu1 }
 0x4d0   : > { %v2980_v37 = vpack.c.bf16 %v2940_v33, %v2938_v31  ;;  %v2857_v40 = vadd.f32 %v2856_v36, %v9713_v43  ;;  %v2941_v49 = vmax.f32 %v2855_v56, 0.0 }
 0x4d1   : > { %v2858_v53 = vpop.f32.mrf.mxu1 }
 0x4d2   : > { %v2859_v46 = vadd.f32 %v2858_v53, %v9716_v47  ;;  %3335 = vmatprep.mubr.bf16.mxu0 %v2980_v37  ;;  %v2942_v55 = vmax.f32 %v2857_v40, 0.0 }
 0x4d3   : > { %v2860_v41 = vpop.f32.mrf.mxu1  ;;  %3336 = vmatmul.mubr.bf16.gmra.mxu0 %v2979_v39 }
 0x4d4   : > { %v2861_v50 = vadd.f32 %v2860_v41, %v9713_v43  ;;  %v2943_v58 = vmax.f32 %v2859_v46, 0.0 }
 0x4d5   : > { %v2864_v42 = vpop.f32.mrf.mxu1 }
 0x4d6   : > { %v2944_v44 = vmax.f32 %v2861_v50, 0.0  ;;  %v2981_v60 = vpack.c.bf16 %v2943_v58, %v2941_v49  ;;  %v2865_v2 = vadd.f32 %v2864_v42, %v9716_v47 }
 0x4d7   : > { %v2866_v54 = vpop.f32.mrf.mxu1 }
 0x4d8   : > { %v2982_v57 = vpack.c.bf16 %v2944_v44, %v2942_v55  ;;  %v2867_v62 = vadd.f32 %v2866_v54, %v9713_v43  ;;  %v2945_v12 = vmax.f32 %v2865_v2, 0.0 }
 0x4d9   : > { %v2868_v61 = vpop.f32.mrf.mxu1 }
 0x4da   : > { %v2869_v1 = vadd.f32 %v2868_v61, %v9716_v47  ;;  %3345 = vmatprep.mubr.bf16.mxu0 %v2982_v57  ;;  %v2946_v9 = vmax.f32 %v2867_v62, 0.0 }
 0x4db   : > { %v2870_v4 = vpop.f32.mrf.mxu1  ;;  %3346 = vmatmul.mubr.bf16.gmra.mxu0 %v2981_v60 }
 0x4dc   : > { %v2871_v5 = vadd.f32 %v2870_v4, %v9713_v43  ;;  %v2947_v7 = vmax.f32 %v2869_v1, 0.0 }
 0x4dd   : > { %v2874_v8 = vpop.f32.mrf.mxu1 }
 0x4de   : > { %v2948_v10 = vmax.f32 %v2871_v5, 0.0  ;;  %v2983_v15 = vpack.c.bf16 %v2947_v7, %v2945_v12  ;;  %v2875_v20 = vadd.f32 %v2874_v8, %v9716_v47  ;;  %v8099_v5 = vld [vmem:[#allocation17 + $0x70] ss:$8 sps:$4 sm:$0xff]  }
 0x4df   : > { %v2876_v13 = vpop.f32.mrf.mxu1 }
 0x4e0   : > { %v2984_v14 = vpack.c.bf16 %v2948_v10, %v2946_v9  ;;  %v2877_v17 = vadd.f32 %v2876_v13, %v9713_v43  ;;  %v2949_v33 = vmax.f32 %v2875_v20, 0.0  ;;  %v8104_v9 = vld [vmem:[#allocation17 + $0x64] ss:$8 sps:$4 sm:$0xff]  }
 0x4e1   : > { %v2878_v16 = vpop.f32.mrf.mxu1 }
 0x4e2   : > { %v2879_v19 = vadd.f32 %v2878_v16, %v9716_v47  ;;  %3355 = vmatprep.mubr.bf16.mxu0 %v2984_v14  ;;  %v2950_v29 = vmax.f32 %v2877_v17, 0.0 }
 0x4e3   : > { %v2880_v22 = vpop.f32.mrf.mxu1  ;;  %3356 = vmatmul.mubr.bf16.gmra.mxu0 %v2983_v15  ;;  %v8102_v15 = vld [vmem:[#allocation17 + $0x60] ss:$8 sps:$4 sm:$0xff]  }
 0x4e4   : > { %v2881_v24 = vadd.f32 %v2880_v22, %v9713_v43  ;;  %v2951_v26 = vmax.f32 %v2879_v19, 0.0  ;;  %v8107_v19 = vld [vmem:[#allocation17 + $0x54] ss:$8 sps:$4 sm:$0xff]  }
 0x4e5   : > { %v2884_v27 = vpop.f32.mrf.mxu1 }
 0x4e6   : > { %v2952_v31 = vmax.f32 %v2881_v24, 0.0  ;;  %v2985_v37 = vpack.c.bf16 %v2951_v26, %v2949_v33  ;;  %v2885_v46 = vadd.f32 %v2884_v27, %v9716_v47 }
 0x4e7   : > { %v2886_v34 = vpop.f32.mrf.mxu1 }
 0x4e8   : > { %v2986_v36 = vpack.c.bf16 %v2952_v31, %v2950_v29  ;;  %v2887_v53 = vadd.f32 %v2886_v34, %v9713_v43  ;;  %v2953_v55 = vmax.f32 %v2885_v46, 0.0  ;;  %v8105_v29 = vld [vmem:[#allocation17 + $0x50] ss:$8 sps:$4 sm:$0xff]   ;;  %v8110_v34 = vld [vmem:[#allocation17 + $0x44] ss:$8 sps:$4 sm:$0xff]  }
 0x4e9   : > { %v2888_v39 = vpop.f32.mrf.mxu1 }
 0x4ea   : > { %v2889_v40 = vadd.f32 %v2888_v39, %v9716_v47  ;;  %3365 = vmatprep.mubr.bf16.mxu0 %v2986_v36  ;;  %v2954_v58 = vmax.f32 %v2887_v53, 0.0 }
 0x4eb   : > { %v2890_v56 = vpop.f32.mrf.mxu1  ;;  %3366 = vmatmul.mubr.bf16.gmra.mxu0 %v2985_v37 }
 0x4ec   : > { %v2891_v41 = vadd.f32 %v2890_v56, %v9713_v43  ;;  %v2955_v50 = vmax.f32 %v2889_v40, 0.0  ;;  %v8101_v43 = vld [vmem:[#allocation17 + $0x74] ss:$8 sps:$4 sm:$0xff]   ;;  %v8108_v40 = vld [vmem:[#allocation17 + $0x40] ss:$8 sps:$4 sm:$0xff]  }
 0x4ed   : > { %4468 = vmatprep.subr.bf16.mxu1 %v8101_v43 }
 0x4ee   : > { %v2956_v42 = vmax.f32 %v2891_v41, 0.0  ;;  %v2987_v49 = vpack.c.bf16 %v2955_v50, %v2953_v55  ;;  %v8113_v41 = vld [vmem:[#allocation17 + $0x34] ss:$8 sps:$4 sm:$0xff]  }
 0x4f0   : > { %v2988_v44 = vpack.c.bf16 %v2956_v42, %v2954_v58 }
 0x4f2   : > { %3375 = vmatprep.mubr.bf16.mxu0 %v2988_v44 }
 0x4f3   : > { %3376 = vmatmul.mubr.bf16.gmra.mxu0 %v2987_v49  ;;  %v8111_v49 = vld [vmem:[#allocation17 + $0x30] ss:$8 sps:$4 sm:$0xff]  }
 0x4f4   : > { %4007 = vmatprep.mubr.bf16.mxu0 %v8882_v0 }
 0x4fb   : > { %4008 = vmatmul.mubr.bf16.vlgmr.msra.gmra.mxu0 %v9393_v23  ;;  %v3021_v23 = vld [vmem:[%s10712_s1] sm:$0x3]  ;;  %s10717_s1 = sld [smem:[#allocation64_spill]] }
 0x4fc   : > { %4017 = vmatprep.mubr.bf16.mxu0 %v8882_v0 }
 0x503   : > { %4018 = vmatmul.mubr.bf16.gmra.mxu0 %v9399_v30 }
 0x504   : > { %4027 = vmatprep.mubr.bf16.mxu0 %v8882_v0 }
 0x50b   : > { %4028 = vmatmul.mubr.bf16.gmra.mxu0 %v9405_v38  ;;  %v9804_v38 = vrot.slane %v3021_v23, %v9486_v48 }
 0x50c   : > { %4037 = vmatprep.mubr.bf16.mxu0 %v8882_v0 }
 0x513   : > { %4038 = vmatmul.mubr.bf16.gmra.mxu0 %v9411_v45  ;;  %v9808_v45 = vrot.slane %v3021_v23, %v9488_v51 }
 0x514   : > { %4047 = vmatprep.mubr.bf16.mxu0 %v8882_v0 }
 0x51b   : > { %4048 = vmatmul.mubr.bf16.gmra.mxu0 %v9417_v52 }
 0x51c   : > { %4057 = vmatprep.mubr.bf16.mxu0 %v8882_v0 }
 0x523   : > { %4058 = vmatmul.mubr.bf16.gmra.mxu0 %v9423_v59 }
 0x524   : > { %4067 = vmatprep.mubr.bf16.mxu0 %v8882_v0 }
 0x52b   : > { %4068 = vmatmul.mubr.bf16.gmra.mxu0 %v9429_v63 }
 0x52c   : > { %4077 = vmatprep.mubr.bf16.mxu0 %v8882_v0 }
 0x533   : > { %4078 = vmatmul.mubr.bf16.gmra.mxu0 %v9435_v3 }
 0x534   : > { %4087 = vmatprep.mubr.bf16.mxu0 %v8882_v0 }
 0x53b   : > { %v3227_v30 = vpop.f32.mrf.mxu0  ;;  %4088 = vmatmul.mubr.bf16.gmra.mxu0 %v9441_v6 }
 0x53c   : > { %4097 = vmatprep.mubr.bf16.mxu0 %v8882_v0  ;;  %v3228_v47 = vadd.f32 %v3227_v30, %v9808_v45  ;;  %v8116_v30 = vld [vmem:[#allocation17 + $0x24] ss:$8 sps:$4 sm:$0xff]  }
 0x53d   : > { %v3229_v52 = vpop.f32.mrf.mxu0 }
 0x53e   : > { %v3230_v63 = vadd.f32 %v3229_v52, %v9804_v38  ;;  %v3386_v1 = vmax.f32 %v3228_v47, 0.0  ;;  %v8114_v47 = vld [vmem:[#allocation17 + $0x20] ss:$8 sps:$4 sm:$0xff]  }
 0x53f   : > { %v3231_v59 = vpop.f32.mrf.mxu0 }
 0x540   : > { %v3232_v3 = vadd.f32 %v3231_v59, %v9808_v45  ;;  %v3387_v61 = vmax.f32 %v3230_v63, 0.0 }
 0x541   : > { %v3233_v54 = vpop.f32.mrf.mxu0 }
 0x542   : > { %v3234_v57 = vadd.f32 %v3233_v54, %v9804_v38  ;;  %v3388_v6 = vmax.f32 %v3232_v3, 0.0 }
 0x543   : > { %v3237_v60 = vpop.f32.mrf.mxu0  ;;  %4098 = vmatmul.mubr.bf16.gmra.mxu0 %v9447_v11 }
 0x544   : > { %v3389_v62 = vmax.f32 %v3234_v57, 0.0  ;;  %4107 = vmatprep.mubr.bf16.mxu0 %v8882_v0  ;;  %v3466_v7 = vpack.c.bf16 %v3388_v6, %v3386_v1  ;;  %v3238_v13 = vadd.f32 %v3237_v60, %v9808_v45  ;;  %v8119_v6 = vld [vmem:[#allocation17 + $0x14] ss:$8 sps:$4 sm:$0xff]  }
 0x545   : > { %v3239_v2 = vpop.f32.mrf.mxu0 }
 0x546   : > { %v3467_v4 = vpack.c.bf16 %v3389_v62, %v3387_v61  ;;  %v3240_v10 = vadd.f32 %v3239_v2, %v9804_v38  ;;  %v3390_v24 = vmax.f32 %v3238_v13, 0.0 }
 0x547   : > { %v3241_v8 = vpop.f32.mrf.mxu0 }
 0x548   : > { %v3242_v12 = vadd.f32 %v3241_v8, %v9808_v45  ;;  %3734 = vmatprep.mubr.bf16.mxu1 %v3467_v4  ;;  %v3391_v20 = vmax.f32 %v3240_v10, 0.0  ;;  %v8117_v4 = vld [vmem:[#allocation17 + $0x10] ss:$8 sps:$4 sm:$0xff]   ;;  %v8122_v8 = vld [vmem:[#allocation17 + $0x4] ss:$8 sps:$4 sm:$0xff]  }
 0x549   : > { %v3243_v14 = vpop.f32.mrf.mxu0  ;;  %3735 = vmatmul.mubr.bf16.vlgmr.msra.gmra.mxu1 %v3466_v7 }
 0x54a   : > { %v3244_v11 = vadd.f32 %v3243_v14, %v9804_v38  ;;  %4469 = vmatpush1.bf16.msra.mxu1 %v8099_v5  ;;  %v3392_v16 = vmax.f32 %v3242_v12, 0.0  ;;  %v8120_v14 = vld [vmem:[#allocation17] ss:$8 sps:$4 sm:$0xff]  }
 0x54b   : > { %v3247_v17 = vpop.f32.mrf.mxu0  ;;  %4108 = vmatmul.mubr.bf16.gmra.mxu0 %v9453_v18  ;;  %4470 = vmatprep.subr.bf16.mxu1 %v8104_v9 }
 0x54c   : > { %v3393_v22 = vmax.f32 %v3244_v11, 0.0  ;;  %4117 = vmatprep.mubr.bf16.mxu0 %v8882_v0  ;;  %v3468_v31 = vpack.c.bf16 %v3392_v16, %v3390_v24  ;;  %v3248_v18 = vadd.f32 %v3247_v17, %v9808_v45  ;;  %v8125_v16 = vld [vmem:[#allocation17 + $0xf4] ss:$8 sps:$4 sm:$0xff]  }
 0x54d   : > { %v3249_v26 = vpop.f32.mrf.mxu0 }
 0x54e   : > { %v3469_v27 = vpack.c.bf16 %v3393_v22, %v3391_v20  ;;  %4471 = vmatpush1.bf16.msra.mxu1 %v8102_v15  ;;  %v3250_v36 = vadd.f32 %v3249_v26, %v9804_v38  ;;  %v3394_v42 = vmax.f32 %v3248_v18, 0.0  ;;  %v8123_v26 = vld [vmem:[#allocation17 + $0xf0] ss:$8 sps:$4 sm:$0xff]   ;;  %v8126_v18 = vld [vmem:[#allocation17 + $0xe0] ss:$8 sps:$4 sm:$0xff]  }
 0x54f   : > { %v3251_v33 = vpop.f32.mrf.mxu0  ;;  %4472 = vmatprep.subr.bf16.mxu1 %v8107_v19 }
 0x550   : > { %v3252_v37 = vadd.f32 %v3251_v33, %v9808_v45  ;;  %3744 = vmatprep.mubr.bf16.mxu1 %v3469_v27  ;;  %v3395_v50 = vmax.f32 %v3250_v36, 0.0 }
 0x551   : > { %v3253_v39 = vpop.f32.mrf.mxu0  ;;  %3745 = vmatmul.mubr.bf16.gmra.mxu1 %v3468_v31  ;;  %v8128_v31 = vld [vmem:[#allocation17 + $0xe4] ss:$8 sps:$4 sm:$0xff]  }
 0x552   : > { %v3254_v53 = vadd.f32 %v3253_v39, %v9804_v38  ;;  %4473 = vmatpush1.bf16.msra.mxu1 %v8105_v29  ;;  %v3396_v46 = vmax.f32 %v3252_v37, 0.0 }
 0x553   : > { %v3257_v56 = vpop.f32.mrf.mxu0  ;;  %4118 = vmatmul.mubr.bf16.gmra.mxu0 %v9459_v21  ;;  %4474 = vmatprep.subr.bf16.mxu1 %v8110_v34 }
 0x554   : > { %v3397_v58 = vmax.f32 %v3254_v53, 0.0  ;;  %4127 = vmatprep.mubr.bf16.mxu0 %v8882_v0  ;;  %v3470_v43 = vpack.c.bf16 %v3396_v46, %v3394_v42  ;;  %v3258_v21 = vadd.f32 %v3257_v56, %v9808_v45  ;;  %v8129_v42 = vld [vmem:[#allocation17 + $0xd0] ss:$8 sps:$4 sm:$0xff]  }
 0x555   : > { %v3259_v55 = vpop.f32.mrf.mxu0 }
 0x556   : > { %v3471_v44 = vpack.c.bf16 %v3397_v58, %v3395_v50  ;;  %4475 = vmatpush1.bf16.msra.mxu1 %v8108_v40  ;;  %v3260_v52 = vadd.f32 %v3259_v55, %v9804_v38  ;;  %v3398_v62 = vmax.f32 %v3258_v21, 0.0  ;;  %v8131_v40 = vld [vmem:[#allocation17 + $0xd4] ss:$8 sps:$4 sm:$0xff]  }
 0x557   : > { %v3261_v23 = vpop.f32.mrf.mxu0  ;;  %4476 = vmatprep.subr.bf16.mxu1 %v8113_v41 }
 0x558   : > { %v3262_v59 = vadd.f32 %v3261_v23, %v9808_v45  ;;  %3754 = vmatprep.mubr.bf16.mxu1 %v3471_v44  ;;  %v3399_v60 = vmax.f32 %v3260_v52, 0.0  ;;  %v8132_v52 = vld [vmem:[#allocation17 + $0xc0] ss:$8 sps:$4 sm:$0xff]  }
 0x559   : > { %v3263_v63 = vpop.f32.mrf.mxu0  ;;  %3755 = vmatmul.mubr.bf16.gmra.mxu1 %v3470_v43 }
 0x55a   : > { %v3264_v3 = vadd.f32 %v3263_v63, %v9804_v38  ;;  %4477 = vmatpush1.bf16.msra.mxu1 %v8111_v49  ;;  %v3400_v54 = vmax.f32 %v3262_v59, 0.0  ;;  %v8134_v49 = vld [vmem:[#allocation17 + $0xc4] ss:$8 sps:$4 sm:$0xff]   ;;  %v8137_v63 = vld [vmem:[#allocation17 + $0xb4] ss:$8 sps:$4 sm:$0xff]  }
 0x55b   : > { %v3267_v57 = vpop.f32.mrf.mxu0  ;;  %4128 = vmatmul.mubr.bf16.gmra.mxu0 %v9465_v25  ;;  %4478 = vmatprep.subr.bf16.mxu1 %v8116_v30 }
 0x55c   : > { %v3401_v61 = vmax.f32 %v3264_v3, 0.0  ;;  %4137 = vmatprep.mubr.bf16.mxu0 %v8882_v0  ;;  %v3472_v5 = vpack.c.bf16 %v3400_v54, %v3398_v62  ;;  %v3268_v25 = vadd.f32 %v3267_v57, %v9808_v45 }
 0x55d   : > { %v3269_v1 = vpop.f32.mrf.mxu0 }
 0x55e   : > { %v3473_v2 = vpack.c.bf16 %v3401_v61, %v3399_v60  ;;  %4479 = vmatpush1.bf16.msra.mxu1 %v8114_v47  ;;  %v3270_v9 = vadd.f32 %v3269_v1, %v9804_v38  ;;  %v3402_v20 = vmax.f32 %v3268_v25, 0.0  ;;  %v8135_v60 = vld [vmem:[#allocation17 + $0xb0] ss:$8 sps:$4 sm:$0xff]   ;;  %v8140_v1 = vld [vmem:[#allocation17 + $0xa4] ss:$8 sps:$4 sm:$0xff]  }
 0x55f   : > { %v3271_v7 = vpop.f32.mrf.mxu0  ;;  %4480 = vmatprep.subr.bf16.mxu1 %v8119_v6  ;;  %v8143_v25 = vld [vmem:[#allocation17 + $0x94] ss:$8 sps:$4 sm:$0xff]  }
 0x560   : > { %v3272_v10 = vadd.f32 %v3271_v7, %v9808_v45  ;;  %3764 = vmatprep.mubr.bf16.mxu1 %v3473_v2  ;;  %v3403_v17 = vmax.f32 %v3270_v9, 0.0 }
 0x561   : > { %v3273_v12 = vpop.f32.mrf.mxu0  ;;  %3765 = vmatmul.mubr.bf16.gmra.mxu1 %v3472_v5 }
 0x562   : > { %v3274_v13 = vadd.f32 %v3273_v12, %v9804_v38  ;;  %4481 = vmatpush1.bf16.msra.mxu1 %v8117_v4  ;;  %v3404_v11 = vmax.f32 %v3272_v10, 0.0 }
 0x563   : > { %v3277_v15 = vpop.f32.mrf.mxu0  ;;  %4138 = vmatmul.mubr.bf16.gmra.mxu0 %v9471_v28  ;;  %4482 = vmatprep.subr.bf16.mxu1 %v8122_v8  ;;  %v8138_v8 = vld [vmem:[#allocation17 + $0xa0] ss:$8 sps:$4 sm:$0xff]  }
 0x564   : > { %v3405_v19 = vmax.f32 %v3274_v13, 0.0  ;;  %4147 = vmatprep.mubr.bf16.mxu0 %v8882_v0  ;;  %v3474_v27 = vpack.c.bf16 %v3404_v11, %v3402_v20  ;;  %v3278_v28 = vadd.f32 %v3277_v15, %v9808_v45 }
 0x565   : > { %v3279_v22 = vpop.f32.mrf.mxu0 }
 0x566   : > { %v3475_v24 = vpack.c.bf16 %v3405_v19, %v3403_v17  ;;  %4483 = vmatpush1.bf16.msra.mxu1 %v8120_v14  ;;  %v3280_v33 = vadd.f32 %v3279_v22, %v9804_v38  ;;  %v3406_v41 = vmax.f32 %v3278_v28, 0.0 }
 0x567   : > { %v3281_v29 = vpop.f32.mrf.mxu0  ;;  %4484 = vmatprep.subr.bf16.mxu1 %v8125_v16  ;;  %v8141_v16 = vld [vmem:[#allocation17 + $0x90] ss:$8 sps:$4 sm:$0xff]  }
 0x568   : > { %v3282_v34 = vadd.f32 %v3281_v29, %v9808_v45  ;;  %3774 = vmatprep.mubr.bf16.mxu1 %v3475_v24  ;;  %v3407_v46 = vmax.f32 %v3280_v33, 0.0 }
 0x569   : > { %v3283_v36 = vpop.f32.mrf.mxu0  ;;  %3775 = vmatmul.mubr.bf16.gmra.mxu1 %v3474_v27 }
 0x56a   : > { %v3284_v37 = vadd.f32 %v3283_v36, %v9804_v38  ;;  %4485 = vmatpush2.bf16.msra.mxu1 %v8123_v26  ;;  %v3408_v39 = vmax.f32 %v3282_v34, 0.0 }
 0x56b   : > { %v3287_v53 = vpop.f32.mrf.mxu0  ;;  %4148 = vmatmul.mubr.bf16.gmra.mxu0 %v9477_v32  ;;  %4486 = vmatprep.subr.bf16.mxu1 %v8128_v31 }
 0x56c   : > { %v3409_v56 = vmax.f32 %v3284_v37, 0.0  ;;  %4157 = vmatprep.mubr.bf16.mxu0 %v8882_v0  ;;  %v3476_v55 = vpack.c.bf16 %v3408_v39, %v3406_v41  ;;  %v3288_v32 = vadd.f32 %v3287_v53, %v9808_v45 }
 0x56d   : > { %v3289_v50 = vpop.f32.mrf.mxu0 }
 0x56e   : > { %v3477_v58 = vpack.c.bf16 %v3409_v56, %v3407_v46  ;;  %4487 = vmatpush2.bf16.msra.mxu1 %v8126_v18  ;;  %v3290_v43 = vadd.f32 %v3289_v50, %v9804_v38  ;;  %v3410_v54 = vmax.f32 %v3288_v32, 0.0 }
 0x56f   : > { %v3291_v44 = vpop.f32.mrf.mxu0  ;;  %4488 = vmatprep.subr.bf16.mxu1 %v8131_v40 }
 0x570   : > { %v3292_v23 = vadd.f32 %v3291_v44, %v9808_v45  ;;  %3784 = vmatprep.mubr.bf16.mxu1 %v3477_v58  ;;  %v3411_v3 = vmax.f32 %v3290_v43, 0.0 }
 0x571   : > { %v3293_v30 = vpop.f32.mrf.mxu0  ;;  %3785 = vmatmul.mubr.bf16.gmra.mxu1 %v3476_v55 }
 0x572   : > { %v3294_v0 = vadd.f32 %v3293_v30, %v9804_v38  ;;  %4489 = vmatpush2.bf16.msra.mxu1 %v8129_v42  ;;  %v3412_v59 = vmax.f32 %v3292_v23, 0.0 }
 0x573   : > { %v3297_v21 = vpop.f32.mrf.mxu0  ;;  %4158 = vmatmul.mubr.bf16.gmra.mxu0 %v9483_v35  ;;  %4490 = vmatprep.subr.bf16.mxu1 %v8134_v49 }
 0x574   : > { %v3413_v47 = vmax.f32 %v3294_v0, 0.0  ;;  %v3478_v61 = vpack.c.bf16 %v3412_v59, %v3410_v54  ;;  %v3298_v35 = vadd.f32 %v3297_v21, %v9808_v45 }
 0x575   : > { %v3299_v57 = vpop.f32.mrf.mxu0 }
 0x576   : > { %v3479_v6 = vpack.c.bf16 %v3413_v47, %v3411_v3  ;;  %4491 = vmatpush2.bf16.msra.mxu1 %v8132_v52  ;;  %v3300_v2 = vadd.f32 %v3299_v57, %v9804_v38  ;;  %v3414_v14 = vmax.f32 %v3298_v35, 0.0  ;;  %v8146_v47 = vld [vmem:[#allocation17 + $0x84] ss:$8 sps:$4 sm:$0xff]  }
 0x577   : > { %v3301_v62 = vpop.f32.mrf.mxu0  ;;  %4492 = vmatprep.subr.bf16.mxu1 %v8137_v63 }
 0x578   : > { %v3302_v4 = vadd.f32 %v3301_v62, %v9808_v45  ;;  %3794 = vmatprep.mubr.bf16.mxu1 %v3479_v6  ;;  %v3415_v12 = vmax.f32 %v3300_v2, 0.0  ;;  %v8144_v6 = vld [vmem:[#allocation17 + $0x80] ss:$8 sps:$4 sm:$0xff]  }
 0x579   : > { %v3303_v5 = vpop.f32.mrf.mxu0  ;;  %3795 = vmatmul.mubr.bf16.gmra.mxu1 %v3478_v61 }
 0x57a   : > { %v3304_v7 = vadd.f32 %v3303_v5, %v9804_v38  ;;  %4493 = vmatpush2.bf16.msra.mxu1 %v8135_v60  ;;  %v3416_v9 = vmax.f32 %v3302_v4, 0.0 }
 0x57b   : > { %v3307_v10 = vpop.f32.mrf.mxu0  ;;  %4494 = vmatprep.subr.bf16.mxu1 %v8140_v1 }
 0x57c   : > { %v3417_v13 = vmax.f32 %v3304_v7, 0.0  ;;  %v3480_v17 = vpack.c.bf16 %v3416_v9, %v3414_v14  ;;  %v3308_v24 = vadd.f32 %v3307_v10, %v9808_v45 }
 0x57d   : > { %v3309_v11 = vpop.f32.mrf.mxu0 }
 0x57e   : > { %v3481_v15 = vpack.c.bf16 %v3417_v13, %v3415_v12  ;;  %4495 = vmatpush2.bf16.msra.mxu1 %v8138_v8  ;;  %v3310_v20 = vadd.f32 %v3309_v11, %v9804_v38  ;;  %v3418_v28 = vmax.f32 %v3308_v24, 0.0 }
 0x57f   : > { %v3311_v19 = vpop.f32.mrf.mxu0  ;;  %4496 = vmatprep.subr.bf16.mxu1 %v8143_v25 }
 0x580   : > { %v3312_v22 = vadd.f32 %v3311_v19, %v9808_v45  ;;  %3804 = vmatprep.mubr.bf16.mxu1 %v3481_v15  ;;  %v3419_v33 = vmax.f32 %v3310_v20, 0.0 }
 0x581   : > { %v3313_v26 = vpop.f32.mrf.mxu0  ;;  %3805 = vmatmul.mubr.bf16.gmra.mxu1 %v3480_v17 }
 0x582   : > { %v3314_v27 = vadd.f32 %v3313_v26, %v9804_v38  ;;  %4497 = vmatpush2.bf16.msra.mxu1 %v8141_v16  ;;  %v3420_v29 = vmax.f32 %v3312_v22, 0.0 }
 0x583   : > { %v3317_v31 = vpop.f32.mrf.mxu0  ;;  %4498 = vmatprep.subr.bf16.mxu1 %v8146_v47 }
 0x584   : > { %v3421_v34 = vmax.f32 %v3314_v27, 0.0  ;;  %v3482_v18 = vpack.c.bf16 %v3420_v29, %v3418_v28  ;;  %v3318_v46 = vadd.f32 %v3317_v31, %v9808_v45 }
 0x585   : > { %v3319_v36 = vpop.f32.mrf.mxu0 }
 0x586   : > { %v3483_v37 = vpack.c.bf16 %v3421_v34, %v3419_v33  ;;  %v3320_v53 = vadd.f32 %v3319_v36, %v9804_v38  ;;  %v3422_v44 = vmax.f32 %v3318_v46, 0.0  ;;  %4499 = vmatpush2.bf16.msra.mxu1 %v8144_v6 }
 0x587   : > { %v3321_v39 = vpop.f32.mrf.mxu0 }
 0x588   : > { %v3322_v40 = vadd.f32 %v3321_v39, %v9808_v45  ;;  %3814 = vmatprep.mubr.bf16.mxu1 %v3483_v37  ;;  %v3423_v42 = vmax.f32 %v3320_v53, 0.0 }
 0x589   : > { %v3323_v56 = vpop.f32.mrf.mxu0  ;;  %3815 = vmatmul.mubr.bf16.gmra.mxu1 %v3482_v18 }
 0x58a   : > { %v3324_v41 = vadd.f32 %v3323_v56, %v9804_v38  ;;  %v3424_v50 = vmax.f32 %v3322_v40, 0.0 }
 0x58b   : > { %v3327_v58 = vpop.f32.mrf.mxu0 }
 0x58c   : > { %v3425_v55 = vmax.f32 %v3324_v41, 0.0  ;;  %v3484_v23 = vpack.c.bf16 %v3424_v50, %v3422_v44  ;;  %v3328_v52 = vadd.f32 %v3327_v58, %v9808_v45 }
 0x58d   : > { %v3329_v49 = vpop.f32.mrf.mxu0 }
 0x58e   : > { %v3485_v43 = vpack.c.bf16 %v3425_v55, %v3423_v42  ;;  %v3330_v30 = vadd.f32 %v3329_v49, %v9804_v38  ;;  %v3426_v60 = vmax.f32 %v3328_v52, 0.0 }
 0x58f   : > { %v3331_v32 = vpop.f32.mrf.mxu0 }
 0x590   : > { %v3332_v0 = vadd.f32 %v3331_v32, %v9808_v45  ;;  %3824 = vmatprep.mubr.bf16.mxu1 %v3485_v43  ;;  %v3427_v54 = vmax.f32 %v3330_v30, 0.0 }
 0x591   : > { %v3333_v59 = vpop.f32.mrf.mxu0  ;;  %3825 = vmatmul.mubr.bf16.gmra.mxu1 %v3484_v23 }
 0x592   : > { %v3334_v21 = vadd.f32 %v3333_v59, %v9804_v38  ;;  %v3428_v63 = vmax.f32 %v3332_v0, 0.0 }
 0x593   : > { %v3337_v3 = vpop.f32.mrf.mxu0 }
 0x594   : > { %v3429_v57 = vmax.f32 %v3334_v21, 0.0  ;;  %v3486_v1 = vpack.c.bf16 %v3428_v63, %v3426_v60  ;;  %v3338_v5 = vadd.f32 %v3337_v3, %v9808_v45 }
 0x595   : > { %v3339_v61 = vpop.f32.mrf.mxu0 }
 0x596   : > { %v3487_v62 = vpack.c.bf16 %v3429_v57, %v3427_v54  ;;  %v3340_v4 = vadd.f32 %v3339_v61, %v9804_v38  ;;  %v3430_v13 = vmax.f32 %v3338_v5, 0.0 }
 0x597   : > { %v3341_v2 = vpop.f32.mrf.mxu0 }
 0x598   : > { %v3342_v35 = vadd.f32 %v3341_v2, %v9808_v45  ;;  %3834 = vmatprep.mubr.bf16.mxu1 %v3487_v62  ;;  %v3431_v25 = vmax.f32 %v3340_v4, 0.0 }
 0x599   : > { %v3343_v7 = vpop.f32.mrf.mxu0  ;;  %3835 = vmatmul.mubr.bf16.gmra.mxu1 %v3486_v1 }
 0x59a   : > { %v3344_v8 = vadd.f32 %v3343_v7, %v9804_v38  ;;  %v3432_v9 = vmax.f32 %v3342_v35, 0.0 }
 0x59b   : > { %v3347_v10 = vpop.f32.mrf.mxu0 }
 0x59c   : > { %v3433_v12 = vmax.f32 %v3344_v8, 0.0  ;;  %v3488_v15 = vpack.c.bf16 %v3432_v9, %v3430_v13  ;;  %v3348_v20 = vadd.f32 %v3347_v10, %v9808_v45 }
 0x59d   : > { %v3349_v14 = vpop.f32.mrf.mxu0 }
 0x59e   : > { %v3489_v11 = vpack.c.bf16 %v3433_v12, %v3431_v25  ;;  %v3350_v17 = vadd.f32 %v3349_v14, %v9804_v38  ;;  %v3434_v33 = vmax.f32 %v3348_v20, 0.0 }
 0x59f   : > { %v3351_v16 = vpop.f32.mrf.mxu0 }
 0x5a0   : > { %v3352_v19 = vadd.f32 %v3351_v16, %v9808_v45  ;;  %3844 = vmatprep.mubr.bf16.mxu1 %v3489_v11  ;;  %v3435_v29 = vmax.f32 %v3350_v17, 0.0 }
 0x5a1   : > { %v3353_v22 = vpop.f32.mrf.mxu0  ;;  %3845 = vmatmul.mubr.bf16.gmra.mxu1 %v3488_v15 }
 0x5a2   : > { %v3354_v24 = vadd.f32 %v3353_v22, %v9804_v38  ;;  %v3436_v26 = vmax.f32 %v3352_v19, 0.0 }
 0x5a3   : > { %v3357_v27 = vpop.f32.mrf.mxu0 }
 0x5a4   : > { %v3437_v31 = vmax.f32 %v3354_v24, 0.0  ;;  %v3490_v36 = vpack.c.bf16 %v3436_v26, %v3434_v33  ;;  %v3358_v53 = vadd.f32 %v3357_v27, %v9808_v45 }
 0x5a5   : > { %v3359_v34 = vpop.f32.mrf.mxu0 }
 0x5a6   : > { %v3491_v28 = vpack.c.bf16 %v3437_v31, %v3435_v29  ;;  %v3360_v18 = vadd.f32 %v3359_v34, %v9804_v38  ;;  %v3438_v42 = vmax.f32 %v3358_v53, 0.0  ;;  %v8149_v53 = vld [vmem:[#allocation19 + $0x74] ss:$8 sps:$4 sm:$0xff]  }
 0x5a7   : > { %v3361_v37 = vpop.f32.mrf.mxu0  ;;  %4961 = vmatprep.subr.bf16.mxu0 %v8149_v53 }
 0x5a8   : > { %v3362_v39 = vadd.f32 %v3361_v37, %v9808_v45  ;;  %3854 = vmatprep.mubr.bf16.mxu1 %v3491_v28  ;;  %v3439_v50 = vmax.f32 %v3360_v18, 0.0 }
 0x5a9   : > { %v3363_v40 = vpop.f32.mrf.mxu0  ;;  %3855 = vmatmul.mubr.bf16.gmra.mxu1 %v3490_v36 }
 0x5aa   : > { %v3364_v46 = vadd.f32 %v3363_v40, %v9804_v38  ;;  %v3440_v56 = vmax.f32 %v3362_v39, 0.0  ;;  %v8147_v39 = vld [vmem:[#allocation19 + $0x70] ss:$8 sps:$4 sm:$0xff]  }
 0x5ab   : > { %v3367_v41 = vpop.f32.mrf.mxu0  ;;  %4962 = vmatpush1.bf16.msra.mxu0 %v8147_v39 }
 0x5ac   : > { %v3441_v58 = vmax.f32 %v3364_v46, 0.0  ;;  %v3492_v49 = vpack.c.bf16 %v3440_v56, %v3438_v42  ;;  %v3368_v30 = vadd.f32 %v3367_v41, %v9808_v45  ;;  %v8150_v56 = vld [vmem:[#allocation19 + $0x60] ss:$8 sps:$4 sm:$0xff]   ;;  %v8152_v41 = vld [vmem:[#allocation19 + $0x64] ss:$8 sps:$4 sm:$0xff]  }
 0x5ad   : > { %v3369_v55 = vpop.f32.mrf.mxu0  ;;  %4963 = vmatprep.subr.bf16.mxu0 %v8152_v41  ;;  %v8153_v42 = vld [vmem:[#allocation19 + $0x50] ss:$8 sps:$4 sm:$0xff]  }
 0x5ae   : > { %v3493_v44 = vpack.c.bf16 %v3441_v58, %v3439_v50  ;;  %v3370_v23 = vadd.f32 %v3369_v55, %v9804_v38  ;;  %v3442_v47 = vmax.f32 %v3368_v30, 0.0  ;;  %v8155_v55 = vld [vmem:[#allocation19 + $0x54] ss:$8 sps:$4 sm:$0xff]   ;;  %v8165_v41 = vld [vmem:[#allocation19 + $0x10] ss:$8 sps:$4 sm:$0xff]  }
 0x5af   : > { %v3371_v43 = vpop.f32.mrf.mxu0  ;;  %4964 = vmatpush1.bf16.msra.mxu0 %v8150_v56  ;;  %v3530_v30 = vld [vmem:[%s10713_s0] sm:$0x3]  ;;  %s10718_s0 = sld [smem:[#allocation66_spill]] }
 0x5b0   : > { %v3372_v32 = vadd.f32 %v3371_v43, %v9808_v45  ;;  %3864 = vmatprep.mubr.bf16.mxu1 %v3493_v44  ;;  %v3443_v63 = vmax.f32 %v3370_v23, 0.0  ;;  %4965 = vmatprep.subr.bf16.mxu0 %v8155_v55  ;;  %v8156_v43 = vld [vmem:[#allocation19 + $0x40] ss:$8 sps:$4 sm:$0xff]   ;;  %v8158_v23 = vld [vmem:[#allocation19 + $0x44] ss:$8 sps:$4 sm:$0xff]  }
 0x5b1   : > { %v3373_v0 = vpop.f32.mrf.mxu0  ;;  %3865 = vmatmul.mubr.bf16.gmra.mxu1 %v3492_v49 }
 0x5b2   : > { %v3374_v52 = vadd.f32 %v3373_v0, %v9804_v38  ;;  %v3444_v59 = vmax.f32 %v3372_v32, 0.0  ;;  %v9953_v0 = vrot.slane %v3530_v30, %v9486_v48 }
 0x5b3   : > { %v3377_v21 = vpop.f32.mrf.mxu0  ;;  %4966 = vmatpush1.bf16.msra.mxu0 %v8153_v42 }
 0x5b4   : > { %v3445_v3 = vmax.f32 %v3374_v52, 0.0  ;;  %v3494_v6 = vpack.c.bf16 %v3444_v59, %v3442_v47  ;;  %v3378_v1 = vadd.f32 %v3377_v21, %v9808_v45  ;;  %4967 = vmatprep.subr.bf16.mxu0 %v8158_v23  ;;  %v9956_v52 = vrot.slane %v3530_v30, %v9488_v51  ;;  %v8159_v47 = vld [vmem:[#allocation19 + $0x30] ss:$8 sps:$4 sm:$0xff]  }
 0x5b5   : > { %v3379_v54 = vpop.f32.mrf.mxu0 }
 0x5b6   : > { %v3495_v57 = vpack.c.bf16 %v3445_v3, %v3443_v63  ;;  %v3380_v61 = vadd.f32 %v3379_v54, %v9804_v38  ;;  %v3446_v9 = vmax.f32 %v3378_v1, 0.0  ;;  %v8161_v54 = vld [vmem:[#allocation19 + $0x34] ss:$8 sps:$4 sm:$0xff]  }
 0x5b7   : > { %v3381_v60 = vpop.f32.mrf.mxu0  ;;  %4968 = vmatpush1.bf16.msra.mxu0 %v8156_v43 }
 0x5b8   : > { %v3382_v62 = vadd.f32 %v3381_v60, %v9808_v45  ;;  %3874 = vmatprep.mubr.bf16.mxu1 %v3495_v57  ;;  %v3447_v7 = vmax.f32 %v3380_v61, 0.0  ;;  %v8164_v61 = vld [vmem:[#allocation19 + $0x24] ss:$8 sps:$4 sm:$0xff]   ;;  %4969 = vmatprep.subr.bf16.mxu0 %v8161_v54 }
 0x5b9   : > { %v3383_v2 = vpop.f32.mrf.mxu0  ;;  %3875 = vmatmul.mubr.bf16.gmra.mxu1 %v3494_v6 }
 0x5ba   : > { %v3384_v4 = vadd.f32 %v3383_v2, %v9804_v38  ;;  %v3448_v35 = vmax.f32 %v3382_v62, 0.0  ;;  %v8162_v2 = vld [vmem:[#allocation19 + $0x20] ss:$8 sps:$4 sm:$0xff]  }
 0x5bb   : > { %v9887_v5 = vpop.f32.mrf.mxu0  ;;  %4970 = vmatpush1.bf16.msra.mxu0 %v8159_v47  ;;  %v8168_v47 = vld [vmem:[#allocation19] ss:$8 sps:$4 sm:$0xff]  }
 0x5bc   : > { %v3449_v8 = vmax.f32 %v3384_v4, 0.0  ;;  %v3496_v12 = vpack.c.bf16 %v3448_v35, %v3446_v9  ;;  %4971 = vmatprep.subr.bf16.mxu0 %v8164_v61  ;;  %v8173_v61 = vld [vmem:[#allocation19 + $0xf4] ss:$8 sps:$4 sm:$0xff]  }
 0x5bd   : > { %v9889_v10 = vpop.f32.mrf.mxu0 }
 0x5be   : > { %v3497_v25 = vpack.c.bf16 %v3449_v8, %v3447_v7 }
 0x5bf   : > { %v9891_v13 = vpop.f32.mrf.mxu0  ;;  %4972 = vmatpush1.bf16.msra.mxu0 %v8162_v2 }
 0x5c0   : > { %3884 = vmatprep.mubr.bf16.mxu1 %v3497_v25 }
 0x5c1   : > { %3885 = vmatmul.mubr.bf16.gmra.mxu1 %v3496_v12  ;;  %v9893_v14 = vpop.f32.mrf.mxu0  ;;  %v8167_v12 = vld [vmem:[#allocation19 + $0x14] ss:$8 sps:$4 sm:$0xff]  }
 0x5c2   : > { %4973 = vmatprep.subr.bf16.mxu0 %v8167_v12  ;;  %v8176_v12 = vld [vmem:[#allocation19 + $0xe4] ss:$8 sps:$4 sm:$0xff]  }
 0x5c3   : > { %v9895_v45 = vpop.f32.mrf.mxu0  ;;  %4974 = vmatpush1.bf16.msra.mxu0 %v8165_v41 }
 0x5c5   : > { %v9897_v11 = vpop.f32.mrf.mxu0 }
 0x5c7   : > { %v9899_v38 = vpop.f32.mrf.mxu0 }
 0x5c9   : > { %v9901_v15 = vpop.f32.mrf.mxu0 }
 0x5cb   : > { %v9903_v16 = vpop.f32.mrf.mxu0 }
 0x5cd   : > { %v9905_v17 = vpop.f32.mrf.mxu0 }
 0x5cf   : > { %v9907_v19 = vpop.f32.mrf.mxu0 }
 0x5d1   : > { %v9909_v20 = vpop.f32.mrf.mxu0 }
 0x5d3   : > { %v9911_v22 = vpop.f32.mrf.mxu0 }
 0x5d5   : > { %v9913_v24 = vpop.f32.mrf.mxu0 }
 0x5d7   : > { %v9915_v26 = vpop.f32.mrf.mxu0 }
 0x5d9   : > { %v9917_v27 = vpop.f32.mrf.mxu0 }
 0x5db   : > { %v9919_v29 = vpop.f32.mrf.mxu0 }
 0x5dd   : > { %v9921_v31 = vpop.f32.mrf.mxu0 }
 0x5df   : > { %v9923_v33 = vpop.f32.mrf.mxu0 }
 0x5e1   : > { %v9925_v34 = vpop.f32.mrf.mxu0 }
 0x5e3   : > { %v9927_v28 = vpop.f32.mrf.mxu0 }
 0x5e5   : > { %v9929_v36 = vpop.f32.mrf.mxu0 }
 0x5e7   : > { %v9931_v37 = vpop.f32.mrf.mxu0 }
 0x5e9   : > { %v9933_v18 = vpop.f32.mrf.mxu0 }
 0x5eb   : > { %v9935_v40 = vpop.f32.mrf.mxu0 }
 0x5ed   : > { %v9937_v46 = vpop.f32.mrf.mxu0 }
 0x5ef   : > { %v9939_v50 = vpop.f32.mrf.mxu0 }
 0x5f1   : > { %v9941_v58 = vpop.f32.mrf.mxu0 }
 0x5f3   : > { %v9943_v44 = vpop.f32.mrf.mxu0 }
 0x5f5   : > { %v9945_v49 = vpop.f32.mrf.mxu0 }
 0x5f7   : > { %v9947_v32 = vpop.f32.mrf.mxu0 }
 0x5f9   : > { %v9958_v21 = vpop.f32.mrf.mxu0 }
 0x5fb   : > { %v9962_v60 = vpop.f32.mrf.mxu0 }
 0x5fd   : > { %v9969_v25 = vpop.f32.mrf.mxu0 }
 0x5ff   : > { %v9974_v30 = vpop.f32.mrf.mxu0 }
 0x601   : > { %v9981_v2 = vpop.f32.mrf.mxu0 }
 0x609   : > { %v3736_v59 = vpop.f32.mrf.mxu1 }
 0x60a   : > { %v3737_v57 = vadd.f32 %v3736_v59, %v9956_v52 }
 0x60b   : > { %v3738_v63 = vpop.f32.mrf.mxu1 }
 0x60c   : > { %v3739_v3 = vadd.f32 %v3738_v63, %v9953_v0  ;;  %v4010_v8 = vadd.f32 %v9887_v5, %v3737_v57 }
 0x60d   : > { %v3740_v6 = vpop.f32.mrf.mxu1 }
 0x60e   : > { %v3741_v62 = vadd.f32 %v3740_v6, %v9956_v52  ;;  %v4012_v4 = vadd.f32 %v9889_v10, %v3739_v3  ;;  %v4168_v43 = vmax.f32 %v4010_v8, 0.0  ;;  %v8171_v8 = vld [vmem:[#allocation19 + $0xf0] ss:$8 sps:$4 sm:$0xff]  }
 0x60f   : > { %v3742_v1 = vpop.f32.mrf.mxu1 }
 0x610   : > { %v4014_v35 = vadd.f32 %v9891_v13, %v3741_v62  ;;  %v3743_v7 = vadd.f32 %v3742_v1, %v9953_v0  ;;  %v4169_v42 = vmax.f32 %v4012_v4, 0.0  ;;  %v8170_v13 = vld [vmem:[#allocation19 + $0x4] ss:$8 sps:$4 sm:$0xff]  }
 0x611   : > { %v3746_v9 = vpop.f32.mrf.mxu1  ;;  %4975 = vmatprep.subr.bf16.mxu0 %v8170_v13 }
 0x612   : > { %v4016_v39 = vadd.f32 %v9893_v14, %v3743_v7  ;;  %v4170_v53 = vmax.f32 %v4014_v35, 0.0  ;;  %v3747_v23 = vadd.f32 %v3746_v9, %v9956_v52  ;;  %4976 = vmatpush1.bf16.msra.mxu0 %v8168_v47 }
 0x613   : > { %v3748_v56 = vpop.f32.mrf.mxu1  ;;  %4977 = vmatprep.subr.bf16.mxu0 %v8173_v61  ;;  %v8182_v61 = vld [vmem:[#allocation19 + $0xc4] ss:$8 sps:$4 sm:$0xff]  }
 0x614   : > { %v4171_v55 = vmax.f32 %v4016_v39, 0.0  ;;  %v3749_v10 = vadd.f32 %v3748_v56, %v9953_v0  ;;  %v4232_v14 = vpack.c.bf16 %v4170_v53, %v4168_v43  ;;  %v4020_v62 = vadd.f32 %v9895_v45, %v3747_v23  ;;  %v9986_v56 = vpop.f32.mrf.mxu0 }
 0x615   : > { %v3750_v5 = vpop.f32.mrf.mxu1 }
 0x616   : > { %v3751_v59 = vadd.f32 %v3750_v5, %v9956_v52  ;;  %v4233_v63 = vpack.c.bf16 %v4171_v55, %v4169_v42  ;;  %v4022_v54 = vadd.f32 %v9897_v11, %v3749_v10  ;;  %v4172_v39 = vmax.f32 %v4020_v62, 0.0  ;;  %4978 = vmatpush2.bf16.msra.mxu0 %v8171_v8  ;;  %v8174_v10 = vld [vmem:[#allocation19 + $0xe0] ss:$8 sps:$4 sm:$0xff]   ;;  %v8179_v5 = vld [vmem:[#allocation19 + $0xd4] ss:$8 sps:$4 sm:$0xff]  }
 0x617   : > { %v3752_v3 = vpop.f32.mrf.mxu1  ;;  %4979 = vmatprep.subr.bf16.mxu0 %v8176_v12 }
 0x618   : > { %v4024_v57 = vadd.f32 %v9899_v38, %v3751_v59  ;;  %v3753_v6 = vadd.f32 %v3752_v3, %v9953_v0  ;;  %4500 = vmatprep.mubr.bf16.mxu1 %v4233_v63  ;;  %v4173_v11 = vmax.f32 %v4022_v54, 0.0 }
 0x619   : > { %v3756_v1 = vpop.f32.mrf.mxu1  ;;  %4501 = vmatmul.mubr.bf16.vlgmr.msra.gmra.mxu1 %v4232_v14  ;;  %v9993_v14 = vpop.f32.mrf.mxu0 }
 0x61a   : > { %v4026_v4 = vadd.f32 %v9901_v15, %v3753_v6  ;;  %v4174_v35 = vmax.f32 %v4024_v57, 0.0  ;;  %v3757_v53 = vadd.f32 %v3756_v1, %v9956_v52  ;;  %4980 = vmatpush2.bf16.msra.mxu0 %v8174_v10  ;;  %v8177_v57 = vld [vmem:[#allocation19 + $0xd0] ss:$8 sps:$4 sm:$0xff]  }
 0x61b   : > { %v3758_v7 = vpop.f32.mrf.mxu1  ;;  %4981 = vmatprep.subr.bf16.mxu0 %v8179_v5  ;;  %v8183_v10 = vld [vmem:[#allocation19 + $0xb0] ss:$8 sps:$4 sm:$0xff]  }
 0x61c   : > { %v4175_v9 = vmax.f32 %v4026_v4, 0.0  ;;  %v3759_v38 = vadd.f32 %v3758_v7, %v9953_v0  ;;  %v4234_v15 = vpack.c.bf16 %v4174_v35, %v4172_v39  ;;  %v4030_v59 = vadd.f32 %v9903_v16, %v3757_v53  ;;  %v9998_v4 = vpop.f32.mrf.mxu0  ;;  %v8185_v39 = vld [vmem:[#allocation19 + $0xb4] ss:$8 sps:$4 sm:$0xff]  }
 0x61d   : > { %v3760_v45 = vpop.f32.mrf.mxu1 }
 0x61e   : > { %v3761_v41 = vadd.f32 %v3760_v45, %v9956_v52  ;;  %v4235_v42 = vpack.c.bf16 %v4175_v9, %v4173_v11  ;;  %v4032_v13 = vadd.f32 %v9905_v17, %v3759_v38  ;;  %v4176_v62 = vmax.f32 %v4030_v59, 0.0  ;;  %4982 = vmatpush2.bf16.msra.mxu0 %v8177_v57  ;;  %v8180_v11 = vld [vmem:[#allocation19 + $0xc0] ss:$8 sps:$4 sm:$0xff]  }
 0x61f   : > { %v3762_v55 = vpop.f32.mrf.mxu1  ;;  %4983 = vmatprep.subr.bf16.mxu0 %v8182_v61 }
 0x620   : > { %v4034_v43 = vadd.f32 %v9907_v19, %v3761_v41  ;;  %v3763_v23 = vadd.f32 %v3762_v55, %v9953_v0  ;;  %4510 = vmatprep.mubr.bf16.mxu1 %v4235_v42  ;;  %v4177_v17 = vmax.f32 %v4032_v13, 0.0  ;;  %v10005_v41 = vpop.f32.mrf.mxu0 }
 0x621   : > { %v3766_v63 = vpop.f32.mrf.mxu1  ;;  %4511 = vmatmul.mubr.bf16.gmra.mxu1 %v4234_v15 }
 0x622   : > { %v4036_v3 = vadd.f32 %v9909_v20, %v3763_v23  ;;  %v4178_v47 = vmax.f32 %v4034_v43, 0.0  ;;  %v3767_v1 = vadd.f32 %v3766_v63, %v9956_v52  ;;  %4984 = vmatpush2.bf16.msra.mxu0 %v8180_v11  ;;  %v8188_v43 = vld [vmem:[#allocation19 + $0xa4] ss:$8 sps:$4 sm:$0xff]   ;;  %v10010_v59 = vpop.f32.mrf.mxu0 }
 0x623   : > { %v3768_v54 = vpop.f32.mrf.mxu1  ;;  %4985 = vmatprep.subr.bf16.mxu0 %v8185_v39 }
 0x624   : > { %v4179_v6 = vmax.f32 %v4036_v3, 0.0  ;;  %v3769_v19 = vadd.f32 %v3768_v54, %v9953_v0  ;;  %v4236_v20 = vpack.c.bf16 %v4178_v47, %v4176_v62  ;;  %v4040_v53 = vadd.f32 %v9911_v22, %v3767_v1  ;;  %v8186_v54 = vld [vmem:[#allocation19 + $0xa0] ss:$8 sps:$4 sm:$0xff]   ;;  %v10017_v1 = vpop.f32.mrf.mxu0 }
 0x625   : > { %v3770_v16 = vpop.f32.mrf.mxu1 }
 0x626   : > { %v3771_v35 = vadd.f32 %v3770_v16, %v9956_v52  ;;  %v4237_v7 = vpack.c.bf16 %v4179_v6, %v4177_v17  ;;  %v4042_v9 = vadd.f32 %v9913_v24, %v3769_v19  ;;  %v4180_v23 = vmax.f32 %v4040_v53, 0.0  ;;  %4986 = vmatpush2.bf16.msra.mxu0 %v8183_v10  ;;  %v8191_v19 = vld [vmem:[#allocation19 + $0x94] ss:$8 sps:$4 sm:$0xff]  }
 0x627   : > { %v3772_v8 = vpop.f32.mrf.mxu1  ;;  %4987 = vmatprep.subr.bf16.mxu0 %v8188_v43 }
 0x628   : > { %v4044_v38 = vadd.f32 %v9915_v26, %v3771_v35  ;;  %v3773_v12 = vadd.f32 %v3772_v8, %v9953_v0  ;;  %4520 = vmatprep.mubr.bf16.mxu1 %v4237_v7  ;;  %v4181_v24 = vmax.f32 %v4042_v9, 0.0 }
 0x629   : > { %v3776_v45 = vpop.f32.mrf.mxu1  ;;  %4521 = vmatmul.mubr.bf16.gmra.mxu1 %v4236_v20  ;;  %v8189_v20 = vld [vmem:[#allocation19 + $0x90] ss:$8 sps:$4 sm:$0xff]  }
 0x62a   : > { %v4046_v42 = vadd.f32 %v9917_v27, %v3773_v12  ;;  %v4182_v15 = vmax.f32 %v4044_v38, 0.0  ;;  %v3777_v5 = vadd.f32 %v3776_v45, %v9956_v52  ;;  %4988 = vmatpush2.bf16.msra.mxu0 %v8186_v54 }
 0x62b   : > { %v3778_v55 = vpop.f32.mrf.mxu1  ;;  %4989 = vmatprep.subr.bf16.mxu0 %v8191_v19 }
 0x62c   : > { %v4183_v13 = vmax.f32 %v4046_v42, 0.0  ;;  %v3779_v26 = vadd.f32 %v3778_v55, %v9953_v0  ;;  %v4238_v27 = vpack.c.bf16 %v4182_v15, %v4180_v23  ;;  %v4050_v61 = vadd.f32 %v9919_v29, %v3777_v5  ;;  %v10022_v29 = vpop.f32.mrf.mxu0 }
 0x62d   : > { %v3780_v22 = vpop.f32.mrf.mxu1 }
 0x62e   : > { %v3781_v63 = vadd.f32 %v3780_v22, %v9956_v52  ;;  %v4239_v3 = vpack.c.bf16 %v4183_v13, %v4181_v24  ;;  %v4052_v57 = vadd.f32 %v9921_v31, %v3779_v26  ;;  %v4184_v11 = vmax.f32 %v4050_v61, 0.0  ;;  %4990 = vmatpush2.bf16.msra.mxu0 %v8189_v20  ;;  %v10029_v24 = vpop.f32.mrf.mxu0 }
 0x62f   : > { %v3782_v47 = vpop.f32.mrf.mxu1 }
 0x630   : > { %v4054_v17 = vadd.f32 %v9923_v33, %v3781_v63  ;;  %v3783_v6 = vadd.f32 %v3782_v47, %v9953_v0  ;;  %4530 = vmatprep.mubr.bf16.mxu1 %v4239_v3  ;;  %v4185_v31 = vmax.f32 %v4052_v57, 0.0  ;;  %v10034_v3 = vpop.f32.mrf.mxu0 }
 0x631   : > { %v3786_v62 = vpop.f32.mrf.mxu1  ;;  %4531 = vmatmul.mubr.bf16.gmra.mxu1 %v4238_v27 }
 0x632   : > { %v4056_v16 = vadd.f32 %v9925_v34, %v3783_v6  ;;  %v4186_v35 = vmax.f32 %v4054_v17, 0.0  ;;  %v3787_v9 = vadd.f32 %v3786_v62, %v9956_v52  ;;  %v10041_v61 = vpop.f32.mrf.mxu0 }
 0x633   : > { %v3788_v7 = vpop.f32.mrf.mxu1 }
 0x634   : > { %v4187_v8 = vmax.f32 %v4056_v16, 0.0  ;;  %v3789_v33 = vadd.f32 %v3788_v7, %v9953_v0  ;;  %v4240_v53 = vpack.c.bf16 %v4186_v35, %v4184_v11  ;;  %v4060_v55 = vadd.f32 %v9927_v28, %v3787_v9 }
 0x635   : > { %v3790_v38 = vpop.f32.mrf.mxu1 }
 0x636   : > { %v3791_v12 = vadd.f32 %v3790_v38, %v9956_v52  ;;  %v4241_v39 = vpack.c.bf16 %v4187_v8, %v4185_v31  ;;  %v4062_v45 = vadd.f32 %v9929_v36, %v3789_v33  ;;  %v4188_v36 = vmax.f32 %v4060_v55, 0.0  ;;  %v10046_v33 = vpop.f32.mrf.mxu0 }
 0x637   : > { %v3792_v34 = vpop.f32.mrf.mxu1 }
 0x638   : > { %v4064_v42 = vadd.f32 %v9931_v37, %v3791_v12  ;;  %v3793_v15 = vadd.f32 %v3792_v34, %v9953_v0  ;;  %4540 = vmatprep.mubr.bf16.mxu1 %v4241_v39  ;;  %v4189_v23 = vmax.f32 %v4062_v45, 0.0  ;;  %v10053_v45 = vpop.f32.mrf.mxu0 }
 0x639   : > { %v3796_v10 = vpop.f32.mrf.mxu1  ;;  %4541 = vmatmul.mubr.bf16.gmra.mxu1 %v4240_v53 }
 0x63a   : > { %v4066_v13 = vadd.f32 %v9933_v18, %v3793_v15  ;;  %v4190_v26 = vmax.f32 %v4064_v42, 0.0  ;;  %v3797_v37 = vadd.f32 %v3796_v10, %v9956_v52 }
 0x63b   : > { %v3798_v43 = vpop.f32.mrf.mxu1 }
 0x63c   : > { %v4191_v5 = vmax.f32 %v4066_v13, 0.0  ;;  %v3799_v22 = vadd.f32 %v3798_v43, %v9953_v0  ;;  %v4242_v47 = vpack.c.bf16 %v4190_v26, %v4188_v36  ;;  %v4070_v6 = vadd.f32 %v9935_v40, %v3797_v37 }
 0x63d   : > { %v3800_v63 = vpop.f32.mrf.mxu1 }
 0x63e   : > { %v3801_v28 = vadd.f32 %v3800_v63, %v9956_v52  ;;  %v4243_v27 = vpack.c.bf16 %v4191_v5, %v4189_v23  ;;  %v4072_v57 = vadd.f32 %v9937_v46, %v3799_v22  ;;  %v4192_v46 = vmax.f32 %v4070_v6, 0.0  ;;  %v10058_v23 = vpop.f32.mrf.mxu0 }
 0x63f   : > { %v3802_v54 = vpop.f32.mrf.mxu1 }
 0x640   : > { %v4074_v18 = vadd.f32 %v9939_v50, %v3801_v28  ;;  %v3803_v17 = vadd.f32 %v3802_v54, %v9953_v0  ;;  %4550 = vmatprep.mubr.bf16.mxu1 %v4243_v27  ;;  %v4193_v7 = vmax.f32 %v4072_v57, 0.0 }
 0x641   : > { %v3806_v19 = vpop.f32.mrf.mxu1  ;;  %4551 = vmatmul.mubr.bf16.gmra.mxu1 %v4242_v47  ;;  %v10065_v47 = vpop.f32.mrf.mxu0 }
 0x642   : > { %v4076_v62 = vadd.f32 %v9941_v58, %v3803_v17  ;;  %v4194_v16 = vmax.f32 %v4074_v18, 0.0  ;;  %v3807_v50 = vadd.f32 %v3806_v19, %v9956_v52 }
 0x643   : > { %v3808_v35 = vpop.f32.mrf.mxu1 }
 0x644   : > { %v4195_v20 = vmax.f32 %v4076_v62, 0.0  ;;  %v3809_v31 = vadd.f32 %v3808_v35, %v9953_v0  ;;  %v4244_v9 = vpack.c.bf16 %v4194_v16, %v4192_v46  ;;  %v4080_v53 = vadd.f32 %v9943_v44, %v3807_v50  ;;  %v10070_v16 = vpop.f32.mrf.mxu0 }
 0x645   : > { %v3810_v8 = vpop.f32.mrf.mxu1 }
 0x646   : > { %v3811_v40 = vadd.f32 %v3810_v8, %v9956_v52  ;;  %v4245_v11 = vpack.c.bf16 %v4195_v20, %v4193_v7  ;;  %v4082_v12 = vadd.f32 %v9945_v49, %v3809_v31  ;;  %v4196_v49 = vmax.f32 %v4080_v53, 0.0 }
 0x647   : > { %v3812_v38 = vpop.f32.mrf.mxu1 }
 0x648   : > { %v4084_v58 = vadd.f32 %v9947_v32, %v3811_v40  ;;  %v3813_v39 = vadd.f32 %v3812_v38, %v9953_v0  ;;  %4560 = vmatprep.mubr.bf16.mxu1 %v4245_v11  ;;  %v4197_v10 = vmax.f32 %v4082_v12, 0.0  ;;  %v10077_v40 = vpop.f32.mrf.mxu0 }
 0x649   : > { %v3816_v34 = vpop.f32.mrf.mxu1  ;;  %4561 = vmatmul.mubr.bf16.gmra.mxu1 %v4244_v9 }
 0x64a   : > { %v4086_v42 = vadd.f32 %v9958_v21, %v3813_v39  ;;  %v4198_v15 = vmax.f32 %v4084_v58, 0.0  ;;  %v3817_v32 = vadd.f32 %v3816_v34, %v9956_v52  ;;  %v10082_v34 = vpop.f32.mrf.mxu0 }
 0x64b   : > { %v3818_v55 = vpop.f32.mrf.mxu1 }
 0x64c   : > { %v4199_v13 = vmax.f32 %v4086_v42, 0.0  ;;  %v3819_v26 = vadd.f32 %v3818_v55, %v9953_v0  ;;  %v4246_v22 = vpack.c.bf16 %v4198_v15, %v4196_v49  ;;  %v4090_v28 = vadd.f32 %v9962_v60, %v3817_v32  ;;  %v10089_v32 = vpop.f32.mrf.mxu0 }
 0x64d   : > { %v3820_v43 = vpop.f32.mrf.mxu1 }
 0x64e   : > { %v3821_v44 = vadd.f32 %v3820_v43, %v9956_v52  ;;  %v4247_v5 = vpack.c.bf16 %v4199_v13, %v4197_v10  ;;  %v4092_v37 = vadd.f32 %v9969_v25, %v3819_v26  ;;  %v4200_v25 = vmax.f32 %v4090_v28, 0.0  ;;  %v8194_v43 = vld [vmem:[#allocation19 + $0x84] ss:$8 sps:$4 sm:$0xff]   ;;  %v4143_v28 = vpop.f32.mrf.mxu0 }
 0x64f   : > { %v3822_v36 = vpop.f32.mrf.mxu1  ;;  %4991 = vmatprep.subr.bf16.mxu0 %v8194_v43 }
 0x650   : > { %v4094_v21 = vadd.f32 %v9974_v30, %v3821_v44  ;;  %v3823_v63 = vadd.f32 %v3822_v36, %v9953_v0  ;;  %4570 = vmatprep.mubr.bf16.mxu1 %v4247_v5  ;;  %v4201_v17 = vmax.f32 %v4092_v37, 0.0  ;;  %v8192_v5 = vld [vmem:[#allocation19 + $0x80] ss:$8 sps:$4 sm:$0xff]  }
 0x651   : > { %v3826_v27 = vpop.f32.mrf.mxu1  ;;  %4571 = vmatmul.mubr.bf16.gmra.mxu1 %v4246_v22  ;;  %4992 = vmatpush2.bf16.msra.mxu0 %v8192_v5 }
 0x652   : > { %v4096_v54 = vadd.f32 %v9981_v2, %v3823_v63  ;;  %v4202_v57 = vmax.f32 %v4094_v21, 0.0  ;;  %v3827_v30 = vadd.f32 %v3826_v27, %v9956_v52 }
 0x653   : > { %v3828_v18 = vpop.f32.mrf.mxu1 }
 0x654   : > { %v4203_v6 = vmax.f32 %v4096_v54, 0.0  ;;  %v3829_v19 = vadd.f32 %v3828_v18, %v9953_v0  ;;  %v4248_v7 = vpack.c.bf16 %v4202_v57, %v4200_v25  ;;  %v4100_v50 = vadd.f32 %v9986_v56, %v3827_v30  ;;  %v4145_v30 = vpop.f32.mrf.mxu0 }
 0x655   : > { %v3830_v62 = vpop.f32.mrf.mxu1 }
 0x656   : > { %v3831_v60 = vadd.f32 %v3830_v62, %v9956_v52  ;;  %v4249_v35 = vpack.c.bf16 %v4203_v6, %v4201_v17  ;;  %v4102_v31 = vadd.f32 %v9993_v14, %v3829_v19  ;;  %v4204_v14 = vmax.f32 %v4100_v50, 0.0 }
 0x657   : > { %v3832_v20 = vpop.f32.mrf.mxu1 }
 0x658   : > { %v4104_v2 = vadd.f32 %v9998_v4, %v3831_v60  ;;  %v3833_v46 = vadd.f32 %v3832_v20, %v9953_v0  ;;  %4580 = vmatprep.mubr.bf16.mxu1 %v4249_v35  ;;  %v4205_v12 = vmax.f32 %v4102_v31, 0.0 }
 0x659   : > { %v3836_v8 = vpop.f32.mrf.mxu1  ;;  %4581 = vmatmul.mubr.bf16.gmra.mxu1 %v4248_v7 }
 0x65a   : > { %v4106_v11 = vadd.f32 %v10005_v41, %v3833_v46  ;;  %v4206_v9 = vmax.f32 %v4104_v2, 0.0  ;;  %v3837_v4 = vadd.f32 %v3836_v8, %v9956_v52  ;;  %v4149_v46 = vpop.f32.mrf.mxu0 }
 0x65b   : > { %v3838_v38 = vpop.f32.mrf.mxu1 }
 0x65c   : > { %v4207_v58 = vmax.f32 %v4106_v11, 0.0  ;;  %v3839_v39 = vadd.f32 %v3838_v38, %v9953_v0  ;;  %v4250_v15 = vpack.c.bf16 %v4206_v9, %v4204_v14  ;;  %v4110_v26 = vadd.f32 %v10010_v59, %v3837_v4 }
 0x65d   : > { %v3840_v53 = vpop.f32.mrf.mxu1 }
 0x65e   : > { %v3841_v56 = vadd.f32 %v3840_v53, %v9956_v52  ;;  %v4251_v42 = vpack.c.bf16 %v4207_v58, %v4205_v12  ;;  %v4112_v10 = vadd.f32 %v10017_v1, %v3839_v39  ;;  %v4208_v21 = vmax.f32 %v4110_v26, 0.0  ;;  %v4151_v39 = vpop.f32.mrf.mxu0 }
 0x65f   : > { %v3842_v55 = vpop.f32.mrf.mxu1 }
 0x660   : > { %v4114_v41 = vadd.f32 %v10022_v29, %v3841_v56  ;;  %v3843_v13 = vadd.f32 %v3842_v55, %v9953_v0  ;;  %4590 = vmatprep.mubr.bf16.mxu1 %v4251_v42  ;;  %v4209_v37 = vmax.f32 %v4112_v10, 0.0  ;;  %v4153_v10 = vpop.f32.mrf.mxu0 }
 0x661   : > { %v3846_v49 = vpop.f32.mrf.mxu1  ;;  %4591 = vmatmul.mubr.bf16.gmra.mxu1 %v4250_v15 }
 0x662   : > { %v4116_v44 = vadd.f32 %v10029_v24, %v3843_v13  ;;  %v4210_v22 = vmax.f32 %v4114_v41, 0.0  ;;  %v3847_v63 = vadd.f32 %v3846_v49, %v9956_v52 }
 0x663   : > { %v3848_v36 = vpop.f32.mrf.mxu1 }
 0x664   : > { %v4211_v1 = vmax.f32 %v4116_v44, 0.0  ;;  %v3849_v29 = vadd.f32 %v3848_v36, %v9953_v0  ;;  %v4252_v57 = vpack.c.bf16 %v4210_v22, %v4208_v21  ;;  %v4120_v19 = vadd.f32 %v10034_v3, %v3847_v63  ;;  %v4155_v22 = vpop.f32.mrf.mxu0 }
 0x665   : > { %v3850_v59 = vpop.f32.mrf.mxu1 }
 0x666   : > { %v3851_v27 = vadd.f32 %v3850_v59, %v9956_v52  ;;  %v4253_v54 = vpack.c.bf16 %v4211_v1, %v4209_v37  ;;  %v4122_v24 = vadd.f32 %v10041_v61, %v3849_v29  ;;  %v4212_v2 = vmax.f32 %v4120_v19, 0.0 }
 0x667   : > { %v3852_v18 = vpop.f32.mrf.mxu1 }
 0x668   : > { %v4124_v17 = vadd.f32 %v10046_v33, %v3851_v27  ;;  %v3853_v6 = vadd.f32 %v3852_v18, %v9953_v0  ;;  %4600 = vmatprep.mubr.bf16.mxu1 %v4253_v54  ;;  %v4213_v7 = vmax.f32 %v4122_v24, 0.0 }
 0x669   : > { %v3856_v25 = vpop.f32.mrf.mxu1  ;;  %4601 = vmatmul.mubr.bf16.gmra.mxu1 %v4252_v57 }
 0x66a   : > { %v4126_v62 = vadd.f32 %v10053_v45, %v3853_v6  ;;  %v4214_v60 = vmax.f32 %v4124_v17, 0.0  ;;  %v3857_v61 = vadd.f32 %v3856_v25, %v9956_v52 }
 0x66b   : > { %v3858_v35 = vpop.f32.mrf.mxu1 }
 0x66c   : > { %v4215_v20 = vmax.f32 %v4126_v62, 0.0  ;;  %v3859_v31 = vadd.f32 %v3858_v35, %v9953_v0  ;;  %v4254_v3 = vpack.c.bf16 %v4214_v60, %v4212_v2  ;;  %v4130_v12 = vadd.f32 %v10058_v23, %v3857_v61 }
 0x66d   : > { %v3860_v33 = vpop.f32.mrf.mxu1 }
 0x66e   : > { %v3861_v50 = vadd.f32 %v3860_v33, %v9956_v52  ;;  %v4255_v8 = vpack.c.bf16 %v4215_v20, %v4213_v7  ;;  %v4132_v9 = vadd.f32 %v10065_v47, %v3859_v31  ;;  %v4216_v55 = vmax.f32 %v4130_v12, 0.0 }
 0x66f   : > { %v3862_v11 = vpop.f32.mrf.mxu1 }
 0x670   : > { %v4134_v45 = vadd.f32 %v10070_v16, %v3861_v50  ;;  %v3863_v38 = vadd.f32 %v3862_v11, %v9953_v0  ;;  %4610 = vmatprep.mubr.bf16.mxu1 %v4255_v8  ;;  %v4217_v56 = vmax.f32 %v4132_v9, 0.0 }
 0x671   : > { %v3866_v58 = vpop.f32.mrf.mxu1  ;;  %4611 = vmatmul.mubr.bf16.gmra.mxu1 %v4254_v3 }
 0x672   : > { %v4136_v14 = vadd.f32 %v10077_v40, %v3863_v38  ;;  %v4218_v4 = vmax.f32 %v4134_v45, 0.0  ;;  %v3867_v47 = vadd.f32 %v3866_v58, %v9956_v52 }
 0x673   : > { %v3868_v53 = vpop.f32.mrf.mxu1 }
 0x674   : > { %v4219_v42 = vmax.f32 %v4136_v14, 0.0  ;;  %v3869_v15 = vadd.f32 %v3868_v53, %v9953_v0  ;;  %v4256_v23 = vpack.c.bf16 %v4218_v4, %v4216_v55  ;;  %v4140_v44 = vadd.f32 %v10082_v34, %v3867_v47  ;;  %v8197_v55 = vld [vmem:[#allocation20 + $0x74] ss:$8 sps:$4 sm:$0xff]   ;;  %v8198_v47 = vld [vmem:[#allocation20 + $0x60] ss:$8 sps:$4 sm:$0xff]  }
 0x675   : > { %v3870_v16 = vpop.f32.mrf.mxu1  ;;  %5454 = vmatprep.subr.bf16.mxu1 %v8197_v55 }
 0x676   : > { %v3871_v41 = vadd.f32 %v3870_v16, %v9956_v52  ;;  %v4257_v13 = vpack.c.bf16 %v4219_v42, %v4217_v56  ;;  %v4142_v49 = vadd.f32 %v10089_v32, %v3869_v15  ;;  %v4220_v59 = vmax.f32 %v4140_v44, 0.0  ;;  %v8200_v16 = vld [vmem:[#allocation20 + $0x64] ss:$8 sps:$4 sm:$0xff]   ;;  %v8210_v44 = vld [vmem:[#allocation20 + $0x20] ss:$8 sps:$4 sm:$0xff]  }
 0x677   : > { %v3872_v26 = vpop.f32.mrf.mxu1 }
 0x678   : > { %v4144_v43 = vadd.f32 %v4143_v28, %v3871_v41  ;;  %v3873_v40 = vadd.f32 %v3872_v26, %v9953_v0  ;;  %4620 = vmatprep.mubr.bf16.mxu1 %v4257_v13  ;;  %v4221_v29 = vmax.f32 %v4142_v49, 0.0  ;;  %v4159_v28 = vpop.f32.mrf.mxu0  ;;  %v8204_v41 = vld [vmem:[#allocation20 + $0x40] ss:$8 sps:$4 sm:$0xff]   ;;  %v8206_v13 = vld [vmem:[#allocation20 + $0x44] ss:$8 sps:$4 sm:$0xff]  }
 0x679   : > { %v3876_v5 = vpop.f32.mrf.mxu1  ;;  %4621 = vmatmul.mubr.bf16.gmra.mxu1 %v4256_v23  ;;  %v8207_v23 = vld [vmem:[#allocation20 + $0x30] ss:$8 sps:$4 sm:$0xff]   ;;  %v8209_v26 = vld [vmem:[#allocation20 + $0x34] ss:$8 sps:$4 sm:$0xff]  }
 0x67a   : > { %v4146_v36 = vadd.f32 %v4145_v30, %v3873_v40  ;;  %v4222_v37 = vmax.f32 %v4144_v43, 0.0  ;;  %v3877_v27 = vadd.f32 %v3876_v5, %v9956_v52  ;;  %v4161_v25 = vpop.f32.mrf.mxu0  ;;  %v4296_v49 = vld [vmem:[%s10714_s10] sm:$0x3]  ;;  %v8212_v5 = vld [vmem:[#allocation20 + $0x24] ss:$8 sps:$4 sm:$0xff]   ;;  %s7358_s10 = sshll.u32 %s10719_s19, 1 }
 0x67b   : > { %v3878_v1 = vpop.f32.mrf.mxu1  ;;  %v10126_v40 = vrot.slane %v4296_v49, %v9486_v48  ;;  %s6725_s15 = sadd.s32 %s10720_s16, %s7358_s10 }
 0x67c   : > { %v4223_v21 = vmax.f32 %v4146_v36, 0.0  ;;  %v3879_v63 = vadd.f32 %v3878_v1, %v9953_v0  ;;  %v4258_v18 = vpack.c.bf16 %v4222_v37, %v4220_v59  ;;  %v4150_v19 = vadd.f32 %v4149_v46, %v3877_v27  ;;  %v4163_v33 = vpop.f32.mrf.mxu0  ;;  %v8213_v59 = vld [vmem:[#allocation20 + $0x10] ss:$8 sps:$4 sm:$0xff]   ;;  %v8215_v27 = vld [vmem:[#allocation20 + $0x14] ss:$8 sps:$4 sm:$0xff]   ;;  %s7365_s21 = sshll.u32 %s6725_s15, 12 }
 0x67d   : > { %v3880_v32 = vpop.f32.mrf.mxu1 }
 0x67e   : > { %v3881_v54 = vadd.f32 %v3880_v32, %v9956_v52  ;;  %v4259_v57 = vpack.c.bf16 %v4223_v21, %v4221_v29  ;;  %v4152_v24 = vadd.f32 %v4151_v39, %v3879_v63  ;;  %v4224_v2 = vmax.f32 %v4150_v19, 0.0  ;;  %v4165_v58 = vpop.f32.mrf.mxu0  ;;  %v8221_v19 = vld [vmem:[#allocation20 + $0xf4] ss:$8 sps:$4 sm:$0xff]  }
 0x67f   : > { %v3882_v34 = vpop.f32.mrf.mxu1 }
 0x680   : > { %v4154_v17 = vadd.f32 %v4153_v10, %v3881_v54  ;;  %v3883_v6 = vadd.f32 %v3882_v34, %v9953_v0  ;;  %4630 = vmatprep.mubr.bf16.mxu1 %v4259_v57  ;;  %v4225_v7 = vmax.f32 %v4152_v24, 0.0  ;;  %v8203_v10 = vld [vmem:[#allocation20 + $0x54] ss:$8 sps:$4 sm:$0xff]   ;;  %v8216_v24 = vld [vmem:[#allocation20] ss:$8 sps:$4 sm:$0xff]  }
 0x681   : > { %v3886_v30 = vpop.f32.mrf.mxu1  ;;  %4631 = vmatmul.mubr.bf16.gmra.mxu1 %v4258_v18 }
 0x682   : > { %v4156_v62 = vadd.f32 %v4155_v22, %v3883_v6  ;;  %v4226_v60 = vmax.f32 %v4154_v17, 0.0  ;;  %v3887_v61 = vadd.f32 %v3886_v30, %v9956_v52  ;;  %v10129_v22 = vrot.slane %v4296_v49, %v9488_v51 }
 0x683   : > { %v3888_v35 = vpop.f32.mrf.mxu1 }
 0x684   : > { %v4227_v20 = vmax.f32 %v4156_v62, 0.0  ;;  %v3889_v31 = vadd.f32 %v3888_v35, %v9953_v0  ;;  %v4260_v11 = vpack.c.bf16 %v4226_v60, %v4224_v2  ;;  %v4160_v12 = vadd.f32 %v4159_v28, %v3887_v61  ;;  %v8218_v28 = vld [vmem:[#allocation20 + $0x4] ss:$8 sps:$4 sm:$0xff]  }
 0x685   : > { %v3890_v50 = vpop.f32.mrf.mxu1  ;;  %v8224_v2 = vld [vmem:[#allocation20 + $0xe4] ss:$8 sps:$4 sm:$0xff]  }
 0x686   : > { %v3891_v8 = vadd.f32 %v3890_v50, %v9956_v52  ;;  %v4261_v3 = vpack.c.bf16 %v4227_v20, %v4225_v7  ;;  %v4162_v9 = vadd.f32 %v4161_v25, %v3889_v31  ;;  %v4228_v56 = vmax.f32 %v4160_v12, 0.0  ;;  %v8195_v52 = vld [vmem:[#allocation20 + $0x70] ss:$8 sps:$4 sm:$0xff]  }
 0x687   : > { %v3892_v46 = vpop.f32.mrf.mxu1  ;;  %5455 = vmatpush1.bf16.msra.mxu1 %v8195_v52  ;;  %v8219_v7 = vld [vmem:[#allocation20 + $0xf0] ss:$8 sps:$4 sm:$0xff]  }
 0x688   : > { %v4164_v45 = vadd.f32 %v4163_v33, %v3891_v8  ;;  %v3893_v38 = vadd.f32 %v3892_v46, %v9953_v0  ;;  %4640 = vmatprep.mubr.bf16.mxu1 %v4261_v3  ;;  %v4229_v4 = vmax.f32 %v4162_v9, 0.0  ;;  %5456 = vmatprep.subr.bf16.mxu1 %v8200_v16  ;;  %v8201_v0 = vld [vmem:[#allocation20 + $0x50] ss:$8 sps:$4 sm:$0xff]  }
 0x689   : > { %4641 = vmatmul.mubr.bf16.gmra.mxu1 %v4260_v11  ;;  %v8222_v11 = vld [vmem:[#allocation20 + $0xe0] ss:$8 sps:$4 sm:$0xff]  }
 0x68a   : > { %v4166_v39 = vadd.f32 %v4165_v58, %v3893_v38  ;;  %v4230_v14 = vmax.f32 %v4164_v45, 0.0  ;;  %v8227_v45 = vld [vmem:[#allocation20 + $0xd4] ss:$8 sps:$4 sm:$0xff]  }
 0x68b   : > { %5457 = vmatpush1.bf16.msra.mxu1 %v8198_v47 }
 0x68c   : > { %v4231_v53 = vmax.f32 %v4166_v39, 0.0  ;;  %v4262_v15 = vpack.c.bf16 %v4230_v14, %v4228_v56  ;;  %5458 = vmatprep.subr.bf16.mxu1 %v8203_v10 }
 0x68e   : > { %v4263_v42 = vpack.c.bf16 %v4231_v53, %v4229_v4  ;;  %v8225_v4 = vld [vmem:[#allocation20 + $0xd0] ss:$8 sps:$4 sm:$0xff]  }
 0x68f   : > { %5459 = vmatpush1.bf16.msra.mxu1 %v8201_v0  ;;  %v8228_v0 = vld [vmem:[#allocation20 + $0xc0] ss:$8 sps:$4 sm:$0xff]  }
 0x690   : > { %4650 = vmatprep.mubr.bf16.mxu1 %v4263_v42  ;;  %5460 = vmatprep.subr.bf16.mxu1 %v8206_v13  ;;  %v8230_v42 = vld [vmem:[#allocation20 + $0xc4] ss:$8 sps:$4 sm:$0xff]   ;;  %v8233_v13 = vld [vmem:[#allocation20 + $0xb4] ss:$8 sps:$4 sm:$0xff]  }
 0x691   : > { %4651 = vmatmul.mubr.bf16.gmra.mxu1 %v4262_v15 }
 0x693   : > { %5461 = vmatpush1.bf16.msra.mxu1 %v8204_v41 }
 0x694   : > { %5462 = vmatprep.subr.bf16.mxu1 %v8209_v26 }
 0x697   : > { %5463 = vmatpush1.bf16.msra.mxu1 %v8207_v23 }
 0x698   : > { %5464 = vmatprep.subr.bf16.mxu1 %v8212_v5  ;;  %v8231_v5 = vld [vmem:[#allocation20 + $0xb0] ss:$8 sps:$4 sm:$0xff]  }
 0x69b   : > { %5465 = vmatpush1.bf16.msra.mxu1 %v8210_v44 }
 0x69c   : > { %5466 = vmatprep.subr.bf16.mxu1 %v8215_v27 }
 0x69f   : > { %5467 = vmatpush1.bf16.msra.mxu1 %v8213_v59 }
 0x6a0   : > { %5468 = vmatprep.subr.bf16.mxu1 %v8218_v28 }
 0x6a3   : > { %5469 = vmatpush1.bf16.msra.mxu1 %v8216_v24 }
 0x6a4   : > { %5470 = vmatprep.subr.bf16.mxu1 %v8221_v19  ;;  %v8237_v19 = vld [vmem:[#allocation20 + $0x90] ss:$8 sps:$4 sm:$0xff]  }
 0x6a7   : > { %5471 = vmatpush2.bf16.msra.mxu1 %v8219_v7 }
 0x6a8   : > { %5472 = vmatprep.subr.bf16.mxu1 %v8224_v2 }
 0x6ab   : > { %5473 = vmatpush2.bf16.msra.mxu1 %v8222_v11 }
 0x6ac   : > { %5474 = vmatprep.subr.bf16.mxu1 %v8227_v45 }
 0x6af   : > { %5475 = vmatpush2.bf16.msra.mxu1 %v8225_v4 }
 0x6b0   : > { %5476 = vmatprep.subr.bf16.mxu1 %v8230_v42 }
 0x6b3   : > { %5477 = vmatpush2.bf16.msra.mxu1 %v8228_v0 }
 0x6b4   : > { %5478 = vmatprep.subr.bf16.mxu1 %v8233_v13 }
 0x6b7   : > { %5479 = vmatpush2.bf16.msra.mxu1 %v8231_v5 }
 0x6d9   : > { %v4502_v43 = vpop.f32.mrf.mxu1 }
 0x6da   : > { %v4503_v21 = vadd.f32 %v4502_v43, %v10129_v22 }
 0x6db   : > { %v4504_v36 = vpop.f32.mrf.mxu1 }
 0x6dc   : > { %v4505_v1 = vadd.f32 %v4504_v36, %v10126_v40  ;;  %v4661_v17 = vmax.f32 %v4503_v21, 0.0 }
 0x6dd   : > { %v4506_v37 = vpop.f32.mrf.mxu1 }
 0x6de   : > { %v4507_v29 = vadd.f32 %v4506_v37, %v10129_v22  ;;  %v4662_v18 = vmax.f32 %v4505_v1, 0.0  ;;  %v8236_v1 = vld [vmem:[#allocation20 + $0xa4] ss:$8 sps:$4 sm:$0xff]  }
 0x6df   : > { %v4508_v63 = vpop.f32.mrf.mxu1  ;;  %5480 = vmatprep.subr.bf16.mxu1 %v8236_v1 }
 0x6e0   : > { %v4509_v32 = vadd.f32 %v4508_v63, %v10126_v40  ;;  %v4663_v54 = vmax.f32 %v4507_v29, 0.0 }
 0x6e1   : > { %v4512_v57 = vpop.f32.mrf.mxu1 }
 0x6e2   : > { %v4664_v34 = vmax.f32 %v4509_v32, 0.0  ;;  %v4725_v30 = vpack.c.bf16 %v4663_v54, %v4661_v17  ;;  %v4513_v20 = vadd.f32 %v4512_v57, %v10129_v22  ;;  %v8234_v32 = vld [vmem:[#allocation20 + $0xa0] ss:$8 sps:$4 sm:$0xff]   ;;  %v8239_v57 = vld [vmem:[#allocation20 + $0x94] ss:$8 sps:$4 sm:$0xff]  }
 0x6e3   : > { %v4514_v6 = vpop.f32.mrf.mxu1  ;;  %5481 = vmatpush2.bf16.msra.mxu1 %v8234_v32 }
 0x6e4   : > { %v4726_v25 = vpack.c.bf16 %v4664_v34, %v4662_v18  ;;  %v4515_v60 = vadd.f32 %v4514_v6, %v10126_v40  ;;  %v4665_v46 = vmax.f32 %v4513_v20, 0.0  ;;  %5482 = vmatprep.subr.bf16.mxu1 %v8239_v57 }
 0x6e5   : > { %v4516_v62 = vpop.f32.mrf.mxu1 }
 0x6e6   : > { %v4517_v35 = vadd.f32 %v4516_v62, %v10129_v22  ;;  %4993 = vmatprep.mubr.bf16.mxu0 %v4726_v25  ;;  %v4666_v8 = vmax.f32 %v4515_v60, 0.0 }
 0x6e7   : > { %v4518_v31 = vpop.f32.mrf.mxu1  ;;  %4994 = vmatmul.mubr.bf16.vlgmr.msra.gmra.mxu0 %v4725_v30  ;;  %5483 = vmatpush2.bf16.msra.mxu1 %v8237_v19 }
 0x6e8   : > { %v4519_v61 = vadd.f32 %v4518_v31, %v10126_v40  ;;  %v4667_v33 = vmax.f32 %v4517_v35, 0.0 }
 0x6e9   : > { %v4522_v50 = vpop.f32.mrf.mxu1 }
 0x6ea   : > { %v4668_v3 = vmax.f32 %v4519_v61, 0.0  ;;  %v4727_v12 = vpack.c.bf16 %v4667_v33, %v4665_v46  ;;  %v4523_v53 = vadd.f32 %v4522_v50, %v10129_v22 }
 0x6eb   : > { %v4524_v9 = vpop.f32.mrf.mxu1 }
 0x6ec   : > { %v4728_v38 = vpack.c.bf16 %v4668_v3, %v4666_v8  ;;  %v4525_v39 = vadd.f32 %v4524_v9, %v10126_v40  ;;  %v4669_v10 = vmax.f32 %v4523_v53, 0.0 }
 0x6ed   : > { %v4526_v58 = vpop.f32.mrf.mxu1 }
 0x6ee   : > { %v4527_v14 = vadd.f32 %v4526_v58, %v10129_v22  ;;  %5003 = vmatprep.mubr.bf16.mxu0 %v4728_v38  ;;  %v4670_v47 = vmax.f32 %v4525_v39, 0.0 }
 0x6ef   : > { %v4528_v56 = vpop.f32.mrf.mxu1  ;;  %5004 = vmatmul.mubr.bf16.gmra.mxu0 %v4727_v12 }
 0x6f0   : > { %v4529_v15 = vadd.f32 %v4528_v56, %v10126_v40  ;;  %v4671_v52 = vmax.f32 %v4527_v14, 0.0 }
 0x6f1   : > { %v4532_v55 = vpop.f32.mrf.mxu1 }
 0x6f2   : > { %v4672_v16 = vmax.f32 %v4529_v15, 0.0  ;;  %v4729_v26 = vpack.c.bf16 %v4671_v52, %v4669_v10  ;;  %v4533_v36 = vadd.f32 %v4532_v55, %v10129_v22 }
 0x6f3   : > { %v4534_v41 = vpop.f32.mrf.mxu1 }
 0x6f4   : > { %v4730_v23 = vpack.c.bf16 %v4672_v16, %v4670_v47  ;;  %v4535_v43 = vadd.f32 %v4534_v41, %v10126_v40  ;;  %v4673_v28 = vmax.f32 %v4533_v36, 0.0 }
 0x6f5   : > { %v4536_v49 = vpop.f32.mrf.mxu1 }
 0x6f6   : > { %v4537_v44 = vadd.f32 %v4536_v49, %v10129_v22  ;;  %5013 = vmatprep.mubr.bf16.mxu0 %v4730_v23  ;;  %v4674_v59 = vmax.f32 %v4535_v43, 0.0 }
 0x6f7   : > { %v4538_v37 = vpop.f32.mrf.mxu1  ;;  %5014 = vmatmul.mubr.bf16.gmra.mxu0 %v4729_v26 }
 0x6f8   : > { %v4539_v29 = vadd.f32 %v4538_v37, %v10126_v40  ;;  %v4675_v21 = vmax.f32 %v4537_v44, 0.0 }
 0x6f9   : > { %v4542_v63 = vpop.f32.mrf.mxu1 }
 0x6fa   : > { %v4676_v27 = vmax.f32 %v4539_v29, 0.0  ;;  %v4731_v34 = vpack.c.bf16 %v4675_v21, %v4673_v28  ;;  %v4543_v25 = vadd.f32 %v4542_v63, %v10129_v22 }
 0x6fb   : > { %v4544_v54 = vpop.f32.mrf.mxu1 }
 0x6fc   : > { %v4732_v18 = vpack.c.bf16 %v4676_v27, %v4674_v59  ;;  %v4545_v17 = vadd.f32 %v4544_v54, %v10126_v40  ;;  %v4677_v31 = vmax.f32 %v4543_v25, 0.0 }
 0x6fd   : > { %v4546_v24 = vpop.f32.mrf.mxu1 }
 0x6fe   : > { %v4547_v6 = vadd.f32 %v4546_v24, %v10129_v22  ;;  %5023 = vmatprep.mubr.bf16.mxu0 %v4732_v18  ;;  %v4678_v7 = vmax.f32 %v4545_v17, 0.0 }
 0x6ff   : > { %v4548_v30 = vpop.f32.mrf.mxu1  ;;  %5024 = vmatmul.mubr.bf16.gmra.mxu0 %v4731_v34 }
 0x700   : > { %v4549_v62 = vadd.f32 %v4548_v30, %v10126_v40  ;;  %v4679_v60 = vmax.f32 %v4547_v6, 0.0 }
 0x701   : > { %v4552_v35 = vpop.f32.mrf.mxu1 }
 0x702   : > { %v4680_v20 = vmax.f32 %v4549_v62, 0.0  ;;  %v4733_v33 = vpack.c.bf16 %v4679_v60, %v4677_v31  ;;  %v4553_v11 = vadd.f32 %v4552_v35, %v10129_v22 }
 0x703   : > { %v4554_v2 = vpop.f32.mrf.mxu1 }
 0x704   : > { %v4734_v61 = vpack.c.bf16 %v4680_v20, %v4678_v7  ;;  %v4555_v8 = vadd.f32 %v4554_v2, %v10126_v40  ;;  %v4681_v39 = vmax.f32 %v4553_v11, 0.0 }
 0x705   : > { %v4556_v50 = vpop.f32.mrf.mxu1 }
 0x706   : > { %v4557_v3 = vadd.f32 %v4556_v50, %v10129_v22  ;;  %5033 = vmatprep.mubr.bf16.mxu0 %v4734_v61  ;;  %v4682_v12 = vmax.f32 %v4555_v8, 0.0 }
 0x707   : > { %v4558_v46 = vpop.f32.mrf.mxu1  ;;  %5034 = vmatmul.mubr.bf16.gmra.mxu0 %v4733_v33 }
 0x708   : > { %v4559_v9 = vadd.f32 %v4558_v46, %v10126_v40  ;;  %v4683_v45 = vmax.f32 %v4557_v3, 0.0 }
 0x709   : > { %v4562_v38 = vpop.f32.mrf.mxu1 }
 0x70a   : > { %v4684_v58 = vmax.f32 %v4559_v9, 0.0  ;;  %v4735_v53 = vpack.c.bf16 %v4683_v45, %v4681_v39  ;;  %v4563_v52 = vadd.f32 %v4562_v38, %v10129_v22 }
 0x70b   : > { %v4564_v14 = vpop.f32.mrf.mxu1 }
 0x70c   : > { %v4736_v4 = vpack.c.bf16 %v4684_v58, %v4682_v12  ;;  %v4565_v42 = vadd.f32 %v4564_v14, %v10126_v40  ;;  %v4685_v13 = vmax.f32 %v4563_v52, 0.0  ;;  %v8240_v52 = vld [vmem:[#allocation20 + $0x80] ss:$8 sps:$4 sm:$0xff]  }
 0x70d   : > { %v4566_v56 = vpop.f32.mrf.mxu1 }
 0x70e   : > { %v4567_v15 = vadd.f32 %v4566_v56, %v10129_v22  ;;  %5043 = vmatprep.mubr.bf16.mxu0 %v4736_v4  ;;  %v4686_v10 = vmax.f32 %v4565_v42, 0.0  ;;  %v8242_v42 = vld [vmem:[#allocation20 + $0x84] ss:$8 sps:$4 sm:$0xff]  }
 0x70f   : > { %v4568_v55 = vpop.f32.mrf.mxu1  ;;  %5044 = vmatmul.mubr.bf16.gmra.mxu0 %v4735_v53  ;;  %5484 = vmatprep.subr.bf16.mxu1 %v8242_v42 }
 0x710   : > { %v4569_v47 = vadd.f32 %v4568_v55, %v10126_v40  ;;  %v4687_v16 = vmax.f32 %v4567_v15, 0.0  ;;  %5485 = vmatpush2.bf16.msra.mxu1 %v8240_v52 }
 0x711   : > { %v4572_v0 = vpop.f32.mrf.mxu1 }
 0x712   : > { %v4688_v41 = vmax.f32 %v4569_v47, 0.0  ;;  %v4737_v49 = vpack.c.bf16 %v4687_v16, %v4685_v13  ;;  %v4573_v36 = vadd.f32 %v4572_v0, %v10129_v22 }
 0x713   : > { %v4574_v23 = vpop.f32.mrf.mxu1 }
 0x714   : > { %v4738_v26 = vpack.c.bf16 %v4688_v41, %v4686_v10  ;;  %v4575_v44 = vadd.f32 %v4574_v23, %v10126_v40  ;;  %v4689_v27 = vmax.f32 %v4573_v36, 0.0 }
 0x715   : > { %v4576_v43 = vpop.f32.mrf.mxu1 }
 0x716   : > { %v4577_v5 = vadd.f32 %v4576_v43, %v10129_v22  ;;  %5053 = vmatprep.mubr.bf16.mxu0 %v4738_v26  ;;  %v4690_v63 = vmax.f32 %v4575_v44, 0.0 }
 0x717   : > { %v4578_v37 = vpop.f32.mrf.mxu1  ;;  %5054 = vmatmul.mubr.bf16.gmra.mxu0 %v4737_v49 }
 0x718   : > { %v4579_v1 = vadd.f32 %v4578_v37, %v10126_v40  ;;  %v4691_v29 = vmax.f32 %v4577_v5, 0.0 }
 0x719   : > { %v4582_v21 = vpop.f32.mrf.mxu1 }
 0x71a   : > { %v4692_v59 = vmax.f32 %v4579_v1, 0.0  ;;  %v4739_v54 = vpack.c.bf16 %v4691_v29, %v4689_v27  ;;  %v4583_v24 = vadd.f32 %v4582_v21, %v10129_v22 }
 0x71b   : > { %v4584_v32 = vpop.f32.mrf.mxu1 }
 0x71c   : > { %v4740_v28 = vpack.c.bf16 %v4692_v59, %v4690_v63  ;;  %v4585_v18 = vadd.f32 %v4584_v32, %v10126_v40  ;;  %v4693_v60 = vmax.f32 %v4583_v24, 0.0 }
 0x71d   : > { %v4586_v57 = vpop.f32.mrf.mxu1 }
 0x71e   : > { %v4587_v34 = vadd.f32 %v4586_v57, %v10129_v22  ;;  %5063 = vmatprep.mubr.bf16.mxu0 %v4740_v28  ;;  %v4694_v30 = vmax.f32 %v4585_v18, 0.0 }
 0x71f   : > { %v4588_v17 = vpop.f32.mrf.mxu1  ;;  %5064 = vmatmul.mubr.bf16.gmra.mxu0 %v4739_v54 }
 0x720   : > { %v4589_v6 = vadd.f32 %v4588_v17, %v10126_v40  ;;  %v4695_v19 = vmax.f32 %v4587_v34, 0.0 }
 0x721   : > { %v4592_v25 = vpop.f32.mrf.mxu1 }
 0x722   : > { %v4696_v62 = vmax.f32 %v4589_v6, 0.0  ;;  %v4741_v20 = vpack.c.bf16 %v4695_v19, %v4693_v60  ;;  %v4593_v33 = vadd.f32 %v4592_v25, %v10129_v22 }
 0x723   : > { %v4594_v35 = vpop.f32.mrf.mxu1 }
 0x724   : > { %v4742_v7 = vpack.c.bf16 %v4696_v62, %v4694_v30  ;;  %v4595_v2 = vadd.f32 %v4594_v35, %v10126_v40  ;;  %v4697_v45 = vmax.f32 %v4593_v33, 0.0 }
 0x725   : > { %v4596_v31 = vpop.f32.mrf.mxu1 }
 0x726   : > { %v4597_v61 = vadd.f32 %v4596_v31, %v10129_v22  ;;  %5073 = vmatprep.mubr.bf16.mxu0 %v4742_v7  ;;  %v4698_v46 = vmax.f32 %v4595_v2, 0.0 }
 0x727   : > { %v4598_v50 = vpop.f32.mrf.mxu1  ;;  %5074 = vmatmul.mubr.bf16.gmra.mxu0 %v4741_v20 }
 0x728   : > { %v4599_v8 = vadd.f32 %v4598_v50, %v10126_v40  ;;  %v4699_v3 = vmax.f32 %v4597_v61, 0.0 }
 0x729   : > { %v4602_v11 = vpop.f32.mrf.mxu1 }
 0x72a   : > { %v4700_v9 = vmax.f32 %v4599_v8, 0.0  ;;  %v4743_v58 = vpack.c.bf16 %v4699_v3, %v4697_v45  ;;  %v4603_v53 = vadd.f32 %v4602_v11, %v10129_v22 }
 0x72b   : > { %v4604_v38 = vpop.f32.mrf.mxu1 }
 0x72c   : > { %v4744_v12 = vpack.c.bf16 %v4700_v9, %v4698_v46  ;;  %v4605_v14 = vadd.f32 %v4604_v38, %v10126_v40  ;;  %v4701_v10 = vmax.f32 %v4603_v53, 0.0 }
 0x72d   : > { %v4606_v39 = vpop.f32.mrf.mxu1 }
 0x72e   : > { %v4607_v4 = vadd.f32 %v4606_v39, %v10129_v22  ;;  %5083 = vmatprep.mubr.bf16.mxu0 %v4744_v12  ;;  %v4702_v16 = vmax.f32 %v4605_v14, 0.0 }
 0x72f   : > { %v4608_v56 = vpop.f32.mrf.mxu1  ;;  %5084 = vmatmul.mubr.bf16.gmra.mxu0 %v4743_v58 }
 0x730   : > { %v4609_v15 = vadd.f32 %v4608_v56, %v10126_v40  ;;  %v4703_v55 = vmax.f32 %v4607_v4, 0.0 }
 0x731   : > { %v4612_v47 = vpop.f32.mrf.mxu1 }
 0x732   : > { %v4704_v0 = vmax.f32 %v4609_v15, 0.0  ;;  %v4745_v23 = vpack.c.bf16 %v4703_v55, %v4701_v10  ;;  %v4613_v44 = vadd.f32 %v4612_v47, %v10129_v22 }
 0x733   : > { %v4614_v41 = vpop.f32.mrf.mxu1 }
 0x734   : > { %v4746_v13 = vpack.c.bf16 %v4704_v0, %v4702_v16  ;;  %v4615_v49 = vadd.f32 %v4614_v41, %v10126_v40  ;;  %v4705_v63 = vmax.f32 %v4613_v44, 0.0 }
 0x735   : > { %v4616_v26 = vpop.f32.mrf.mxu1 }
 0x736   : > { %v4617_v43 = vadd.f32 %v4616_v26, %v10129_v22  ;;  %5093 = vmatprep.mubr.bf16.mxu0 %v4746_v13  ;;  %v4706_v29 = vmax.f32 %v4615_v49, 0.0 }
 0x737   : > { %v4618_v5 = vpop.f32.mrf.mxu1  ;;  %5094 = vmatmul.mubr.bf16.gmra.mxu0 %v4745_v23 }
 0x738   : > { %v4619_v36 = vadd.f32 %v4618_v5, %v10126_v40  ;;  %v4707_v37 = vmax.f32 %v4617_v43, 0.0 }
 0x739   : > { %v4622_v1 = vpop.f32.mrf.mxu1 }
 0x73a   : > { %v4708_v21 = vmax.f32 %v4619_v36, 0.0  ;;  %v4747_v32 = vpack.c.bf16 %v4707_v37, %v4705_v63  ;;  %v4623_v18 = vadd.f32 %v4622_v1, %v10129_v22  ;;  %v8246_v63 = vld [vmem:[#allocation22 + $0x60] ss:$8 sps:$4 sm:$0xff]  }
 0x73b   : > { %v4624_v59 = vpop.f32.mrf.mxu1 }
 0x73c   : > { %v4748_v27 = vpack.c.bf16 %v4708_v21, %v4706_v29  ;;  %v4625_v54 = vadd.f32 %v4624_v59, %v10126_v40  ;;  %v4709_v30 = vmax.f32 %v4623_v18, 0.0  ;;  %v8243_v29 = vld [vmem:[#allocation22 + $0x70] ss:$8 sps:$4 sm:$0xff]   ;;  %v8245_v21 = vld [vmem:[#allocation22 + $0x74] ss:$8 sps:$4 sm:$0xff]  }
 0x73d   : > { %v4626_v28 = vpop.f32.mrf.mxu1  ;;  %5883 = vmatprep.subr.bf16.mxu0 %v8245_v21  ;;  %v8248_v59 = vld [vmem:[#allocation22 + $0x64] ss:$8 sps:$4 sm:$0xff]  }
 0x73e   : > { %v4627_v57 = vadd.f32 %v4626_v28, %v10129_v22  ;;  %5103 = vmatprep.mubr.bf16.mxu0 %v4748_v27  ;;  %v4710_v19 = vmax.f32 %v4625_v54, 0.0  ;;  %5884 = vmatpush1.bf16.msra.mxu0 %v8243_v29  ;;  %v8251_v27 = vld [vmem:[#allocation22 + $0x54] ss:$8 sps:$4 sm:$0xff]   ;;  %v8255_v28 = vld [vmem:[#allocation22 + $0x30] ss:$8 sps:$4 sm:$0xff]  }
 0x73f   : > { %v4628_v34 = vpop.f32.mrf.mxu1  ;;  %5104 = vmatmul.mubr.bf16.gmra.mxu0 %v4747_v32  ;;  %5885 = vmatprep.subr.bf16.mxu0 %v8248_v59  ;;  %v8254_v32 = vld [vmem:[#allocation22 + $0x44] ss:$8 sps:$4 sm:$0xff]   ;;  %v8257_v54 = vld [vmem:[#allocation22 + $0x34] ss:$8 sps:$4 sm:$0xff]  }
 0x740   : > { %v4629_v24 = vadd.f32 %v4628_v34, %v10126_v40  ;;  %v4711_v17 = vmax.f32 %v4627_v57, 0.0  ;;  %v4789_v57 = vld [vmem:[%s10715_s24] sm:$0x3]  ;;  %s6732_s24 = sshll.u32 %s10458_s6, 4  ;;  %s10528_s24 = int_to_ptr.vmem [resolvable:$true] %s6732_s24 }
 0x741   : > { %v4632_v6 = vpop.f32.mrf.mxu1  ;;  %v10199_v34 = vrot.slane %v4789_v57, %v9486_v48  ;;  %p8716_p2 = scmp.lt.s32.totalorder %s10528_s24, %s8714_s12 }
 0x742   : > { %v4712_v25 = vmax.f32 %v4629_v24, 0.0  ;;  %v4749_v35 = vpack.c.bf16 %v4711_v17, %v4709_v30  ;;  %v4633_v2 = vadd.f32 %v4632_v6, %v10129_v22  ;;  %5886 = vmatpush1.bf16.msra.mxu0 %v8246_v63  ;;  %v10202_v24 = vrot.slane %v4789_v57, %v9488_v51  ;;  %v8258_v6 = vld [vmem:[#allocation22 + $0x20] ss:$8 sps:$4 sm:$0xff]  }
 0x743   : > { %v4634_v62 = vpop.f32.mrf.mxu1  ;;  %5887 = vmatprep.subr.bf16.mxu0 %v8251_v27 }
 0x744   : > { %v4750_v60 = vpack.c.bf16 %v4712_v25, %v4710_v19  ;;  %v4635_v20 = vadd.f32 %v4634_v62, %v10126_v40  ;;  %v4713_v46 = vmax.f32 %v4633_v2, 0.0  ;;  %v8260_v19 = vld [vmem:[#allocation22 + $0x24] ss:$8 sps:$4 sm:$0xff]  }
 0x745   : > { %v4636_v7 = vpop.f32.mrf.mxu1  ;;  %v8266_v2 = vld [vmem:[#allocation22 + $0x4] ss:$8 sps:$4 sm:$0xff]  }
 0x746   : > { %v4637_v31 = vadd.f32 %v4636_v7, %v10129_v22  ;;  %5113 = vmatprep.mubr.bf16.mxu0 %v4750_v60  ;;  %v4714_v3 = vmax.f32 %v4635_v20, 0.0  ;;  %v8261_v7 = vld [vmem:[#allocation22 + $0x10] ss:$8 sps:$4 sm:$0xff]   ;;  %v8263_v20 = vld [vmem:[#allocation22 + $0x14] ss:$8 sps:$4 sm:$0xff]  }
 0x747   : > { %v4638_v61 = vpop.f32.mrf.mxu1  ;;  %5114 = vmatmul.mubr.bf16.gmra.mxu0 %v4749_v35 }
 0x748   : > { %v4639_v33 = vadd.f32 %v4638_v61, %v10126_v40  ;;  %v4715_v50 = vmax.f32 %v4637_v31, 0.0 }
 0x749   : > { %v4642_v8 = vpop.f32.mrf.mxu1 }
 0x74a   : > { %v4716_v11 = vmax.f32 %v4639_v33, 0.0  ;;  %v4751_v38 = vpack.c.bf16 %v4715_v50, %v4713_v46  ;;  %v4643_v14 = vadd.f32 %v4642_v8, %v10129_v22  ;;  %v8264_v46 = vld [vmem:[#allocation22] ss:$8 sps:$4 sm:$0xff]  }
 0x74b   : > { %v4644_v9 = vpop.f32.mrf.mxu1 }
 0x74c   : > { %v4752_v45 = vpack.c.bf16 %v4716_v11, %v4714_v3  ;;  %v4645_v58 = vadd.f32 %v4644_v9, %v10126_v40  ;;  %v4717_v55 = vmax.f32 %v4643_v14, 0.0 }
 0x74d   : > { %v4646_v12 = vpop.f32.mrf.mxu1 }
 0x74e   : > { %v4647_v39 = vadd.f32 %v4646_v12, %v10129_v22  ;;  %5123 = vmatprep.mubr.bf16.mxu0 %v4752_v45  ;;  %v4718_v15 = vmax.f32 %v4645_v58, 0.0  ;;  %v8269_v45 = vld [vmem:[#allocation22 + $0xf4] ss:$8 sps:$4 sm:$0xff]  }
 0x74f   : > { %v4648_v4 = vpop.f32.mrf.mxu1  ;;  %5124 = vmatmul.mubr.bf16.gmra.mxu0 %v4751_v38 }
 0x750   : > { %v4649_v53 = vadd.f32 %v4648_v4, %v10126_v40  ;;  %v4719_v56 = vmax.f32 %v4647_v39, 0.0 }
 0x751   : > { %v4652_v42 = vpop.f32.mrf.mxu1 }
 0x752   : > { %v4720_v52 = vmax.f32 %v4649_v53, 0.0  ;;  %v4753_v0 = vpack.c.bf16 %v4719_v56, %v4717_v55  ;;  %v4653_v23 = vadd.f32 %v4652_v42, %v10129_v22  ;;  %v8267_v53 = vld [vmem:[#allocation22 + $0xf0] ss:$8 sps:$4 sm:$0xff]   ;;  %v8272_v42 = vld [vmem:[#allocation22 + $0xe4] ss:$8 sps:$4 sm:$0xff]  }
 0x753   : > { %v4654_v47 = vpop.f32.mrf.mxu1 }
 0x754   : > { %v4754_v16 = vpack.c.bf16 %v4720_v52, %v4718_v15  ;;  %v4655_v41 = vadd.f32 %v4654_v47, %v10126_v40  ;;  %v4721_v36 = vmax.f32 %v4653_v23, 0.0 }
 0x755   : > { %v4656_v10 = vpop.f32.mrf.mxu1 }
 0x756   : > { %v4657_v13 = vadd.f32 %v4656_v10, %v10129_v22  ;;  %5133 = vmatprep.mubr.bf16.mxu0 %v4754_v16  ;;  %v4722_v44 = vmax.f32 %v4655_v41, 0.0  ;;  %v8249_v22 = vld [vmem:[#allocation22 + $0x50] ss:$8 sps:$4 sm:$0xff]   ;;  %v8270_v10 = vld [vmem:[#allocation22 + $0xe0] ss:$8 sps:$4 sm:$0xff]  }
 0x757   : > { %v4658_v26 = vpop.f32.mrf.mxu1  ;;  %5134 = vmatmul.mubr.bf16.gmra.mxu0 %v4753_v0 }
 0x758   : > { %v4659_v49 = vadd.f32 %v4658_v26, %v10126_v40  ;;  %v4723_v43 = vmax.f32 %v4657_v13, 0.0  ;;  %5888 = vmatpush1.bf16.msra.mxu0 %v8249_v22  ;;  %v8252_v40 = vld [vmem:[#allocation22 + $0x40] ss:$8 sps:$4 sm:$0xff]   ;;  %v8275_v13 = vld [vmem:[#allocation22 + $0xd4] ss:$8 sps:$4 sm:$0xff]  }
 0x759   : > { %5889 = vmatprep.subr.bf16.mxu0 %v8254_v32 }
 0x75a   : > { %v4724_v5 = vmax.f32 %v4659_v49, 0.0  ;;  %v4755_v1 = vpack.c.bf16 %v4723_v43, %v4721_v36  ;;  %v8273_v36 = vld [vmem:[#allocation22 + $0xd0] ss:$8 sps:$4 sm:$0xff]  }
 0x75c   : > { %v4756_v37 = vpack.c.bf16 %v4724_v5, %v4722_v44  ;;  %5890 = vmatpush1.bf16.msra.mxu0 %v8252_v40  ;;  %v8276_v40 = vld [vmem:[#allocation22 + $0xc0] ss:$8 sps:$4 sm:$0xff]  }
 0x75d   : > { %5891 = vmatprep.subr.bf16.mxu0 %v8257_v54 }
 0x75e   : > { %5143 = vmatprep.mubr.bf16.mxu0 %v4756_v37 }
 0x75f   : > { %5144 = vmatmul.mubr.bf16.gmra.mxu0 %v4755_v1  ;;  %v8278_v1 = vld [vmem:[#allocation22 + $0xc4] ss:$8 sps:$4 sm:$0xff]  }
 0x760   : > { %5892 = vmatpush1.bf16.msra.mxu0 %v8255_v28  ;;  %v8281_v28 = vld [vmem:[#allocation22 + $0xb4] ss:$8 sps:$4 sm:$0xff]  }
 0x761   : > { %5893 = vmatprep.subr.bf16.mxu0 %v8260_v19 }
 0x764   : > { %5894 = vmatpush1.bf16.msra.mxu0 %v8258_v6 }
 0x765   : > { %5895 = vmatprep.subr.bf16.mxu0 %v8263_v20 }
 0x768   : > { %5896 = vmatpush1.bf16.msra.mxu0 %v8261_v7 }
 0x769   : > { %5897 = vmatprep.subr.bf16.mxu0 %v8266_v2 }
 0x76c   : > { %5898 = vmatpush1.bf16.msra.mxu0 %v8264_v46 }
 0x76d   : > { %5899 = vmatprep.subr.bf16.mxu0 %v8269_v45 }
 0x770   : > { %5900 = vmatpush2.bf16.msra.mxu0 %v8267_v53 }
 0x771   : > { %5901 = vmatprep.subr.bf16.mxu0 %v8272_v42 }
 0x774   : > { %5902 = vmatpush2.bf16.msra.mxu0 %v8270_v10 }
 0x775   : > { %5903 = vmatprep.subr.bf16.mxu0 %v8275_v13 }
 0x778   : > { %5904 = vmatpush2.bf16.msra.mxu0 %v8273_v36 }
 0x779   : > { %5905 = vmatprep.subr.bf16.mxu0 %v8278_v1 }
 0x77c   : > { %5906 = vmatpush2.bf16.msra.mxu0 %v8276_v40 }
 0x77d   : > { %5907 = vmatprep.subr.bf16.mxu0 %v8281_v28 }
 0x7a7   : > { %v4995_v18 = vpop.f32.mrf.mxu0 }
 0x7a8   : > { %v4996_v60 = vadd.f32 %v4995_v18, %v10202_v24 }
 0x7a9   : > { %v4997_v17 = vpop.f32.mrf.mxu0 }
 0x7aa   : > { %v4998_v30 = vadd.f32 %v4997_v17, %v10199_v34  ;;  %v5154_v3 = vmax.f32 %v4996_v60, 0.0 }
 0x7ab   : > { %v4999_v25 = vpop.f32.mrf.mxu0 }
 0x7ac   : > { %v5000_v62 = vadd.f32 %v4999_v25, %v10202_v24  ;;  %v5155_v50 = vmax.f32 %v4998_v30, 0.0  ;;  %v8279_v25 = vld [vmem:[#allocation22 + $0xb0] ss:$8 sps:$4 sm:$0xff]  }
 0x7ad   : > { %v5001_v35 = vpop.f32.mrf.mxu0  ;;  %5908 = vmatpush2.bf16.msra.mxu0 %v8279_v25 }
 0x7ae   : > { %v5002_v31 = vadd.f32 %v5001_v35, %v10199_v34  ;;  %v5156_v61 = vmax.f32 %v5000_v62, 0.0  ;;  %v8284_v62 = vld [vmem:[#allocation22 + $0xa4] ss:$8 sps:$4 sm:$0xff]  }
 0x7af   : > { %v5005_v33 = vpop.f32.mrf.mxu0  ;;  %5909 = vmatprep.subr.bf16.mxu0 %v8284_v62 }
 0x7b0   : > { %v5157_v8 = vmax.f32 %v5002_v31, 0.0  ;;  %v5218_v38 = vpack.c.bf16 %v5156_v61, %v5154_v3  ;;  %v5006_v14 = vadd.f32 %v5005_v33, %v10202_v24  ;;  %v8282_v61 = vld [vmem:[#allocation22 + $0xa0] ss:$8 sps:$4 sm:$0xff]  }
 0x7b1   : > { %v5007_v11 = vpop.f32.mrf.mxu0  ;;  %5910 = vmatpush2.bf16.msra.mxu0 %v8282_v61 }
 0x7b2   : > { %v5219_v9 = vpack.c.bf16 %v5157_v8, %v5155_v50  ;;  %v5008_v58 = vadd.f32 %v5007_v11, %v10199_v34  ;;  %v5158_v16 = vmax.f32 %v5006_v14, 0.0  ;;  %v8287_v50 = vld [vmem:[#allocation22 + $0x94] ss:$8 sps:$4 sm:$0xff]  }
 0x7b3   : > { %v5009_v12 = vpop.f32.mrf.mxu0  ;;  %5911 = vmatprep.subr.bf16.mxu0 %v8287_v50 }
 0x7b4   : > { %v5010_v39 = vadd.f32 %v5009_v12, %v10202_v24  ;;  %5486 = vmatprep.mubr.bf16.mxu1 %v5219_v9  ;;  %v5159_v55 = vmax.f32 %v5008_v58, 0.0 }
 0x7b5   : > { %v5011_v4 = vpop.f32.mrf.mxu0  ;;  %5487 = vmatmul.mubr.bf16.vlgmr.msra.gmra.mxu1 %v5218_v38  ;;  %v8285_v38 = vld [vmem:[#allocation22 + $0x90] ss:$8 sps:$4 sm:$0xff]  }
 0x7b6   : > { %v5012_v56 = vadd.f32 %v5011_v4, %v10199_v34  ;;  %v5160_v15 = vmax.f32 %v5010_v39, 0.0  ;;  %5912 = vmatpush2.bf16.msra.mxu0 %v8285_v38 }
 0x7b7   : > { %v5015_v52 = vpop.f32.mrf.mxu0 }
 0x7b8   : > { %v5161_v47 = vmax.f32 %v5012_v56, 0.0  ;;  %v5220_v23 = vpack.c.bf16 %v5160_v15, %v5158_v16  ;;  %v5016_v44 = vadd.f32 %v5015_v52, %v10202_v24 }
 0x7b9   : > { %v5017_v0 = vpop.f32.mrf.mxu0 }
 0x7ba   : > { %v5221_v41 = vpack.c.bf16 %v5161_v47, %v5159_v55  ;;  %v5018_v49 = vadd.f32 %v5017_v0, %v10199_v34  ;;  %v5162_v22 = vmax.f32 %v5016_v44, 0.0 }
 0x7bb   : > { %v5019_v26 = vpop.f32.mrf.mxu0 }
 0x7bc   : > { %v5020_v43 = vadd.f32 %v5019_v26, %v10202_v24  ;;  %5496 = vmatprep.mubr.bf16.mxu1 %v5221_v41  ;;  %v5163_v63 = vmax.f32 %v5018_v49, 0.0 }
 0x7bd   : > { %v5021_v5 = vpop.f32.mrf.mxu0  ;;  %5497 = vmatmul.mubr.bf16.gmra.mxu1 %v5220_v23 }
 0x7be   : > { %v5022_v37 = vadd.f32 %v5021_v5, %v10199_v34  ;;  %v5164_v29 = vmax.f32 %v5020_v43, 0.0 }
 0x7bf   : > { %v5025_v21 = vpop.f32.mrf.mxu0 }
 0x7c0   : > { %v5165_v59 = vmax.f32 %v5022_v37, 0.0  ;;  %v5222_v54 = vpack.c.bf16 %v5164_v29, %v5162_v22  ;;  %v5026_v6 = vadd.f32 %v5025_v21, %v10202_v24 }
 0x7c1   : > { %v5027_v27 = vpop.f32.mrf.mxu0 }
 0x7c2   : > { %v5223_v32 = vpack.c.bf16 %v5165_v59, %v5163_v63  ;;  %v5028_v18 = vadd.f32 %v5027_v27, %v10199_v34  ;;  %v5166_v31 = vmax.f32 %v5026_v6, 0.0 }
 0x7c3   : > { %v5029_v57 = vpop.f32.mrf.mxu0 }
 0x7c4   : > { %v5030_v17 = vadd.f32 %v5029_v57, %v10202_v24  ;;  %5506 = vmatprep.mubr.bf16.mxu1 %v5223_v32  ;;  %v5167_v7 = vmax.f32 %v5028_v18, 0.0 }
 0x7c5   : > { %v5031_v19 = vpop.f32.mrf.mxu0  ;;  %5507 = vmatmul.mubr.bf16.gmra.mxu1 %v5222_v54 }
 0x7c6   : > { %v5032_v30 = vadd.f32 %v5031_v19, %v10199_v34  ;;  %v5168_v60 = vmax.f32 %v5030_v17, 0.0 }
 0x7c7   : > { %v5035_v35 = vpop.f32.mrf.mxu0 }
 0x7c8   : > { %v5169_v20 = vmax.f32 %v5032_v30, 0.0  ;;  %v5224_v8 = vpack.c.bf16 %v5168_v60, %v5166_v31  ;;  %v5036_v9 = vadd.f32 %v5035_v35, %v10202_v24 }
 0x7c9   : > { %v5037_v2 = vpop.f32.mrf.mxu0 }
 0x7ca   : > { %v5225_v33 = vpack.c.bf16 %v5169_v20, %v5167_v7  ;;  %v5038_v11 = vadd.f32 %v5037_v2, %v10199_v34  ;;  %v5170_v53 = vmax.f32 %v5036_v9, 0.0 }
 0x7cb   : > { %v5039_v3 = vpop.f32.mrf.mxu0 }
 0x7cc   : > { %v5040_v46 = vadd.f32 %v5039_v3, %v10202_v24  ;;  %5516 = vmatprep.mubr.bf16.mxu1 %v5225_v33  ;;  %v5171_v14 = vmax.f32 %v5038_v11, 0.0 }
 0x7cd   : > { %v5041_v45 = vpop.f32.mrf.mxu0  ;;  %5517 = vmatmul.mubr.bf16.gmra.mxu1 %v5224_v8 }
 0x7ce   : > { %v5042_v12 = vadd.f32 %v5041_v45, %v10199_v34  ;;  %v5172_v58 = vmax.f32 %v5040_v46, 0.0 }
 0x7cf   : > { %v5045_v39 = vpop.f32.mrf.mxu0 }
 0x7d0   : > { %v5173_v4 = vmax.f32 %v5042_v12, 0.0  ;;  %v5226_v15 = vpack.c.bf16 %v5172_v58, %v5170_v53  ;;  %v5046_v16 = vadd.f32 %v5045_v39, %v10202_v24 }
 0x7d1   : > { %v5047_v56 = vpop.f32.mrf.mxu0 }
 0x7d2   : > { %v5227_v42 = vpack.c.bf16 %v5173_v4, %v5171_v14  ;;  %v5048_v55 = vadd.f32 %v5047_v56, %v10199_v34  ;;  %v5174_v49 = vmax.f32 %v5046_v16, 0.0 }
 0x7d3   : > { %v5049_v52 = vpop.f32.mrf.mxu0 }
 0x7d4   : > { %v5050_v47 = vadd.f32 %v5049_v52, %v10202_v24  ;;  %5526 = vmatprep.mubr.bf16.mxu1 %v5227_v42  ;;  %v5175_v23 = vmax.f32 %v5048_v55, 0.0 }
 0x7d5   : > { %v5051_v0 = vpop.f32.mrf.mxu0  ;;  %5527 = vmatmul.mubr.bf16.gmra.mxu1 %v5226_v15 }
 0x7d6   : > { %v5052_v10 = vadd.f32 %v5051_v0, %v10199_v34  ;;  %v5176_v41 = vmax.f32 %v5050_v47, 0.0 }
 0x7d7   : > { %v5055_v13 = vpop.f32.mrf.mxu0 }
 0x7d8   : > { %v5177_v26 = vmax.f32 %v5052_v10, 0.0  ;;  %v5228_v5 = vpack.c.bf16 %v5176_v41, %v5174_v49  ;;  %v5056_v29 = vadd.f32 %v5055_v13, %v10202_v24  ;;  %v8288_v41 = vld [vmem:[#allocation22 + $0x80] ss:$8 sps:$4 sm:$0xff]   ;;  %v8290_v13 = vld [vmem:[#allocation22 + $0x84] ss:$8 sps:$4 sm:$0xff]  }
 0x7d9   : > { %v5057_v43 = vpop.f32.mrf.mxu0  ;;  %5913 = vmatprep.subr.bf16.mxu0 %v8290_v13 }
 0x7da   : > { %v5229_v44 = vpack.c.bf16 %v5177_v26, %v5175_v23  ;;  %v5058_v37 = vadd.f32 %v5057_v43, %v10199_v34  ;;  %v5178_v32 = vmax.f32 %v5056_v29, 0.0  ;;  %5914 = vmatpush2.bf16.msra.mxu0 %v8288_v41 }
 0x7db   : > { %v5059_v36 = vpop.f32.mrf.mxu0 }
 0x7dc   : > { %v5060_v1 = vadd.f32 %v5059_v36, %v10202_v24  ;;  %5536 = vmatprep.mubr.bf16.mxu1 %v5229_v44  ;;  %v5179_v27 = vmax.f32 %v5058_v37, 0.0 }
 0x7dd   : > { %v5061_v21 = vpop.f32.mrf.mxu0  ;;  %5537 = vmatmul.mubr.bf16.gmra.mxu1 %v5228_v5 }
 0x7de   : > { %v5062_v63 = vadd.f32 %v5061_v21, %v10199_v34  ;;  %v5180_v59 = vmax.f32 %v5060_v1, 0.0 }
 0x7df   : > { %v5065_v22 = vpop.f32.mrf.mxu0 }
 0x7e0   : > { %v5181_v40 = vmax.f32 %v5062_v63, 0.0  ;;  %v5230_v57 = vpack.c.bf16 %v5180_v59, %v5178_v32  ;;  %v5066_v19 = vadd.f32 %v5065_v22, %v10202_v24 }
 0x7e1   : > { %v5067_v28 = vpop.f32.mrf.mxu0 }
 0x7e2   : > { %v5231_v54 = vpack.c.bf16 %v5181_v40, %v5179_v27  ;;  %v5068_v17 = vadd.f32 %v5067_v28, %v10199_v34  ;;  %v5182_v20 = vmax.f32 %v5066_v19, 0.0 }
 0x7e3   : > { %v5069_v18 = vpop.f32.mrf.mxu0 }
 0x7e4   : > { %v5070_v6 = vadd.f32 %v5069_v18, %v10202_v24  ;;  %5546 = vmatprep.mubr.bf16.mxu1 %v5231_v54  ;;  %v5183_v35 = vmax.f32 %v5068_v17, 0.0 }
 0x7e5   : > { %v5071_v25 = vpop.f32.mrf.mxu0  ;;  %5547 = vmatmul.mubr.bf16.gmra.mxu1 %v5230_v57 }
 0x7e6   : > { %v5072_v30 = vadd.f32 %v5071_v25, %v10199_v34  ;;  %v5184_v62 = vmax.f32 %v5070_v6, 0.0 }
 0x7e7   : > { %v5075_v60 = vpop.f32.mrf.mxu0 }
 0x7e8   : > { %v5185_v7 = vmax.f32 %v5072_v30, 0.0  ;;  %v5232_v61 = vpack.c.bf16 %v5184_v62, %v5182_v20  ;;  %v5076_v3 = vadd.f32 %v5075_v60, %v10202_v24 }
 0x7e9   : > { %v5077_v31 = vpop.f32.mrf.mxu0 }
 0x7ea   : > { %v5233_v2 = vpack.c.bf16 %v5185_v7, %v5183_v35  ;;  %v5078_v50 = vadd.f32 %v5077_v31, %v10199_v34  ;;  %v5186_v58 = vmax.f32 %v5076_v3, 0.0 }
 0x7eb   : > { %v5079_v33 = vpop.f32.mrf.mxu0 }
 0x7ec   : > { %v5080_v8 = vadd.f32 %v5079_v33, %v10202_v24  ;;  %5556 = vmatprep.mubr.bf16.mxu1 %v5233_v2  ;;  %v5187_v38 = vmax.f32 %v5078_v50, 0.0 }
 0x7ed   : > { %v5081_v11 = vpop.f32.mrf.mxu0  ;;  %5557 = vmatmul.mubr.bf16.gmra.mxu1 %v5232_v61 }
 0x7ee   : > { %v5082_v46 = vadd.f32 %v5081_v11, %v10199_v34  ;;  %v5188_v9 = vmax.f32 %v5080_v8, 0.0 }
 0x7ef   : > { %v5085_v45 = vpop.f32.mrf.mxu0 }
 0x7f0   : > { %v5189_v12 = vmax.f32 %v5082_v46, 0.0  ;;  %v5234_v4 = vpack.c.bf16 %v5188_v9, %v5186_v58  ;;  %v5086_v15 = vadd.f32 %v5085_v45, %v10202_v24 }
 0x7f1   : > { %v5087_v39 = vpop.f32.mrf.mxu0 }
 0x7f2   : > { %v5235_v14 = vpack.c.bf16 %v5189_v12, %v5187_v38  ;;  %v5088_v56 = vadd.f32 %v5087_v39, %v10199_v34  ;;  %v5190_v23 = vmax.f32 %v5086_v15, 0.0 }
 0x7f3   : > { %v5089_v53 = vpop.f32.mrf.mxu0 }
 0x7f4   : > { %v5090_v42 = vadd.f32 %v5089_v53, %v10202_v24  ;;  %5566 = vmatprep.mubr.bf16.mxu1 %v5235_v14  ;;  %v5191_v0 = vmax.f32 %v5088_v56, 0.0 }
 0x7f5   : > { %v5091_v52 = vpop.f32.mrf.mxu0  ;;  %5567 = vmatmul.mubr.bf16.gmra.mxu1 %v5234_v4 }
 0x7f6   : > { %v5092_v55 = vadd.f32 %v5091_v52, %v10199_v34  ;;  %v5192_v47 = vmax.f32 %v5090_v42, 0.0 }
 0x7f7   : > { %v5095_v16 = vpop.f32.mrf.mxu0 }
 0x7f8   : > { %v5193_v10 = vmax.f32 %v5092_v55, 0.0  ;;  %v5236_v43 = vpack.c.bf16 %v5192_v47, %v5190_v23  ;;  %v5096_v37 = vadd.f32 %v5095_v16, %v10202_v24 }
 0x7f9   : > { %v5097_v26 = vpop.f32.mrf.mxu0 }
 0x7fa   : > { %v5237_v49 = vpack.c.bf16 %v5193_v10, %v5191_v0  ;;  %v5098_v5 = vadd.f32 %v5097_v26, %v10199_v34  ;;  %v5194_v27 = vmax.f32 %v5096_v37, 0.0 }
 0x7fb   : > { %v5099_v44 = vpop.f32.mrf.mxu0 }
 0x7fc   : > { %v5100_v36 = vadd.f32 %v5099_v44, %v10202_v24  ;;  %5576 = vmatprep.mubr.bf16.mxu1 %v5237_v49  ;;  %v5195_v59 = vmax.f32 %v5098_v5, 0.0 }
 0x7fd   : > { %v5101_v1 = vpop.f32.mrf.mxu0  ;;  %5577 = vmatmul.mubr.bf16.gmra.mxu1 %v5236_v43 }
 0x7fe   : > { %v5102_v29 = vadd.f32 %v5101_v1, %v10199_v34  ;;  %v5196_v21 = vmax.f32 %v5100_v36, 0.0 }
 0x7ff   : > { %v5105_v63 = vpop.f32.mrf.mxu0 }
 0x800   : > { %v5197_v22 = vmax.f32 %v5102_v29, 0.0  ;;  %v5238_v28 = vpack.c.bf16 %v5196_v21, %v5194_v27  ;;  %v5106_v17 = vadd.f32 %v5105_v63, %v10202_v24 }
 0x801   : > { %v5107_v40 = vpop.f32.mrf.mxu0 }
 0x802   : > { %v5239_v32 = vpack.c.bf16 %v5197_v22, %v5195_v59  ;;  %v5108_v57 = vadd.f32 %v5107_v40, %v10199_v34  ;;  %v5198_v35 = vmax.f32 %v5106_v17, 0.0 }
 0x803   : > { %v5109_v54 = vpop.f32.mrf.mxu0 }
 0x804   : > { %v5110_v18 = vadd.f32 %v5109_v54, %v10202_v24  ;;  %5586 = vmatprep.mubr.bf16.mxu1 %v5239_v32  ;;  %v5199_v62 = vmax.f32 %v5108_v57, 0.0 }
 0x805   : > { %v5111_v6 = vpop.f32.mrf.mxu0  ;;  %5587 = vmatmul.mubr.bf16.gmra.mxu1 %v5238_v28 }
 0x806   : > { %v5112_v19 = vadd.f32 %v5111_v6, %v10199_v34  ;;  %v5200_v25 = vmax.f32 %v5110_v18, 0.0 }
 0x807   : > { %v5115_v30 = vpop.f32.mrf.mxu0 }
 0x808   : > { %v5201_v60 = vmax.f32 %v5112_v19, 0.0  ;;  %v5240_v31 = vpack.c.bf16 %v5200_v25, %v5198_v35  ;;  %v5116_v50 = vadd.f32 %v5115_v30, %v10202_v24  ;;  %v8293_v35 = vld [vmem:[#allocation23 + $0x70] sm:$0xff]  }
 0x809   : > { %v5117_v7 = vpop.f32.mrf.mxu0 }
 0x80a   : > { %v5241_v20 = vpack.c.bf16 %v5201_v60, %v5199_v62  ;;  %v5118_v61 = vadd.f32 %v5117_v7, %v10199_v34  ;;  %v5202_v38 = vmax.f32 %v5116_v50, 0.0  ;;  %v8291_v62 = vld [vmem:[#allocation23 + $0x78] sm:$0xff]   ;;  %v8294_v7 = vld [vmem:[#allocation23 + $0x30] sm:$0xff]  }
 0x80b   : > { %v5119_v2 = vpop.f32.mrf.mxu0  ;;  %v8292_v60 = vld [vmem:[#allocation23 + $0x38] sm:$0xff]   ;;  %7366 = vmatprep.subr.bf16.mxu1 %v8291_v62 }
 0x80c   : > { %v5120_v33 = vadd.f32 %v5119_v2, %v10202_v24  ;;  %5596 = vmatprep.mubr.bf16.mxu1 %v5241_v20  ;;  %v5203_v9 = vmax.f32 %v5118_v61, 0.0  ;;  %7367 = vmatpush3.bf16.msra.mxu1 %v8292_v60  ;;  %v8296_v20 = vld [vmem:[#allocation23 + $0x28] sm:$0xff]  }
 0x80d   : > { %v5121_v8 = vpop.f32.mrf.mxu0  ;;  %5597 = vmatmul.mubr.bf16.gmra.mxu1 %v5240_v31  ;;  %7368 = vmatprep.subr.bf16.mxu1 %v8293_v35  ;;  %v5282_v31 = vld [vmem:[%s10716_s5] sm:$0x3]  ;;  %s10721_s5 = sld [smem:[#allocation67_spill]] }
 0x80e   : > { %v5122_v3 = vadd.f32 %v5121_v8, %v10199_v34  ;;  %v5204_v11 = vmax.f32 %v5120_v33, 0.0  ;;  %v10272_v61 = vrot.slane %v5282_v31, %v9486_v48  ;;  %v10275_v33 = vrot.slane %v5282_v31, %v9488_v51  ;;  %v8297_v8 = vld [vmem:[#allocation23 + $0x60] sm:$0xff]  }
 0x80f   : > { %v5125_v46 = vpop.f32.mrf.mxu0 }
 0x810   : > { %v5205_v45 = vmax.f32 %v5122_v3, 0.0  ;;  %v5242_v39 = vpack.c.bf16 %v5204_v11, %v5202_v38  ;;  %v5126_v56 = vadd.f32 %v5125_v46, %v10202_v24  ;;  %7369 = vmatpush3.bf16.msra.mxu1 %v8294_v7  ;;  %v8298_v3 = vld [vmem:[#allocation23 + $0x20] sm:$0xff]   ;;  %v8299_v11 = vld [vmem:[#allocation23 + $0x58] sm:$0xff]  }
 0x811   : > { %v5127_v12 = vpop.f32.mrf.mxu0 }
 0x812   : > { %v5243_v58 = vpack.c.bf16 %v5205_v45, %v5203_v9  ;;  %v5128_v4 = vadd.f32 %v5127_v12, %v10199_v34  ;;  %v5206_v0 = vmax.f32 %v5126_v56, 0.0  ;;  %v8300_v12 = vld [vmem:[#allocation23 + $0x18] sm:$0xff]  }
 0x813   : > { %v5129_v14 = vpop.f32.mrf.mxu0  ;;  %s10526_s20 = scalar_lea.hbm %s10721_s5, %s7365_s21 }
 0x814   : > { %v5130_v53 = vadd.f32 %v5129_v14, %v10202_v24  ;;  %5606 = vmatprep.mubr.bf16.mxu1 %v5243_v58  ;;  %v5207_v47 = vmax.f32 %v5128_v4, 0.0  ;;  %v8301_v14 = vld [vmem:[#allocation23 + $0x50] sm:$0xff]  }
 0x815   : > { %v5131_v42 = vpop.f32.mrf.mxu0  ;;  %5607 = vmatmul.mubr.bf16.gmra.mxu1 %v5242_v39 }
 0x816   : > { %v5132_v15 = vadd.f32 %v5131_v42, %v10199_v34  ;;  %v5208_v52 = vmax.f32 %v5130_v53, 0.0  ;;  %v8302_v42 = vld [vmem:[#allocation23 + $0x10] sm:$0xff]  }
 0x817   : > { %v5135_v55 = vpop.f32.mrf.mxu0 }
 0x818   : > { %v5209_v16 = vmax.f32 %v5132_v15, 0.0  ;;  %v5244_v13 = vpack.c.bf16 %v5208_v52, %v5206_v0  ;;  %v5136_v43 = vadd.f32 %v5135_v55, %v10202_v24  ;;  %v8303_v52 = vld [vmem:[#allocation23 + $0x48] sm:$0xff]  }
 0x819   : > { %v5137_v10 = vpop.f32.mrf.mxu0 }
 0x81a   : > { %v5245_v41 = vpack.c.bf16 %v5209_v16, %v5207_v47  ;;  %v5138_v26 = vadd.f32 %v5137_v10, %v10199_v34  ;;  %v5210_v21 = vmax.f32 %v5136_v43, 0.0  ;;  %v8304_v10 = vld [vmem:[#allocation23 + $0x8] sm:$0xff]  }
 0x81b   : > { %v5139_v23 = vpop.f32.mrf.mxu0 }
 0x81c   : > { %v5140_v49 = vadd.f32 %v5139_v23, %v10202_v24  ;;  %5616 = vmatprep.mubr.bf16.mxu1 %v5245_v41  ;;  %v5211_v1 = vmax.f32 %v5138_v26, 0.0  ;;  %v8305_v23 = vld [vmem:[#allocation23 + $0x40] sm:$0xff]  }
 0x81d   : > { %v5141_v44 = vpop.f32.mrf.mxu0  ;;  %5617 = vmatmul.mubr.bf16.gmra.mxu1 %v5244_v13 }
 0x81e   : > { %v5142_v5 = vadd.f32 %v5141_v44, %v10199_v34  ;;  %v5212_v36 = vmax.f32 %v5140_v49, 0.0  ;;  %v8306_v44 = vld [vmem:[#allocation23] sm:$0xff]  }
 0x81f   : > { %v5145_v37 = vpop.f32.mrf.mxu0 }
 0x820   : > { %v5213_v29 = vmax.f32 %v5142_v5, 0.0  ;;  %v5246_v22 = vpack.c.bf16 %v5212_v36, %v5210_v21  ;;  %v5146_v28 = vadd.f32 %v5145_v37, %v10202_v24 }
 0x821   : > { %v5147_v63 = vpop.f32.mrf.mxu0 }
 0x822   : > { %v5247_v59 = vpack.c.bf16 %v5213_v29, %v5211_v1  ;;  %v5148_v40 = vadd.f32 %v5147_v63, %v10199_v34  ;;  %v5214_v19 = vmax.f32 %v5146_v28, 0.0 }
 0x823   : > { %v5149_v27 = vpop.f32.mrf.mxu0 }
 0x824   : > { %v5150_v32 = vadd.f32 %v5149_v27, %v10202_v24  ;;  %5626 = vmatprep.mubr.bf16.mxu1 %v5247_v59  ;;  %v5215_v17 = vmax.f32 %v5148_v40, 0.0  ;;  %v8295_v24 = vld [vmem:[#allocation23 + $0x68] sm:$0xff]  }
 0x825   : > { %v5151_v54 = vpop.f32.mrf.mxu0  ;;  %5627 = vmatmul.mubr.bf16.gmra.mxu1 %v5246_v22  ;;  %7370 = vmatprep.subr.bf16.mxu1 %v8295_v24 }
 0x826   : > { %v5152_v57 = vadd.f32 %v5151_v54, %v10199_v34  ;;  %v5216_v18 = vmax.f32 %v5150_v32, 0.0  ;;  %7371 = vmatpush3.bf16.msra.mxu1 %v8296_v20 }
 0x827   : > { %7372 = vmatprep.subr.bf16.mxu1 %v8297_v8 }
 0x828   : > { %v5217_v6 = vmax.f32 %v5152_v57, 0.0  ;;  %v5248_v30 = vpack.c.bf16 %v5216_v18, %v5214_v19 }
 0x82a   : > { %v5249_v25 = vpack.c.bf16 %v5217_v6, %v5215_v17  ;;  %7373 = vmatpush3.bf16.msra.mxu1 %v8298_v3 }
 0x82b   : > { %7374 = vmatprep.subr.bf16.mxu1 %v8299_v11 }
 0x82c   : > { %5636 = vmatprep.mubr.bf16.mxu1 %v5249_v25 }
 0x82d   : > { %5637 = vmatmul.mubr.bf16.gmra.mxu1 %v5248_v30 }
 0x82e   : > { %7375 = vmatpush3.bf16.msra.mxu1 %v8300_v12 }
 0x82f   : > { %7376 = vmatprep.subr.bf16.mxu1 %v8301_v14 }
 0x832   : > { %7377 = vmatpush3.bf16.msra.mxu1 %v8302_v42 }
 0x833   : > { %7378 = vmatprep.subr.bf16.mxu1 %v8303_v52 }
 0x836   : > { %7379 = vmatpush3.bf16.msra.mxu1 %v8304_v10 }
 0x837   : > { %7380 = vmatprep.subr.bf16.mxu1 %v8305_v23 }
 0x83a   : > { %7381 = vmatpush3.bf16.msra.mxu1 %v8306_v44 }
 0x875   : > { %v5488_v34 = vpop.f32.mrf.mxu1 }
 0x876   : > { %v5489_v58 = vadd.f32 %v5488_v34, %v10275_v33 }
 0x877   : > { %v5490_v2 = vpop.f32.mrf.mxu1 }
 0x878   : > { %v5491_v45 = vadd.f32 %v5490_v2, %v10272_v61 }
 0x879   : > { %v5492_v50 = vpop.f32.mrf.mxu1 }
 0x87a   : > { %v5493_v46 = vadd.f32 %v5492_v50, %v10275_v33 }
 0x87b   : > { %v5494_v9 = vpop.f32.mrf.mxu1 }
 0x87c   : > { %v5495_v38 = vadd.f32 %v5494_v9, %v10272_v61  ;;  %v5647_v53 = vpack.c.bf16 %v5493_v46, %v5489_v58 }
 0x87d   : > { %v5498_v39 = vpop.f32.mrf.mxu1 }
 0x87e   : > { %v5648_v4 = vpack.c.bf16 %v5495_v38, %v5491_v45  ;;  %v5499_v41 = vadd.f32 %v5498_v39, %v10275_v33 }
 0x87f   : > { %v5500_v56 = vpop.f32.mrf.mxu1 }
 0x880   : > { %5915 = vmatprep.mubr.bf16.mxu0 %v5648_v4  ;;  %v5501_v16 = vadd.f32 %v5500_v56, %v10272_v61 }
 0x881   : > { %v5502_v15 = vpop.f32.mrf.mxu1  ;;  %5916 = vmatmul.mubr.bf16.vlgmr.msra.gmra.mxu0 %v5647_v53 }
 0x882   : > { %v5503_v55 = vadd.f32 %v5502_v15, %v10275_v33 }
 0x883   : > { %v5504_v47 = vpop.f32.mrf.mxu1 }
 0x884   : > { %v5505_v0 = vadd.f32 %v5504_v47, %v10272_v61  ;;  %v5649_v49 = vpack.c.bf16 %v5503_v55, %v5499_v41 }
 0x885   : > { %v5508_v13 = vpop.f32.mrf.mxu1 }
 0x886   : > { %v5650_v26 = vpack.c.bf16 %v5505_v0, %v5501_v16  ;;  %v5509_v21 = vadd.f32 %v5508_v13, %v10275_v33 }
 0x887   : > { %v5510_v43 = vpop.f32.mrf.mxu1 }
 0x888   : > { %5925 = vmatprep.mubr.bf16.mxu0 %v5650_v26  ;;  %v5511_v1 = vadd.f32 %v5510_v43, %v10272_v61 }
 0x889   : > { %v5512_v5 = vpop.f32.mrf.mxu1  ;;  %5926 = vmatmul.mubr.bf16.gmra.mxu0 %v5649_v49 }
 0x88a   : > { %v5513_v36 = vadd.f32 %v5512_v5, %v10275_v33 }
 0x88b   : > { %v5514_v37 = vpop.f32.mrf.mxu1 }
 0x88c   : > { %v5515_v29 = vadd.f32 %v5514_v37, %v10272_v61  ;;  %v5651_v22 = vpack.c.bf16 %v5513_v36, %v5509_v21 }
 0x88d   : > { %v5518_v63 = vpop.f32.mrf.mxu1 }
 0x88e   : > { %v5652_v59 = vpack.c.bf16 %v5515_v29, %v5511_v1  ;;  %v5519_v18 = vadd.f32 %v5518_v63, %v10275_v33 }
 0x88f   : > { %v5520_v27 = vpop.f32.mrf.mxu1 }
 0x890   : > { %5935 = vmatprep.mubr.bf16.mxu0 %v5652_v59  ;;  %v5521_v54 = vadd.f32 %v5520_v27, %v10272_v61 }
 0x891   : > { %v5522_v40 = vpop.f32.mrf.mxu1  ;;  %5936 = vmatmul.mubr.bf16.gmra.mxu0 %v5651_v22 }
 0x892   : > { %v5523_v32 = vadd.f32 %v5522_v40, %v10275_v33 }
 0x893   : > { %v5524_v28 = vpop.f32.mrf.mxu1 }
 0x894   : > { %v5525_v57 = vadd.f32 %v5524_v28, %v10272_v61  ;;  %v5653_v19 = vpack.c.bf16 %v5523_v32, %v5519_v18 }
 0x895   : > { %v5528_v17 = vpop.f32.mrf.mxu1 }
 0x896   : > { %v5654_v6 = vpack.c.bf16 %v5525_v57, %v5521_v54  ;;  %v5529_v24 = vadd.f32 %v5528_v17, %v10275_v33 }
 0x897   : > { %v5530_v25 = vpop.f32.mrf.mxu1 }
 0x898   : > { %5945 = vmatprep.mubr.bf16.mxu0 %v5654_v6  ;;  %v5531_v35 = vadd.f32 %v5530_v25, %v10272_v61 }
 0x899   : > { %v5532_v30 = vpop.f32.mrf.mxu1  ;;  %5946 = vmatmul.mubr.bf16.gmra.mxu0 %v5653_v19 }
 0x89a   : > { %v5533_v62 = vadd.f32 %v5532_v30, %v10275_v33 }
 0x89b   : > { %v5534_v60 = vpop.f32.mrf.mxu1 }
 0x89c   : > { %v5535_v7 = vadd.f32 %v5534_v60, %v10272_v61  ;;  %v5655_v31 = vpack.c.bf16 %v5533_v62, %v5529_v24 }
 0x89d   : > { %v5538_v20 = vpop.f32.mrf.mxu1 }
 0x89e   : > { %v5656_v34 = vpack.c.bf16 %v5535_v7, %v5531_v35  ;;  %v5539_v9 = vadd.f32 %v5538_v20, %v10275_v33 }
 0x89f   : > { %v5540_v2 = vpop.f32.mrf.mxu1 }
 0x8a0   : > { %5955 = vmatprep.mubr.bf16.mxu0 %v5656_v34  ;;  %v5541_v11 = vadd.f32 %v5540_v2, %v10272_v61 }
 0x8a1   : > { %v5542_v50 = vpop.f32.mrf.mxu1  ;;  %5956 = vmatmul.mubr.bf16.gmra.mxu0 %v5655_v31 }
 0x8a2   : > { %v5543_v8 = vadd.f32 %v5542_v50, %v10275_v33 }
 0x8a3   : > { %v5544_v3 = vpop.f32.mrf.mxu1 }
 0x8a4   : > { %v5545_v46 = vadd.f32 %v5544_v3, %v10272_v61  ;;  %v5657_v12 = vpack.c.bf16 %v5543_v8, %v5539_v9 }
 0x8a5   : > { %v5548_v45 = vpop.f32.mrf.mxu1 }
 0x8a6   : > { %v5658_v38 = vpack.c.bf16 %v5545_v46, %v5541_v11  ;;  %v5549_v42 = vadd.f32 %v5548_v45, %v10275_v33 }
 0x8a7   : > { %v5550_v58 = vpop.f32.mrf.mxu1 }
 0x8a8   : > { %5965 = vmatprep.mubr.bf16.mxu0 %v5658_v38  ;;  %v5551_v53 = vadd.f32 %v5550_v58, %v10272_v61 }
 0x8a9   : > { %v5552_v39 = vpop.f32.mrf.mxu1  ;;  %5966 = vmatmul.mubr.bf16.gmra.mxu0 %v5657_v12 }
 0x8aa   : > { %v5553_v14 = vadd.f32 %v5552_v39, %v10275_v33 }
 0x8ab   : > { %v5554_v4 = vpop.f32.mrf.mxu1 }
 0x8ac   : > { %v5555_v56 = vadd.f32 %v5554_v4, %v10272_v61  ;;  %v5659_v55 = vpack.c.bf16 %v5553_v14, %v5549_v42 }
 0x8ad   : > { %v5558_v15 = vpop.f32.mrf.mxu1 }
 0x8ae   : > { %v5660_v52 = vpack.c.bf16 %v5555_v56, %v5551_v53  ;;  %v5559_v23 = vadd.f32 %v5558_v15, %v10275_v33 }
 0x8af   : > { %v5560_v47 = vpop.f32.mrf.mxu1 }
 0x8b0   : > { %5975 = vmatprep.mubr.bf16.mxu0 %v5660_v52  ;;  %v5561_v41 = vadd.f32 %v5560_v47, %v10272_v61 }
 0x8b1   : > { %v5562_v16 = vpop.f32.mrf.mxu1  ;;  %5976 = vmatmul.mubr.bf16.gmra.mxu0 %v5659_v55 }
 0x8b2   : > { %v5563_v0 = vadd.f32 %v5562_v16, %v10275_v33 }
 0x8b3   : > { %v5564_v10 = vpop.f32.mrf.mxu1 }
 0x8b4   : > { %v5565_v13 = vadd.f32 %v5564_v10, %v10272_v61  ;;  %v5661_v43 = vpack.c.bf16 %v5563_v0, %v5559_v23 }
 0x8b5   : > { %v5568_v26 = vpop.f32.mrf.mxu1 }
 0x8b6   : > { %v5662_v49 = vpack.c.bf16 %v5565_v13, %v5561_v41  ;;  %v5569_v21 = vadd.f32 %v5568_v26, %v10275_v33 }
 0x8b7   : > { %v5570_v44 = vpop.f32.mrf.mxu1 }
 0x8b8   : > { %5985 = vmatprep.mubr.bf16.mxu0 %v5662_v49  ;;  %v5571_v1 = vadd.f32 %v5570_v44, %v10272_v61 }
 0x8b9   : > { %v5572_v5 = vpop.f32.mrf.mxu1  ;;  %5986 = vmatmul.mubr.bf16.gmra.mxu0 %v5661_v43 }
 0x8ba   : > { %v5573_v36 = vadd.f32 %v5572_v5, %v10275_v33 }
 0x8bb   : > { %v5574_v37 = vpop.f32.mrf.mxu1 }
 0x8bc   : > { %v5575_v29 = vadd.f32 %v5574_v37, %v10272_v61  ;;  %v5663_v22 = vpack.c.bf16 %v5573_v36, %v5569_v21 }
 0x8bd   : > { %v5578_v63 = vpop.f32.mrf.mxu1 }
 0x8be   : > { %v5664_v59 = vpack.c.bf16 %v5575_v29, %v5571_v1  ;;  %v5579_v18 = vadd.f32 %v5578_v63, %v10275_v33 }
 0x8bf   : > { %v5580_v27 = vpop.f32.mrf.mxu1 }
 0x8c0   : > { %5995 = vmatprep.mubr.bf16.mxu0 %v5664_v59  ;;  %v5581_v54 = vadd.f32 %v5580_v27, %v10272_v61 }
 0x8c1   : > { %v5582_v40 = vpop.f32.mrf.mxu1  ;;  %5996 = vmatmul.mubr.bf16.gmra.mxu0 %v5663_v22 }
 0x8c2   : > { %v5583_v32 = vadd.f32 %v5582_v40, %v10275_v33 }
 0x8c3   : > { %v5584_v28 = vpop.f32.mrf.mxu1 }
 0x8c4   : > { %v5585_v57 = vadd.f32 %v5584_v28, %v10272_v61  ;;  %v5665_v19 = vpack.c.bf16 %v5583_v32, %v5579_v18 }
 0x8c5   : > { %v5588_v17 = vpop.f32.mrf.mxu1 }
 0x8c6   : > { %v5666_v6 = vpack.c.bf16 %v5585_v57, %v5581_v54  ;;  %v5589_v24 = vadd.f32 %v5588_v17, %v10275_v33 }
 0x8c7   : > { %v5590_v25 = vpop.f32.mrf.mxu1 }
 0x8c8   : > { %6005 = vmatprep.mubr.bf16.mxu0 %v5666_v6  ;;  %v5591_v35 = vadd.f32 %v5590_v25, %v10272_v61  ;;  %v5711_v25 = vld [vmem:[%s932_s22] sm:$0x3]  ;;  %s6717_s22 = scalar_lea.sflag [#allocation4], %s9341_s11 }
 0x8c9   : > { %v5592_v30 = vpop.f32.mrf.mxu1  ;;  %6006 = vmatmul.mubr.bf16.gmra.mxu0 %v5665_v19 }
 0x8ca   : > { %v5593_v62 = vadd.f32 %v5592_v30, %v10275_v33 }
 0x8cb   : > { %v5594_v60 = vpop.f32.mrf.mxu1 }
 0x8cc   : > { %v5595_v7 = vadd.f32 %v5594_v60, %v10272_v61  ;;  %v5667_v31 = vpack.c.bf16 %v5593_v62, %v5589_v24  ;;  %v10344_v62 = vrot.slane %v5711_v25, %v9486_v48  ;;  %v10347_v60 = vrot.slane %v5711_v25, %v9488_v51  ;;  %v8308_v24 = vld [vmem:[#allocation25 + $0x30] sm:$0xff]  }
 0x8cd   : > { %v5598_v20 = vpop.f32.mrf.mxu1 }
 0x8ce   : > { %v5668_v34 = vpack.c.bf16 %v5595_v7, %v5591_v35  ;;  %v5599_v9 = vadd.f32 %v5598_v20, %v10275_v33  ;;  %v8307_v7 = vld [vmem:[#allocation25 + $0x38] sm:$0xff]  }
 0x8cf   : > { %v5600_v2 = vpop.f32.mrf.mxu1  ;;  %7502 = vmatprep.subr.bf16.mxu0 %v8307_v7  ;;  %7550 = vmatprep.subr.bf16.mxu1 %v8307_v7 }
 0x8d0   : > { %6015 = vmatprep.mubr.bf16.mxu0 %v5668_v34  ;;  %v5601_v11 = vadd.f32 %v5600_v2, %v10272_v61  ;;  %7503 = vmatpush3.bf16.msra.mxu0 %v8307_v7  ;;  %v8309_v2 = vld [vmem:[#allocation25 + $0x28] sm:$0xff]  }
 0x8d1   : > { %v5602_v50 = vpop.f32.mrf.mxu1  ;;  %6016 = vmatmul.mubr.bf16.gmra.mxu0 %v5667_v31  ;;  %7504 = vmatprep.subr.bf16.mxu0 %v8308_v24 }
 0x8d2   : > { %v5603_v8 = vadd.f32 %v5602_v50, %v10275_v33 }
 0x8d3   : > { %v5604_v3 = vpop.f32.mrf.mxu1 }
 0x8d4   : > { %v5605_v46 = vadd.f32 %v5604_v3, %v10272_v61  ;;  %v5669_v12 = vpack.c.bf16 %v5603_v8, %v5599_v9  ;;  %7505 = vmatpush3.bf16.msra.mxu0 %v8308_v24 }
 0x8d5   : > { %v5608_v45 = vpop.f32.mrf.mxu1  ;;  %7506 = vmatprep.subr.bf16.mxu0 %v8309_v2 }
 0x8d6   : > { %v5670_v38 = vpack.c.bf16 %v5605_v46, %v5601_v11  ;;  %v5609_v42 = vadd.f32 %v5608_v45, %v10275_v33 }
 0x8d7   : > { %v5610_v58 = vpop.f32.mrf.mxu1 }
 0x8d8   : > { %6025 = vmatprep.mubr.bf16.mxu0 %v5670_v38  ;;  %v5611_v53 = vadd.f32 %v5610_v58, %v10272_v61  ;;  %7507 = vmatpush3.bf16.msra.mxu0 %v8309_v2 }
 0x8d9   : > { %v5612_v39 = vpop.f32.mrf.mxu1  ;;  %6026 = vmatmul.mubr.bf16.gmra.mxu0 %v5669_v12 }
 0x8da   : > { %v5613_v14 = vadd.f32 %v5612_v39, %v10275_v33 }
 0x8db   : > { %v5614_v4 = vpop.f32.mrf.mxu1 }
 0x8dc   : > { %v5615_v56 = vadd.f32 %v5614_v4, %v10272_v61  ;;  %v5671_v55 = vpack.c.bf16 %v5613_v14, %v5609_v42 }
 0x8dd   : > { %v5618_v15 = vpop.f32.mrf.mxu1 }
 0x8de   : > { %v5672_v52 = vpack.c.bf16 %v5615_v56, %v5611_v53  ;;  %v5619_v23 = vadd.f32 %v5618_v15, %v10275_v33 }
 0x8df   : > { %v5620_v47 = vpop.f32.mrf.mxu1 }
 0x8e0   : > { %6035 = vmatprep.mubr.bf16.mxu0 %v5672_v52  ;;  %v5621_v41 = vadd.f32 %v5620_v47, %v10272_v61 }
 0x8e1   : > { %v5622_v16 = vpop.f32.mrf.mxu1  ;;  %6036 = vmatmul.mubr.bf16.gmra.mxu0 %v5671_v55 }
 0x8e2   : > { %v5623_v0 = vadd.f32 %v5622_v16, %v10275_v33 }
 0x8e3   : > { %v5624_v10 = vpop.f32.mrf.mxu1 }
 0x8e4   : > { %v5625_v13 = vadd.f32 %v5624_v10, %v10272_v61  ;;  %v5673_v43 = vpack.c.bf16 %v5623_v0, %v5619_v23 }
 0x8e5   : > { %v5628_v26 = vpop.f32.mrf.mxu1 }
 0x8e6   : > { %v5674_v49 = vpack.c.bf16 %v5625_v13, %v5621_v41  ;;  %v5629_v21 = vadd.f32 %v5628_v26, %v10275_v33 }
 0x8e7   : > { %v5630_v44 = vpop.f32.mrf.mxu1 }
 0x8e8   : > { %6045 = vmatprep.mubr.bf16.mxu0 %v5674_v49  ;;  %v5631_v1 = vadd.f32 %v5630_v44, %v10272_v61 }
 0x8e9   : > { %v5632_v5 = vpop.f32.mrf.mxu1  ;;  %6046 = vmatmul.mubr.bf16.gmra.mxu0 %v5673_v43 }
 0x8ea   : > { %v5633_v36 = vadd.f32 %v5632_v5, %v10275_v33 }
 0x8eb   : > { %v5634_v37 = vpop.f32.mrf.mxu1 }
 0x8ec   : > { %v5635_v29 = vadd.f32 %v5634_v37, %v10272_v61  ;;  %v5675_v22 = vpack.c.bf16 %v5633_v36, %v5629_v21 }
 0x8ed   : > { %v5638_v63 = vpop.f32.mrf.mxu1 }
 0x8ee   : > { %v5676_v59 = vpack.c.bf16 %v5635_v29, %v5631_v1  ;;  %v5639_v18 = vadd.f32 %v5638_v63, %v10275_v33 }
 0x8ef   : > { %v5640_v27 = vpop.f32.mrf.mxu1 }
 0x8f0   : > { %6055 = vmatprep.mubr.bf16.mxu0 %v5676_v59  ;;  %v5641_v54 = vadd.f32 %v5640_v27, %v10272_v61 }
 0x8f1   : > { %v5642_v40 = vpop.f32.mrf.mxu1  ;;  %6056 = vmatmul.mubr.bf16.gmra.mxu0 %v5675_v22 }
 0x8f2   : > { %v5643_v32 = vadd.f32 %v5642_v40, %v10275_v33 }
 0x8f3   : > { %v5644_v28 = vpop.f32.mrf.mxu1 }
 0x8f4   : > { %v5645_v57 = vadd.f32 %v5644_v28, %v10272_v61  ;;  %v5677_v6 = vpack.c.bf16 %v5643_v32, %v5639_v18 }
 0x8f6   : > { %v5678_v17 = vpack.c.bf16 %v5645_v57, %v5641_v54 }
 0x8f8   : > { %6065 = vmatprep.mubr.bf16.mxu0 %v5678_v17 }
 0x8f9   : > { %6066 = vmatmul.mubr.bf16.gmra.mxu0 %v5677_v6 }
 0x941   : > { %v5917_v19 = vpop.f32.mrf.mxu0 }
 0x942   : > { %v5918_v31 = vadd.f32 %v5917_v19, %v10347_v60 }
 0x943   : > { %v5919_v30 = vpop.f32.mrf.mxu0 }
 0x944   : > { %v5920_v20 = vadd.f32 %v5919_v30, %v10344_v62 }
 0x945   : > { %v5921_v35 = vpop.f32.mrf.mxu0 }
 0x946   : > { %v5922_v61 = vadd.f32 %v5921_v35, %v10347_v60 }
 0x947   : > { %v5923_v33 = vpop.f32.mrf.mxu0 }
 0x948   : > { %v5924_v34 = vadd.f32 %v5923_v33, %v10344_v62  ;;  %v6076_v50 = vpack.c.bf16 %v5922_v61, %v5918_v31 }
 0x949   : > { %v5927_v48 = vpop.f32.mrf.mxu0 }
 0x94a   : > { %v6077_v51 = vpack.c.bf16 %v5924_v34, %v5920_v20  ;;  %v5928_v38 = vadd.f32 %v5927_v48, %v10347_v60 }
 0x94b   : > { %v5929_v8 = vpop.f32.mrf.mxu0 }
 0x94c   : > { %6275 = vmatprep.mubr.bf16.mxu1 %v6077_v51  ;;  %v5930_v9 = vadd.f32 %v5929_v8, %v10344_v62 }
 0x94d   : > { %v5931_v3 = vpop.f32.mrf.mxu0  ;;  %6276 = vmatmul.mubr.bf16.vlgmr.msra.gmra.mxu1 %v6076_v50 }
 0x94e   : > { %7558 = vmatpush3.bf16.msra.mxu1 %v8307_v7  ;;  %v5932_v11 = vadd.f32 %v5931_v3, %v10347_v60 }
 0x94f   : > { %v5933_v46 = vpop.f32.mrf.mxu0  ;;  %7551 = vmatprep.subr.bf16.mxu1 %v8308_v24 }
 0x950   : > { %v5934_v45 = vadd.f32 %v5933_v46, %v10344_v62  ;;  %v6078_v39 = vpack.c.bf16 %v5932_v11, %v5928_v38 }
 0x951   : > { %v5937_v12 = vpop.f32.mrf.mxu0 }
 0x952   : > { %v6079_v58 = vpack.c.bf16 %v5934_v45, %v5930_v9  ;;  %7559 = vmatpush3.bf16.msra.mxu1 %v8308_v24  ;;  %v5938_v52 = vadd.f32 %v5937_v12, %v10347_v60 }
 0x953   : > { %v5939_v14 = vpop.f32.mrf.mxu0  ;;  %7552 = vmatprep.subr.bf16.mxu1 %v8309_v2 }
 0x954   : > { %6283 = vmatprep.mubr.bf16.mxu1 %v6079_v58  ;;  %v5940_v42 = vadd.f32 %v5939_v14, %v10344_v62 }
 0x955   : > { %v5941_v4 = vpop.f32.mrf.mxu0  ;;  %6284 = vmatmul.mubr.bf16.gmra.mxu1 %v6078_v39 }
 0x956   : > { %7560 = vmatpush3.bf16.msra.mxu1 %v8309_v2  ;;  %v5942_v53 = vadd.f32 %v5941_v4, %v10347_v60 }
 0x957   : > { %v5943_v56 = vpop.f32.mrf.mxu0 }
 0x958   : > { %v5944_v15 = vadd.f32 %v5943_v56, %v10344_v62  ;;  %v6080_v16 = vpack.c.bf16 %v5942_v53, %v5938_v52 }
 0x959   : > { %v5947_v55 = vpop.f32.mrf.mxu0 }
 0x95a   : > { %v6081_v47 = vpack.c.bf16 %v5944_v15, %v5940_v42  ;;  %v5948_v49 = vadd.f32 %v5947_v55, %v10347_v60 }
 0x95b   : > { %v5949_v0 = vpop.f32.mrf.mxu0 }
 0x95c   : > { %6291 = vmatprep.mubr.bf16.mxu1 %v6081_v47  ;;  %v5950_v23 = vadd.f32 %v5949_v0, %v10344_v62  ;;  %v8310_v0 = vld [vmem:[#allocation25 + $0x20] sm:$0xff]  }
 0x95d   : > { %v5951_v10 = vpop.f32.mrf.mxu0  ;;  %6292 = vmatmul.mubr.bf16.gmra.mxu1 %v6080_v16  ;;  %7508 = vmatprep.subr.bf16.mxu0 %v8310_v0 }
 0x95e   : > { %v5952_v41 = vadd.f32 %v5951_v10, %v10347_v60  ;;  %7553 = vmatprep.subr.bf16.mxu1 %v8310_v0  ;;  %7509 = vmatpush3.bf16.msra.mxu0 %v8310_v0 }
 0x95f   : > { %v5953_v13 = vpop.f32.mrf.mxu0  ;;  %7561 = vmatpush3.bf16.msra.mxu1 %v8310_v0 }
 0x960   : > { %v5954_v26 = vadd.f32 %v5953_v13, %v10344_v62  ;;  %v6082_v5 = vpack.c.bf16 %v5952_v41, %v5948_v49 }
 0x961   : > { %v5957_v43 = vpop.f32.mrf.mxu0 }
 0x962   : > { %v6083_v44 = vpack.c.bf16 %v5954_v26, %v5950_v23  ;;  %v5958_v59 = vadd.f32 %v5957_v43, %v10347_v60 }
 0x963   : > { %v5959_v36 = vpop.f32.mrf.mxu0 }
 0x964   : > { %6299 = vmatprep.mubr.bf16.mxu1 %v6083_v44  ;;  %v5960_v21 = vadd.f32 %v5959_v36, %v10344_v62  ;;  %v8311_v44 = vld [vmem:[#allocation25 + $0x18] sm:$0xff]  }
 0x965   : > { %v5961_v37 = vpop.f32.mrf.mxu0  ;;  %6300 = vmatmul.mubr.bf16.gmra.mxu1 %v6082_v5  ;;  %7510 = vmatprep.subr.bf16.mxu0 %v8311_v44 }
 0x966   : > { %v5962_v1 = vadd.f32 %v5961_v37, %v10347_v60  ;;  %7511 = vmatpush3.bf16.msra.mxu0 %v8311_v44  ;;  %7554 = vmatprep.subr.bf16.mxu1 %v8311_v44 }
 0x967   : > { %v5963_v29 = vpop.f32.mrf.mxu0  ;;  %7562 = vmatpush3.bf16.msra.mxu1 %v8311_v44 }
 0x968   : > { %v5964_v63 = vadd.f32 %v5963_v29, %v10344_v62  ;;  %v6084_v40 = vpack.c.bf16 %v5962_v1, %v5958_v59  ;;  %v8312_v1 = vld [vmem:[#allocation25 + $0x10] sm:$0xff]  }
 0x969   : > { %v5967_v22 = vpop.f32.mrf.mxu0  ;;  %7512 = vmatprep.subr.bf16.mxu0 %v8312_v1  ;;  %7555 = vmatprep.subr.bf16.mxu1 %v8312_v1 }
 0x96a   : > { %v6085_v27 = vpack.c.bf16 %v5964_v63, %v5960_v21  ;;  %v5968_v6 = vadd.f32 %v5967_v22, %v10347_v60  ;;  %7513 = vmatpush3.bf16.msra.mxu0 %v8312_v1 }
 0x96b   : > { %v5969_v32 = vpop.f32.mrf.mxu0  ;;  %7563 = vmatpush3.bf16.msra.mxu1 %v8312_v1 }
 0x96c   : > { %6307 = vmatprep.mubr.bf16.mxu1 %v6085_v27  ;;  %v5970_v18 = vadd.f32 %v5969_v32, %v10344_v62  ;;  %v8313_v32 = vld [vmem:[#allocation25 + $0x8] sm:$0xff]  }
 0x96d   : > { %v5971_v28 = vpop.f32.mrf.mxu0  ;;  %6308 = vmatmul.mubr.bf16.gmra.mxu1 %v6084_v40  ;;  %7514 = vmatprep.subr.bf16.mxu0 %v8313_v32 }
 0x96e   : > { %v5972_v54 = vadd.f32 %v5971_v28, %v10347_v60  ;;  %7515 = vmatpush3.bf16.msra.mxu0 %v8313_v32  ;;  %7556 = vmatprep.subr.bf16.mxu1 %v8313_v32 }
 0x96f   : > { %v5973_v57 = vpop.f32.mrf.mxu0  ;;  %7564 = vmatpush3.bf16.msra.mxu1 %v8313_v32 }
 0x970   : > { %v5974_v17 = vadd.f32 %v5973_v57, %v10344_v62  ;;  %v6086_v30 = vpack.c.bf16 %v5972_v54, %v5968_v6 }
 0x971   : > { %v5977_v19 = vpop.f32.mrf.mxu0 }
 0x972   : > { %v6087_v25 = vpack.c.bf16 %v5974_v17, %v5970_v18  ;;  %v5978_v34 = vadd.f32 %v5977_v19, %v10347_v60  ;;  %v8314_v18 = vld [vmem:[#allocation25] sm:$0xff]  }
 0x973   : > { %v5979_v35 = vpop.f32.mrf.mxu0  ;;  %7516 = vmatprep.subr.bf16.mxu0 %v8314_v18  ;;  %7557 = vmatprep.subr.bf16.mxu1 %v8314_v18 }
 0x974   : > { %6315 = vmatprep.mubr.bf16.mxu1 %v6087_v25  ;;  %v5980_v33 = vadd.f32 %v5979_v35, %v10344_v62  ;;  %7517 = vmatpush3.bf16.msra.mxu0 %v8314_v18 }
 0x975   : > { %v5981_v7 = vpop.f32.mrf.mxu0  ;;  %6316 = vmatmul.mubr.bf16.gmra.mxu1 %v6086_v30 }
 0x976   : > { %v5982_v24 = vadd.f32 %v5981_v7, %v10347_v60  ;;  %7565 = vmatpush3.bf16.msra.mxu1 %v8314_v18 }
 0x977   : > { %v5983_v61 = vpop.f32.mrf.mxu0 }
 0x978   : > { %v5984_v20 = vadd.f32 %v5983_v61, %v10344_v62  ;;  %v6088_v2 = vpack.c.bf16 %v5982_v24, %v5978_v34 }
 0x979   : > { %v5987_v31 = vpop.f32.mrf.mxu0 }
 0x97a   : > { %v6089_v48 = vpack.c.bf16 %v5984_v20, %v5980_v33  ;;  %v5988_v9 = vadd.f32 %v5987_v31, %v10347_v60 }
 0x97b   : > { %v5989_v51 = vpop.f32.mrf.mxu0 }
 0x97c   : > { %6323 = vmatprep.mubr.bf16.mxu1 %v6089_v48  ;;  %v5990_v11 = vadd.f32 %v5989_v51, %v10344_v62 }
 0x97d   : > { %v5991_v50 = vpop.f32.mrf.mxu0  ;;  %6324 = vmatmul.mubr.bf16.gmra.mxu1 %v6088_v2 }
 0x97e   : > { %v5992_v8 = vadd.f32 %v5991_v50, %v10347_v60 }
 0x97f   : > { %v5993_v3 = vpop.f32.mrf.mxu0 }
 0x980   : > { %v5994_v46 = vadd.f32 %v5993_v3, %v10344_v62  ;;  %v6090_v12 = vpack.c.bf16 %v5992_v8, %v5988_v9 }
 0x981   : > { %v5997_v45 = vpop.f32.mrf.mxu0 }
 0x982   : > { %v6091_v38 = vpack.c.bf16 %v5994_v46, %v5990_v11  ;;  %v5998_v42 = vadd.f32 %v5997_v45, %v10347_v60 }
 0x983   : > { %v5999_v58 = vpop.f32.mrf.mxu0 }
 0x984   : > { %6331 = vmatprep.mubr.bf16.mxu1 %v6091_v38  ;;  %v6000_v53 = vadd.f32 %v5999_v58, %v10344_v62 }
 0x985   : > { %v6001_v39 = vpop.f32.mrf.mxu0  ;;  %6332 = vmatmul.mubr.bf16.gmra.mxu1 %v6090_v12 }
 0x986   : > { %v6002_v14 = vadd.f32 %v6001_v39, %v10347_v60 }
 0x987   : > { %v6003_v4 = vpop.f32.mrf.mxu0 }
 0x988   : > { %v6004_v56 = vadd.f32 %v6003_v4, %v10344_v62  ;;  %v6092_v55 = vpack.c.bf16 %v6002_v14, %v5998_v42 }
 0x989   : > { %v6007_v15 = vpop.f32.mrf.mxu0 }
 0x98a   : > { %v6093_v52 = vpack.c.bf16 %v6004_v56, %v6000_v53  ;;  %v6008_v26 = vadd.f32 %v6007_v15, %v10347_v60 }
 0x98b   : > { %v6009_v47 = vpop.f32.mrf.mxu0 }
 0x98c   : > { %6339 = vmatprep.mubr.bf16.mxu1 %v6093_v52  ;;  %v6010_v13 = vadd.f32 %v6009_v47, %v10344_v62 }
 0x98d   : > { %v6011_v16 = vpop.f32.mrf.mxu0  ;;  %6340 = vmatmul.mubr.bf16.gmra.mxu1 %v6092_v55 }
 0x98e   : > { %v6012_v10 = vadd.f32 %v6011_v16, %v10347_v60 }
 0x98f   : > { %v6013_v41 = vpop.f32.mrf.mxu0 }
 0x990   : > { %v6014_v23 = vadd.f32 %v6013_v41, %v10344_v62  ;;  %v6094_v5 = vpack.c.bf16 %v6012_v10, %v6008_v26 }
 0x991   : > { %v6017_v49 = vpop.f32.mrf.mxu0 }
 0x992   : > { %v6095_v43 = vpack.c.bf16 %v6014_v23, %v6010_v13  ;;  %v6018_v22 = vadd.f32 %v6017_v49, %v10347_v60 }
 0x993   : > { %v6019_v36 = vpop.f32.mrf.mxu0 }
 0x994   : > { %6347 = vmatprep.mubr.bf16.mxu1 %v6095_v43  ;;  %v6020_v63 = vadd.f32 %v6019_v36, %v10344_v62 }
 0x995   : > { %v6021_v37 = vpop.f32.mrf.mxu0  ;;  %6348 = vmatmul.mubr.bf16.gmra.mxu1 %v6094_v5 }
 0x996   : > { %v6022_v29 = vadd.f32 %v6021_v37, %v10347_v60 }
 0x997   : > { %v6023_v21 = vpop.f32.mrf.mxu0 }
 0x998   : > { %v6024_v59 = vadd.f32 %v6023_v21, %v10344_v62  ;;  %v6096_v28 = vpack.c.bf16 %v6022_v29, %v6018_v22  ;;  %v10416_v29 = vld [vmem:[%s10717_s1] ss:$0 sm:$0xff]  ;;  %s8709_s1 = scalar_lea.vmem %s10528_s24, 4096 }
 0x999   : > { %v6027_v27 = vpop.f32.mrf.mxu0  ;;  %p8710_p3 = scmp.ne.s32.totalorder %s10528_s24, %s8709_s1 }
 0x99a   : > { %v6097_v40 = vpack.c.bf16 %v6024_v59, %v6020_v63  ;;  %v6028_v30 = vadd.f32 %v6027_v27, %v10347_v60 }
 0x99b   : > { %v6029_v54 = vpop.f32.mrf.mxu0  ;;  %p8711_p6 = pnand %p8710_p3, %p10722_p13 }
 0x99c   : > { %6355 = vmatprep.mubr.bf16.mxu1 %v6097_v40  ;;  %v6030_v19 = vadd.f32 %v6029_v54, %v10344_v62 }
 0x99d   : > { %v6031_v57 = vpop.f32.mrf.mxu0  ;;  %6356 = vmatmul.mubr.bf16.gmra.mxu1 %v6096_v28  ;;  %p8712_p0 = pneg %p8711_p6 }
 0x99e   : > { %v6032_v17 = vadd.f32 %v6031_v57, %v10347_v60 }
 0x99f   : > { %v6033_v6 = vpop.f32.mrf.mxu0 }
 0x9a0   : > { %v6034_v25 = vadd.f32 %v6033_v6, %v10344_v62  ;;  %v6098_v24 = vpack.c.bf16 %v6032_v17, %v6028_v30 }
 0x9a1   : > { %v6037_v35 = vpop.f32.mrf.mxu0 }
 0x9a2   : > { %v6099_v7 = vpack.c.bf16 %v6034_v25, %v6030_v19  ;;  %v6038_v2 = vadd.f32 %v6037_v35, %v10347_v60 }
 0x9a3   : > { %v6039_v61 = vpop.f32.mrf.mxu0 }
 0x9a4   : > { %6363 = vmatprep.mubr.bf16.mxu1 %v6099_v7  ;;  %v6040_v31 = vadd.f32 %v6039_v61, %v10344_v62 }
 0x9a5   : > { %v6041_v33 = vpop.f32.mrf.mxu0  ;;  %6364 = vmatmul.mubr.bf16.gmra.mxu1 %v6098_v24 }
 0x9a6   : > { %v6042_v20 = vadd.f32 %v6041_v33, %v10347_v60 }
 0x9a7   : > { %v6043_v34 = vpop.f32.mrf.mxu0 }
 0x9a8   : > { %v6044_v48 = vadd.f32 %v6043_v34, %v10344_v62  ;;  %v6100_v8 = vpack.c.bf16 %v6042_v20, %v6038_v2 }
 0x9a9   : > { %v6047_v51 = vpop.f32.mrf.mxu0 }
 0x9aa   : > { %v6101_v50 = vpack.c.bf16 %v6044_v48, %v6040_v31  ;;  %v6048_v12 = vadd.f32 %v6047_v51, %v10347_v60 }
 0x9ab   : > { %v6049_v3 = vpop.f32.mrf.mxu0 }
 0x9ac   : > { %6371 = vmatprep.mubr.bf16.mxu1 %v6101_v50  ;;  %v6050_v45 = vadd.f32 %v6049_v3, %v10344_v62 }
 0x9ad   : > { %v6051_v11 = vpop.f32.mrf.mxu0  ;;  %6372 = vmatmul.mubr.bf16.gmra.mxu1 %v6100_v8 }
 0x9ae   : > { %v6052_v46 = vadd.f32 %v6051_v11, %v10347_v60 }
 0x9af   : > { %v6053_v9 = vpop.f32.mrf.mxu0 }
 0x9b0   : > { %v6054_v38 = vadd.f32 %v6053_v9, %v10344_v62  ;;  %v6102_v14 = vpack.c.bf16 %v6052_v46, %v6048_v12 }
 0x9b1   : > { %v6057_v58 = vpop.f32.mrf.mxu0 }
 0x9b2   : > { %v6103_v39 = vpack.c.bf16 %v6054_v38, %v6050_v45  ;;  %v6058_v55 = vadd.f32 %v6057_v58, %v10347_v60 }
 0x9b3   : > { %v6059_v4 = vpop.f32.mrf.mxu0 }
 0x9b4   : > { %6379 = vmatprep.mubr.bf16.mxu1 %v6103_v39  ;;  %v6060_v15 = vadd.f32 %v6059_v4, %v10344_v62 }
 0x9b5   : > { %v6061_v53 = vpop.f32.mrf.mxu0  ;;  %6380 = vmatmul.mubr.bf16.gmra.mxu1 %v6102_v14 }
 0x9b6   : > { %v6062_v56 = vadd.f32 %v6061_v53, %v10347_v60 }
 0x9b7   : > { %v6063_v42 = vpop.f32.mrf.mxu0 }
 0x9b8   : > { %v6064_v52 = vadd.f32 %v6063_v42, %v10344_v62  ;;  %v6104_v0 = vpack.c.bf16 %v6062_v56, %v6058_v55 }
 0x9b9   : > { %v6067_v47 = vpop.f32.mrf.mxu0 }
 0x9ba   : > { %v6105_v16 = vpack.c.bf16 %v6064_v52, %v6060_v15  ;;  %v6068_v43 = vadd.f32 %v6067_v47, %v10347_v60 }
 0x9bb   : > { %v6069_v10 = vpop.f32.mrf.mxu0 }
 0x9bc   : > { %6387 = vmatprep.mubr.bf16.mxu1 %v6105_v16  ;;  %v6070_v26 = vadd.f32 %v6069_v10, %v10344_v62 }
 0x9bd   : > { %v6071_v41 = vpop.f32.mrf.mxu0  ;;  %6388 = vmatmul.mubr.bf16.gmra.mxu1 %v6104_v0 }
 0x9be   : > { %v6072_v13 = vadd.f32 %v6071_v41, %v10347_v60 }
 0x9bf   : > { %v6073_v23 = vpop.f32.mrf.mxu0 }
 0x9c0   : > { %v6074_v49 = vadd.f32 %v6073_v23, %v10344_v62  ;;  %v6106_v5 = vpack.c.bf16 %v6072_v13, %v6068_v43 }
 0x9c2   : > { %v6107_v44 = vpack.c.bf16 %v6074_v49, %v6070_v26 }
 0x9c4   : > { %6395 = vmatprep.mubr.bf16.mxu1 %v6107_v44 }
 0x9c5   : > { %6396 = vmatmul.mubr.bf16.gmra.mxu1 %v6106_v5 }
 0xa0d   : > { %v7382_v36 = vpop.f32.mrf.mxu1 }
 0xa0f   : > { %v7383_v37 = vpop.f32.mrf.mxu1 }
 0xa10   : > { %v7384_v1 = vadd.f32 %v7383_v37, %v7382_v36 }
 0xa11   : > { %v7385_v21 = vpop.f32.mrf.mxu1 }
 0xa12   : > { %v6278_v59 = vadd.f32 %v7384_v1, %v10416_v29 }
 0xa13   : > { %v7386_v63 = vpop.f32.mrf.mxu1 }
 0xa14   : > { %v7387_v22 = vadd.f32 %v7386_v63, %v7385_v21  ;;  %v6404_v40 = vmax.f32 %v6278_v59, 0.0 }
 0xa15   : > { %v7388_v62 = vpop.f32.mrf.mxu1 }
 0xa16   : > { %v6281_v60 = vadd.f32 %v7387_v22, %v10416_v29 }
 0xa17   : > { %v7389_v27 = vpop.f32.mrf.mxu1 }
 0xa18   : > { %v6405_v32 = vmax.f32 %v6281_v60, 0.0  ;;  %v7390_v28 = vadd.f32 %v7389_v27, %v7388_v62 }
 0xa19   : > { %v7391_v54 = vpop.f32.mrf.mxu1 }
 0xa1a   : > { %v6436_v57 = vpack.c.bf16 %v6405_v32, %v6404_v40  ;;  %v6286_v17 = vadd.f32 %v7390_v28, %v10416_v29 }
 0xa1b   : > { %v7392_v18 = vpop.f32.mrf.mxu1 }
 0xa1c   : > { %v7393_v6 = vadd.f32 %v7392_v18, %v7391_v54  ;;  %7518 = vmatprep.mubr.bf16.mxu0 %v6436_v57  ;;  %v6406_v35 = vmax.f32 %v6286_v17, 0.0 }
 0xa1d   : > { %v7394_v19 = vpop.f32.mrf.mxu1 }
 0xa1e   : > { %v6289_v25 = vadd.f32 %v7393_v6, %v10416_v29 }
 0xa1f   : > { %v7395_v30 = vpop.f32.mrf.mxu1 }
 0xa20   : > { %v6407_v7 = vmax.f32 %v6289_v25, 0.0  ;;  %v7396_v24 = vadd.f32 %v7395_v30, %v7394_v19 }
 0xa21   : > { %v7397_v61 = vpop.f32.mrf.mxu1 }
 0xa22   : > { %v6437_v33 = vpack.c.bf16 %v6407_v7, %v6406_v35  ;;  %v6294_v34 = vadd.f32 %v7396_v24, %v10416_v29 }
 0xa23   : > { %v7398_v20 = vpop.f32.mrf.mxu1 }
 0xa24   : > { %v7399_v31 = vadd.f32 %v7398_v20, %v7397_v61  ;;  %7519 = vmatmul.mubr.bf16.vlgmr.msra.gmra.mxu0 %v6437_v33  ;;  %v6408_v50 = vmax.f32 %v6294_v34, 0.0 }
 0xa25   : > { %v7400_v48 = vpop.f32.mrf.mxu1 }
 0xa26   : > { %v6297_v2 = vadd.f32 %v7399_v31, %v10416_v29 }
 0xa27   : > { %v7401_v51 = vpop.f32.mrf.mxu1 }
 0xa28   : > { %v6409_v8 = vmax.f32 %v6297_v2, 0.0  ;;  %v7402_v3 = vadd.f32 %v7401_v51, %v7400_v48 }
 0xa29   : > { %v7403_v11 = vpop.f32.mrf.mxu1 }
 0xa2a   : > { %v6438_v46 = vpack.c.bf16 %v6409_v8, %v6408_v50  ;;  %v6302_v45 = vadd.f32 %v7402_v3, %v10416_v29 }
 0xa2b   : > { %v7404_v9 = vpop.f32.mrf.mxu1 }
 0xa2c   : > { %v7405_v38 = vadd.f32 %v7404_v9, %v7403_v11  ;;  %7522 = vmatprep.mubr.bf16.mxu0 %v6438_v46  ;;  %v6410_v14 = vmax.f32 %v6302_v45, 0.0 }
 0xa2d   : > { %v7406_v12 = vpop.f32.mrf.mxu1 }
 0xa2e   : > { %v6305_v58 = vadd.f32 %v7405_v38, %v10416_v29 }
 0xa2f   : > { %v7407_v39 = vpop.f32.mrf.mxu1 }
 0xa30   : > { %v6411_v4 = vmax.f32 %v6305_v58, 0.0  ;;  %v7408_v53 = vadd.f32 %v7407_v39, %v7406_v12 }
 0xa31   : > { %v7409_v56 = vpop.f32.mrf.mxu1 }
 0xa32   : > { %v6439_v42 = vpack.c.bf16 %v6411_v4, %v6410_v14  ;;  %v6310_v52 = vadd.f32 %v7408_v53, %v10416_v29 }
 0xa33   : > { %v7410_v15 = vpop.f32.mrf.mxu1 }
 0xa34   : > { %v7411_v55 = vadd.f32 %v7410_v15, %v7409_v56  ;;  %7523 = vmatmul.mubr.bf16.gmra.mxu0 %v6439_v42  ;;  %v6412_v10 = vmax.f32 %v6310_v52, 0.0 }
 0xa35   : > { %v7412_v47 = vpop.f32.mrf.mxu1 }
 0xa36   : > { %v6313_v16 = vadd.f32 %v7411_v55, %v10416_v29 }
 0xa37   : > { %v7413_v0 = vpop.f32.mrf.mxu1 }
 0xa38   : > { %v6413_v41 = vmax.f32 %v6313_v16, 0.0  ;;  %v7414_v13 = vadd.f32 %v7413_v0, %v7412_v47 }
 0xa39   : > { %v7415_v23 = vpop.f32.mrf.mxu1 }
 0xa3a   : > { %v6440_v26 = vpack.c.bf16 %v6413_v41, %v6412_v10  ;;  %v6318_v43 = vadd.f32 %v7414_v13, %v10416_v29 }
 0xa3b   : > { %v7416_v49 = vpop.f32.mrf.mxu1 }
 0xa3c   : > { %v7417_v44 = vadd.f32 %v7416_v49, %v7415_v23  ;;  %7526 = vmatprep.mubr.bf16.mxu0 %v6440_v26  ;;  %v6414_v1 = vmax.f32 %v6318_v43, 0.0 }
 0xa3d   : > { %v7418_v5 = vpop.f32.mrf.mxu1 }
 0xa3e   : > { %v6321_v36 = vadd.f32 %v7417_v44, %v10416_v29 }
 0xa3f   : > { %v7419_v37 = vpop.f32.mrf.mxu1 }
 0xa40   : > { %v6415_v21 = vmax.f32 %v6321_v36, 0.0  ;;  %v7420_v63 = vadd.f32 %v7419_v37, %v7418_v5 }
 0xa41   : > { %v7421_v59 = vpop.f32.mrf.mxu1 }
 0xa42   : > { %v6441_v22 = vpack.c.bf16 %v6415_v21, %v6414_v1  ;;  %v6326_v60 = vadd.f32 %v7420_v63, %v10416_v29 }
 0xa43   : > { %v7422_v62 = vpop.f32.mrf.mxu1 }
 0xa44   : > { %v7423_v27 = vadd.f32 %v7422_v62, %v7421_v59  ;;  %7527 = vmatmul.mubr.bf16.gmra.mxu0 %v6441_v22  ;;  %v6416_v54 = vmax.f32 %v6326_v60, 0.0 }
 0xa45   : > { %v7424_v40 = vpop.f32.mrf.mxu1 }
 0xa46   : > { %v6329_v32 = vadd.f32 %v7423_v27, %v10416_v29 }
 0xa47   : > { %v7425_v28 = vpop.f32.mrf.mxu1 }
 0xa48   : > { %v6417_v57 = vmax.f32 %v6329_v32, 0.0  ;;  %v7426_v18 = vadd.f32 %v7425_v28, %v7424_v40 }
 0xa49   : > { %v7427_v17 = vpop.f32.mrf.mxu1 }
 0xa4a   : > { %v6442_v6 = vpack.c.bf16 %v6417_v57, %v6416_v54  ;;  %v6334_v25 = vadd.f32 %v7426_v18, %v10416_v29 }
 0xa4b   : > { %v7428_v19 = vpop.f32.mrf.mxu1 }
 0xa4c   : > { %v7429_v30 = vadd.f32 %v7428_v19, %v7427_v17  ;;  %7530 = vmatprep.mubr.bf16.mxu0 %v6442_v6  ;;  %v6418_v61 = vmax.f32 %v6334_v25, 0.0 }
 0xa4d   : > { %v7430_v35 = vpop.f32.mrf.mxu1 }
 0xa4e   : > { %v6337_v7 = vadd.f32 %v7429_v30, %v10416_v29 }
 0xa4f   : > { %v7431_v24 = vpop.f32.mrf.mxu1 }
 0xa50   : > { %v6419_v33 = vmax.f32 %v6337_v7, 0.0  ;;  %v7432_v20 = vadd.f32 %v7431_v24, %v7430_v35 }
 0xa51   : > { %v7433_v34 = vpop.f32.mrf.mxu1 }
 0xa52   : > { %v6443_v31 = vpack.c.bf16 %v6419_v33, %v6418_v61  ;;  %v6342_v2 = vadd.f32 %v7432_v20, %v10416_v29 }
 0xa53   : > { %v7434_v48 = vpop.f32.mrf.mxu1 }
 0xa54   : > { %v7435_v51 = vadd.f32 %v7434_v48, %v7433_v34  ;;  %7531 = vmatmul.mubr.bf16.gmra.mxu0 %v6443_v31  ;;  %v6420_v11 = vmax.f32 %v6342_v2, 0.0 }
 0xa55   : > { %v7436_v50 = vpop.f32.mrf.mxu1 }
 0xa56   : > { %v6345_v8 = vadd.f32 %v7435_v51, %v10416_v29 }
 0xa57   : > { %v7437_v3 = vpop.f32.mrf.mxu1 }
 0xa58   : > { %v6421_v46 = vmax.f32 %v6345_v8, 0.0  ;;  %v7438_v9 = vadd.f32 %v7437_v3, %v7436_v50 }
 0xa59   : > { %v7439_v45 = vpop.f32.mrf.mxu1 }
 0xa5a   : > { %v6444_v38 = vpack.c.bf16 %v6421_v46, %v6420_v11  ;;  %v6350_v58 = vadd.f32 %v7438_v9, %v10416_v29 }
 0xa5b   : > { %v7440_v12 = vpop.f32.mrf.mxu1 }
 0xa5c   : > { %v7441_v39 = vadd.f32 %v7440_v12, %v7439_v45  ;;  %7534 = vmatprep.mubr.bf16.mxu0 %v6444_v38  ;;  %v6422_v56 = vmax.f32 %v6350_v58, 0.0 }
 0xa5d   : > { %v7442_v14 = vpop.f32.mrf.mxu1 }
 0xa5e   : > { %v6353_v4 = vadd.f32 %v7441_v39, %v10416_v29 }
 0xa5f   : > { %v7443_v53 = vpop.f32.mrf.mxu1 }
 0xa60   : > { %v6423_v42 = vmax.f32 %v6353_v4, 0.0  ;;  %v7444_v15 = vadd.f32 %v7443_v53, %v7442_v14 }
 0xa61   : > { %v7445_v52 = vpop.f32.mrf.mxu1 }
 0xa62   : > { %v6445_v55 = vpack.c.bf16 %v6423_v42, %v6422_v56  ;;  %v6358_v16 = vadd.f32 %v7444_v15, %v10416_v29 }
 0xa63   : > { %v7446_v47 = vpop.f32.mrf.mxu1 }
 0xa64   : > { %v7447_v0 = vadd.f32 %v7446_v47, %v7445_v52  ;;  %7535 = vmatmul.mubr.bf16.gmra.mxu0 %v6445_v55  ;;  %v6424_v23 = vmax.f32 %v6358_v16, 0.0  ;;  %v10453_v55 = vld [vmem:[%s10718_s0] ss:$0 sm:$0xff]  ;;  %s8715_s0 = scalar_lea.vmem %s8714_s12, 8192 }
 0xa65   : > { %v7448_v10 = vpop.f32.mrf.mxu1  ;;  %p8717_p8 = scmp.lt.s32.totalorder %s8715_s0, %s8709_s1 }
 0xa66   : > { %v6361_v41 = vadd.f32 %v7447_v0, %v10416_v29 }
 0xa67   : > { %v7449_v13 = vpop.f32.mrf.mxu1  ;;  %p8718_p10 = por %p8717_p8, %p8716_p2 }
 0xa68   : > { %v6425_v26 = vmax.f32 %v6361_v41, 0.0  ;;  %v7450_v49 = vadd.f32 %v7449_v13, %v7448_v10 }
 0xa69   : > { %v7451_v43 = vpop.f32.mrf.mxu1  ;;  %p8719_p12 = pnand %p8718_p10, %p8712_p0 }
 0xa6a   : > { %v6446_v44 = vpack.c.bf16 %v6425_v26, %v6424_v23  ;;  %v6366_v36 = vadd.f32 %v7450_v49, %v10416_v29 }
 0xa6b   : > { %v7452_v5 = vpop.f32.mrf.mxu1 }
 0xa6c   : > { %v7453_v37 = vadd.f32 %v7452_v5, %v7451_v43  ;;  %7538 = vmatprep.mubr.bf16.mxu0 %v6446_v44  ;;  %v6426_v59 = vmax.f32 %v6366_v36, 0.0 }
 0xa6d   : > { %v7454_v1 = vpop.f32.mrf.mxu1 }
 0xa6e   : > { %v6369_v21 = vadd.f32 %v7453_v37, %v10416_v29 }
 0xa6f   : > { %v7455_v63 = vpop.f32.mrf.mxu1 }
 0xa70   : > { %v6427_v22 = vmax.f32 %v6369_v21, 0.0  ;;  %v7456_v62 = vadd.f32 %v7455_v63, %v7454_v1 }
 0xa71   : > { %v7457_v60 = vpop.f32.mrf.mxu1 }
 0xa72   : > { %v6447_v27 = vpack.c.bf16 %v6427_v22, %v6426_v59  ;;  %v6374_v32 = vadd.f32 %v7456_v62, %v10416_v29 }
 0xa73   : > { %v7458_v40 = vpop.f32.mrf.mxu1 }
 0xa74   : > { %v7459_v28 = vadd.f32 %v7458_v40, %v7457_v60  ;;  %7539 = vmatmul.mubr.bf16.gmra.mxu0 %v6447_v27  ;;  %v6428_v17 = vmax.f32 %v6374_v32, 0.0 }
 0xa75   : > { %v7460_v54 = vpop.f32.mrf.mxu1 }
 0xa76   : > { %v6377_v57 = vadd.f32 %v7459_v28, %v10416_v29 }
 0xa77   : > { %v7461_v18 = vpop.f32.mrf.mxu1 }
 0xa78   : > { %v6429_v6 = vmax.f32 %v6377_v57, 0.0  ;;  %v7462_v19 = vadd.f32 %v7461_v18, %v7460_v54 }
 0xa79   : > { %v7463_v25 = vpop.f32.mrf.mxu1 }
 0xa7a   : > { %v6448_v30 = vpack.c.bf16 %v6429_v6, %v6428_v17  ;;  %v6382_v7 = vadd.f32 %v7462_v19, %v10416_v29 }
 0xa7b   : > { %v7464_v35 = vpop.f32.mrf.mxu1 }
 0xa7c   : > { %v7465_v24 = vadd.f32 %v7464_v35, %v7463_v25  ;;  %7542 = vmatprep.mubr.bf16.mxu1 %v6448_v30  ;;  %v6430_v34 = vmax.f32 %v6382_v7, 0.0 }
 0xa7d   : > { %v7466_v61 = vpop.f32.mrf.mxu1 }
 0xa7e   : > { %v6385_v33 = vadd.f32 %v7465_v24, %v10416_v29 }
 0xa7f   : > { %v7467_v20 = vpop.f32.mrf.mxu1 }
 0xa80   : > { %v6431_v31 = vmax.f32 %v6385_v33, 0.0  ;;  %v7468_v48 = vadd.f32 %v7467_v20, %v7466_v61 }
 0xa81   : > { %v7469_v2 = vpop.f32.mrf.mxu1 }
 0xa82   : > { %v6449_v51 = vpack.c.bf16 %v6431_v31, %v6430_v34  ;;  %v6390_v8 = vadd.f32 %v7468_v48, %v10416_v29 }
 0xa83   : > { %v7470_v50 = vpop.f32.mrf.mxu1 }
 0xa84   : > { %v7471_v3 = vadd.f32 %v7470_v50, %v7469_v2  ;;  %7543 = vmatmul.mubr.bf16.vlgmr.msra.gmra.mxu1 %v6449_v51  ;;  %v6432_v45 = vmax.f32 %v6390_v8, 0.0 }
 0xa85   : > { %v7472_v11 = vpop.f32.mrf.mxu1 }
 0xa86   : > { %v6393_v46 = vadd.f32 %v7471_v3, %v10416_v29 }
 0xa87   : > { %v7473_v9 = vpop.f32.mrf.mxu1 }
 0xa88   : > { %v6433_v38 = vmax.f32 %v6393_v46, 0.0  ;;  %v7474_v12 = vadd.f32 %v7473_v9, %v7472_v11 }
 0xa89   : > { %v7475_v58 = vpop.f32.mrf.mxu1 }
 0xa8a   : > { %v6450_v39 = vpack.c.bf16 %v6433_v38, %v6432_v45  ;;  %v6398_v4 = vadd.f32 %v7474_v12, %v10416_v29 }
 0xa8b   : > { %v7476_v14 = vpop.f32.mrf.mxu1 }
 0xa8c   : > { %v7477_v53 = vadd.f32 %v7476_v14, %v7475_v58  ;;  %7546 = vmatprep.mubr.bf16.mxu1 %v6450_v39  ;;  %v6434_v42 = vmax.f32 %v6398_v4, 0.0 }
 0xa8e   : > { %v6401_v56 = vadd.f32 %v7477_v53, %v10416_v29 }
 0xa90   : > { %v6435_v15 = vmax.f32 %v6401_v56, 0.0 }
 0xa92   : > { %v6451_v52 = vpack.c.bf16 %v6435_v15, %v6434_v42 }
 0xa94   : > { %7547 = vmatmul.mubr.bf16.gmra.mxu1 %v6451_v52 }
 0xae4   : > { %v7520_v47 = vpop.f32.mrf.mxu0 }
 0xae5   : > { %v6566_v16 = vadd.f32 %v7520_v47, %v10453_v55 }
 0xae6   : > { %v6557_v0 = vpop.f32.mrf.mxu0 }
 0xae7   : > { %6686 = vst [vmem:[%s10458_s6 + $0x10] sm:$0xff] %v6566_v16  ;;  %v6558_v29 = vadd.f32 %v10453_v55, %v6557_v0 }
 0xae8   : > { %v7521_v10 = vpop.f32.mrf.mxu0 }
 0xae9   : > { %6684 = vst [vmem:[%s10458_s6] sm:$0xff] %v6558_v29  ;;  %v6569_v41 = vadd.f32 %v7521_v10, %v10453_v55 }
 0xaea   : > { %v6560_v13 = vpop.f32.mrf.mxu0 }
 0xaeb   : > { %6687 = vst [vmem:[%s10458_s6 + $0x18] sm:$0xff] %v6569_v41  ;;  %v6561_v23 = vadd.f32 %v10453_v55, %v6560_v13 }
 0xaed   : > { %6685 = vst [vmem:[%s10458_s6 + $0x8] sm:$0xff] %v6561_v23 }
 0xaf4   : > { %v7524_v26 = vpop.f32.mrf.mxu0 }
 0xaf5   : > { %v6582_v49 = vadd.f32 %v7524_v26, %v10453_v55 }
 0xaf6   : > { %v6573_v43 = vpop.f32.mrf.mxu0 }
 0xaf7   : > { %6690 = vst [vmem:[%s10458_s6 + $0x30] sm:$0xff] %v6582_v49  ;;  %v6574_v44 = vadd.f32 %v10453_v55, %v6573_v43 }
 0xaf8   : > { %v7525_v5 = vpop.f32.mrf.mxu0 }
 0xaf9   : > { %6688 = vst [vmem:[%s10458_s6 + $0x20] sm:$0xff] %v6574_v44  ;;  %v6585_v36 = vadd.f32 %v7525_v5, %v10453_v55 }
 0xafa   : > { %v6576_v37 = vpop.f32.mrf.mxu0 }
 0xafb   : > { %6691 = vst [vmem:[%s10458_s6 + $0x38] sm:$0xff] %v6585_v36  ;;  %v6577_v1 = vadd.f32 %v10453_v55, %v6576_v37 }
 0xafd   : > { %6689 = vst [vmem:[%s10458_s6 + $0x28] sm:$0xff] %v6577_v1 }
 0xb04   : > { %v7528_v21 = vpop.f32.mrf.mxu0 }
 0xb05   : > { %v6598_v63 = vadd.f32 %v7528_v21, %v10453_v55 }
 0xb06   : > { %v6589_v59 = vpop.f32.mrf.mxu0 }
 0xb07   : > { %6694 = vst [vmem:[%s10458_s6 + $0x50] sm:$0xff] %v6598_v63  ;;  %v6590_v22 = vadd.f32 %v10453_v55, %v6589_v59 }
 0xb08   : > { %v7529_v62 = vpop.f32.mrf.mxu0 }
 0xb09   : > { %6692 = vst [vmem:[%s10458_s6 + $0x40] sm:$0xff] %v6590_v22  ;;  %v6601_v60 = vadd.f32 %v7529_v62, %v10453_v55 }
 0xb0a   : > { %v6592_v27 = vpop.f32.mrf.mxu0 }
 0xb0b   : > { %6695 = vst [vmem:[%s10458_s6 + $0x58] sm:$0xff] %v6601_v60  ;;  %v6593_v40 = vadd.f32 %v10453_v55, %v6592_v27 }
 0xb0d   : > { %6693 = vst [vmem:[%s10458_s6 + $0x48] sm:$0xff] %v6593_v40 }
 0xb14   : > { %v7532_v32 = vpop.f32.mrf.mxu0 }
 0xb15   : > { %v6614_v28 = vadd.f32 %v7532_v32, %v10453_v55 }
 0xb16   : > { %v6605_v54 = vpop.f32.mrf.mxu0 }
 0xb17   : > { %6698 = vst [vmem:[%s10458_s6 + $0x70] sm:$0xff] %v6614_v28  ;;  %v6606_v57 = vadd.f32 %v10453_v55, %v6605_v54 }
 0xb18   : > { %v7533_v18 = vpop.f32.mrf.mxu0 }
 0xb19   : > { %6696 = vst [vmem:[%s10458_s6 + $0x60] sm:$0xff] %v6606_v57  ;;  %v6617_v17 = vadd.f32 %v7533_v18, %v10453_v55 }
 0xb1a   : > { %v6608_v6 = vpop.f32.mrf.mxu0 }
 0xb1b   : > { %6699 = vst [vmem:[%s10458_s6 + $0x78] sm:$0xff] %v6617_v17  ;;  %v6609_v19 = vadd.f32 %v10453_v55, %v6608_v6 }
 0xb1d   : > { %6697 = vst [vmem:[%s10458_s6 + $0x68] sm:$0xff] %v6609_v19 }
 0xb24   : > { %v7536_v25 = vpop.f32.mrf.mxu0 }
 0xb25   : > { %v6630_v30 = vadd.f32 %v7536_v25, %v10453_v55 }
 0xb26   : > { %v6621_v35 = vpop.f32.mrf.mxu0 }
 0xb27   : > { %6702 = vst [vmem:[%s10458_s6 + $0x90] sm:$0xff] %v6630_v30  ;;  %v6622_v7 = vadd.f32 %v10453_v55, %v6621_v35 }
 0xb28   : > { %v7537_v24 = vpop.f32.mrf.mxu0 }
 0xb29   : > { %6700 = vst [vmem:[%s10458_s6 + $0x80] sm:$0xff] %v6622_v7  ;;  %v6633_v61 = vadd.f32 %v7537_v24, %v10453_v55 }
 0xb2a   : > { %v6624_v33 = vpop.f32.mrf.mxu0 }
 0xb2b   : > { %6703 = vst [vmem:[%s10458_s6 + $0x98] sm:$0xff] %v6633_v61  ;;  %v6625_v20 = vadd.f32 %v10453_v55, %v6624_v33 }
 0xb2d   : > { %6701 = vst [vmem:[%s10458_s6 + $0x88] sm:$0xff] %v6625_v20 }
 0xb34   : > { %v7540_v34 = vpop.f32.mrf.mxu0 }
 0xb35   : > { %v6646_v31 = vadd.f32 %v7540_v34, %v10453_v55 }
 0xb36   : > { %v6637_v48 = vpop.f32.mrf.mxu0 }
 0xb37   : > { %6706 = vst [vmem:[%s10458_s6 + $0xb0] sm:$0xff] %v6646_v31  ;;  %v6638_v2 = vadd.f32 %v10453_v55, %v6637_v48 }
 0xb38   : > { %v7541_v51 = vpop.f32.mrf.mxu0 }
 0xb39   : > { %6704 = vst [vmem:[%s10458_s6 + $0xa0] sm:$0xff] %v6638_v2  ;;  %v6649_v50 = vadd.f32 %v7541_v51, %v10453_v55 }
 0xb3a   : > { %v6640_v8 = vpop.f32.mrf.mxu0 }
 0xb3b   : > { %6707 = vst [vmem:[%s10458_s6 + $0xb8] sm:$0xff] %v6649_v50  ;;  %v6641_v3 = vadd.f32 %v10453_v55, %v6640_v8 }
 0xb3d   : > { %6705 = vst [vmem:[%s10458_s6 + $0xa8] sm:$0xff] %v6641_v3 }
 0xb44   : > { %v7544_v11 = vpop.f32.mrf.mxu1 }
 0xb45   : > { %v6662_v46 = vadd.f32 %v7544_v11, %v10453_v55 }
 0xb46   : > { %v6653_v9 = vpop.f32.mrf.mxu1 }
 0xb47   : > { %6710 = vst [vmem:[%s10458_s6 + $0xd0] sm:$0xff] %v6662_v46  ;;  %v6654_v45 = vadd.f32 %v10453_v55, %v6653_v9 }
 0xb48   : > { %v7545_v38 = vpop.f32.mrf.mxu1 }
 0xb49   : > { %6708 = vst [vmem:[%s10458_s6 + $0xc0] sm:$0xff] %v6654_v45  ;;  %v6665_v12 = vadd.f32 %v7545_v38, %v10453_v55 }
 0xb4a   : > { %v6656_v58 = vpop.f32.mrf.mxu1 }
 0xb4b   : > { %6711 = vst [vmem:[%s10458_s6 + $0xd8] sm:$0xff] %v6665_v12  ;;  %v6657_v39 = vadd.f32 %v10453_v55, %v6656_v58 }
 0xb4d   : > { %6709 = vst [vmem:[%s10458_s6 + $0xc8] sm:$0xff] %v6657_v39 }
 0xb54   : > { %v7548_v14 = vpop.f32.mrf.mxu1 }
 0xb55   : > { %v6678_v4 = vadd.f32 %v7548_v14, %v10453_v55 }
 0xb56   : > { %v6669_v53 = vpop.f32.mrf.mxu1 }
 0xb57   : > { %6714 = vst [vmem:[%s10458_s6 + $0xf0] sm:$0xff] %v6678_v4  ;;  %v6670_v56 = vadd.f32 %v10453_v55, %v6669_v53 }
 0xb58   : > { %v7549_v42 = vpop.f32.mrf.mxu1 }
 0xb59   : > { %6712 = vst [vmem:[%s10458_s6 + $0xe0] sm:$0xff] %v6670_v56  ;;  %v6681_v15 = vadd.f32 %v7549_v42, %v10453_v55 }
 0xb5a   : > { %v6672_v52 = vpop.f32.mrf.mxu1 }
 0xb5b   : > { %6715 = vst [vmem:[%s10458_s6 + $0xf8] sm:$0xff] %v6681_v15  ;;  %v6673_v47 = vadd.f32 %v10453_v55, %v6672_v52 }
 0xb5d   : > { %6713 = vst [vmem:[%s10458_s6 + $0xe8] sm:$0xff] %v6673_v47 }
 0xb5e   : > { %8722 = shalt.err (!%p8719_p12)
}
 0xb5f   : > { %s8723_s6 = scalar_lea.hbm %s10526_s20, 4096  ;;  %s8727_s10 = scalar_lea.hbm %s10721_s5, 16384 }
 0xb60   : > { %p8724_p4 = scmp.ne.s32.totalorder %s10526_s20, %s8723_s6  ;;  %p8728_p9 = scmp.lt.s32.totalorder %s10526_s20, %s10721_s5 }
 0xb61   : > { %p8729_p11 = scmp.lt.s32.totalorder %s8727_s10, %s8723_s6 }
 0xb62   : > { %p8725_p7 = pnand %p8724_p4, %p10722_p13 }
 0xb63   : > { %p8730_p5 = por %p8729_p11, %p8728_p9 }
 0xb64   : > { %p8726_p1 = pneg %p8725_p7 }
 0xb66   : > { %p8731_p3 = pnand %p8730_p5, %p8726_p1 }
 0xb68   : > { %8734 = shalt.err (!%p8731_p3)
}
 0xb69   : > { %s8884_s14 = smov 128   ;;  %s8885_s17 = smov 8  }
 0xb6a   : > { %7622 = dma.vmem_to_hbm [thread:$0]  (%p10722_p13), %s10528_s24, 4096, %s10526_s20, %s6717_s22, %s8884_s14, %s8884_s14, %s8885_s17  }
 0xb6b PF: > { %p7702_p6 = scmp.ge.s32.totalorder %s8861_s2, 2  ;;  %s6747_s1 = sand.u32 1, %s8833_s28  }
 0xb6c   : > { %p10723_p0 = scmp.ne.s32.totalorder %s10682_s25, 0  ;;  %s6748_s29 = scalar_lea.sflag [#allocation4], %s6747_s1 }
 0xb6e   : > { %p7672_p2 = pnand %p7702_p6, %p10723_p0 }
 0xb70   : > { %p7673_p8 = pneg %p7672_p2 }
 0xb72   : > { %8816 = dma.done.wait (%p7673_p8), %s6748_s29, 4096  }
 0xb73   : > { %8818 = vsyncadd (%p7673_p8), %s6748_s29, 4294963200  ;;  %s51_s2 = sadd.s32 1, %s8861_s2   ;;  %s10724_s18 = smov %s9308_s27 }
 0xb74   : > { %p48_p10 = scmp.ge.s32.totalorder %s51_s2, 6   ;;  %s10725_s27 = smov %s8825_s3 }
 0xb75   : > { %s10726_s3 = smov %s8829_s7  ;;  %s10727_s7 = smov %s10724_s18 }
 0xb76   : > { %s10728_s28 = smov %s8837_s8  ;;  %s10729_s8 = smov %s8841_s4 }
 0xb77   : > { %s10730_s4 = smov %s9284_s13  ;;  %s10731_s29 = smov %s8853_s9 }
 0xb78   : > { %s10732_s0 = smov %s8857_s30  ;;  %s10733_s9 = smov %s10736_s26 }
 0xb79   : > { %s10734_s30 = smov %s10740_s23  ;;  %50 = sbr.rel (!%p48_p10) target bundleno = 45 (0x2d), region = 234 }
 0xb7e   :  { %6753 = vsyncpa [#allocation3], 1 }
 0xb7f   :  { %6755 = vsyncpa [#allocation3 + $0x1], 1 }
 0xb80   :  { %6756 = vsyncpa [#allocation6], 1 }
 0xb81   :  { %6758 = vsyncpa [#allocation6 + $0x1], 1 }
 0xb82   :  { %6759 = vsyncpa [#allocation9], 1 }
 0xb83   :  { %6760 = vsyncpa [#allocation12], 1 }
 0xb84   :  { %6761 = vsyncpa [#allocation15], 1 }
 0xb85   :  { %6762 = vsyncpa [#allocation18], 1 }
 0xb86   :  { %6763 = vsyncpa [#allocation21], 1 }
 0xb87   :  { %6764 = vsyncpa [#allocation24], 1 }
 0xb88   :  { %6765 = vsyncpa [#allocation4], 1 }
 0xb89   :  { %6767 = vsyncpa [#allocation4 + $0x1], 1 }

</bundles_post_ra>
